<compile_context>
chip_gen: v7x
topology: tpu7x:2x2x1
jax: 0.10.0
libtpu: 0.0.40
codegen_flags: <defaults>
</compile_context>

<pallas_src>
import jax
import jax.numpy as jnp
from jax import lax
from jax.experimental import pallas as pl
from jax.experimental.pallas import tpu as pltpu


def _batch_split(B):
    # Give megacore (v7x: 2 TCs/chip) a 'parallel' batch axis when the batch can be
    # split into sublane-aligned halves; otherwise a single block.
    return 2 if (B % 16 == 0) else 1


# ----------------------------------------------------------------------------
# Fused encoder kernel: all 8 shared-weight layers in one kernel.
#   layer0(fwd) + layer1(x.flip(0)) summed, then 6 residual layers.
# ----------------------------------------------------------------------------
def encoder_kernel(x_ref, wih_ref, whh_ref, b_ref, y_ref, gates_sc):
    S, B, D = x_ref.shape
    f32 = jnp.float32
    bf16 = jnp.bfloat16

    def compute_gates(src_ref):
        # Hoisted input projection: one big GEMM over the whole sequence.
        xs = src_ref[...].reshape(S * B, D).astype(bf16)
        g = jnp.dot(xs, wih_ref[...], preferred_element_type=f32) + b_ref[...]
        gates_sc[...] = g.reshape(S, B, 4 * D)

    def cell(gate_x, h, c):
        g = gate_x + jnp.dot(h.astype(bf16), whh_ref[...],
                             preferred_element_type=f32)
        i = jax.nn.sigmoid(g[:, 0 * D:1 * D])
        f = jax.nn.sigmoid(g[:, 1 * D:2 * D])
        gg = jnp.tanh(g[:, 2 * D:3 * D])
        o = jax.nn.sigmoid(g[:, 3 * D:4 * D])
        c_new = f * c + i * gg
        h_new = o * jnp.tanh(c_new)
        return h_new, c_new

    zeros = jnp.zeros((B, D), f32)

    # --- layers 0 (forward) and 1 (on x.flip(0)): shared weights & shared gates ---
    compute_gates(x_ref)

    def fwd_body(t, carry):
        h, c = cell(gates_sc[t], *carry)
        y_ref[t] = h
        return (h, c)

    lax.fori_loop(0, S, fwd_body, (zeros, zeros))

    def bkd_body(t, carry):
        h, c = cell(gates_sc[S - 1 - t], *carry)
        y_ref[t] = y_ref[t] + h            # x = x_fwd + x_bkd (no re-flip, as in torch)
        return (h, c)

    lax.fori_loop(0, S, bkd_body, (zeros, zeros))

    # --- layers 2..7: residual layers, same shared weights, residual fused ---
    for _ in range(6):
        compute_gates(y_ref)

        def res_body(t, carry):
            h, c = cell(gates_sc[t], *carry)
            y_ref[t] = y_ref[t] + h        # fused residual add (gates already cached)
            return (h, c)

        lax.fori_loop(0, S, res_body, (zeros, zeros))


def encode(x, enc_params):
    """x: [S, B, D] f32 -> encoder output [S, B, D] f32."""
    S, B, D = x.shape
    wih, whh, b = enc_params
    nb = _batch_split(B)
    bb = B // nb
    return pl.pallas_call(
        encoder_kernel,
        out_shape=jax.ShapeDtypeStruct((S, B, D), jnp.float32),
        grid=(nb,),
        in_specs=[
            pl.BlockSpec((S, bb, D), lambda ib: (0, ib, 0)),   # x
            pl.BlockSpec((D, 4 * D), lambda ib: (0, 0)),       # W_ih^T (bf16, resident)
            pl.BlockSpec((D, 4 * D), lambda ib: (0, 0)),       # W_hh^T (bf16, resident)
            pl.BlockSpec((1, 4 * D), lambda ib: (0, 0)),       # b_ih + b_hh (f32)
        ],
        out_specs=pl.BlockSpec((S, bb, D), lambda ib: (0, ib, 0)),
        scratch_shapes=[pltpu.VMEM((S, bb, 4 * D), jnp.float32)],
        compiler_params=pltpu.CompilerParams(
            dimension_semantics=("parallel",)),
    )(x, wih, whh, b)


# ----------------------------------------------------------------------------
# Fused decoder kernel: one grid step per output token = 8 shared-weight LSTM
# cells (per-layer h/c in VMEM scratch, residuals fused) + Luong attention.
# ----------------------------------------------------------------------------
def decode_kernel(y0_ref, ctx_ref, wih_ref, whh_ref, b_ref,
                  win_ref, wc_ref, wq_ref,
                  ys_ref, h_sc, c_sc, y_sc):
    t = pl.program_id(1)
    B, D = y0_ref.shape
    n_layers = h_sc.shape[0]
    f32 = jnp.float32
    bf16 = jnp.bfloat16

    @pl.when(t == 0)
    def _():
        h_sc[...] = jnp.zeros_like(h_sc)
        c_sc[...] = jnp.zeros_like(c_sc)
        y_sc[...] = y0_ref[...]

    y = y_sc[...]
    for layer in range(n_layers):          # one shared weight set across all 8 layers
        res = y
        h = h_sc[layer]
        c = c_sc[layer]
        gates = (jnp.dot(y.astype(bf16), wih_ref[...], preferred_element_type=f32)
                 + jnp.dot(h.astype(bf16), whh_ref[...], preferred_element_type=f32)
                 + b_ref[...])
        i = jax.nn.sigmoid(gates[:, 0 * D:1 * D])
        f = jax.nn.sigmoid(gates[:, 1 * D:2 * D])
        g = jnp.tanh(gates[:, 2 * D:3 * D])
        o = jax.nn.sigmoid(gates[:, 3 * D:4 * D])
        c = f * c + i * g
        h = o * jnp.tanh(c)
        h_sc[layer] = h
        c_sc[layer] = c
        y = h + res                        # fused residual add

    # ---- attention (Q = 1): linear_in, softmax over S, context, split linear_out ----
    ctx = ctx_ref[...]                                                   # [B, S, D] bf16
    qin = jnp.dot(y.astype(bf16), win_ref[...], preferred_element_type=f32)   # [B, D]
    score = jnp.einsum('bqd,bsd->bqs', qin[:, None, :].astype(ctx.dtype), ctx,
                       preferred_element_type=f32)                      # [B, 1, S]
    score = jax.nn.softmax(score, axis=-1)
    ctxv = jnp.einsum('bqs,bsd->bqd', score.astype(ctx.dtype), ctx,
                      preferred_element_type=f32)[:, 0, :]              # [B, D]
    # linear_out on cat([ctx, qin]) done as two dots into one accumulator (no concat).
    out = jnp.tanh(
        jnp.dot(ctxv.astype(bf16), wc_ref[...], preferred_element_type=f32)
        + jnp.dot(qin.astype(bf16), wq_ref[...], preferred_element_type=f32))

    y_sc[...] = out                        # next step's decoder input
    ys_ref[0] = out.astype(ys_ref.dtype)


def decode_attend(y0, ctx_bsd, dec_params, attn_params, n_layers=8):
    """y0: [B, D] first-step decoder input; ctx_bsd: [B, S, D] bf16 encoder output."""
    B, D = y0.shape
    S = ctx_bsd.shape[1]
    wih, whh, b = dec_params
    win, wc, wq = attn_params
    nb = _batch_split(B)
    bb = B // nb
    return pl.pallas_call(
        decode_kernel,
        out_shape=jax.ShapeDtypeStruct((S, B, D), jnp.float32),
        grid=(nb, S),
        in_specs=[
            pl.BlockSpec((bb, D), lambda ib, t: (ib, 0)),            # y0
            pl.BlockSpec((bb, S, D), lambda ib, t: (ib, 0, 0)),      # context (bf16, resident)
            pl.BlockSpec((D, 4 * D), lambda ib, t: (0, 0)),          # W_ih^T
            pl.BlockSpec((D, 4 * D), lambda ib, t: (0, 0)),          # W_hh^T
            pl.BlockSpec((1, 4 * D), lambda ib, t: (0, 0)),          # bias
            pl.BlockSpec((D, D), lambda ib, t: (0, 0)),              # linear_in^T
            pl.BlockSpec((D, D), lambda ib, t: (0, 0)),              # linear_out^T (ctx half)
            pl.BlockSpec((D, D), lambda ib, t: (0, 0)),              # linear_out^T (q half)
        ],
        out_specs=pl.BlockSpec((1, bb, D), lambda ib, t: (t, ib, 0)),
        scratch_shapes=[
            pltpu.VMEM((n_layers, bb, D), jnp.float32),   # per-layer h
            pltpu.VMEM((n_layers, bb, D), jnp.float32),   # per-layer c
            pltpu.VMEM((bb, D), jnp.float32),             # current step input / output
        ],
        compiler_params=pltpu.CompilerParams(
            dimension_semantics=("parallel", "arbitrary")),
    )(y0, ctx_bsd, wih, whh, b, win, wc, wq)


# ----------------------------------------------------------------------------
# GNMT forward glue (matches GNMT.encode / GNMT.decode / GNMT.forward).
# ----------------------------------------------------------------------------
def gnmt_forward(params, x_ids):
    """x_ids: int32 [S, B] token ids (already tokenized & padded)."""
    x = jnp.take(params['src_embed'], x_ids, axis=0)                   # [S, B, D]
    ctx = encode(x, params['enc_lstm'])                                # [S, B, D] f32
    ctx_bsd = jnp.transpose(ctx, (1, 0, 2)).astype(jnp.bfloat16)       # batch-major, once
    # TODO(synk): torch forward feeds raw int ids x[:1] straight into the decoder LSTM;
    # here they are embedded with trg_embed so the LSTM gets dim-sized float vectors.
    y0 = jnp.take(params['trg_embed'], x_ids[0], axis=0)               # [B, D]
    ys = decode_attend(y0, ctx_bsd, params['dec_lstm'], params['attn'])
    # TODO(synk): torch cats the raw id row y[0] with float attn outputs (dtype/shape
    # mismatch in the original); we return only the S attention outputs -> [S, B, D].
    return ys


# ----------------------------------------------------------------------------
# Deterministic parameter init (shapes per GNMT.__init__; no checkpoint load).
# ----------------------------------------------------------------------------
def init_params(key, dim, src_vocab, trg_vocab):
    ks = jax.random.split(key, 6)
    scale = 0.1
    bf16 = jnp.bfloat16

    def norm(k, shape):
        return jax.random.normal(k, shape, jnp.float32) * scale

    def lstm_p(k):
        k1, k2, k3, k4 = jax.random.split(k, 4)
        wih = norm(k1, (4 * dim, dim))                 # torch weight_ih_l0
        whh = norm(k2, (4 * dim, dim))                 # torch weight_hh_l0
        bih = norm(k3, (4 * dim,))
        bhh = norm(k4, (4 * dim,))
        return (wih.T.astype(bf16), whh.T.astype(bf16),
                (bih + bhh).reshape(1, 4 * dim))       # bias kept f32

    wout_t = norm(ks[5], (dim, 2 * dim)).T             # linear_out.weight^T: [2D, D]
    return {
        'src_embed': norm(ks[0], (src_vocab, dim)),
        'trg_embed': norm(ks[1], (trg_vocab, dim)),
        'enc_lstm': lstm_p(ks[2]),                     # one LSTM shared by all 8 enc layers
        'dec_lstm': lstm_p(ks[3]),                     # one LSTM shared by all 8 dec layers
        'attn': (norm(ks[4], (dim, dim)).T.astype(bf16),   # linear_in.weight^T
                 wout_t[:dim].astype(bf16),                # linear_out^T, ctx half
                 wout_t[dim:].astype(bf16)),               # linear_out^T, q half
        # proj (dim -> trg_vocab) exists in the module but is unused by forward().
    }


if __name__ == "__main__":
    # (8,128)-aligned toy sizes: B=8 fills the sublanes, D=128 fills the lanes so
    # every gate slice is lane-register aligned and all stores are unmasked.
    S, B, D = 8, 8, 128
    SRC_VOCAB, TRG_VOCAB = 64, 64

    key = jax.random.PRNGKey(0)
    pkey, dkey = jax.random.split(key)
    params = init_params(pkey, D, SRC_VOCAB, TRG_VOCAB)
    x_ids = jax.random.randint(dkey, (S, B), 0, SRC_VOCAB, dtype=jnp.int32)

    fwd = jax.jit(gnmt_forward)
    out = fwd(params, x_ids)
    jax.block_until_ready(out)
    assert out.shape == (S, B, D) and out.dtype == jnp.float32
    print("KERNEL_OK")
</pallas_src>

<mosaic_0001>
module attributes {stable_mosaic.version = 11 : i64} {
  func.func @encoder_kernel(%arg0: i32, %arg1: memref<8x8x128xf32, #tpu.memory_space<vmem>>, %arg2: memref<128x512xbf16, #tpu.memory_space<vmem>>, %arg3: memref<128x512xbf16, #tpu.memory_space<vmem>>, %arg4: memref<1x512xf32, #tpu.memory_space<vmem>>, %arg5: memref<8x8x128xf32, #tpu.memory_space<vmem>>, %arg6: memref<8x8x512xf32, #tpu.memory_space<vmem>>) attributes {dimension_semantics = [#tpu.dimension_semantics<parallel>], iteration_bounds = array<i64: 1>, scalar_prefetch = 0 : i64, scratch_operands = 1 : i64, tpu.core_type = #tpu.core_type<tc>, window_params = [{transform_indices = @transform_0, window_bounds = array<i64: 8, 8, 128>}, {pipeline_mode = #tpu.pipeline_mode<synchronous>, transform_indices = @transform_1, window_bounds = array<i64: 128, 512>}, {pipeline_mode = #tpu.pipeline_mode<synchronous>, transform_indices = @transform_2, window_bounds = array<i64: 128, 512>}, {pipeline_mode = #tpu.pipeline_mode<synchronous>, transform_indices = @transform_3, window_bounds = array<i64: 1, 512>}, {transform_indices = @transform_4, window_bounds = array<i64: 8, 8, 128>}]} {
    %cst = arith.constant 0.000000e+00 : f32
    %0 = vector.broadcast %cst : f32 to vector<8x128xf32>
    %c0 = arith.constant 0 : index
    %c0_0 = arith.constant 0 : index
    %c0_1 = arith.constant 0 : index
    %1 = vector.load %arg1[%c0, %c0_0, %c0_1] : memref<8x8x128xf32, #tpu.memory_space<vmem>>, vector<8x8x128xf32>
    %2 = vector.shape_cast %1 : vector<8x8x128xf32> to vector<64x128xf32>
    %3 = arith.truncf %2 : vector<64x128xf32> to vector<64x128xbf16>
    %c0_2 = arith.constant 0 : index
    %c0_3 = arith.constant 0 : index
    %4 = vector.load %arg2[%c0_2, %c0_3] : memref<128x512xbf16, #tpu.memory_space<vmem>>, vector<128x512xbf16>
    %cst_4 = arith.constant dense<0.000000e+00> : vector<64x512xf32>
    %5 = tpu.matmul %3, %4, %cst_4 {dimension_numbers = #tpu.dot_dimension_numbers<[1], [0], [0], [1], [0, 0, 1, 1], [], []>} : vector<64x128xbf16>, vector<128x512xbf16>, vector<64x512xf32> -> vector<64x512xf32>
    %c0_5 = arith.constant 0 : index
    %c0_6 = arith.constant 0 : index
    %6 = vector.load %arg4[%c0_5, %c0_6] : memref<1x512xf32, #tpu.memory_space<vmem>>, vector<1x512xf32>
    %7 = vector.broadcast %6 : vector<1x512xf32> to vector<64x512xf32>
    %8 = arith.addf %5, %7 : vector<64x512xf32>
    %9 = vector.shape_cast %8 : vector<64x512xf32> to vector<8x8x512xf32>
    %c0_7 = arith.constant 0 : index
    %c0_8 = arith.constant 0 : index
    %c0_9 = arith.constant 0 : index
    %10 = vector.load %arg6[%c0_7, %c0_8, %c0_9] : memref<8x8x512xf32, #tpu.memory_space<vmem>>, vector<8x8x512xf32>
    tpu.vector_store %arg6[%c0_7, %c0_8, %c0_9], %9 {strides = array<i32>} : memref<8x8x512xf32, #tpu.memory_space<vmem>>, vector<8x8x512xf32>,
    %c0_i32 = arith.constant 0 : i32
    %c8_i32 = arith.constant 8 : i32
    %11 = arith.addi %c0_i32, %c8_i32 : i32
    %c1_i32 = arith.constant 1 : i32
    %12:2 = scf.for %arg7 = %c0_i32 to %11 step %c1_i32 iter_args(%arg8 = %0, %arg9 = %0) -> (vector<8x128xf32>, vector<8x128xf32>)  : i32 {
      %87 = arith.index_cast %arg7 : i32 to index
      %c0_105 = arith.constant 0 : index
      %c0_106 = arith.constant 0 : index
      %88 = vector.load %arg6[%87, %c0_105, %c0_106] : memref<8x8x512xf32, #tpu.memory_space<vmem>>, vector<1x8x512xf32>
      %89 = vector.shape_cast %88 : vector<1x8x512xf32> to vector<8x512xf32>
      %90 = arith.truncf %arg8 : vector<8x128xf32> to vector<8x128xbf16>
      %c0_107 = arith.constant 0 : index
      %c0_108 = arith.constant 0 : index
      %91 = vector.load %arg3[%c0_107, %c0_108] : memref<128x512xbf16, #tpu.memory_space<vmem>>, vector<128x512xbf16>
      %cst_109 = arith.constant dense<0.000000e+00> : vector<8x512xf32>
      %92 = tpu.matmul %90, %91, %cst_109 {dimension_numbers = #tpu.dot_dimension_numbers<[1], [0], [0], [1], [0, 0, 1, 1], [], []>} : vector<8x128xbf16>, vector<128x512xbf16>, vector<8x512xf32> -> vector<8x512xf32>
      %93 = arith.addf %89, %92 : vector<8x512xf32>
      %94 = vector.extract_strided_slice %93 {offsets = [0, 0], sizes = [8, 128], strides = [1, 1]} : vector<8x512xf32> to vector<8x128xf32>
      %95 = arith.negf %94 : vector<8x128xf32>
      %96 = math.exp %95 : vector<8x128xf32>
      %cst_110 = arith.constant 1.000000e+00 : f32
      %97 = vector.broadcast %cst_110 : f32 to vector<8x128xf32>
      %98 = arith.addf %97, %96 : vector<8x128xf32>
      %99 = arith.divf %97, %98 : vector<8x128xf32>
      %100 = vector.extract_strided_slice %93 {offsets = [0, 128], sizes = [8, 128], strides = [1, 1]} : vector<8x512xf32> to vector<8x128xf32>
      %101 = arith.negf %100 : vector<8x128xf32>
      %102 = math.exp %101 : vector<8x128xf32>
      %cst_111 = arith.constant 1.000000e+00 : f32
      %103 = vector.broadcast %cst_111 : f32 to vector<8x128xf32>
      %104 = arith.addf %103, %102 : vector<8x128xf32>
      %105 = arith.divf %103, %104 : vector<8x128xf32>
      %106 = vector.extract_strided_slice %93 {offsets = [0, 256], sizes = [8, 128], strides = [1, 1]} : vector<8x512xf32> to vector<8x128xf32>
      %107 = math.tanh %106 : vector<8x128xf32>
      %108 = vector.extract_strided_slice %93 {offsets = [0, 384], sizes = [8, 128], strides = [1, 1]} : vector<8x512xf32> to vector<8x128xf32>
      %109 = arith.negf %108 : vector<8x128xf32>
      %110 = math.exp %109 : vector<8x128xf32>
      %cst_112 = arith.constant 1.000000e+00 : f32
      %111 = vector.broadcast %cst_112 : f32 to vector<8x128xf32>
      %112 = arith.addf %111, %110 : vector<8x128xf32>
      %113 = arith.divf %111, %112 : vector<8x128xf32>
      %114 = arith.mulf %105, %arg9 : vector<8x128xf32>
      %115 = arith.mulf %99, %107 : vector<8x128xf32>
      %116 = arith.addf %114, %115 : vector<8x128xf32>
      %117 = math.tanh %116 : vector<8x128xf32>
      %118 = arith.mulf %113, %117 : vector<8x128xf32>
      %119 = arith.index_cast %arg7 : i32 to index
      %c0_113 = arith.constant 0 : index
      %c0_114 = arith.constant 0 : index
      %120 = vector.load %arg5[%119, %c0_113, %c0_114] : memref<8x8x128xf32, #tpu.memory_space<vmem>>, vector<1x8x128xf32>
      %121 = vector.shape_cast %120 : vector<1x8x128xf32> to vector<8x128xf32>
      %122 = vector.shape_cast %118 : vector<8x128xf32> to vector<1x8x128xf32>
      tpu.vector_store %arg5[%119, %c0_113, %c0_114], %122 {strides = array<i32>} : memref<8x8x128xf32, #tpu.memory_space<vmem>>, vector<1x8x128xf32>,
      scf.yield %118, %116 : vector<8x128xf32>, vector<8x128xf32>
    }
    %c8_i32_10 = arith.constant 8 : i32
    %c0_i32_11 = arith.constant 0 : i32
    %c8_i32_12 = arith.constant 8 : i32
    %13 = arith.addi %c0_i32_11, %c8_i32_12 : i32
    %c1_i32_13 = arith.constant 1 : i32
    %14:2 = scf.for %arg7 = %c0_i32_11 to %13 step %c1_i32_13 iter_args(%arg8 = %0, %arg9 = %0) -> (vector<8x128xf32>, vector<8x128xf32>)  : i32 {
      %c7_i32 = arith.constant 7 : i32
      %87 = arith.subi %c7_i32, %arg7 : i32
      %88 = arith.index_cast %87 : i32 to index
      %c0_105 = arith.constant 0 : index
      %c0_106 = arith.constant 0 : index
      %89 = vector.load %arg6[%88, %c0_105, %c0_106] : memref<8x8x512xf32, #tpu.memory_space<vmem>>, vector<1x8x512xf32>
      %90 = vector.shape_cast %89 : vector<1x8x512xf32> to vector<8x512xf32>
      %91 = arith.truncf %arg8 : vector<8x128xf32> to vector<8x128xbf16>
      %c0_107 = arith.constant 0 : index
      %c0_108 = arith.constant 0 : index
      %92 = vector.load %arg3[%c0_107, %c0_108] : memref<128x512xbf16, #tpu.memory_space<vmem>>, vector<128x512xbf16>
      %cst_109 = arith.constant dense<0.000000e+00> : vector<8x512xf32>
      %93 = tpu.matmul %91, %92, %cst_109 {dimension_numbers = #tpu.dot_dimension_numbers<[1], [0], [0], [1], [0, 0, 1, 1], [], []>} : vector<8x128xbf16>, vector<128x512xbf16>, vector<8x512xf32> -> vector<8x512xf32>
      %94 = arith.addf %90, %93 : vector<8x512xf32>
      %95 = vector.extract_strided_slice %94 {offsets = [0, 0], sizes = [8, 128], strides = [1, 1]} : vector<8x512xf32> to vector<8x128xf32>
      %96 = arith.negf %95 : vector<8x128xf32>
      %97 = math.exp %96 : vector<8x128xf32>
      %cst_110 = arith.constant 1.000000e+00 : f32
      %98 = vector.broadcast %cst_110 : f32 to vector<8x128xf32>
      %99 = arith.addf %98, %97 : vector<8x128xf32>
      %100 = arith.divf %98, %99 : vector<8x128xf32>
      %101 = vector.extract_strided_slice %94 {offsets = [0, 128], sizes = [8, 128], strides = [1, 1]} : vector<8x512xf32> to vector<8x128xf32>
      %102 = arith.negf %101 : vector<8x128xf32>
      %103 = math.exp %102 : vector<8x128xf32>
      %cst_111 = arith.constant 1.000000e+00 : f32
      %104 = vector.broadcast %cst_111 : f32 to vector<8x128xf32>
      %105 = arith.addf %104, %103 : vector<8x128xf32>
      %106 = arith.divf %104, %105 : vector<8x128xf32>
      %107 = vector.extract_strided_slice %94 {offsets = [0, 256], sizes = [8, 128], strides = [1, 1]} : vector<8x512xf32> to vector<8x128xf32>
      %108 = math.tanh %107 : vector<8x128xf32>
      %109 = vector.extract_strided_slice %94 {offsets = [0, 384], sizes = [8, 128], strides = [1, 1]} : vector<8x512xf32> to vector<8x128xf32>
      %110 = arith.negf %109 : vector<8x128xf32>
      %111 = math.exp %110 : vector<8x128xf32>
      %cst_112 = arith.constant 1.000000e+00 : f32
      %112 = vector.broadcast %cst_112 : f32 to vector<8x128xf32>
      %113 = arith.addf %112, %111 : vector<8x128xf32>
      %114 = arith.divf %112, %113 : vector<8x128xf32>
      %115 = arith.mulf %106, %arg9 : vector<8x128xf32>
      %116 = arith.mulf %100, %108 : vector<8x128xf32>
      %117 = arith.addf %115, %116 : vector<8x128xf32>
      %118 = math.tanh %117 : vector<8x128xf32>
      %119 = arith.mulf %114, %118 : vector<8x128xf32>
      %120 = arith.index_cast %arg7 : i32 to index
      %c0_113 = arith.constant 0 : index
      %c0_114 = arith.constant 0 : index
      %121 = vector.load %arg5[%120, %c0_113, %c0_114] : memref<8x8x128xf32, #tpu.memory_space<vmem>>, vector<1x8x128xf32>
      %122 = vector.shape_cast %121 : vector<1x8x128xf32> to vector<8x128xf32>
      %123 = arith.addf %122, %119 : vector<8x128xf32>
      %124 = arith.index_cast %arg7 : i32 to index
      %c0_115 = arith.constant 0 : index
      %c0_116 = arith.constant 0 : index
      %125 = vector.load %arg5[%124, %c0_115, %c0_116] : memref<8x8x128xf32, #tpu.memory_space<vmem>>, vector<1x8x128xf32>
      %126 = vector.shape_cast %125 : vector<1x8x128xf32> to vector<8x128xf32>
      %127 = vector.shape_cast %123 : vector<8x128xf32> to vector<1x8x128xf32>
      tpu.vector_store %arg5[%124, %c0_115, %c0_116], %127 {strides = array<i32>} : memref<8x8x128xf32, #tpu.memory_space<vmem>>, vector<1x8x128xf32>,
      scf.yield %119, %117 : vector<8x128xf32>, vector<8x128xf32>
    }
    %c8_i32_14 = arith.constant 8 : i32
    %c0_15 = arith.constant 0 : index
    %c0_16 = arith.constant 0 : index
    %c0_17 = arith.constant 0 : index
    %15 = vector.load %arg5[%c0_15, %c0_16, %c0_17] : memref<8x8x128xf32, #tpu.memory_space<vmem>>, vector<8x8x128xf32>
    %16 = vector.shape_cast %15 : vector<8x8x128xf32> to vector<64x128xf32>
    %17 = arith.truncf %16 : vector<64x128xf32> to vector<64x128xbf16>
    %c0_18 = arith.constant 0 : index
    %c0_19 = arith.constant 0 : index
    %18 = vector.load %arg2[%c0_18, %c0_19] : memref<128x512xbf16, #tpu.memory_space<vmem>>, vector<128x512xbf16>
    %cst_20 = arith.constant dense<0.000000e+00> : vector<64x512xf32>
    %19 = tpu.matmul %17, %18, %cst_20 {dimension_numbers = #tpu.dot_dimension_numbers<[1], [0], [0], [1], [0, 0, 1, 1], [], []>} : vector<64x128xbf16>, vector<128x512xbf16>, vector<64x512xf32> -> vector<64x512xf32>
    %c0_21 = arith.constant 0 : index
    %c0_22 = arith.constant 0 : index
    %20 = vector.load %arg4[%c0_21, %c0_22] : memref<1x512xf32, #tpu.memory_space<vmem>>, vector<1x512xf32>
    %21 = vector.broadcast %20 : vector<1x512xf32> to vector<64x512xf32>
    %22 = arith.addf %19, %21 : vector<64x512xf32>
    %23 = vector.shape_cast %22 : vector<64x512xf32> to vector<8x8x512xf32>
    %c0_23 = arith.constant 0 : index
    %c0_24 = arith.constant 0 : index
    %c0_25 = arith.constant 0 : index
    %24 = vector.load %arg6[%c0_23, %c0_24, %c0_25] : memref<8x8x512xf32, #tpu.memory_space<vmem>>, vector<8x8x512xf32>
    tpu.vector_store %arg6[%c0_23, %c0_24, %c0_25], %23 {strides = array<i32>} : memref<8x8x512xf32, #tpu.memory_space<vmem>>, vector<8x8x512xf32>,
    %c0_i32_26 = arith.constant 0 : i32
    %c8_i32_27 = arith.constant 8 : i32
    %25 = arith.addi %c0_i32_26, %c8_i32_27 : i32
    %c1_i32_28 = arith.constant 1 : i32
    %26:2 = scf.for %arg7 = %c0_i32_26 to %25 step %c1_i32_28 iter_args(%arg8 = %0, %arg9 = %0) -> (vector<8x128xf32>, vector<8x128xf32>)  : i32 {
      %87 = arith.index_cast %arg7 : i32 to index
      %c0_105 = arith.constant 0 : index
      %c0_106 = arith.constant 0 : index
      %88 = vector.load %arg6[%87, %c0_105, %c0_106] : memref<8x8x512xf32, #tpu.memory_space<vmem>>, vector<1x8x512xf32>
      %89 = vector.shape_cast %88 : vector<1x8x512xf32> to vector<8x512xf32>
      %90 = arith.truncf %arg8 : vector<8x128xf32> to vector<8x128xbf16>
      %c0_107 = arith.constant 0 : index
      %c0_108 = arith.constant 0 : index
      %91 = vector.load %arg3[%c0_107, %c0_108] : memref<128x512xbf16, #tpu.memory_space<vmem>>, vector<128x512xbf16>
      %cst_109 = arith.constant dense<0.000000e+00> : vector<8x512xf32>
      %92 = tpu.matmul %90, %91, %cst_109 {dimension_numbers = #tpu.dot_dimension_numbers<[1], [0], [0], [1], [0, 0, 1, 1], [], []>} : vector<8x128xbf16>, vector<128x512xbf16>, vector<8x512xf32> -> vector<8x512xf32>
      %93 = arith.addf %89, %92 : vector<8x512xf32>
      %94 = vector.extract_strided_slice %93 {offsets = [0, 0], sizes = [8, 128], strides = [1, 1]} : vector<8x512xf32> to vector<8x128xf32>
      %95 = arith.negf %94 : vector<8x128xf32>
      %96 = math.exp %95 : vector<8x128xf32>
      %cst_110 = arith.constant 1.000000e+00 : f32
      %97 = vector.broadcast %cst_110 : f32 to vector<8x128xf32>
      %98 = arith.addf %97, %96 : vector<8x128xf32>
      %99 = arith.divf %97, %98 : vector<8x128xf32>
      %100 = vector.extract_strided_slice %93 {offsets = [0, 128], sizes = [8, 128], strides = [1, 1]} : vector<8x512xf32> to vector<8x128xf32>
      %101 = arith.negf %100 : vector<8x128xf32>
      %102 = math.exp %101 : vector<8x128xf32>
      %cst_111 = arith.constant 1.000000e+00 : f32
      %103 = vector.broadcast %cst_111 : f32 to vector<8x128xf32>
      %104 = arith.addf %103, %102 : vector<8x128xf32>
      %105 = arith.divf %103, %104 : vector<8x128xf32>
      %106 = vector.extract_strided_slice %93 {offsets = [0, 256], sizes = [8, 128], strides = [1, 1]} : vector<8x512xf32> to vector<8x128xf32>
      %107 = math.tanh %106 : vector<8x128xf32>
      %108 = vector.extract_strided_slice %93 {offsets = [0, 384], sizes = [8, 128], strides = [1, 1]} : vector<8x512xf32> to vector<8x128xf32>
      %109 = arith.negf %108 : vector<8x128xf32>
      %110 = math.exp %109 : vector<8x128xf32>
      %cst_112 = arith.constant 1.000000e+00 : f32
      %111 = vector.broadcast %cst_112 : f32 to vector<8x128xf32>
      %112 = arith.addf %111, %110 : vector<8x128xf32>
      %113 = arith.divf %111, %112 : vector<8x128xf32>
      %114 = arith.mulf %105, %arg9 : vector<8x128xf32>
      %115 = arith.mulf %99, %107 : vector<8x128xf32>
      %116 = arith.addf %114, %115 : vector<8x128xf32>
      %117 = math.tanh %116 : vector<8x128xf32>
      %118 = arith.mulf %113, %117 : vector<8x128xf32>
      %119 = arith.index_cast %arg7 : i32 to index
      %c0_113 = arith.constant 0 : index
      %c0_114 = arith.constant 0 : index
      %120 = vector.load %arg5[%119, %c0_113, %c0_114] : memref<8x8x128xf32, #tpu.memory_space<vmem>>, vector<1x8x128xf32>
      %121 = vector.shape_cast %120 : vector<1x8x128xf32> to vector<8x128xf32>
      %122 = arith.addf %121, %118 : vector<8x128xf32>
      %123 = arith.index_cast %arg7 : i32 to index
      %c0_115 = arith.constant 0 : index
      %c0_116 = arith.constant 0 : index
      %124 = vector.load %arg5[%123, %c0_115, %c0_116] : memref<8x8x128xf32, #tpu.memory_space<vmem>>, vector<1x8x128xf32>
      %125 = vector.shape_cast %124 : vector<1x8x128xf32> to vector<8x128xf32>
      %126 = vector.shape_cast %122 : vector<8x128xf32> to vector<1x8x128xf32>
      tpu.vector_store %arg5[%123, %c0_115, %c0_116], %126 {strides = array<i32>} : memref<8x8x128xf32, #tpu.memory_space<vmem>>, vector<1x8x128xf32>,
      scf.yield %118, %116 : vector<8x128xf32>, vector<8x128xf32>
    }
    %c8_i32_29 = arith.constant 8 : i32
    %c0_30 = arith.constant 0 : index
    %c0_31 = arith.constant 0 : index
    %c0_32 = arith.constant 0 : index
    %27 = vector.load %arg5[%c0_30, %c0_31, %c0_32] : memref<8x8x128xf32, #tpu.memory_space<vmem>>, vector<8x8x128xf32>
    %28 = vector.shape_cast %27 : vector<8x8x128xf32> to vector<64x128xf32>
    %29 = arith.truncf %28 : vector<64x128xf32> to vector<64x128xbf16>
    %c0_33 = arith.constant 0 : index
    %c0_34 = arith.constant 0 : index
    %30 = vector.load %arg2[%c0_33, %c0_34] : memref<128x512xbf16, #tpu.memory_space<vmem>>, vector<128x512xbf16>
    %cst_35 = arith.constant dense<0.000000e+00> : vector<64x512xf32>
    %31 = tpu.matmul %29, %30, %cst_35 {dimension_numbers = #tpu.dot_dimension_numbers<[1], [0], [0], [1], [0, 0, 1, 1], [], []>} : vector<64x128xbf16>, vector<128x512xbf16>, vector<64x512xf32> -> vector<64x512xf32>
    %c0_36 = arith.constant 0 : index
    %c0_37 = arith.constant 0 : index
    %32 = vector.load %arg4[%c0_36, %c0_37] : memref<1x512xf32, #tpu.memory_space<vmem>>, vector<1x512xf32>
    %33 = vector.broadcast %32 : vector<1x512xf32> to vector<64x512xf32>
    %34 = arith.addf %31, %33 : vector<64x512xf32>
    %35 = vector.shape_cast %34 : vector<64x512xf32> to vector<8x8x512xf32>
    %c0_38 = arith.constant 0 : index
    %c0_39 = arith.constant 0 : index
    %c0_40 = arith.constant 0 : index
    %36 = vector.load %arg6[%c0_38, %c0_39, %c0_40] : memref<8x8x512xf32, #tpu.memory_space<vmem>>, vector<8x8x512xf32>
    tpu.vector_store %arg6[%c0_38, %c0_39, %c0_40], %35 {strides = array<i32>} : memref<8x8x512xf32, #tpu.memory_space<vmem>>, vector<8x8x512xf32>,
    %c0_i32_41 = arith.constant 0 : i32
    %c8_i32_42 = arith.constant 8 : i32
    %37 = arith.addi %c0_i32_41, %c8_i32_42 : i32
    %c1_i32_43 = arith.constant 1 : i32
    %38:2 = scf.for %arg7 = %c0_i32_41 to %37 step %c1_i32_43 iter_args(%arg8 = %0, %arg9 = %0) -> (vector<8x128xf32>, vector<8x128xf32>)  : i32 {
      %87 = arith.index_cast %arg7 : i32 to index
      %c0_105 = arith.constant 0 : index
      %c0_106 = arith.constant 0 : index
      %88 = vector.load %arg6[%87, %c0_105, %c0_106] : memref<8x8x512xf32, #tpu.memory_space<vmem>>, vector<1x8x512xf32>
      %89 = vector.shape_cast %88 : vector<1x8x512xf32> to vector<8x512xf32>
      %90 = arith.truncf %arg8 : vector<8x128xf32> to vector<8x128xbf16>
      %c0_107 = arith.constant 0 : index
      %c0_108 = arith.constant 0 : index
      %91 = vector.load %arg3[%c0_107, %c0_108] : memref<128x512xbf16, #tpu.memory_space<vmem>>, vector<128x512xbf16>
      %cst_109 = arith.constant dense<0.000000e+00> : vector<8x512xf32>
      %92 = tpu.matmul %90, %91, %cst_109 {dimension_numbers = #tpu.dot_dimension_numbers<[1], [0], [0], [1], [0, 0, 1, 1], [], []>} : vector<8x128xbf16>, vector<128x512xbf16>, vector<8x512xf32> -> vector<8x512xf32>
      %93 = arith.addf %89, %92 : vector<8x512xf32>
      %94 = vector.extract_strided_slice %93 {offsets = [0, 0], sizes = [8, 128], strides = [1, 1]} : vector<8x512xf32> to vector<8x128xf32>
      %95 = arith.negf %94 : vector<8x128xf32>
      %96 = math.exp %95 : vector<8x128xf32>
      %cst_110 = arith.constant 1.000000e+00 : f32
      %97 = vector.broadcast %cst_110 : f32 to vector<8x128xf32>
      %98 = arith.addf %97, %96 : vector<8x128xf32>
      %99 = arith.divf %97, %98 : vector<8x128xf32>
      %100 = vector.extract_strided_slice %93 {offsets = [0, 128], sizes = [8, 128], strides = [1, 1]} : vector<8x512xf32> to vector<8x128xf32>
      %101 = arith.negf %100 : vector<8x128xf32>
      %102 = math.exp %101 : vector<8x128xf32>
      %cst_111 = arith.constant 1.000000e+00 : f32
      %103 = vector.broadcast %cst_111 : f32 to vector<8x128xf32>
      %104 = arith.addf %103, %102 : vector<8x128xf32>
      %105 = arith.divf %103, %104 : vector<8x128xf32>
      %106 = vector.extract_strided_slice %93 {offsets = [0, 256], sizes = [8, 128], strides = [1, 1]} : vector<8x512xf32> to vector<8x128xf32>
      %107 = math.tanh %106 : vector<8x128xf32>
      %108 = vector.extract_strided_slice %93 {offsets = [0, 384], sizes = [8, 128], strides = [1, 1]} : vector<8x512xf32> to vector<8x128xf32>
      %109 = arith.negf %108 : vector<8x128xf32>
      %110 = math.exp %109 : vector<8x128xf32>
      %cst_112 = arith.constant 1.000000e+00 : f32
      %111 = vector.broadcast %cst_112 : f32 to vector<8x128xf32>
      %112 = arith.addf %111, %110 : vector<8x128xf32>
      %113 = arith.divf %111, %112 : vector<8x128xf32>
      %114 = arith.mulf %105, %arg9 : vector<8x128xf32>
      %115 = arith.mulf %99, %107 : vector<8x128xf32>
      %116 = arith.addf %114, %115 : vector<8x128xf32>
      %117 = math.tanh %116 : vector<8x128xf32>
      %118 = arith.mulf %113, %117 : vector<8x128xf32>
      %119 = arith.index_cast %arg7 : i32 to index
      %c0_113 = arith.constant 0 : index
      %c0_114 = arith.constant 0 : index
      %120 = vector.load %arg5[%119, %c0_113, %c0_114] : memref<8x8x128xf32, #tpu.memory_space<vmem>>, vector<1x8x128xf32>
      %121 = vector.shape_cast %120 : vector<1x8x128xf32> to vector<8x128xf32>
      %122 = arith.addf %121, %118 : vector<8x128xf32>
      %123 = arith.index_cast %arg7 : i32 to index
      %c0_115 = arith.constant 0 : index
      %c0_116 = arith.constant 0 : index
      %124 = vector.load %arg5[%123, %c0_115, %c0_116] : memref<8x8x128xf32, #tpu.memory_space<vmem>>, vector<1x8x128xf32>
      %125 = vector.shape_cast %124 : vector<1x8x128xf32> to vector<8x128xf32>
      %126 = vector.shape_cast %122 : vector<8x128xf32> to vector<1x8x128xf32>
      tpu.vector_store %arg5[%123, %c0_115, %c0_116], %126 {strides = array<i32>} : memref<8x8x128xf32, #tpu.memory_space<vmem>>, vector<1x8x128xf32>,
      scf.yield %118, %116 : vector<8x128xf32>, vector<8x128xf32>
    }
    %c8_i32_44 = arith.constant 8 : i32
    %c0_45 = arith.constant 0 : index
    %c0_46 = arith.constant 0 : index
    %c0_47 = arith.constant 0 : index
    %39 = vector.load %arg5[%c0_45, %c0_46, %c0_47] : memref<8x8x128xf32, #tpu.memory_space<vmem>>, vector<8x8x128xf32>
    %40 = vector.shape_cast %39 : vector<8x8x128xf32> to vector<64x128xf32>
    %41 = arith.truncf %40 : vector<64x128xf32> to vector<64x128xbf16>
    %c0_48 = arith.constant 0 : index
    %c0_49 = arith.constant 0 : index
    %42 = vector.load %arg2[%c0_48, %c0_49] : memref<128x512xbf16, #tpu.memory_space<vmem>>, vector<128x512xbf16>
    %cst_50 = arith.constant dense<0.000000e+00> : vector<64x512xf32>
    %43 = tpu.matmul %41, %42, %cst_50 {dimension_numbers = #tpu.dot_dimension_numbers<[1], [0], [0], [1], [0, 0, 1, 1], [], []>} : vector<64x128xbf16>, vector<128x512xbf16>, vector<64x512xf32> -> vector<64x512xf32>
    %c0_51 = arith.constant 0 : index
    %c0_52 = arith.constant 0 : index
    %44 = vector.load %arg4[%c0_51, %c0_52] : memref<1x512xf32, #tpu.memory_space<vmem>>, vector<1x512xf32>
    %45 = vector.broadcast %44 : vector<1x512xf32> to vector<64x512xf32>
    %46 = arith.addf %43, %45 : vector<64x512xf32>
    %47 = vector.shape_cast %46 : vector<64x512xf32> to vector<8x8x512xf32>
    %c0_53 = arith.constant 0 : index
    %c0_54 = arith.constant 0 : index
    %c0_55 = arith.constant 0 : index
    %48 = vector.load %arg6[%c0_53, %c0_54, %c0_55] : memref<8x8x512xf32, #tpu.memory_space<vmem>>, vector<8x8x512xf32>
    tpu.vector_store %arg6[%c0_53, %c0_54, %c0_55], %47 {strides = array<i32>} : memref<8x8x512xf32, #tpu.memory_space<vmem>>, vector<8x8x512xf32>,
    %c0_i32_56 = arith.constant 0 : i32
    %c8_i32_57 = arith.constant 8 : i32
    %49 = arith.addi %c0_i32_56, %c8_i32_57 : i32
    %c1_i32_58 = arith.constant 1 : i32
    %50:2 = scf.for %arg7 = %c0_i32_56 to %49 step %c1_i32_58 iter_args(%arg8 = %0, %arg9 = %0) -> (vector<8x128xf32>, vector<8x128xf32>)  : i32 {
      %87 = arith.index_cast %arg7 : i32 to index
      %c0_105 = arith.constant 0 : index
      %c0_106 = arith.constant 0 : index
      %88 = vector.load %arg6[%87, %c0_105, %c0_106] : memref<8x8x512xf32, #tpu.memory_space<vmem>>, vector<1x8x512xf32>
      %89 = vector.shape_cast %88 : vector<1x8x512xf32> to vector<8x512xf32>
      %90 = arith.truncf %arg8 : vector<8x128xf32> to vector<8x128xbf16>
      %c0_107 = arith.constant 0 : index
      %c0_108 = arith.constant 0 : index
      %91 = vector.load %arg3[%c0_107, %c0_108] : memref<128x512xbf16, #tpu.memory_space<vmem>>, vector<128x512xbf16>
      %cst_109 = arith.constant dense<0.000000e+00> : vector<8x512xf32>
      %92 = tpu.matmul %90, %91, %cst_109 {dimension_numbers = #tpu.dot_dimension_numbers<[1], [0], [0], [1], [0, 0, 1, 1], [], []>} : vector<8x128xbf16>, vector<128x512xbf16>, vector<8x512xf32> -> vector<8x512xf32>
      %93 = arith.addf %89, %92 : vector<8x512xf32>
      %94 = vector.extract_strided_slice %93 {offsets = [0, 0], sizes = [8, 128], strides = [1, 1]} : vector<8x512xf32> to vector<8x128xf32>
      %95 = arith.negf %94 : vector<8x128xf32>
      %96 = math.exp %95 : vector<8x128xf32>
      %cst_110 = arith.constant 1.000000e+00 : f32
      %97 = vector.broadcast %cst_110 : f32 to vector<8x128xf32>
      %98 = arith.addf %97, %96 : vector<8x128xf32>
      %99 = arith.divf %97, %98 : vector<8x128xf32>
      %100 = vector.extract_strided_slice %93 {offsets = [0, 128], sizes = [8, 128], strides = [1, 1]} : vector<8x512xf32> to vector<8x128xf32>
      %101 = arith.negf %100 : vector<8x128xf32>
      %102 = math.exp %101 : vector<8x128xf32>
      %cst_111 = arith.constant 1.000000e+00 : f32
      %103 = vector.broadcast %cst_111 : f32 to vector<8x128xf32>
      %104 = arith.addf %103, %102 : vector<8x128xf32>
      %105 = arith.divf %103, %104 : vector<8x128xf32>
      %106 = vector.extract_strided_slice %93 {offsets = [0, 256], sizes = [8, 128], strides = [1, 1]} : vector<8x512xf32> to vector<8x128xf32>
      %107 = math.tanh %106 : vector<8x128xf32>
      %108 = vector.extract_strided_slice %93 {offsets = [0, 384], sizes = [8, 128], strides = [1, 1]} : vector<8x512xf32> to vector<8x128xf32>
      %109 = arith.negf %108 : vector<8x128xf32>
      %110 = math.exp %109 : vector<8x128xf32>
      %cst_112 = arith.constant 1.000000e+00 : f32
      %111 = vector.broadcast %cst_112 : f32 to vector<8x128xf32>
      %112 = arith.addf %111, %110 : vector<8x128xf32>
      %113 = arith.divf %111, %112 : vector<8x128xf32>
      %114 = arith.mulf %105, %arg9 : vector<8x128xf32>
      %115 = arith.mulf %99, %107 : vector<8x128xf32>
      %116 = arith.addf %114, %115 : vector<8x128xf32>
      %117 = math.tanh %116 : vector<8x128xf32>
      %118 = arith.mulf %113, %117 : vector<8x128xf32>
      %119 = arith.index_cast %arg7 : i32 to index
      %c0_113 = arith.constant 0 : index
      %c0_114 = arith.constant 0 : index
      %120 = vector.load %arg5[%119, %c0_113, %c0_114] : memref<8x8x128xf32, #tpu.memory_space<vmem>>, vector<1x8x128xf32>
      %121 = vector.shape_cast %120 : vector<1x8x128xf32> to vector<8x128xf32>
      %122 = arith.addf %121, %118 : vector<8x128xf32>
      %123 = arith.index_cast %arg7 : i32 to index
      %c0_115 = arith.constant 0 : index
      %c0_116 = arith.constant 0 : index
      %124 = vector.load %arg5[%123, %c0_115, %c0_116] : memref<8x8x128xf32, #tpu.memory_space<vmem>>, vector<1x8x128xf32>
      %125 = vector.shape_cast %124 : vector<1x8x128xf32> to vector<8x128xf32>
      %126 = vector.shape_cast %122 : vector<8x128xf32> to vector<1x8x128xf32>
      tpu.vector_store %arg5[%123, %c0_115, %c0_116], %126 {strides = array<i32>} : memref<8x8x128xf32, #tpu.memory_space<vmem>>, vector<1x8x128xf32>,
      scf.yield %118, %116 : vector<8x128xf32>, vector<8x128xf32>
    }
    %c8_i32_59 = arith.constant 8 : i32
    %c0_60 = arith.constant 0 : index
    %c0_61 = arith.constant 0 : index
    %c0_62 = arith.constant 0 : index
    %51 = vector.load %arg5[%c0_60, %c0_61, %c0_62] : memref<8x8x128xf32, #tpu.memory_space<vmem>>, vector<8x8x128xf32>
    %52 = vector.shape_cast %51 : vector<8x8x128xf32> to vector<64x128xf32>
    %53 = arith.truncf %52 : vector<64x128xf32> to vector<64x128xbf16>
    %c0_63 = arith.constant 0 : index
    %c0_64 = arith.constant 0 : index
    %54 = vector.load %arg2[%c0_63, %c0_64] : memref<128x512xbf16, #tpu.memory_space<vmem>>, vector<128x512xbf16>
    %cst_65 = arith.constant dense<0.000000e+00> : vector<64x512xf32>
    %55 = tpu.matmul %53, %54, %cst_65 {dimension_numbers = #tpu.dot_dimension_numbers<[1], [0], [0], [1], [0, 0, 1, 1], [], []>} : vector<64x128xbf16>, vector<128x512xbf16>, vector<64x512xf32> -> vector<64x512xf32>
    %c0_66 = arith.constant 0 : index
    %c0_67 = arith.constant 0 : index
    %56 = vector.load %arg4[%c0_66, %c0_67] : memref<1x512xf32, #tpu.memory_space<vmem>>, vector<1x512xf32>
    %57 = vector.broadcast %56 : vector<1x512xf32> to vector<64x512xf32>
    %58 = arith.addf %55, %57 : vector<64x512xf32>
    %59 = vector.shape_cast %58 : vector<64x512xf32> to vector<8x8x512xf32>
    %c0_68 = arith.constant 0 : index
    %c0_69 = arith.constant 0 : index
    %c0_70 = arith.constant 0 : index
    %60 = vector.load %arg6[%c0_68, %c0_69, %c0_70] : memref<8x8x512xf32, #tpu.memory_space<vmem>>, vector<8x8x512xf32>
    tpu.vector_store %arg6[%c0_68, %c0_69, %c0_70], %59 {strides = array<i32>} : memref<8x8x512xf32, #tpu.memory_space<vmem>>, vector<8x8x512xf32>,
    %c0_i32_71 = arith.constant 0 : i32
    %c8_i32_72 = arith.constant 8 : i32
    %61 = arith.addi %c0_i32_71, %c8_i32_72 : i32
    %c1_i32_73 = arith.constant 1 : i32
    %62:2 = scf.for %arg7 = %c0_i32_71 to %61 step %c1_i32_73 iter_args(%arg8 = %0, %arg9 = %0) -> (vector<8x128xf32>, vector<8x128xf32>)  : i32 {
      %87 = arith.index_cast %arg7 : i32 to index
      %c0_105 = arith.constant 0 : index
      %c0_106 = arith.constant 0 : index
      %88 = vector.load %arg6[%87, %c0_105, %c0_106] : memref<8x8x512xf32, #tpu.memory_space<vmem>>, vector<1x8x512xf32>
      %89 = vector.shape_cast %88 : vector<1x8x512xf32> to vector<8x512xf32>
      %90 = arith.truncf %arg8 : vector<8x128xf32> to vector<8x128xbf16>
      %c0_107 = arith.constant 0 : index
      %c0_108 = arith.constant 0 : index
      %91 = vector.load %arg3[%c0_107, %c0_108] : memref<128x512xbf16, #tpu.memory_space<vmem>>, vector<128x512xbf16>
      %cst_109 = arith.constant dense<0.000000e+00> : vector<8x512xf32>
      %92 = tpu.matmul %90, %91, %cst_109 {dimension_numbers = #tpu.dot_dimension_numbers<[1], [0], [0], [1], [0, 0, 1, 1], [], []>} : vector<8x128xbf16>, vector<128x512xbf16>, vector<8x512xf32> -> vector<8x512xf32>
      %93 = arith.addf %89, %92 : vector<8x512xf32>
      %94 = vector.extract_strided_slice %93 {offsets = [0, 0], sizes = [8, 128], strides = [1, 1]} : vector<8x512xf32> to vector<8x128xf32>
      %95 = arith.negf %94 : vector<8x128xf32>
      %96 = math.exp %95 : vector<8x128xf32>
      %cst_110 = arith.constant 1.000000e+00 : f32
      %97 = vector.broadcast %cst_110 : f32 to vector<8x128xf32>
      %98 = arith.addf %97, %96 : vector<8x128xf32>
      %99 = arith.divf %97, %98 : vector<8x128xf32>
      %100 = vector.extract_strided_slice %93 {offsets = [0, 128], sizes = [8, 128], strides = [1, 1]} : vector<8x512xf32> to vector<8x128xf32>
      %101 = arith.negf %100 : vector<8x128xf32>
      %102 = math.exp %101 : vector<8x128xf32>
      %cst_111 = arith.constant 1.000000e+00 : f32
      %103 = vector.broadcast %cst_111 : f32 to vector<8x128xf32>
      %104 = arith.addf %103, %102 : vector<8x128xf32>
      %105 = arith.divf %103, %104 : vector<8x128xf32>
      %106 = vector.extract_strided_slice %93 {offsets = [0, 256], sizes = [8, 128], strides = [1, 1]} : vector<8x512xf32> to vector<8x128xf32>
      %107 = math.tanh %106 : vector<8x128xf32>
      %108 = vector.extract_strided_slice %93 {offsets = [0, 384], sizes = [8, 128], strides = [1, 1]} : vector<8x512xf32> to vector<8x128xf32>
      %109 = arith.negf %108 : vector<8x128xf32>
      %110 = math.exp %109 : vector<8x128xf32>
      %cst_112 = arith.constant 1.000000e+00 : f32
      %111 = vector.broadcast %cst_112 : f32 to vector<8x128xf32>
      %112 = arith.addf %111, %110 : vector<8x128xf32>
      %113 = arith.divf %111, %112 : vector<8x128xf32>
      %114 = arith.mulf %105, %arg9 : vector<8x128xf32>
      %115 = arith.mulf %99, %107 : vector<8x128xf32>
      %116 = arith.addf %114, %115 : vector<8x128xf32>
      %117 = math.tanh %116 : vector<8x128xf32>
      %118 = arith.mulf %113, %117 : vector<8x128xf32>
      %119 = arith.index_cast %arg7 : i32 to index
      %c0_113 = arith.constant 0 : index
      %c0_114 = arith.constant 0 : index
      %120 = vector.load %arg5[%119, %c0_113, %c0_114] : memref<8x8x128xf32, #tpu.memory_space<vmem>>, vector<1x8x128xf32>
      %121 = vector.shape_cast %120 : vector<1x8x128xf32> to vector<8x128xf32>
      %122 = arith.addf %121, %118 : vector<8x128xf32>
      %123 = arith.index_cast %arg7 : i32 to index
      %c0_115 = arith.constant 0 : index
      %c0_116 = arith.constant 0 : index
      %124 = vector.load %arg5[%123, %c0_115, %c0_116] : memref<8x8x128xf32, #tpu.memory_space<vmem>>, vector<1x8x128xf32>
      %125 = vector.shape_cast %124 : vector<1x8x128xf32> to vector<8x128xf32>
      %126 = vector.shape_cast %122 : vector<8x128xf32> to vector<1x8x128xf32>
      tpu.vector_store %arg5[%123, %c0_115, %c0_116], %126 {strides = array<i32>} : memref<8x8x128xf32, #tpu.memory_space<vmem>>, vector<1x8x128xf32>,
      scf.yield %118, %116 : vector<8x128xf32>, vector<8x128xf32>
    }
    %c8_i32_74 = arith.constant 8 : i32
    %c0_75 = arith.constant 0 : index
    %c0_76 = arith.constant 0 : index
    %c0_77 = arith.constant 0 : index
    %63 = vector.load %arg5[%c0_75, %c0_76, %c0_77] : memref<8x8x128xf32, #tpu.memory_space<vmem>>, vector<8x8x128xf32>
    %64 = vector.shape_cast %63 : vector<8x8x128xf32> to vector<64x128xf32>
    %65 = arith.truncf %64 : vector<64x128xf32> to vector<64x128xbf16>
    %c0_78 = arith.constant 0 : index
    %c0_79 = arith.constant 0 : index
    %66 = vector.load %arg2[%c0_78, %c0_79] : memref<128x512xbf16, #tpu.memory_space<vmem>>, vector<128x512xbf16>
    %cst_80 = arith.constant dense<0.000000e+00> : vector<64x512xf32>
    %67 = tpu.matmul %65, %66, %cst_80 {dimension_numbers = #tpu.dot_dimension_numbers<[1], [0], [0], [1], [0, 0, 1, 1], [], []>} : vector<64x128xbf16>, vector<128x512xbf16>, vector<64x512xf32> -> vector<64x512xf32>
    %c0_81 = arith.constant 0 : index
    %c0_82 = arith.constant 0 : index
    %68 = vector.load %arg4[%c0_81, %c0_82] : memref<1x512xf32, #tpu.memory_space<vmem>>, vector<1x512xf32>
    %69 = vector.broadcast %68 : vector<1x512xf32> to vector<64x512xf32>
    %70 = arith.addf %67, %69 : vector<64x512xf32>
    %71 = vector.shape_cast %70 : vector<64x512xf32> to vector<8x8x512xf32>
    %c0_83 = arith.constant 0 : index
    %c0_84 = arith.constant 0 : index
    %c0_85 = arith.constant 0 : index
    %72 = vector.load %arg6[%c0_83, %c0_84, %c0_85] : memref<8x8x512xf32, #tpu.memory_space<vmem>>, vector<8x8x512xf32>
    tpu.vector_store %arg6[%c0_83, %c0_84, %c0_85], %71 {strides = array<i32>} : memref<8x8x512xf32, #tpu.memory_space<vmem>>, vector<8x8x512xf32>,
    %c0_i32_86 = arith.constant 0 : i32
    %c8_i32_87 = arith.constant 8 : i32
    %73 = arith.addi %c0_i32_86, %c8_i32_87 : i32
    %c1_i32_88 = arith.constant 1 : i32
    %74:2 = scf.for %arg7 = %c0_i32_86 to %73 step %c1_i32_88 iter_args(%arg8 = %0, %arg9 = %0) -> (vector<8x128xf32>, vector<8x128xf32>)  : i32 {
      %87 = arith.index_cast %arg7 : i32 to index
      %c0_105 = arith.constant 0 : index
      %c0_106 = arith.constant 0 : index
      %88 = vector.load %arg6[%87, %c0_105, %c0_106] : memref<8x8x512xf32, #tpu.memory_space<vmem>>, vector<1x8x512xf32>
      %89 = vector.shape_cast %88 : vector<1x8x512xf32> to vector<8x512xf32>
      %90 = arith.truncf %arg8 : vector<8x128xf32> to vector<8x128xbf16>
      %c0_107 = arith.constant 0 : index
      %c0_108 = arith.constant 0 : index
      %91 = vector.load %arg3[%c0_107, %c0_108] : memref<128x512xbf16, #tpu.memory_space<vmem>>, vector<128x512xbf16>
      %cst_109 = arith.constant dense<0.000000e+00> : vector<8x512xf32>
      %92 = tpu.matmul %90, %91, %cst_109 {dimension_numbers = #tpu.dot_dimension_numbers<[1], [0], [0], [1], [0, 0, 1, 1], [], []>} : vector<8x128xbf16>, vector<128x512xbf16>, vector<8x512xf32> -> vector<8x512xf32>
      %93 = arith.addf %89, %92 : vector<8x512xf32>
      %94 = vector.extract_strided_slice %93 {offsets = [0, 0], sizes = [8, 128], strides = [1, 1]} : vector<8x512xf32> to vector<8x128xf32>
      %95 = arith.negf %94 : vector<8x128xf32>
      %96 = math.exp %95 : vector<8x128xf32>
      %cst_110 = arith.constant 1.000000e+00 : f32
      %97 = vector.broadcast %cst_110 : f32 to vector<8x128xf32>
      %98 = arith.addf %97, %96 : vector<8x128xf32>
      %99 = arith.divf %97, %98 : vector<8x128xf32>
      %100 = vector.extract_strided_slice %93 {offsets = [0, 128], sizes = [8, 128], strides = [1, 1]} : vector<8x512xf32> to vector<8x128xf32>
      %101 = arith.negf %100 : vector<8x128xf32>
      %102 = math.exp %101 : vector<8x128xf32>
      %cst_111 = arith.constant 1.000000e+00 : f32
      %103 = vector.broadcast %cst_111 : f32 to vector<8x128xf32>
      %104 = arith.addf %103, %102 : vector<8x128xf32>
      %105 = arith.divf %103, %104 : vector<8x128xf32>
      %106 = vector.extract_strided_slice %93 {offsets = [0, 256], sizes = [8, 128], strides = [1, 1]} : vector<8x512xf32> to vector<8x128xf32>
      %107 = math.tanh %106 : vector<8x128xf32>
      %108 = vector.extract_strided_slice %93 {offsets = [0, 384], sizes = [8, 128], strides = [1, 1]} : vector<8x512xf32> to vector<8x128xf32>
      %109 = arith.negf %108 : vector<8x128xf32>
      %110 = math.exp %109 : vector<8x128xf32>
      %cst_112 = arith.constant 1.000000e+00 : f32
      %111 = vector.broadcast %cst_112 : f32 to vector<8x128xf32>
      %112 = arith.addf %111, %110 : vector<8x128xf32>
      %113 = arith.divf %111, %112 : vector<8x128xf32>
      %114 = arith.mulf %105, %arg9 : vector<8x128xf32>
      %115 = arith.mulf %99, %107 : vector<8x128xf32>
      %116 = arith.addf %114, %115 : vector<8x128xf32>
      %117 = math.tanh %116 : vector<8x128xf32>
      %118 = arith.mulf %113, %117 : vector<8x128xf32>
      %119 = arith.index_cast %arg7 : i32 to index
      %c0_113 = arith.constant 0 : index
      %c0_114 = arith.constant 0 : index
      %120 = vector.load %arg5[%119, %c0_113, %c0_114] : memref<8x8x128xf32, #tpu.memory_space<vmem>>, vector<1x8x128xf32>
      %121 = vector.shape_cast %120 : vector<1x8x128xf32> to vector<8x128xf32>
      %122 = arith.addf %121, %118 : vector<8x128xf32>
      %123 = arith.index_cast %arg7 : i32 to index
      %c0_115 = arith.constant 0 : index
      %c0_116 = arith.constant 0 : index
      %124 = vector.load %arg5[%123, %c0_115, %c0_116] : memref<8x8x128xf32, #tpu.memory_space<vmem>>, vector<1x8x128xf32>
      %125 = vector.shape_cast %124 : vector<1x8x128xf32> to vector<8x128xf32>
      %126 = vector.shape_cast %122 : vector<8x128xf32> to vector<1x8x128xf32>
      tpu.vector_store %arg5[%123, %c0_115, %c0_116], %126 {strides = array<i32>} : memref<8x8x128xf32, #tpu.memory_space<vmem>>, vector<1x8x128xf32>,
      scf.yield %118, %116 : vector<8x128xf32>, vector<8x128xf32>
    }
    %c8_i32_89 = arith.constant 8 : i32
    %c0_90 = arith.constant 0 : index
    %c0_91 = arith.constant 0 : index
    %c0_92 = arith.constant 0 : index
    %75 = vector.load %arg5[%c0_90, %c0_91, %c0_92] : memref<8x8x128xf32, #tpu.memory_space<vmem>>, vector<8x8x128xf32>
    %76 = vector.shape_cast %75 : vector<8x8x128xf32> to vector<64x128xf32>
    %77 = arith.truncf %76 : vector<64x128xf32> to vector<64x128xbf16>
    %c0_93 = arith.constant 0 : index
    %c0_94 = arith.constant 0 : index
    %78 = vector.load %arg2[%c0_93, %c0_94] : memref<128x512xbf16, #tpu.memory_space<vmem>>, vector<128x512xbf16>
    %cst_95 = arith.constant dense<0.000000e+00> : vector<64x512xf32>
    %79 = tpu.matmul %77, %78, %cst_95 {dimension_numbers = #tpu.dot_dimension_numbers<[1], [0], [0], [1], [0, 0, 1, 1], [], []>} : vector<64x128xbf16>, vector<128x512xbf16>, vector<64x512xf32> -> vector<64x512xf32>
    %c0_96 = arith.constant 0 : index
    %c0_97 = arith.constant 0 : index
    %80 = vector.load %arg4[%c0_96, %c0_97] : memref<1x512xf32, #tpu.memory_space<vmem>>, vector<1x512xf32>
    %81 = vector.broadcast %80 : vector<1x512xf32> to vector<64x512xf32>
    %82 = arith.addf %79, %81 : vector<64x512xf32>
    %83 = vector.shape_cast %82 : vector<64x512xf32> to vector<8x8x512xf32>
    %c0_98 = arith.constant 0 : index
    %c0_99 = arith.constant 0 : index
    %c0_100 = arith.constant 0 : index
    %84 = vector.load %arg6[%c0_98, %c0_99, %c0_100] : memref<8x8x512xf32, #tpu.memory_space<vmem>>, vector<8x8x512xf32>
    tpu.vector_store %arg6[%c0_98, %c0_99, %c0_100], %83 {strides = array<i32>} : memref<8x8x512xf32, #tpu.memory_space<vmem>>, vector<8x8x512xf32>,
    %c0_i32_101 = arith.constant 0 : i32
    %c8_i32_102 = arith.constant 8 : i32
    %85 = arith.addi %c0_i32_101, %c8_i32_102 : i32
    %c1_i32_103 = arith.constant 1 : i32
    %86:2 = scf.for %arg7 = %c0_i32_101 to %85 step %c1_i32_103 iter_args(%arg8 = %0, %arg9 = %0) -> (vector<8x128xf32>, vector<8x128xf32>)  : i32 {
      %87 = arith.index_cast %arg7 : i32 to index
      %c0_105 = arith.constant 0 : index
      %c0_106 = arith.constant 0 : index
      %88 = vector.load %arg6[%87, %c0_105, %c0_106] : memref<8x8x512xf32, #tpu.memory_space<vmem>>, vector<1x8x512xf32>
      %89 = vector.shape_cast %88 : vector<1x8x512xf32> to vector<8x512xf32>
      %90 = arith.truncf %arg8 : vector<8x128xf32> to vector<8x128xbf16>
      %c0_107 = arith.constant 0 : index
      %c0_108 = arith.constant 0 : index
      %91 = vector.load %arg3[%c0_107, %c0_108] : memref<128x512xbf16, #tpu.memory_space<vmem>>, vector<128x512xbf16>
      %cst_109 = arith.constant dense<0.000000e+00> : vector<8x512xf32>
      %92 = tpu.matmul %90, %91, %cst_109 {dimension_numbers = #tpu.dot_dimension_numbers<[1], [0], [0], [1], [0, 0, 1, 1], [], []>} : vector<8x128xbf16>, vector<128x512xbf16>, vector<8x512xf32> -> vector<8x512xf32>
      %93 = arith.addf %89, %92 : vector<8x512xf32>
      %94 = vector.extract_strided_slice %93 {offsets = [0, 0], sizes = [8, 128], strides = [1, 1]} : vector<8x512xf32> to vector<8x128xf32>
      %95 = arith.negf %94 : vector<8x128xf32>
      %96 = math.exp %95 : vector<8x128xf32>
      %cst_110 = arith.constant 1.000000e+00 : f32
      %97 = vector.broadcast %cst_110 : f32 to vector<8x128xf32>
      %98 = arith.addf %97, %96 : vector<8x128xf32>
      %99 = arith.divf %97, %98 : vector<8x128xf32>
      %100 = vector.extract_strided_slice %93 {offsets = [0, 128], sizes = [8, 128], strides = [1, 1]} : vector<8x512xf32> to vector<8x128xf32>
      %101 = arith.negf %100 : vector<8x128xf32>
      %102 = math.exp %101 : vector<8x128xf32>
      %cst_111 = arith.constant 1.000000e+00 : f32
      %103 = vector.broadcast %cst_111 : f32 to vector<8x128xf32>
      %104 = arith.addf %103, %102 : vector<8x128xf32>
      %105 = arith.divf %103, %104 : vector<8x128xf32>
      %106 = vector.extract_strided_slice %93 {offsets = [0, 256], sizes = [8, 128], strides = [1, 1]} : vector<8x512xf32> to vector<8x128xf32>
      %107 = math.tanh %106 : vector<8x128xf32>
      %108 = vector.extract_strided_slice %93 {offsets = [0, 384], sizes = [8, 128], strides = [1, 1]} : vector<8x512xf32> to vector<8x128xf32>
      %109 = arith.negf %108 : vector<8x128xf32>
      %110 = math.exp %109 : vector<8x128xf32>
      %cst_112 = arith.constant 1.000000e+00 : f32
      %111 = vector.broadcast %cst_112 : f32 to vector<8x128xf32>
      %112 = arith.addf %111, %110 : vector<8x128xf32>
      %113 = arith.divf %111, %112 : vector<8x128xf32>
      %114 = arith.mulf %105, %arg9 : vector<8x128xf32>
      %115 = arith.mulf %99, %107 : vector<8x128xf32>
      %116 = arith.addf %114, %115 : vector<8x128xf32>
      %117 = math.tanh %116 : vector<8x128xf32>
      %118 = arith.mulf %113, %117 : vector<8x128xf32>
      %119 = arith.index_cast %arg7 : i32 to index
      %c0_113 = arith.constant 0 : index
      %c0_114 = arith.constant 0 : index
      %120 = vector.load %arg5[%119, %c0_113, %c0_114] : memref<8x8x128xf32, #tpu.memory_space<vmem>>, vector<1x8x128xf32>
      %121 = vector.shape_cast %120 : vector<1x8x128xf32> to vector<8x128xf32>
      %122 = arith.addf %121, %118 : vector<8x128xf32>
      %123 = arith.index_cast %arg7 : i32 to index
      %c0_115 = arith.constant 0 : index
      %c0_116 = arith.constant 0 : index
      %124 = vector.load %arg5[%123, %c0_115, %c0_116] : memref<8x8x128xf32, #tpu.memory_space<vmem>>, vector<1x8x128xf32>
      %125 = vector.shape_cast %124 : vector<1x8x128xf32> to vector<8x128xf32>
      %126 = vector.shape_cast %122 : vector<8x128xf32> to vector<1x8x128xf32>
      tpu.vector_store %arg5[%123, %c0_115, %c0_116], %126 {strides = array<i32>} : memref<8x8x128xf32, #tpu.memory_space<vmem>>, vector<1x8x128xf32>,
      scf.yield %118, %116 : vector<8x128xf32>, vector<8x128xf32>
    }
    %c8_i32_104 = arith.constant 8 : i32
    return
  }
  func.func @transform_0(%arg0: i32) -> (i32, i32, i32) {
    %c0_i32 = arith.constant 0 : i32
    %c0_i32_0 = arith.constant 0 : i32
    %c0_i32_1 = arith.constant 0 : i32
    return %c0_i32, %arg0, %c0_i32_0 : i32, i32, i32
  }
  func.func @transform_1(%arg0: i32) -> (i32, i32) {
    %c0_i32 = arith.constant 0 : i32
    %c0_i32_0 = arith.constant 0 : i32
    %c0_i32_1 = arith.constant 0 : i32
    return %c0_i32, %c0_i32_0 : i32, i32
  }
  func.func @transform_2(%arg0: i32) -> (i32, i32) {
    %c0_i32 = arith.constant 0 : i32
    %c0_i32_0 = arith.constant 0 : i32
    %c0_i32_1 = arith.constant 0 : i32
    return %c0_i32, %c0_i32_0 : i32, i32
  }
  func.func @transform_3(%arg0: i32) -> (i32, i32) {
    %c0_i32 = arith.constant 0 : i32
    %c0_i32_0 = arith.constant 0 : i32
    %c0_i32_1 = arith.constant 0 : i32
    return %c0_i32, %c0_i32_0 : i32, i32
  }
  func.func @transform_4(%arg0: i32) -> (i32, i32, i32) {
    %c0_i32 = arith.constant 0 : i32
    %c0_i32_0 = arith.constant 0 : i32
    %c0_i32_1 = arith.constant 0 : i32
    return %c0_i32, %arg0, %c0_i32_0 : i32, i32, i32
  }
}

module attributes {stable_mosaic.version = 11 : i64} {
  func.func @decode_kernel(%arg0: i32, %arg1: i32, %arg2: memref<8x128xf32, #tpu.memory_space<vmem>>, %arg3: memref<8x8x128xbf16, #tpu.memory_space<vmem>>, %arg4: memref<128x512xbf16, #tpu.memory_space<vmem>>, %arg5: memref<128x512xbf16, #tpu.memory_space<vmem>>, %arg6: memref<1x512xf32, #tpu.memory_space<vmem>>, %arg7: memref<128x128xbf16, #tpu.memory_space<vmem>>, %arg8: memref<128x128xbf16, #tpu.memory_space<vmem>>, %arg9: memref<128x128xbf16, #tpu.memory_space<vmem>>, %arg10: memref<1x8x128xf32, #tpu.memory_space<vmem>>, %arg11: memref<8x8x128xf32, #tpu.memory_space<vmem>>, %arg12: memref<8x8x128xf32, #tpu.memory_space<vmem>>, %arg13: memref<8x128xf32, #tpu.memory_space<vmem>>) attributes {dimension_semantics = [#tpu.dimension_semantics<parallel>, #tpu.dimension_semantics<arbitrary>], iteration_bounds = array<i64: 1, 8>, scalar_prefetch = 0 : i64, scratch_operands = 3 : i64, tpu.core_type = #tpu.core_type<tc>, window_params = [{transform_indices = @transform_0, window_bounds = array<i64: 8, 128>}, {transform_indices = @transform_1, window_bounds = array<i64: 8, 8, 128>}, {pipeline_mode = #tpu.pipeline_mode<synchronous>, transform_indices = @transform_2, window_bounds = array<i64: 128, 512>}, {pipeline_mode = #tpu.pipeline_mode<synchronous>, transform_indices = @transform_3, window_bounds = array<i64: 128, 512>}, {pipeline_mode = #tpu.pipeline_mode<synchronous>, transform_indices = @transform_4, window_bounds = array<i64: 1, 512>}, {pipeline_mode = #tpu.pipeline_mode<synchronous>, transform_indices = @transform_5, window_bounds = array<i64: 128, 128>}, {pipeline_mode = #tpu.pipeline_mode<synchronous>, transform_indices = @transform_6, window_bounds = array<i64: 128, 128>}, {pipeline_mode = #tpu.pipeline_mode<synchronous>, transform_indices = @transform_7, window_bounds = array<i64: 128, 128>}, {transform_indices = @transform_8, window_bounds = array<i64: 1, 8, 128>}]} {
    %c0_i32 = arith.constant 0 : i32
    %0 = arith.cmpi eq, %arg1, %c0_i32 : i32
    %1 = arith.extui %0 : i1 to i32
    %c0_i32_0 = arith.constant 0 : i32
    %2 = arith.cmpi ne, %1, %c0_i32_0 : i32
    scf.if %2 {
      %cst_200 = arith.constant 0.000000e+00 : f32
      %405 = vector.broadcast %cst_200 : f32 to vector<8x8x128xf32>
      %c0_201 = arith.constant 0 : index
      %c0_202 = arith.constant 0 : index
      %c0_203 = arith.constant 0 : index
      %406 = vector.load %arg11[%c0_201, %c0_202, %c0_203] : memref<8x8x128xf32, #tpu.memory_space<vmem>>, vector<8x8x128xf32>
      tpu.vector_store %arg11[%c0_201, %c0_202, %c0_203], %405 {strides = array<i32>} : memref<8x8x128xf32, #tpu.memory_space<vmem>>, vector<8x8x128xf32>,
      %cst_204 = arith.constant 0.000000e+00 : f32
      %407 = vector.broadcast %cst_204 : f32 to vector<8x8x128xf32>
      %c0_205 = arith.constant 0 : index
      %c0_206 = arith.constant 0 : index
      %c0_207 = arith.constant 0 : index
      %408 = vector.load %arg12[%c0_205, %c0_206, %c0_207] : memref<8x8x128xf32, #tpu.memory_space<vmem>>, vector<8x8x128xf32>
      tpu.vector_store %arg12[%c0_205, %c0_206, %c0_207], %407 {strides = array<i32>} : memref<8x8x128xf32, #tpu.memory_space<vmem>>, vector<8x8x128xf32>,
      %c0_208 = arith.constant 0 : index
      %c0_209 = arith.constant 0 : index
      %409 = vector.load %arg2[%c0_208, %c0_209] : memref<8x128xf32, #tpu.memory_space<vmem>>, vector<8x128xf32>
      %c0_210 = arith.constant 0 : index
      %c0_211 = arith.constant 0 : index
      %410 = vector.load %arg13[%c0_210, %c0_211] : memref<8x128xf32, #tpu.memory_space<vmem>>, vector<8x128xf32>
      tpu.vector_store %arg13[%c0_210, %c0_211], %409 {strides = array<i32>} : memref<8x128xf32, #tpu.memory_space<vmem>>, vector<8x128xf32>,
    } else {
    }
    %c0 = arith.constant 0 : index
    %c0_1 = arith.constant 0 : index
    %3 = vector.load %arg13[%c0, %c0_1] : memref<8x128xf32, #tpu.memory_space<vmem>>, vector<8x128xf32>
    %c0_2 = arith.constant 0 : index
    %c0_3 = arith.constant 0 : index
    %c0_4 = arith.constant 0 : index
    %4 = vector.load %arg11[%c0_2, %c0_3, %c0_4] : memref<8x8x128xf32, #tpu.memory_space<vmem>>, vector<1x8x128xf32>
    %5 = vector.shape_cast %4 : vector<1x8x128xf32> to vector<8x128xf32>
    %c0_5 = arith.constant 0 : index
    %c0_6 = arith.constant 0 : index
    %c0_7 = arith.constant 0 : index
    %6 = vector.load %arg12[%c0_5, %c0_6, %c0_7] : memref<8x8x128xf32, #tpu.memory_space<vmem>>, vector<1x8x128xf32>
    %7 = vector.shape_cast %6 : vector<1x8x128xf32> to vector<8x128xf32>
    %8 = arith.truncf %3 : vector<8x128xf32> to vector<8x128xbf16>
    %c0_8 = arith.constant 0 : index
    %c0_9 = arith.constant 0 : index
    %9 = vector.load %arg4[%c0_8, %c0_9] : memref<128x512xbf16, #tpu.memory_space<vmem>>, vector<128x512xbf16>
    %cst = arith.constant dense<0.000000e+00> : vector<8x512xf32>
    %10 = tpu.matmul %8, %9, %cst {dimension_numbers = #tpu.dot_dimension_numbers<[1], [0], [0], [1], [0, 0, 1, 1], [], []>} : vector<8x128xbf16>, vector<128x512xbf16>, vector<8x512xf32> -> vector<8x512xf32>
    %11 = arith.truncf %5 : vector<8x128xf32> to vector<8x128xbf16>
    %c0_10 = arith.constant 0 : index
    %c0_11 = arith.constant 0 : index
    %12 = vector.load %arg5[%c0_10, %c0_11] : memref<128x512xbf16, #tpu.memory_space<vmem>>, vector<128x512xbf16>
    %cst_12 = arith.constant dense<0.000000e+00> : vector<8x512xf32>
    %13 = tpu.matmul %11, %12, %cst_12 {dimension_numbers = #tpu.dot_dimension_numbers<[1], [0], [0], [1], [0, 0, 1, 1], [], []>} : vector<8x128xbf16>, vector<128x512xbf16>, vector<8x512xf32> -> vector<8x512xf32>
    %14 = arith.addf %10, %13 : vector<8x512xf32>
    %c0_13 = arith.constant 0 : index
    %c0_14 = arith.constant 0 : index
    %15 = vector.load %arg6[%c0_13, %c0_14] : memref<1x512xf32, #tpu.memory_space<vmem>>, vector<1x512xf32>
    %16 = vector.broadcast %15 : vector<1x512xf32> to vector<8x512xf32>
    %17 = arith.addf %14, %16 : vector<8x512xf32>
    %18 = vector.extract_strided_slice %17 {offsets = [0, 0], sizes = [8, 128], strides = [1, 1]} : vector<8x512xf32> to vector<8x128xf32>
    %19 = arith.negf %18 : vector<8x128xf32>
    %20 = math.exp %19 : vector<8x128xf32>
    %cst_15 = arith.constant 1.000000e+00 : f32
    %21 = vector.broadcast %cst_15 : f32 to vector<8x128xf32>
    %22 = arith.addf %21, %20 : vector<8x128xf32>
    %23 = arith.divf %21, %22 : vector<8x128xf32>
    %24 = vector.extract_strided_slice %17 {offsets = [0, 128], sizes = [8, 128], strides = [1, 1]} : vector<8x512xf32> to vector<8x128xf32>
    %25 = arith.negf %24 : vector<8x128xf32>
    %26 = math.exp %25 : vector<8x128xf32>
    %cst_16 = arith.constant 1.000000e+00 : f32
    %27 = vector.broadcast %cst_16 : f32 to vector<8x128xf32>
    %28 = arith.addf %27, %26 : vector<8x128xf32>
    %29 = arith.divf %27, %28 : vector<8x128xf32>
    %30 = vector.extract_strided_slice %17 {offsets = [0, 256], sizes = [8, 128], strides = [1, 1]} : vector<8x512xf32> to vector<8x128xf32>
    %31 = math.tanh %30 : vector<8x128xf32>
    %32 = vector.extract_strided_slice %17 {offsets = [0, 384], sizes = [8, 128], strides = [1, 1]} : vector<8x512xf32> to vector<8x128xf32>
    %33 = arith.negf %32 : vector<8x128xf32>
    %34 = math.exp %33 : vector<8x128xf32>
    %cst_17 = arith.constant 1.000000e+00 : f32
    %35 = vector.broadcast %cst_17 : f32 to vector<8x128xf32>
    %36 = arith.addf %35, %34 : vector<8x128xf32>
    %37 = arith.divf %35, %36 : vector<8x128xf32>
    %38 = arith.mulf %29, %7 : vector<8x128xf32>
    %39 = arith.mulf %23, %31 : vector<8x128xf32>
    %40 = arith.addf %38, %39 : vector<8x128xf32>
    %41 = math.tanh %40 : vector<8x128xf32>
    %42 = arith.mulf %37, %41 : vector<8x128xf32>
    %c0_18 = arith.constant 0 : index
    %c0_19 = arith.constant 0 : index
    %c0_20 = arith.constant 0 : index
    %43 = vector.load %arg11[%c0_18, %c0_19, %c0_20] : memref<8x8x128xf32, #tpu.memory_space<vmem>>, vector<1x8x128xf32>
    %44 = vector.shape_cast %43 : vector<1x8x128xf32> to vector<8x128xf32>
    %45 = vector.shape_cast %42 : vector<8x128xf32> to vector<1x8x128xf32>
    tpu.vector_store %arg11[%c0_18, %c0_19, %c0_20], %45 {strides = array<i32>} : memref<8x8x128xf32, #tpu.memory_space<vmem>>, vector<1x8x128xf32>,
    %c0_21 = arith.constant 0 : index
    %c0_22 = arith.constant 0 : index
    %c0_23 = arith.constant 0 : index
    %46 = vector.load %arg12[%c0_21, %c0_22, %c0_23] : memref<8x8x128xf32, #tpu.memory_space<vmem>>, vector<1x8x128xf32>
    %47 = vector.shape_cast %46 : vector<1x8x128xf32> to vector<8x128xf32>
    %48 = vector.shape_cast %40 : vector<8x128xf32> to vector<1x8x128xf32>
    tpu.vector_store %arg12[%c0_21, %c0_22, %c0_23], %48 {strides = array<i32>} : memref<8x8x128xf32, #tpu.memory_space<vmem>>, vector<1x8x128xf32>,
    %49 = arith.addf %42, %3 : vector<8x128xf32>
    %c1 = arith.constant 1 : index
    %c0_24 = arith.constant 0 : index
    %c0_25 = arith.constant 0 : index
    %50 = vector.load %arg11[%c1, %c0_24, %c0_25] : memref<8x8x128xf32, #tpu.memory_space<vmem>>, vector<1x8x128xf32>
    %51 = vector.shape_cast %50 : vector<1x8x128xf32> to vector<8x128xf32>
    %c1_26 = arith.constant 1 : index
    %c0_27 = arith.constant 0 : index
    %c0_28 = arith.constant 0 : index
    %52 = vector.load %arg12[%c1_26, %c0_27, %c0_28] : memref<8x8x128xf32, #tpu.memory_space<vmem>>, vector<1x8x128xf32>
    %53 = vector.shape_cast %52 : vector<1x8x128xf32> to vector<8x128xf32>
    %54 = arith.truncf %49 : vector<8x128xf32> to vector<8x128xbf16>
    %c0_29 = arith.constant 0 : index
    %c0_30 = arith.constant 0 : index
    %55 = vector.load %arg4[%c0_29, %c0_30] : memref<128x512xbf16, #tpu.memory_space<vmem>>, vector<128x512xbf16>
    %cst_31 = arith.constant dense<0.000000e+00> : vector<8x512xf32>
    %56 = tpu.matmul %54, %55, %cst_31 {dimension_numbers = #tpu.dot_dimension_numbers<[1], [0], [0], [1], [0, 0, 1, 1], [], []>} : vector<8x128xbf16>, vector<128x512xbf16>, vector<8x512xf32> -> vector<8x512xf32>
    %57 = arith.truncf %51 : vector<8x128xf32> to vector<8x128xbf16>
    %c0_32 = arith.constant 0 : index
    %c0_33 = arith.constant 0 : index
    %58 = vector.load %arg5[%c0_32, %c0_33] : memref<128x512xbf16, #tpu.memory_space<vmem>>, vector<128x512xbf16>
    %cst_34 = arith.constant dense<0.000000e+00> : vector<8x512xf32>
    %59 = tpu.matmul %57, %58, %cst_34 {dimension_numbers = #tpu.dot_dimension_numbers<[1], [0], [0], [1], [0, 0, 1, 1], [], []>} : vector<8x128xbf16>, vector<128x512xbf16>, vector<8x512xf32> -> vector<8x512xf32>
    %60 = arith.addf %56, %59 : vector<8x512xf32>
    %c0_35 = arith.constant 0 : index
    %c0_36 = arith.constant 0 : index
    %61 = vector.load %arg6[%c0_35, %c0_36] : memref<1x512xf32, #tpu.memory_space<vmem>>, vector<1x512xf32>
    %62 = vector.broadcast %61 : vector<1x512xf32> to vector<8x512xf32>
    %63 = arith.addf %60, %62 : vector<8x512xf32>
    %64 = vector.extract_strided_slice %63 {offsets = [0, 0], sizes = [8, 128], strides = [1, 1]} : vector<8x512xf32> to vector<8x128xf32>
    %65 = arith.negf %64 : vector<8x128xf32>
    %66 = math.exp %65 : vector<8x128xf32>
    %cst_37 = arith.constant 1.000000e+00 : f32
    %67 = vector.broadcast %cst_37 : f32 to vector<8x128xf32>
    %68 = arith.addf %67, %66 : vector<8x128xf32>
    %69 = arith.divf %67, %68 : vector<8x128xf32>
    %70 = vector.extract_strided_slice %63 {offsets = [0, 128], sizes = [8, 128], strides = [1, 1]} : vector<8x512xf32> to vector<8x128xf32>
    %71 = arith.negf %70 : vector<8x128xf32>
    %72 = math.exp %71 : vector<8x128xf32>
    %cst_38 = arith.constant 1.000000e+00 : f32
    %73 = vector.broadcast %cst_38 : f32 to vector<8x128xf32>
    %74 = arith.addf %73, %72 : vector<8x128xf32>
    %75 = arith.divf %73, %74 : vector<8x128xf32>
    %76 = vector.extract_strided_slice %63 {offsets = [0, 256], sizes = [8, 128], strides = [1, 1]} : vector<8x512xf32> to vector<8x128xf32>
    %77 = math.tanh %76 : vector<8x128xf32>
    %78 = vector.extract_strided_slice %63 {offsets = [0, 384], sizes = [8, 128], strides = [1, 1]} : vector<8x512xf32> to vector<8x128xf32>
    %79 = arith.negf %78 : vector<8x128xf32>
    %80 = math.exp %79 : vector<8x128xf32>
    %cst_39 = arith.constant 1.000000e+00 : f32
    %81 = vector.broadcast %cst_39 : f32 to vector<8x128xf32>
    %82 = arith.addf %81, %80 : vector<8x128xf32>
    %83 = arith.divf %81, %82 : vector<8x128xf32>
    %84 = arith.mulf %75, %53 : vector<8x128xf32>
    %85 = arith.mulf %69, %77 : vector<8x128xf32>
    %86 = arith.addf %84, %85 : vector<8x128xf32>
    %87 = math.tanh %86 : vector<8x128xf32>
    %88 = arith.mulf %83, %87 : vector<8x128xf32>
    %c1_40 = arith.constant 1 : index
    %c0_41 = arith.constant 0 : index
    %c0_42 = arith.constant 0 : index
    %89 = vector.load %arg11[%c1_40, %c0_41, %c0_42] : memref<8x8x128xf32, #tpu.memory_space<vmem>>, vector<1x8x128xf32>
    %90 = vector.shape_cast %89 : vector<1x8x128xf32> to vector<8x128xf32>
    %91 = vector.shape_cast %88 : vector<8x128xf32> to vector<1x8x128xf32>
    tpu.vector_store %arg11[%c1_40, %c0_41, %c0_42], %91 {strides = array<i32>} : memref<8x8x128xf32, #tpu.memory_space<vmem>>, vector<1x8x128xf32>,
    %c1_43 = arith.constant 1 : index
    %c0_44 = arith.constant 0 : index
    %c0_45 = arith.constant 0 : index
    %92 = vector.load %arg12[%c1_43, %c0_44, %c0_45] : memref<8x8x128xf32, #tpu.memory_space<vmem>>, vector<1x8x128xf32>
    %93 = vector.shape_cast %92 : vector<1x8x128xf32> to vector<8x128xf32>
    %94 = vector.shape_cast %86 : vector<8x128xf32> to vector<1x8x128xf32>
    tpu.vector_store %arg12[%c1_43, %c0_44, %c0_45], %94 {strides = array<i32>} : memref<8x8x128xf32, #tpu.memory_space<vmem>>, vector<1x8x128xf32>,
    %95 = arith.addf %88, %49 : vector<8x128xf32>
    %c2 = arith.constant 2 : index
    %c0_46 = arith.constant 0 : index
    %c0_47 = arith.constant 0 : index
    %96 = vector.load %arg11[%c2, %c0_46, %c0_47] : memref<8x8x128xf32, #tpu.memory_space<vmem>>, vector<1x8x128xf32>
    %97 = vector.shape_cast %96 : vector<1x8x128xf32> to vector<8x128xf32>
    %c2_48 = arith.constant 2 : index
    %c0_49 = arith.constant 0 : index
    %c0_50 = arith.constant 0 : index
    %98 = vector.load %arg12[%c2_48, %c0_49, %c0_50] : memref<8x8x128xf32, #tpu.memory_space<vmem>>, vector<1x8x128xf32>
    %99 = vector.shape_cast %98 : vector<1x8x128xf32> to vector<8x128xf32>
    %100 = arith.truncf %95 : vector<8x128xf32> to vector<8x128xbf16>
    %c0_51 = arith.constant 0 : index
    %c0_52 = arith.constant 0 : index
    %101 = vector.load %arg4[%c0_51, %c0_52] : memref<128x512xbf16, #tpu.memory_space<vmem>>, vector<128x512xbf16>
    %cst_53 = arith.constant dense<0.000000e+00> : vector<8x512xf32>
    %102 = tpu.matmul %100, %101, %cst_53 {dimension_numbers = #tpu.dot_dimension_numbers<[1], [0], [0], [1], [0, 0, 1, 1], [], []>} : vector<8x128xbf16>, vector<128x512xbf16>, vector<8x512xf32> -> vector<8x512xf32>
    %103 = arith.truncf %97 : vector<8x128xf32> to vector<8x128xbf16>
    %c0_54 = arith.constant 0 : index
    %c0_55 = arith.constant 0 : index
    %104 = vector.load %arg5[%c0_54, %c0_55] : memref<128x512xbf16, #tpu.memory_space<vmem>>, vector<128x512xbf16>
    %cst_56 = arith.constant dense<0.000000e+00> : vector<8x512xf32>
    %105 = tpu.matmul %103, %104, %cst_56 {dimension_numbers = #tpu.dot_dimension_numbers<[1], [0], [0], [1], [0, 0, 1, 1], [], []>} : vector<8x128xbf16>, vector<128x512xbf16>, vector<8x512xf32> -> vector<8x512xf32>
    %106 = arith.addf %102, %105 : vector<8x512xf32>
    %c0_57 = arith.constant 0 : index
    %c0_58 = arith.constant 0 : index
    %107 = vector.load %arg6[%c0_57, %c0_58] : memref<1x512xf32, #tpu.memory_space<vmem>>, vector<1x512xf32>
    %108 = vector.broadcast %107 : vector<1x512xf32> to vector<8x512xf32>
    %109 = arith.addf %106, %108 : vector<8x512xf32>
    %110 = vector.extract_strided_slice %109 {offsets = [0, 0], sizes = [8, 128], strides = [1, 1]} : vector<8x512xf32> to vector<8x128xf32>
    %111 = arith.negf %110 : vector<8x128xf32>
    %112 = math.exp %111 : vector<8x128xf32>
    %cst_59 = arith.constant 1.000000e+00 : f32
    %113 = vector.broadcast %cst_59 : f32 to vector<8x128xf32>
    %114 = arith.addf %113, %112 : vector<8x128xf32>
    %115 = arith.divf %113, %114 : vector<8x128xf32>
    %116 = vector.extract_strided_slice %109 {offsets = [0, 128], sizes = [8, 128], strides = [1, 1]} : vector<8x512xf32> to vector<8x128xf32>
    %117 = arith.negf %116 : vector<8x128xf32>
    %118 = math.exp %117 : vector<8x128xf32>
    %cst_60 = arith.constant 1.000000e+00 : f32
    %119 = vector.broadcast %cst_60 : f32 to vector<8x128xf32>
    %120 = arith.addf %119, %118 : vector<8x128xf32>
    %121 = arith.divf %119, %120 : vector<8x128xf32>
    %122 = vector.extract_strided_slice %109 {offsets = [0, 256], sizes = [8, 128], strides = [1, 1]} : vector<8x512xf32> to vector<8x128xf32>
    %123 = math.tanh %122 : vector<8x128xf32>
    %124 = vector.extract_strided_slice %109 {offsets = [0, 384], sizes = [8, 128], strides = [1, 1]} : vector<8x512xf32> to vector<8x128xf32>
    %125 = arith.negf %124 : vector<8x128xf32>
    %126 = math.exp %125 : vector<8x128xf32>
    %cst_61 = arith.constant 1.000000e+00 : f32
    %127 = vector.broadcast %cst_61 : f32 to vector<8x128xf32>
    %128 = arith.addf %127, %126 : vector<8x128xf32>
    %129 = arith.divf %127, %128 : vector<8x128xf32>
    %130 = arith.mulf %121, %99 : vector<8x128xf32>
    %131 = arith.mulf %115, %123 : vector<8x128xf32>
    %132 = arith.addf %130, %131 : vector<8x128xf32>
    %133 = math.tanh %132 : vector<8x128xf32>
    %134 = arith.mulf %129, %133 : vector<8x128xf32>
    %c2_62 = arith.constant 2 : index
    %c0_63 = arith.constant 0 : index
    %c0_64 = arith.constant 0 : index
    %135 = vector.load %arg11[%c2_62, %c0_63, %c0_64] : memref<8x8x128xf32, #tpu.memory_space<vmem>>, vector<1x8x128xf32>
    %136 = vector.shape_cast %135 : vector<1x8x128xf32> to vector<8x128xf32>
    %137 = vector.shape_cast %134 : vector<8x128xf32> to vector<1x8x128xf32>
    tpu.vector_store %arg11[%c2_62, %c0_63, %c0_64], %137 {strides = array<i32>} : memref<8x8x128xf32, #tpu.memory_space<vmem>>, vector<1x8x128xf32>,
    %c2_65 = arith.constant 2 : index
    %c0_66 = arith.constant 0 : index
    %c0_67 = arith.constant 0 : index
    %138 = vector.load %arg12[%c2_65, %c0_66, %c0_67] : memref<8x8x128xf32, #tpu.memory_space<vmem>>, vector<1x8x128xf32>
    %139 = vector.shape_cast %138 : vector<1x8x128xf32> to vector<8x128xf32>
    %140 = vector.shape_cast %132 : vector<8x128xf32> to vector<1x8x128xf32>
    tpu.vector_store %arg12[%c2_65, %c0_66, %c0_67], %140 {strides = array<i32>} : memref<8x8x128xf32, #tpu.memory_space<vmem>>, vector<1x8x128xf32>,
    %141 = arith.addf %134, %95 : vector<8x128xf32>
    %c3 = arith.constant 3 : index
    %c0_68 = arith.constant 0 : index
    %c0_69 = arith.constant 0 : index
    %142 = vector.load %arg11[%c3, %c0_68, %c0_69] : memref<8x8x128xf32, #tpu.memory_space<vmem>>, vector<1x8x128xf32>
    %143 = vector.shape_cast %142 : vector<1x8x128xf32> to vector<8x128xf32>
    %c3_70 = arith.constant 3 : index
    %c0_71 = arith.constant 0 : index
    %c0_72 = arith.constant 0 : index
    %144 = vector.load %arg12[%c3_70, %c0_71, %c0_72] : memref<8x8x128xf32, #tpu.memory_space<vmem>>, vector<1x8x128xf32>
    %145 = vector.shape_cast %144 : vector<1x8x128xf32> to vector<8x128xf32>
    %146 = arith.truncf %141 : vector<8x128xf32> to vector<8x128xbf16>
    %c0_73 = arith.constant 0 : index
    %c0_74 = arith.constant 0 : index
    %147 = vector.load %arg4[%c0_73, %c0_74] : memref<128x512xbf16, #tpu.memory_space<vmem>>, vector<128x512xbf16>
    %cst_75 = arith.constant dense<0.000000e+00> : vector<8x512xf32>
    %148 = tpu.matmul %146, %147, %cst_75 {dimension_numbers = #tpu.dot_dimension_numbers<[1], [0], [0], [1], [0, 0, 1, 1], [], []>} : vector<8x128xbf16>, vector<128x512xbf16>, vector<8x512xf32> -> vector<8x512xf32>
    %149 = arith.truncf %143 : vector<8x128xf32> to vector<8x128xbf16>
    %c0_76 = arith.constant 0 : index
    %c0_77 = arith.constant 0 : index
    %150 = vector.load %arg5[%c0_76, %c0_77] : memref<128x512xbf16, #tpu.memory_space<vmem>>, vector<128x512xbf16>
    %cst_78 = arith.constant dense<0.000000e+00> : vector<8x512xf32>
    %151 = tpu.matmul %149, %150, %cst_78 {dimension_numbers = #tpu.dot_dimension_numbers<[1], [0], [0], [1], [0, 0, 1, 1], [], []>} : vector<8x128xbf16>, vector<128x512xbf16>, vector<8x512xf32> -> vector<8x512xf32>
    %152 = arith.addf %148, %151 : vector<8x512xf32>
    %c0_79 = arith.constant 0 : index
    %c0_80 = arith.constant 0 : index
    %153 = vector.load %arg6[%c0_79, %c0_80] : memref<1x512xf32, #tpu.memory_space<vmem>>, vector<1x512xf32>
    %154 = vector.broadcast %153 : vector<1x512xf32> to vector<8x512xf32>
    %155 = arith.addf %152, %154 : vector<8x512xf32>
    %156 = vector.extract_strided_slice %155 {offsets = [0, 0], sizes = [8, 128], strides = [1, 1]} : vector<8x512xf32> to vector<8x128xf32>
    %157 = arith.negf %156 : vector<8x128xf32>
    %158 = math.exp %157 : vector<8x128xf32>
    %cst_81 = arith.constant 1.000000e+00 : f32
    %159 = vector.broadcast %cst_81 : f32 to vector<8x128xf32>
    %160 = arith.addf %159, %158 : vector<8x128xf32>
    %161 = arith.divf %159, %160 : vector<8x128xf32>
    %162 = vector.extract_strided_slice %155 {offsets = [0, 128], sizes = [8, 128], strides = [1, 1]} : vector<8x512xf32> to vector<8x128xf32>
    %163 = arith.negf %162 : vector<8x128xf32>
    %164 = math.exp %163 : vector<8x128xf32>
    %cst_82 = arith.constant 1.000000e+00 : f32
    %165 = vector.broadcast %cst_82 : f32 to vector<8x128xf32>
    %166 = arith.addf %165, %164 : vector<8x128xf32>
    %167 = arith.divf %165, %166 : vector<8x128xf32>
    %168 = vector.extract_strided_slice %155 {offsets = [0, 256], sizes = [8, 128], strides = [1, 1]} : vector<8x512xf32> to vector<8x128xf32>
    %169 = math.tanh %168 : vector<8x128xf32>
    %170 = vector.extract_strided_slice %155 {offsets = [0, 384], sizes = [8, 128], strides = [1, 1]} : vector<8x512xf32> to vector<8x128xf32>
    %171 = arith.negf %170 : vector<8x128xf32>
    %172 = math.exp %171 : vector<8x128xf32>
    %cst_83 = arith.constant 1.000000e+00 : f32
    %173 = vector.broadcast %cst_83 : f32 to vector<8x128xf32>
    %174 = arith.addf %173, %172 : vector<8x128xf32>
    %175 = arith.divf %173, %174 : vector<8x128xf32>
    %176 = arith.mulf %167, %145 : vector<8x128xf32>
    %177 = arith.mulf %161, %169 : vector<8x128xf32>
    %178 = arith.addf %176, %177 : vector<8x128xf32>
    %179 = math.tanh %178 : vector<8x128xf32>
    %180 = arith.mulf %175, %179 : vector<8x128xf32>
    %c3_84 = arith.constant 3 : index
    %c0_85 = arith.constant 0 : index
    %c0_86 = arith.constant 0 : index
    %181 = vector.load %arg11[%c3_84, %c0_85, %c0_86] : memref<8x8x128xf32, #tpu.memory_space<vmem>>, vector<1x8x128xf32>
    %182 = vector.shape_cast %181 : vector<1x8x128xf32> to vector<8x128xf32>
    %183 = vector.shape_cast %180 : vector<8x128xf32> to vector<1x8x128xf32>
    tpu.vector_store %arg11[%c3_84, %c0_85, %c0_86], %183 {strides = array<i32>} : memref<8x8x128xf32, #tpu.memory_space<vmem>>, vector<1x8x128xf32>,
    %c3_87 = arith.constant 3 : index
    %c0_88 = arith.constant 0 : index
    %c0_89 = arith.constant 0 : index
    %184 = vector.load %arg12[%c3_87, %c0_88, %c0_89] : memref<8x8x128xf32, #tpu.memory_space<vmem>>, vector<1x8x128xf32>
    %185 = vector.shape_cast %184 : vector<1x8x128xf32> to vector<8x128xf32>
    %186 = vector.shape_cast %178 : vector<8x128xf32> to vector<1x8x128xf32>
    tpu.vector_store %arg12[%c3_87, %c0_88, %c0_89], %186 {strides = array<i32>} : memref<8x8x128xf32, #tpu.memory_space<vmem>>, vector<1x8x128xf32>,
    %187 = arith.addf %180, %141 : vector<8x128xf32>
    %c4 = arith.constant 4 : index
    %c0_90 = arith.constant 0 : index
    %c0_91 = arith.constant 0 : index
    %188 = vector.load %arg11[%c4, %c0_90, %c0_91] : memref<8x8x128xf32, #tpu.memory_space<vmem>>, vector<1x8x128xf32>
    %189 = vector.shape_cast %188 : vector<1x8x128xf32> to vector<8x128xf32>
    %c4_92 = arith.constant 4 : index
    %c0_93 = arith.constant 0 : index
    %c0_94 = arith.constant 0 : index
    %190 = vector.load %arg12[%c4_92, %c0_93, %c0_94] : memref<8x8x128xf32, #tpu.memory_space<vmem>>, vector<1x8x128xf32>
    %191 = vector.shape_cast %190 : vector<1x8x128xf32> to vector<8x128xf32>
    %192 = arith.truncf %187 : vector<8x128xf32> to vector<8x128xbf16>
    %c0_95 = arith.constant 0 : index
    %c0_96 = arith.constant 0 : index
    %193 = vector.load %arg4[%c0_95, %c0_96] : memref<128x512xbf16, #tpu.memory_space<vmem>>, vector<128x512xbf16>
    %cst_97 = arith.constant dense<0.000000e+00> : vector<8x512xf32>
    %194 = tpu.matmul %192, %193, %cst_97 {dimension_numbers = #tpu.dot_dimension_numbers<[1], [0], [0], [1], [0, 0, 1, 1], [], []>} : vector<8x128xbf16>, vector<128x512xbf16>, vector<8x512xf32> -> vector<8x512xf32>
    %195 = arith.truncf %189 : vector<8x128xf32> to vector<8x128xbf16>
    %c0_98 = arith.constant 0 : index
    %c0_99 = arith.constant 0 : index
    %196 = vector.load %arg5[%c0_98, %c0_99] : memref<128x512xbf16, #tpu.memory_space<vmem>>, vector<128x512xbf16>
    %cst_100 = arith.constant dense<0.000000e+00> : vector<8x512xf32>
    %197 = tpu.matmul %195, %196, %cst_100 {dimension_numbers = #tpu.dot_dimension_numbers<[1], [0], [0], [1], [0, 0, 1, 1], [], []>} : vector<8x128xbf16>, vector<128x512xbf16>, vector<8x512xf32> -> vector<8x512xf32>
    %198 = arith.addf %194, %197 : vector<8x512xf32>
    %c0_101 = arith.constant 0 : index
    %c0_102 = arith.constant 0 : index
    %199 = vector.load %arg6[%c0_101, %c0_102] : memref<1x512xf32, #tpu.memory_space<vmem>>, vector<1x512xf32>
    %200 = vector.broadcast %199 : vector<1x512xf32> to vector<8x512xf32>
    %201 = arith.addf %198, %200 : vector<8x512xf32>
    %202 = vector.extract_strided_slice %201 {offsets = [0, 0], sizes = [8, 128], strides = [1, 1]} : vector<8x512xf32> to vector<8x128xf32>
    %203 = arith.negf %202 : vector<8x128xf32>
    %204 = math.exp %203 : vector<8x128xf32>
    %cst_103 = arith.constant 1.000000e+00 : f32
    %205 = vector.broadcast %cst_103 : f32 to vector<8x128xf32>
    %206 = arith.addf %205, %204 : vector<8x128xf32>
    %207 = arith.divf %205, %206 : vector<8x128xf32>
    %208 = vector.extract_strided_slice %201 {offsets = [0, 128], sizes = [8, 128], strides = [1, 1]} : vector<8x512xf32> to vector<8x128xf32>
    %209 = arith.negf %208 : vector<8x128xf32>
    %210 = math.exp %209 : vector<8x128xf32>
    %cst_104 = arith.constant 1.000000e+00 : f32
    %211 = vector.broadcast %cst_104 : f32 to vector<8x128xf32>
    %212 = arith.addf %211, %210 : vector<8x128xf32>
    %213 = arith.divf %211, %212 : vector<8x128xf32>
    %214 = vector.extract_strided_slice %201 {offsets = [0, 256], sizes = [8, 128], strides = [1, 1]} : vector<8x512xf32> to vector<8x128xf32>
    %215 = math.tanh %214 : vector<8x128xf32>
    %216 = vector.extract_strided_slice %201 {offsets = [0, 384], sizes = [8, 128], strides = [1, 1]} : vector<8x512xf32> to vector<8x128xf32>
    %217 = arith.negf %216 : vector<8x128xf32>
    %218 = math.exp %217 : vector<8x128xf32>
    %cst_105 = arith.constant 1.000000e+00 : f32
    %219 = vector.broadcast %cst_105 : f32 to vector<8x128xf32>
    %220 = arith.addf %219, %218 : vector<8x128xf32>
    %221 = arith.divf %219, %220 : vector<8x128xf32>
    %222 = arith.mulf %213, %191 : vector<8x128xf32>
    %223 = arith.mulf %207, %215 : vector<8x128xf32>
    %224 = arith.addf %222, %223 : vector<8x128xf32>
    %225 = math.tanh %224 : vector<8x128xf32>
    %226 = arith.mulf %221, %225 : vector<8x128xf32>
    %c4_106 = arith.constant 4 : index
    %c0_107 = arith.constant 0 : index
    %c0_108 = arith.constant 0 : index
    %227 = vector.load %arg11[%c4_106, %c0_107, %c0_108] : memref<8x8x128xf32, #tpu.memory_space<vmem>>, vector<1x8x128xf32>
    %228 = vector.shape_cast %227 : vector<1x8x128xf32> to vector<8x128xf32>
    %229 = vector.shape_cast %226 : vector<8x128xf32> to vector<1x8x128xf32>
    tpu.vector_store %arg11[%c4_106, %c0_107, %c0_108], %229 {strides = array<i32>} : memref<8x8x128xf32, #tpu.memory_space<vmem>>, vector<1x8x128xf32>,
    %c4_109 = arith.constant 4 : index
    %c0_110 = arith.constant 0 : index
    %c0_111 = arith.constant 0 : index
    %230 = vector.load %arg12[%c4_109, %c0_110, %c0_111] : memref<8x8x128xf32, #tpu.memory_space<vmem>>, vector<1x8x128xf32>
    %231 = vector.shape_cast %230 : vector<1x8x128xf32> to vector<8x128xf32>
    %232 = vector.shape_cast %224 : vector<8x128xf32> to vector<1x8x128xf32>
    tpu.vector_store %arg12[%c4_109, %c0_110, %c0_111], %232 {strides = array<i32>} : memref<8x8x128xf32, #tpu.memory_space<vmem>>, vector<1x8x128xf32>,
    %233 = arith.addf %226, %187 : vector<8x128xf32>
    %c5 = arith.constant 5 : index
    %c0_112 = arith.constant 0 : index
    %c0_113 = arith.constant 0 : index
    %234 = vector.load %arg11[%c5, %c0_112, %c0_113] : memref<8x8x128xf32, #tpu.memory_space<vmem>>, vector<1x8x128xf32>
    %235 = vector.shape_cast %234 : vector<1x8x128xf32> to vector<8x128xf32>
    %c5_114 = arith.constant 5 : index
    %c0_115 = arith.constant 0 : index
    %c0_116 = arith.constant 0 : index
    %236 = vector.load %arg12[%c5_114, %c0_115, %c0_116] : memref<8x8x128xf32, #tpu.memory_space<vmem>>, vector<1x8x128xf32>
    %237 = vector.shape_cast %236 : vector<1x8x128xf32> to vector<8x128xf32>
    %238 = arith.truncf %233 : vector<8x128xf32> to vector<8x128xbf16>
    %c0_117 = arith.constant 0 : index
    %c0_118 = arith.constant 0 : index
    %239 = vector.load %arg4[%c0_117, %c0_118] : memref<128x512xbf16, #tpu.memory_space<vmem>>, vector<128x512xbf16>
    %cst_119 = arith.constant dense<0.000000e+00> : vector<8x512xf32>
    %240 = tpu.matmul %238, %239, %cst_119 {dimension_numbers = #tpu.dot_dimension_numbers<[1], [0], [0], [1], [0, 0, 1, 1], [], []>} : vector<8x128xbf16>, vector<128x512xbf16>, vector<8x512xf32> -> vector<8x512xf32>
    %241 = arith.truncf %235 : vector<8x128xf32> to vector<8x128xbf16>
    %c0_120 = arith.constant 0 : index
    %c0_121 = arith.constant 0 : index
    %242 = vector.load %arg5[%c0_120, %c0_121] : memref<128x512xbf16, #tpu.memory_space<vmem>>, vector<128x512xbf16>
    %cst_122 = arith.constant dense<0.000000e+00> : vector<8x512xf32>
    %243 = tpu.matmul %241, %242, %cst_122 {dimension_numbers = #tpu.dot_dimension_numbers<[1], [0], [0], [1], [0, 0, 1, 1], [], []>} : vector<8x128xbf16>, vector<128x512xbf16>, vector<8x512xf32> -> vector<8x512xf32>
    %244 = arith.addf %240, %243 : vector<8x512xf32>
    %c0_123 = arith.constant 0 : index
    %c0_124 = arith.constant 0 : index
    %245 = vector.load %arg6[%c0_123, %c0_124] : memref<1x512xf32, #tpu.memory_space<vmem>>, vector<1x512xf32>
    %246 = vector.broadcast %245 : vector<1x512xf32> to vector<8x512xf32>
    %247 = arith.addf %244, %246 : vector<8x512xf32>
    %248 = vector.extract_strided_slice %247 {offsets = [0, 0], sizes = [8, 128], strides = [1, 1]} : vector<8x512xf32> to vector<8x128xf32>
    %249 = arith.negf %248 : vector<8x128xf32>
    %250 = math.exp %249 : vector<8x128xf32>
    %cst_125 = arith.constant 1.000000e+00 : f32
    %251 = vector.broadcast %cst_125 : f32 to vector<8x128xf32>
    %252 = arith.addf %251, %250 : vector<8x128xf32>
    %253 = arith.divf %251, %252 : vector<8x128xf32>
    %254 = vector.extract_strided_slice %247 {offsets = [0, 128], sizes = [8, 128], strides = [1, 1]} : vector<8x512xf32> to vector<8x128xf32>
    %255 = arith.negf %254 : vector<8x128xf32>
    %256 = math.exp %255 : vector<8x128xf32>
    %cst_126 = arith.constant 1.000000e+00 : f32
    %257 = vector.broadcast %cst_126 : f32 to vector<8x128xf32>
    %258 = arith.addf %257, %256 : vector<8x128xf32>
    %259 = arith.divf %257, %258 : vector<8x128xf32>
    %260 = vector.extract_strided_slice %247 {offsets = [0, 256], sizes = [8, 128], strides = [1, 1]} : vector<8x512xf32> to vector<8x128xf32>
    %261 = math.tanh %260 : vector<8x128xf32>
    %262 = vector.extract_strided_slice %247 {offsets = [0, 384], sizes = [8, 128], strides = [1, 1]} : vector<8x512xf32> to vector<8x128xf32>
    %263 = arith.negf %262 : vector<8x128xf32>
    %264 = math.exp %263 : vector<8x128xf32>
    %cst_127 = arith.constant 1.000000e+00 : f32
    %265 = vector.broadcast %cst_127 : f32 to vector<8x128xf32>
    %266 = arith.addf %265, %264 : vector<8x128xf32>
    %267 = arith.divf %265, %266 : vector<8x128xf32>
    %268 = arith.mulf %259, %237 : vector<8x128xf32>
    %269 = arith.mulf %253, %261 : vector<8x128xf32>
    %270 = arith.addf %268, %269 : vector<8x128xf32>
    %271 = math.tanh %270 : vector<8x128xf32>
    %272 = arith.mulf %267, %271 : vector<8x128xf32>
    %c5_128 = arith.constant 5 : index
    %c0_129 = arith.constant 0 : index
    %c0_130 = arith.constant 0 : index
    %273 = vector.load %arg11[%c5_128, %c0_129, %c0_130] : memref<8x8x128xf32, #tpu.memory_space<vmem>>, vector<1x8x128xf32>
    %274 = vector.shape_cast %273 : vector<1x8x128xf32> to vector<8x128xf32>
    %275 = vector.shape_cast %272 : vector<8x128xf32> to vector<1x8x128xf32>
    tpu.vector_store %arg11[%c5_128, %c0_129, %c0_130], %275 {strides = array<i32>} : memref<8x8x128xf32, #tpu.memory_space<vmem>>, vector<1x8x128xf32>,
    %c5_131 = arith.constant 5 : index
    %c0_132 = arith.constant 0 : index
    %c0_133 = arith.constant 0 : index
    %276 = vector.load %arg12[%c5_131, %c0_132, %c0_133] : memref<8x8x128xf32, #tpu.memory_space<vmem>>, vector<1x8x128xf32>
    %277 = vector.shape_cast %276 : vector<1x8x128xf32> to vector<8x128xf32>
    %278 = vector.shape_cast %270 : vector<8x128xf32> to vector<1x8x128xf32>
    tpu.vector_store %arg12[%c5_131, %c0_132, %c0_133], %278 {strides = array<i32>} : memref<8x8x128xf32, #tpu.memory_space<vmem>>, vector<1x8x128xf32>,
    %279 = arith.addf %272, %233 : vector<8x128xf32>
    %c6 = arith.constant 6 : index
    %c0_134 = arith.constant 0 : index
    %c0_135 = arith.constant 0 : index
    %280 = vector.load %arg11[%c6, %c0_134, %c0_135] : memref<8x8x128xf32, #tpu.memory_space<vmem>>, vector<1x8x128xf32>
    %281 = vector.shape_cast %280 : vector<1x8x128xf32> to vector<8x128xf32>
    %c6_136 = arith.constant 6 : index
    %c0_137 = arith.constant 0 : index
    %c0_138 = arith.constant 0 : index
    %282 = vector.load %arg12[%c6_136, %c0_137, %c0_138] : memref<8x8x128xf32, #tpu.memory_space<vmem>>, vector<1x8x128xf32>
    %283 = vector.shape_cast %282 : vector<1x8x128xf32> to vector<8x128xf32>
    %284 = arith.truncf %279 : vector<8x128xf32> to vector<8x128xbf16>
    %c0_139 = arith.constant 0 : index
    %c0_140 = arith.constant 0 : index
    %285 = vector.load %arg4[%c0_139, %c0_140] : memref<128x512xbf16, #tpu.memory_space<vmem>>, vector<128x512xbf16>
    %cst_141 = arith.constant dense<0.000000e+00> : vector<8x512xf32>
    %286 = tpu.matmul %284, %285, %cst_141 {dimension_numbers = #tpu.dot_dimension_numbers<[1], [0], [0], [1], [0, 0, 1, 1], [], []>} : vector<8x128xbf16>, vector<128x512xbf16>, vector<8x512xf32> -> vector<8x512xf32>
    %287 = arith.truncf %281 : vector<8x128xf32> to vector<8x128xbf16>
    %c0_142 = arith.constant 0 : index
    %c0_143 = arith.constant 0 : index
    %288 = vector.load %arg5[%c0_142, %c0_143] : memref<128x512xbf16, #tpu.memory_space<vmem>>, vector<128x512xbf16>
    %cst_144 = arith.constant dense<0.000000e+00> : vector<8x512xf32>
    %289 = tpu.matmul %287, %288, %cst_144 {dimension_numbers = #tpu.dot_dimension_numbers<[1], [0], [0], [1], [0, 0, 1, 1], [], []>} : vector<8x128xbf16>, vector<128x512xbf16>, vector<8x512xf32> -> vector<8x512xf32>
    %290 = arith.addf %286, %289 : vector<8x512xf32>
    %c0_145 = arith.constant 0 : index
    %c0_146 = arith.constant 0 : index
    %291 = vector.load %arg6[%c0_145, %c0_146] : memref<1x512xf32, #tpu.memory_space<vmem>>, vector<1x512xf32>
    %292 = vector.broadcast %291 : vector<1x512xf32> to vector<8x512xf32>
    %293 = arith.addf %290, %292 : vector<8x512xf32>
    %294 = vector.extract_strided_slice %293 {offsets = [0, 0], sizes = [8, 128], strides = [1, 1]} : vector<8x512xf32> to vector<8x128xf32>
    %295 = arith.negf %294 : vector<8x128xf32>
    %296 = math.exp %295 : vector<8x128xf32>
    %cst_147 = arith.constant 1.000000e+00 : f32
    %297 = vector.broadcast %cst_147 : f32 to vector<8x128xf32>
    %298 = arith.addf %297, %296 : vector<8x128xf32>
    %299 = arith.divf %297, %298 : vector<8x128xf32>
    %300 = vector.extract_strided_slice %293 {offsets = [0, 128], sizes = [8, 128], strides = [1, 1]} : vector<8x512xf32> to vector<8x128xf32>
    %301 = arith.negf %300 : vector<8x128xf32>
    %302 = math.exp %301 : vector<8x128xf32>
    %cst_148 = arith.constant 1.000000e+00 : f32
    %303 = vector.broadcast %cst_148 : f32 to vector<8x128xf32>
    %304 = arith.addf %303, %302 : vector<8x128xf32>
    %305 = arith.divf %303, %304 : vector<8x128xf32>
    %306 = vector.extract_strided_slice %293 {offsets = [0, 256], sizes = [8, 128], strides = [1, 1]} : vector<8x512xf32> to vector<8x128xf32>
    %307 = math.tanh %306 : vector<8x128xf32>
    %308 = vector.extract_strided_slice %293 {offsets = [0, 384], sizes = [8, 128], strides = [1, 1]} : vector<8x512xf32> to vector<8x128xf32>
    %309 = arith.negf %308 : vector<8x128xf32>
    %310 = math.exp %309 : vector<8x128xf32>
    %cst_149 = arith.constant 1.000000e+00 : f32
    %311 = vector.broadcast %cst_149 : f32 to vector<8x128xf32>
    %312 = arith.addf %311, %310 : vector<8x128xf32>
    %313 = arith.divf %311, %312 : vector<8x128xf32>
    %314 = arith.mulf %305, %283 : vector<8x128xf32>
    %315 = arith.mulf %299, %307 : vector<8x128xf32>
    %316 = arith.addf %314, %315 : vector<8x128xf32>
    %317 = math.tanh %316 : vector<8x128xf32>
    %318 = arith.mulf %313, %317 : vector<8x128xf32>
    %c6_150 = arith.constant 6 : index
    %c0_151 = arith.constant 0 : index
    %c0_152 = arith.constant 0 : index
    %319 = vector.load %arg11[%c6_150, %c0_151, %c0_152] : memref<8x8x128xf32, #tpu.memory_space<vmem>>, vector<1x8x128xf32>
    %320 = vector.shape_cast %319 : vector<1x8x128xf32> to vector<8x128xf32>
    %321 = vector.shape_cast %318 : vector<8x128xf32> to vector<1x8x128xf32>
    tpu.vector_store %arg11[%c6_150, %c0_151, %c0_152], %321 {strides = array<i32>} : memref<8x8x128xf32, #tpu.memory_space<vmem>>, vector<1x8x128xf32>,
    %c6_153 = arith.constant 6 : index
    %c0_154 = arith.constant 0 : index
    %c0_155 = arith.constant 0 : index
    %322 = vector.load %arg12[%c6_153, %c0_154, %c0_155] : memref<8x8x128xf32, #tpu.memory_space<vmem>>, vector<1x8x128xf32>
    %323 = vector.shape_cast %322 : vector<1x8x128xf32> to vector<8x128xf32>
    %324 = vector.shape_cast %316 : vector<8x128xf32> to vector<1x8x128xf32>
    tpu.vector_store %arg12[%c6_153, %c0_154, %c0_155], %324 {strides = array<i32>} : memref<8x8x128xf32, #tpu.memory_space<vmem>>, vector<1x8x128xf32>,
    %325 = arith.addf %318, %279 : vector<8x128xf32>
    %c7 = arith.constant 7 : index
    %c0_156 = arith.constant 0 : index
    %c0_157 = arith.constant 0 : index
    %326 = vector.load %arg11[%c7, %c0_156, %c0_157] : memref<8x8x128xf32, #tpu.memory_space<vmem>>, vector<1x8x128xf32>
    %327 = vector.shape_cast %326 : vector<1x8x128xf32> to vector<8x128xf32>
    %c7_158 = arith.constant 7 : index
    %c0_159 = arith.constant 0 : index
    %c0_160 = arith.constant 0 : index
    %328 = vector.load %arg12[%c7_158, %c0_159, %c0_160] : memref<8x8x128xf32, #tpu.memory_space<vmem>>, vector<1x8x128xf32>
    %329 = vector.shape_cast %328 : vector<1x8x128xf32> to vector<8x128xf32>
    %330 = arith.truncf %325 : vector<8x128xf32> to vector<8x128xbf16>
    %c0_161 = arith.constant 0 : index
    %c0_162 = arith.constant 0 : index
    %331 = vector.load %arg4[%c0_161, %c0_162] : memref<128x512xbf16, #tpu.memory_space<vmem>>, vector<128x512xbf16>
    %cst_163 = arith.constant dense<0.000000e+00> : vector<8x512xf32>
    %332 = tpu.matmul %330, %331, %cst_163 {dimension_numbers = #tpu.dot_dimension_numbers<[1], [0], [0], [1], [0, 0, 1, 1], [], []>} : vector<8x128xbf16>, vector<128x512xbf16>, vector<8x512xf32> -> vector<8x512xf32>
    %333 = arith.truncf %327 : vector<8x128xf32> to vector<8x128xbf16>
    %c0_164 = arith.constant 0 : index
    %c0_165 = arith.constant 0 : index
    %334 = vector.load %arg5[%c0_164, %c0_165] : memref<128x512xbf16, #tpu.memory_space<vmem>>, vector<128x512xbf16>
    %cst_166 = arith.constant dense<0.000000e+00> : vector<8x512xf32>
    %335 = tpu.matmul %333, %334, %cst_166 {dimension_numbers = #tpu.dot_dimension_numbers<[1], [0], [0], [1], [0, 0, 1, 1], [], []>} : vector<8x128xbf16>, vector<128x512xbf16>, vector<8x512xf32> -> vector<8x512xf32>
    %336 = arith.addf %332, %335 : vector<8x512xf32>
    %c0_167 = arith.constant 0 : index
    %c0_168 = arith.constant 0 : index
    %337 = vector.load %arg6[%c0_167, %c0_168] : memref<1x512xf32, #tpu.memory_space<vmem>>, vector<1x512xf32>
    %338 = vector.broadcast %337 : vector<1x512xf32> to vector<8x512xf32>
    %339 = arith.addf %336, %338 : vector<8x512xf32>
    %340 = vector.extract_strided_slice %339 {offsets = [0, 0], sizes = [8, 128], strides = [1, 1]} : vector<8x512xf32> to vector<8x128xf32>
    %341 = arith.negf %340 : vector<8x128xf32>
    %342 = math.exp %341 : vector<8x128xf32>
    %cst_169 = arith.constant 1.000000e+00 : f32
    %343 = vector.broadcast %cst_169 : f32 to vector<8x128xf32>
    %344 = arith.addf %343, %342 : vector<8x128xf32>
    %345 = arith.divf %343, %344 : vector<8x128xf32>
    %346 = vector.extract_strided_slice %339 {offsets = [0, 128], sizes = [8, 128], strides = [1, 1]} : vector<8x512xf32> to vector<8x128xf32>
    %347 = arith.negf %346 : vector<8x128xf32>
    %348 = math.exp %347 : vector<8x128xf32>
    %cst_170 = arith.constant 1.000000e+00 : f32
    %349 = vector.broadcast %cst_170 : f32 to vector<8x128xf32>
    %350 = arith.addf %349, %348 : vector<8x128xf32>
    %351 = arith.divf %349, %350 : vector<8x128xf32>
    %352 = vector.extract_strided_slice %339 {offsets = [0, 256], sizes = [8, 128], strides = [1, 1]} : vector<8x512xf32> to vector<8x128xf32>
    %353 = math.tanh %352 : vector<8x128xf32>
    %354 = vector.extract_strided_slice %339 {offsets = [0, 384], sizes = [8, 128], strides = [1, 1]} : vector<8x512xf32> to vector<8x128xf32>
    %355 = arith.negf %354 : vector<8x128xf32>
    %356 = math.exp %355 : vector<8x128xf32>
    %cst_171 = arith.constant 1.000000e+00 : f32
    %357 = vector.broadcast %cst_171 : f32 to vector<8x128xf32>
    %358 = arith.addf %357, %356 : vector<8x128xf32>
    %359 = arith.divf %357, %358 : vector<8x128xf32>
    %360 = arith.mulf %351, %329 : vector<8x128xf32>
    %361 = arith.mulf %345, %353 : vector<8x128xf32>
    %362 = arith.addf %360, %361 : vector<8x128xf32>
    %363 = math.tanh %362 : vector<8x128xf32>
    %364 = arith.mulf %359, %363 : vector<8x128xf32>
    %c7_172 = arith.constant 7 : index
    %c0_173 = arith.constant 0 : index
    %c0_174 = arith.constant 0 : index
    %365 = vector.load %arg11[%c7_172, %c0_173, %c0_174] : memref<8x8x128xf32, #tpu.memory_space<vmem>>, vector<1x8x128xf32>
    %366 = vector.shape_cast %365 : vector<1x8x128xf32> to vector<8x128xf32>
    %367 = vector.shape_cast %364 : vector<8x128xf32> to vector<1x8x128xf32>
    tpu.vector_store %arg11[%c7_172, %c0_173, %c0_174], %367 {strides = array<i32>} : memref<8x8x128xf32, #tpu.memory_space<vmem>>, vector<1x8x128xf32>,
    %c7_175 = arith.constant 7 : index
    %c0_176 = arith.constant 0 : index
    %c0_177 = arith.constant 0 : index
    %368 = vector.load %arg12[%c7_175, %c0_176, %c0_177] : memref<8x8x128xf32, #tpu.memory_space<vmem>>, vector<1x8x128xf32>
    %369 = vector.shape_cast %368 : vector<1x8x128xf32> to vector<8x128xf32>
    %370 = vector.shape_cast %362 : vector<8x128xf32> to vector<1x8x128xf32>
    tpu.vector_store %arg12[%c7_175, %c0_176, %c0_177], %370 {strides = array<i32>} : memref<8x8x128xf32, #tpu.memory_space<vmem>>, vector<1x8x128xf32>,
    %371 = arith.addf %364, %325 : vector<8x128xf32>
    %c0_178 = arith.constant 0 : index
    %c0_179 = arith.constant 0 : index
    %c0_180 = arith.constant 0 : index
    %372 = vector.load %arg3[%c0_178, %c0_179, %c0_180] : memref<8x8x128xbf16, #tpu.memory_space<vmem>>, vector<8x8x128xbf16>
    %373 = arith.truncf %371 : vector<8x128xf32> to vector<8x128xbf16>
    %c0_181 = arith.constant 0 : index
    %c0_182 = arith.constant 0 : index
    %374 = vector.load %arg7[%c0_181, %c0_182] : memref<128x128xbf16, #tpu.memory_space<vmem>>, vector<128x128xbf16>
    %cst_183 = arith.constant dense<0.000000e+00> : vector<8x128xf32>
    %375 = tpu.matmul %373, %374, %cst_183 {dimension_numbers = #tpu.dot_dimension_numbers<[1], [0], [0], [1], [0, 0, 1, 1], [], []>} : vector<8x128xbf16>, vector<128x128xbf16>, vector<8x128xf32> -> vector<8x128xf32>
    %376 = vector.shape_cast %375 : vector<8x128xf32> to vector<8x1x128xf32>
    %377 = arith.truncf %376 : vector<8x1x128xf32> to vector<8x1x128xbf16>
    "tpu.trace_start"() <{level = 10 : i32, message = "bqd,bsd->bqs"}> : () -> ()
    %cst_184 = arith.constant dense<0.000000e+00> : vector<8x1x8xf32>
    %378 = tpu.matmul %377, %372, %cst_184 {dimension_numbers = #tpu.dot_dimension_numbers<[2], [2], [1], [1], [0, 0, 0, 1, 1, 1], [0], [0]>} : vector<8x1x128xbf16>, vector<8x8x128xbf16>, vector<8x1x8xf32> -> vector<8x1x8xf32>
    "tpu.trace_stop"() : () -> ()
    %cst_185 = arith.constant dense<0xFF800000> : vector<8x1xf32>
    %379 = vector.multi_reduction <maximumf>, %378, %cst_185 [2] : vector<8x1x8xf32> to vector<8x1xf32>
    %cst_186 = arith.constant 0xFF800000 : f32
    %380 = vector.broadcast %cst_186 : f32 to vector<8x1xf32>
    %381 = arith.maximumf %380, %379 : vector<8x1xf32>
    %382 = vector.shape_cast %381 : vector<8x1xf32> to vector<8x1x1xf32>
    %383 = vector.broadcast %382 : vector<8x1x1xf32> to vector<8x1x8xf32>
    %384 = arith.subf %378, %383 : vector<8x1x8xf32>
    %385 = math.exp %384 : vector<8x1x8xf32>
    %cst_187 = arith.constant dense<0.000000e+00> : vector<8x1xf32>
    %386 = vector.multi_reduction <add>, %385, %cst_187 [2] : vector<8x1x8xf32> to vector<8x1xf32>
    %387 = vector.shape_cast %386 : vector<8x1xf32> to vector<8x1x1xf32>
    %388 = vector.broadcast %387 : vector<8x1x1xf32> to vector<8x1x8xf32>
    %389 = arith.divf %385, %388 : vector<8x1x8xf32>
    %390 = arith.truncf %389 : vector<8x1x8xf32> to vector<8x1x8xbf16>
    "tpu.trace_start"() <{level = 10 : i32, message = "bqs,bsd->bqd"}> : () -> ()
    %cst_188 = arith.constant dense<0.000000e+00> : vector<8x1x128xf32>
    %391 = tpu.matmul %390, %372, %cst_188 {dimension_numbers = #tpu.dot_dimension_numbers<[2], [1], [1], [2], [0, 0, 0, 1, 1, 2], [0], [0]>} : vector<8x1x8xbf16>, vector<8x8x128xbf16>, vector<8x1x128xf32> -> vector<8x1x128xf32>
    "tpu.trace_stop"() : () -> ()
    %392 = vector.shape_cast %391 : vector<8x1x128xf32> to vector<8x128xf32>
    %393 = arith.truncf %392 : vector<8x128xf32> to vector<8x128xbf16>
    %c0_189 = arith.constant 0 : index
    %c0_190 = arith.constant 0 : index
    %394 = vector.load %arg8[%c0_189, %c0_190] : memref<128x128xbf16, #tpu.memory_space<vmem>>, vector<128x128xbf16>
    %cst_191 = arith.constant dense<0.000000e+00> : vector<8x128xf32>
    %395 = tpu.matmul %393, %394, %cst_191 {dimension_numbers = #tpu.dot_dimension_numbers<[1], [0], [0], [1], [0, 0, 1, 1], [], []>} : vector<8x128xbf16>, vector<128x128xbf16>, vector<8x128xf32> -> vector<8x128xf32>
    %396 = arith.truncf %375 : vector<8x128xf32> to vector<8x128xbf16>
    %c0_192 = arith.constant 0 : index
    %c0_193 = arith.constant 0 : index
    %397 = vector.load %arg9[%c0_192, %c0_193] : memref<128x128xbf16, #tpu.memory_space<vmem>>, vector<128x128xbf16>
    %cst_194 = arith.constant dense<0.000000e+00> : vector<8x128xf32>
    %398 = tpu.matmul %396, %397, %cst_194 {dimension_numbers = #tpu.dot_dimension_numbers<[1], [0], [0], [1], [0, 0, 1, 1], [], []>} : vector<8x128xbf16>, vector<128x128xbf16>, vector<8x128xf32> -> vector<8x128xf32>
    %399 = arith.addf %395, %398 : vector<8x128xf32>
    %400 = math.tanh %399 : vector<8x128xf32>
    %c0_195 = arith.constant 0 : index
    %c0_196 = arith.constant 0 : index
    %401 = vector.load %arg13[%c0_195, %c0_196] : memref<8x128xf32, #tpu.memory_space<vmem>>, vector<8x128xf32>
    tpu.vector_store %arg13[%c0_195, %c0_196], %400 {strides = array<i32>} : memref<8x128xf32, #tpu.memory_space<vmem>>, vector<8x128xf32>,
    %c0_197 = arith.constant 0 : index
    %c0_198 = arith.constant 0 : index
    %c0_199 = arith.constant 0 : index
    %402 = vector.load %arg10[%c0_197, %c0_198, %c0_199] : memref<1x8x128xf32, #tpu.memory_space<vmem>>, vector<1x8x128xf32>
    %403 = vector.shape_cast %402 : vector<1x8x128xf32> to vector<8x128xf32>
    %404 = vector.shape_cast %400 : vector<8x128xf32> to vector<1x8x128xf32>
    tpu.vector_store %arg10[%c0_197, %c0_198, %c0_199], %404 {strides = array<i32>} : memref<1x8x128xf32, #tpu.memory_space<vmem>>, vector<1x8x128xf32>,
    return
  }
  func.func @transform_0(%arg0: i32, %arg1: i32) -> (i32, i32) {
    %c0_i32 = arith.constant 0 : i32
    %c0_i32_0 = arith.constant 0 : i32
    return %arg0, %c0_i32 : i32, i32
  }
  func.func @transform_1(%arg0: i32, %arg1: i32) -> (i32, i32, i32) {
    %c0_i32 = arith.constant 0 : i32
    %c0_i32_0 = arith.constant 0 : i32
    %c0_i32_1 = arith.constant 0 : i32
    return %arg0, %c0_i32, %c0_i32_0 : i32, i32, i32
  }
  func.func @transform_2(%arg0: i32, %arg1: i32) -> (i32, i32) {
    %c0_i32 = arith.constant 0 : i32
    %c0_i32_0 = arith.constant 0 : i32
    %c0_i32_1 = arith.constant 0 : i32
    return %c0_i32, %c0_i32_0 : i32, i32
  }
  func.func @transform_3(%arg0: i32, %arg1: i32) -> (i32, i32) {
    %c0_i32 = arith.constant 0 : i32
    %c0_i32_0 = arith.constant 0 : i32
    %c0_i32_1 = arith.constant 0 : i32
    return %c0_i32, %c0_i32_0 : i32, i32
  }
  func.func @transform_4(%arg0: i32, %arg1: i32) -> (i32, i32) {
    %c0_i32 = arith.constant 0 : i32
    %c0_i32_0 = arith.constant 0 : i32
    %c0_i32_1 = arith.constant 0 : i32
    return %c0_i32, %c0_i32_0 : i32, i32
  }
  func.func @transform_5(%arg0: i32, %arg1: i32) -> (i32, i32) {
    %c0_i32 = arith.constant 0 : i32
    %c0_i32_0 = arith.constant 0 : i32
    %c0_i32_1 = arith.constant 0 : i32
    return %c0_i32, %c0_i32_0 : i32, i32
  }
  func.func @transform_6(%arg0: i32, %arg1: i32) -> (i32, i32) {
    %c0_i32 = arith.constant 0 : i32
    %c0_i32_0 = arith.constant 0 : i32
    %c0_i32_1 = arith.constant 0 : i32
    return %c0_i32, %c0_i32_0 : i32, i32
  }
  func.func @transform_7(%arg0: i32, %arg1: i32) -> (i32, i32) {
    %c0_i32 = arith.constant 0 : i32
    %c0_i32_0 = arith.constant 0 : i32
    %c0_i32_1 = arith.constant 0 : i32
    return %c0_i32, %c0_i32_0 : i32, i32
  }
  func.func @transform_8(%arg0: i32, %arg1: i32) -> (i32, i32, i32) {
    %c0_i32 = arith.constant 0 : i32
    %c0_i32_0 = arith.constant 0 : i32
    return %arg1, %arg0, %c0_i32 : i32, i32, i32
  }
}

</mosaic_0001>

<bundles_post_ra>
// kernel: gnmt_forward.2
= control target key start
LH: loop header
LB: loop body
LE: loop exit
PB: predicated region body
PF: predicated region fallthrough
CT: control target
= control target key end

     0   :  { %v7330_v1 = vmov 0   ;;  %v64_v45 = vlaneseq  ;;  %s9605_s1 = inlined_call_operand.vmem [shape: bf16[128,512], index: 1, kind: input, shape index: {}]   ;;  %s9606_s2 = inlined_call_operand.vmem [shape: bf16[128,512], index: 2, kind: input, shape index: {}]   ;;  %s9607_s4 = inlined_call_operand.vmem [shape: f32[8,8,128], index: 4, kind: output, shape index: {}]   ;;  %s9608_s0 = inlined_call_operand.vmem [shape: f32[8,8,128], index: 0, kind: input, shape index: {}]   ;;  %s9609_s3 = inlined_call_operand.vmem [shape: f32[1,512], index: 3, kind: input, shape index: {}]  }
   0x1   :  { %v6290_v0 = vld [vmem:[%s9605_s1 + $0x4] ss:$16 sps:$4 sm:$0xff]   ;;  %276 = vmatprep.mubr.bf16.mxu0 %v7330_v1  ;;  %349 = vmatprep.mubr.bf16.mxu1 %v7330_v1  ;;  %v6292_v2 = vld [vmem:[%s9605_s1 + $0xc] ss:$16 sps:$4 sm:$0xff]   ;;  %v6294_v3 = vld [vmem:[%s9605_s1] ss:$16 sps:$4 sm:$0xff]  }
   0x2   :  { %244 = vmatprep.subr.bf16.mxu0 %v6290_v0  ;;  %v6295_v4 = vld [vmem:[%s9605_s1 + $0x8] ss:$16 sps:$4 sm:$0xff]   ;;  %317 = vmatprep.subr.bf16.mxu1 %v6292_v2  ;;  %v6296_v5 = vld [vmem:[%s9605_s1 + $0x24] ss:$16 sps:$4 sm:$0xff]   ;;  %v6298_v6 = vld [vmem:[%s9605_s1 + $0x2c] ss:$16 sps:$4 sm:$0xff]  }
   0x3   :  { %245 = vmatpush1.bf16.msra.mxu0 %v6294_v3  ;;  %318 = vmatpush1.bf16.msra.mxu1 %v6295_v4  ;;  %v6300_v7 = vld [vmem:[%s9605_s1 + $0x20] ss:$16 sps:$4 sm:$0xff]   ;;  %v6301_v8 = vld [vmem:[%s9605_s1 + $0x28] ss:$16 sps:$4 sm:$0xff]   ;;  %v6302_v9 = vld [vmem:[%s9605_s1 + $0x44] ss:$16 sps:$4 sm:$0xff]  }
   0x4   :  { %246 = vmatprep.subr.bf16.mxu0 %v6296_v5  ;;  %319 = vmatprep.subr.bf16.mxu1 %v6298_v6  ;;  %v6304_v10 = vld [vmem:[%s9605_s1 + $0x4c] ss:$16 sps:$4 sm:$0xff]   ;;  %v6306_v11 = vld [vmem:[%s9605_s1 + $0x40] ss:$16 sps:$4 sm:$0xff]   ;;  %v6307_v12 = vld [vmem:[%s9605_s1 + $0x48] ss:$16 sps:$4 sm:$0xff]  }
   0x5   :  { %v6308_v13 = vld [vmem:[%s9605_s1 + $0x64] ss:$16 sps:$4 sm:$0xff]   ;;  %v6310_v14 = vld [vmem:[%s9605_s1 + $0x6c] ss:$16 sps:$4 sm:$0xff]   ;;  %v6312_v15 = vld [vmem:[%s9605_s1 + $0x60] ss:$16 sps:$4 sm:$0xff]  }
   0x6   :  { %v6313_v16 = vld [vmem:[%s9605_s1 + $0x68] ss:$16 sps:$4 sm:$0xff]   ;;  %v6314_v17 = vld [vmem:[%s9605_s1 + $0x84] ss:$16 sps:$4 sm:$0xff]   ;;  %v6316_v18 = vld [vmem:[%s9605_s1 + $0x8c] ss:$16 sps:$4 sm:$0xff]  }
   0x7   :  { %247 = vmatpush1.bf16.msra.mxu0 %v6300_v7  ;;  %320 = vmatpush1.bf16.msra.mxu1 %v6301_v8  ;;  %v6318_v19 = vld [vmem:[%s9605_s1 + $0x80] ss:$16 sps:$4 sm:$0xff]   ;;  %v6319_v20 = vld [vmem:[%s9605_s1 + $0x88] ss:$16 sps:$4 sm:$0xff]   ;;  %v6320_v21 = vld [vmem:[%s9605_s1 + $0xa4] ss:$16 sps:$4 sm:$0xff]  }
   0x8   :  { %248 = vmatprep.subr.bf16.mxu0 %v6302_v9  ;;  %321 = vmatprep.subr.bf16.mxu1 %v6304_v10  ;;  %v6322_v22 = vld [vmem:[%s9605_s1 + $0xac] ss:$16 sps:$4 sm:$0xff]   ;;  %v6324_v23 = vld [vmem:[%s9605_s1 + $0xa0] ss:$16 sps:$4 sm:$0xff]   ;;  %v6325_v24 = vld [vmem:[%s9605_s1 + $0xa8] ss:$16 sps:$4 sm:$0xff]  }
   0x9   :  { %v6326_v25 = vld [vmem:[%s9605_s1 + $0xc4] ss:$16 sps:$4 sm:$0xff]   ;;  %v6328_v26 = vld [vmem:[%s9605_s1 + $0xcc] ss:$16 sps:$4 sm:$0xff]   ;;  %v6330_v27 = vld [vmem:[%s9605_s1 + $0xc0] ss:$16 sps:$4 sm:$0xff]  }
   0xa   :  { %v6331_v28 = vld [vmem:[%s9605_s1 + $0xc8] ss:$16 sps:$4 sm:$0xff]   ;;  %v6332_v29 = vld [vmem:[%s9605_s1 + $0xe4] ss:$16 sps:$4 sm:$0xff]   ;;  %v6334_v30 = vld [vmem:[%s9605_s1 + $0xec] ss:$16 sps:$4 sm:$0xff]  }
   0xb   :  { %249 = vmatpush1.bf16.msra.mxu0 %v6306_v11  ;;  %322 = vmatpush1.bf16.msra.mxu1 %v6307_v12  ;;  %v6336_v31 = vld [vmem:[%s9605_s1 + $0xe0] ss:$16 sps:$4 sm:$0xff]   ;;  %v6337_v32 = vld [vmem:[%s9605_s1 + $0xe8] ss:$16 sps:$4 sm:$0xff]   ;;  %v65_v46 = vshrl.u32 %v64_v45, 7 }
   0xc   :  { %250 = vmatprep.subr.bf16.mxu0 %v6308_v13  ;;  %323 = vmatprep.subr.bf16.mxu1 %v6310_v14  ;;  %v18_v33 = vld [vmem:[%s9608_s0] sm:$0xff]  ;;  %v19_v34 = vld [vmem:[%s9608_s0 + $0x8] sm:$0xff]  ;;  %v20_v36 = vld [vmem:[%s9608_s0 + $0x10] sm:$0xff] }
   0xd   :  { %v26_v35 = vpack.c.bf16 %v19_v34, %v18_v33  ;;  %v21_v37 = vld [vmem:[%s9608_s0 + $0x18] sm:$0xff]  ;;  %v22_v39 = vld [vmem:[%s9608_s0 + $0x20] sm:$0xff]  ;;  %v23_v40 = vld [vmem:[%s9608_s0 + $0x28] sm:$0xff]  ;;  %v7492_v47 = vsub.s32 0, %v65_v46  ;;  %v7494_v48 = vsub.s32 2, %v65_v46  ;;  %v7499_v50 = vsub.s32 1, %v65_v46 }
   0xe   :  { %v27_v38 = vpack.c.bf16 %v21_v37, %v20_v36  ;;  %v28_v41 = vpack.c.bf16 %v23_v40, %v22_v39  ;;  %v24_v42 = vld [vmem:[%s9608_s0 + $0x30] sm:$0xff]  ;;  %v25_v43 = vld [vmem:[%s9608_s0 + $0x38] sm:$0xff]  ;;  %v62_v49 = vld [vmem:[%s9609_s3] sm:$0xf]  ;;  %v7501_v51 = vsub.s32 3, %v65_v46  ;;  %s7551_s0 = smov 0  }
   0xf   :  { %251 = vmatpush1.bf16.msra.mxu0 %v6312_v15  ;;  %324 = vmatpush1.bf16.msra.mxu1 %v6313_v16  ;;  %v29_v44 = vpack.c.bf16 %v25_v43, %v24_v42  ;;  %v7504_v52 = vrot.slane %v62_v49, %v7492_v47  ;;  %v7507_v53 = vrot.slane %v62_v49, %v7494_v48 }
  0x10   :  { %252 = vmatprep.subr.bf16.mxu0 %v6314_v17  ;;  %325 = vmatprep.subr.bf16.mxu1 %v6316_v18  ;;  %v7510_v54 = vrot.slane %v62_v49, %v7499_v50  ;;  %v7513_v55 = vrot.slane %v62_v49, %v7501_v51 }
  0x13   :  { %253 = vmatpush1.bf16.msra.mxu0 %v6318_v19  ;;  %326 = vmatpush1.bf16.msra.mxu1 %v6319_v20 }
  0x14   :  { %254 = vmatprep.subr.bf16.mxu0 %v6320_v21  ;;  %327 = vmatprep.subr.bf16.mxu1 %v6322_v22 }
  0x17   :  { %255 = vmatpush1.bf16.msra.mxu0 %v6324_v23  ;;  %328 = vmatpush1.bf16.msra.mxu1 %v6325_v24 }
  0x18   :  { %256 = vmatprep.subr.bf16.mxu0 %v6326_v25  ;;  %329 = vmatprep.subr.bf16.mxu1 %v6328_v26 }
  0x1b   :  { %257 = vmatpush1.bf16.msra.mxu0 %v6330_v27  ;;  %330 = vmatpush1.bf16.msra.mxu1 %v6331_v28 }
  0x1c   :  { %258 = vmatprep.subr.bf16.mxu0 %v6332_v29  ;;  %331 = vmatprep.subr.bf16.mxu1 %v6334_v30 }
  0x1f   :  { %259 = vmatpush1.bf16.msra.mxu0 %v6336_v31  ;;  %332 = vmatpush1.bf16.msra.mxu1 %v6337_v32 }
  0x22   :  { %277 = vmatmul.mubr.bf16.vlgmr.msra.gmra.mrb[0].mxu0 %v26_v35  ;;  %350 = vmatmul.mubr.bf16.vlgmr.msra.gmra.mrb[0].mxu1 %v26_v35 }
  0x23   :  { %286 = vmatprep.mubr.bf16.mxu0 %v7330_v1  ;;  %359 = vmatprep.mubr.bf16.mxu1 %v7330_v1 }
  0x2a   :  { %287 = vmatmul.mubr.bf16.gmra.mrb[4].mxu0 %v27_v38  ;;  %360 = vmatmul.mubr.bf16.gmra.mrb[4].mxu1 %v27_v38 }
  0x2b   :  { %296 = vmatprep.mubr.bf16.mxu0 %v7330_v1  ;;  %369 = vmatprep.mubr.bf16.mxu1 %v7330_v1 }
  0x32   :  { %297 = vmatmul.mubr.bf16.gmra.mrb[8].mxu0 %v28_v41  ;;  %370 = vmatmul.mubr.bf16.gmra.mrb[8].mxu1 %v28_v41 }
  0x33   :  { %306 = vmatprep.mubr.bf16.mxu0 %v7330_v1  ;;  %379 = vmatprep.mubr.bf16.mxu1 %v7330_v1 }
  0x3a   :  { %307 = vmatmul.mubr.bf16.gmra.mrb[12].mxu0 %v29_v44  ;;  %380 = vmatmul.mubr.bf16.gmra.mrb[12].mxu1 %v29_v44 }
  0xf5   :  { %v278_v56 = vpop.f32.mrb[0].mxu0  ;;  %v351_v57 = vpop.f32.mrb[0].mxu1 }
  0xf6   :  { %v279_v58 = vadd.f32 %v278_v56, %v7504_v52  ;;  %v352_v59 = vadd.f32 %v351_v57, %v7507_v53  ;;  %v280_v60 = vpop.f32.mrb[1].mxu0  ;;  %v353_v61 = vpop.f32.mrb[1].mxu1 }
  0xf7   :  { %v281_v62 = vadd.f32 %v280_v60, %v7510_v54  ;;  %v354_v63 = vadd.f32 %v353_v61, %v7513_v55  ;;  %v282_v0 = vpop.f32.mrb[2].mxu0  ;;  %v355_v2 = vpop.f32.mrb[2].mxu1 }
  0xf8   :  { %390 = vst [vmem:[#allocation2] sm:$0xff] %v279_v58  ;;  %392 = vst [vmem:[#allocation2 + $0x10] sm:$0xff] %v352_v59  ;;  %v283_v3 = vadd.f32 %v282_v0, %v7504_v52  ;;  %v356_v4 = vadd.f32 %v355_v2, %v7507_v53  ;;  %v284_v5 = vpop.f32.mrb[3].mxu0  ;;  %v357_v6 = vpop.f32.mrb[3].mxu1  ;;  %v7547_v2 = vmov 0.0  }
  0xf9   :  { %391 = vst [vmem:[#allocation2 + $0x8] sm:$0xff] %v281_v62  ;;  %393 = vst [vmem:[#allocation2 + $0x18] sm:$0xff] %v354_v63  ;;  %v285_v7 = vadd.f32 %v284_v5, %v7510_v54  ;;  %v358_v8 = vadd.f32 %v357_v6, %v7513_v55 }
  0xfa   :  { %394 = vst [vmem:[#allocation2 + $0x20] sm:$0xff] %v283_v3  ;;  %396 = vst [vmem:[#allocation2 + $0x30] sm:$0xff] %v356_v4  ;;  %v7549_v3 = vmov 0.0  }
  0xfb   :  { %395 = vst [vmem:[#allocation2 + $0x28] sm:$0xff] %v285_v7  ;;  %397 = vst [vmem:[#allocation2 + $0x38] sm:$0xff] %v358_v8 }
  0xfd   :  { %v288_v9 = vpop.f32.mrb[4].mxu0  ;;  %v361_v10 = vpop.f32.mrb[4].mxu1 }
  0xfe   :  { %v289_v11 = vadd.f32 %v288_v9, %v7504_v52  ;;  %v362_v12 = vadd.f32 %v361_v10, %v7507_v53  ;;  %v290_v13 = vpop.f32.mrb[5].mxu0  ;;  %v363_v14 = vpop.f32.mrb[5].mxu1 }
  0xff   :  { %v291_v15 = vadd.f32 %v290_v13, %v7510_v54  ;;  %v364_v16 = vadd.f32 %v363_v14, %v7513_v55  ;;  %v292_v17 = vpop.f32.mrb[6].mxu0  ;;  %v365_v18 = vpop.f32.mrb[6].mxu1 }
 0x100   :  { %398 = vst [vmem:[#allocation2 + $0x40] sm:$0xff] %v289_v11  ;;  %400 = vst [vmem:[#allocation2 + $0x50] sm:$0xff] %v362_v12  ;;  %v293_v19 = vadd.f32 %v292_v17, %v7504_v52  ;;  %v366_v20 = vadd.f32 %v365_v18, %v7507_v53  ;;  %v294_v21 = vpop.f32.mrb[7].mxu0  ;;  %v367_v22 = vpop.f32.mrb[7].mxu1 }
 0x101   :  { %399 = vst [vmem:[#allocation2 + $0x48] sm:$0xff] %v291_v15  ;;  %401 = vst [vmem:[#allocation2 + $0x58] sm:$0xff] %v364_v16  ;;  %v295_v23 = vadd.f32 %v294_v21, %v7510_v54  ;;  %v368_v24 = vadd.f32 %v367_v22, %v7513_v55 }
 0x102   :  { %402 = vst [vmem:[#allocation2 + $0x60] sm:$0xff] %v293_v19  ;;  %404 = vst [vmem:[#allocation2 + $0x70] sm:$0xff] %v366_v20 }
 0x103   :  { %403 = vst [vmem:[#allocation2 + $0x68] sm:$0xff] %v295_v23  ;;  %405 = vst [vmem:[#allocation2 + $0x78] sm:$0xff] %v368_v24 }
 0x105   :  { %v298_v25 = vpop.f32.mrb[8].mxu0  ;;  %v371_v26 = vpop.f32.mrb[8].mxu1 }
 0x106   :  { %v299_v27 = vadd.f32 %v298_v25, %v7504_v52  ;;  %v372_v28 = vadd.f32 %v371_v26, %v7507_v53  ;;  %v300_v29 = vpop.f32.mrb[9].mxu0  ;;  %v373_v30 = vpop.f32.mrb[9].mxu1 }
 0x107   :  { %v301_v31 = vadd.f32 %v300_v29, %v7510_v54  ;;  %v374_v32 = vadd.f32 %v373_v30, %v7513_v55  ;;  %v302_v33 = vpop.f32.mrb[10].mxu0  ;;  %v375_v34 = vpop.f32.mrb[10].mxu1 }
 0x108   :  { %406 = vst [vmem:[#allocation2 + $0x80] sm:$0xff] %v299_v27  ;;  %408 = vst [vmem:[#allocation2 + $0x90] sm:$0xff] %v372_v28  ;;  %v303_v35 = vadd.f32 %v302_v33, %v7504_v52  ;;  %v376_v36 = vadd.f32 %v375_v34, %v7507_v53  ;;  %v304_v37 = vpop.f32.mrb[11].mxu0  ;;  %v377_v38 = vpop.f32.mrb[11].mxu1 }
 0x109   :  { %407 = vst [vmem:[#allocation2 + $0x88] sm:$0xff] %v301_v31  ;;  %409 = vst [vmem:[#allocation2 + $0x98] sm:$0xff] %v374_v32  ;;  %v305_v39 = vadd.f32 %v304_v37, %v7510_v54  ;;  %v378_v40 = vadd.f32 %v377_v38, %v7513_v55 }
 0x10a   :  { %410 = vst [vmem:[#allocation2 + $0xa0] sm:$0xff] %v303_v35  ;;  %412 = vst [vmem:[#allocation2 + $0xb0] sm:$0xff] %v376_v36 }
 0x10b   :  { %411 = vst [vmem:[#allocation2 + $0xa8] sm:$0xff] %v305_v39  ;;  %413 = vst [vmem:[#allocation2 + $0xb8] sm:$0xff] %v378_v40 }
 0x10d   :  { %v308_v41 = vpop.f32.mrb[12].mxu0  ;;  %v381_v42 = vpop.f32.mrb[12].mxu1 }
 0x10e   :  { %v309_v43 = vadd.f32 %v308_v41, %v7504_v52  ;;  %v382_v44 = vadd.f32 %v381_v42, %v7507_v53  ;;  %v310_v45 = vpop.f32.mrb[13].mxu0  ;;  %v383_v46 = vpop.f32.mrb[13].mxu1 }
 0x10f   :  { %v311_v49 = vadd.f32 %v310_v45, %v7510_v54  ;;  %v384_v56 = vadd.f32 %v383_v46, %v7513_v55  ;;  %v312_v57 = vpop.f32.mrb[14].mxu0  ;;  %v385_v58 = vpop.f32.mrb[14].mxu1 }
 0x110   :  { %414 = vst [vmem:[#allocation2 + $0xc0] sm:$0xff] %v309_v43  ;;  %416 = vst [vmem:[#allocation2 + $0xd0] sm:$0xff] %v382_v44  ;;  %v313_v59 = vadd.f32 %v312_v57, %v7504_v52  ;;  %v386_v60 = vadd.f32 %v385_v58, %v7507_v53  ;;  %v314_v61 = vpop.f32.mrb[15].mxu0  ;;  %v387_v62 = vpop.f32.mrb[15].mxu1 }
 0x111   :  { %415 = vst [vmem:[#allocation2 + $0xc8] sm:$0xff] %v311_v49  ;;  %417 = vst [vmem:[#allocation2 + $0xd8] sm:$0xff] %v384_v56  ;;  %v315_v63 = vadd.f32 %v314_v61, %v7510_v54  ;;  %v388_v0 = vadd.f32 %v387_v62, %v7513_v55 }
 0x112   :  { %418 = vst [vmem:[#allocation2 + $0xe0] sm:$0xff] %v313_v59  ;;  %420 = vst [vmem:[#allocation2 + $0xf0] sm:$0xff] %v386_v60 }
 0x113   :  { %419 = vst [vmem:[#allocation2 + $0xe8] sm:$0xff] %v315_v63  ;;  %421 = vst [vmem:[#allocation2 + $0xf8] sm:$0xff] %v388_v0 }
 0x114 LB: > { %v6338_v52 = vld [vmem:[%s9606_s2 + $0x4] ss:$16 sps:$4 sm:$0xff]   ;;  %v6340_v53 = vld [vmem:[%s9606_s2] ss:$16 sps:$4 sm:$0xff]   ;;  %v7331_v54 = vmov 0   ;;  %v437_v32 = vpack.c.bf16 %v7240_v3, %v7240_v3  ;;  %s6081_s5 = sshll.u32 %s7244_s0, 5  ;;  %s7244_s0 = sphi %s7551_s0, %s427_s0   ;;  %v7240_v3 = vphi %v7549_v3, %v739_v3   ;;  %v7236_v2 = vphi %v7547_v2, %v737_v2  }
 0x115   : > { %662 = vmatprep.mubr.bf16.mxu0 %v7331_v54  ;;  %703 = vmatprep.mubr.bf16.mxu1 %v7331_v54  ;;  %v6341_v55 = vld [vmem:[%s9606_s2 + $0x24] ss:$16 sps:$4 sm:$0xff]   ;;  %v6343_v4 = vld [vmem:[%s9606_s2 + $0x20] ss:$16 sps:$4 sm:$0xff]   ;;  %v6349_v6 = vld [vmem:[%s9606_s2 + $0xc] ss:$16 sps:$4 sm:$0xff]  }
 0x116   : > { %630 = vmatprep.subr.bf16.mxu0 %v6338_v52  ;;  %v6344_v5 = vld [vmem:[%s9606_s2 + $0x44] ss:$16 sps:$4 sm:$0xff]   ;;  %v6352_v7 = vld [vmem:[%s9606_s2 + $0x8] ss:$16 sps:$4 sm:$0xff]   ;;  %v6346_v8 = vld [vmem:[%s9606_s2 + $0x40] ss:$16 sps:$4 sm:$0xff]   ;;  %671 = vmatprep.subr.bf16.mxu1 %v6349_v6 }
 0x117   : > { %631 = vmatpush1.bf16.msra.mxu0 %v6340_v53  ;;  %v6347_v9 = vld [vmem:[%s9606_s2 + $0x64] ss:$16 sps:$4 sm:$0xff]   ;;  %672 = vmatpush1.bf16.msra.mxu1 %v6352_v7  ;;  %v6355_v10 = vld [vmem:[%s9606_s2 + $0x2c] ss:$16 sps:$4 sm:$0xff]   ;;  %v6358_v11 = vld [vmem:[%s9606_s2 + $0x28] ss:$16 sps:$4 sm:$0xff]  }
 0x118   : > { %632 = vmatprep.subr.bf16.mxu0 %v6341_v55  ;;  %673 = vmatprep.subr.bf16.mxu1 %v6355_v10  ;;  %v6351_v12 = vld [vmem:[%s9606_s2 + $0x60] ss:$16 sps:$4 sm:$0xff]   ;;  %v6353_v13 = vld [vmem:[%s9606_s2 + $0x84] ss:$16 sps:$4 sm:$0xff]   ;;  %v6361_v14 = vld [vmem:[%s9606_s2 + $0x4c] ss:$16 sps:$4 sm:$0xff]  }
 0x119   : > { %v6364_v15 = vld [vmem:[%s9606_s2 + $0x48] ss:$16 sps:$4 sm:$0xff]   ;;  %v6367_v16 = vld [vmem:[%s9606_s2 + $0x6c] ss:$16 sps:$4 sm:$0xff]   ;;  %v6357_v17 = vld [vmem:[%s9606_s2 + $0x80] ss:$16 sps:$4 sm:$0xff]  }
 0x11a   : > { %v6359_v18 = vld [vmem:[%s9606_s2 + $0xa4] ss:$16 sps:$4 sm:$0xff]   ;;  %v6370_v19 = vld [vmem:[%s9606_s2 + $0x68] ss:$16 sps:$4 sm:$0xff]   ;;  %v6373_v20 = vld [vmem:[%s9606_s2 + $0x8c] ss:$16 sps:$4 sm:$0xff]  }
 0x11b   : > { %633 = vmatpush1.bf16.msra.mxu0 %v6343_v4  ;;  %674 = vmatpush1.bf16.msra.mxu1 %v6358_v11  ;;  %v6363_v21 = vld [vmem:[%s9606_s2 + $0xa0] ss:$16 sps:$4 sm:$0xff]   ;;  %v6365_v22 = vld [vmem:[%s9606_s2 + $0xc4] ss:$16 sps:$4 sm:$0xff]   ;;  %v6376_v23 = vld [vmem:[%s9606_s2 + $0x88] ss:$16 sps:$4 sm:$0xff]  }
 0x11c   : > { %634 = vmatprep.subr.bf16.mxu0 %v6344_v5  ;;  %675 = vmatprep.subr.bf16.mxu1 %v6361_v14  ;;  %v6377_v24 = vld [vmem:[%s9606_s2 + $0xac] ss:$16 sps:$4 sm:$0xff]   ;;  %v6369_v25 = vld [vmem:[%s9606_s2 + $0xc0] ss:$16 sps:$4 sm:$0xff]   ;;  %v6371_v26 = vld [vmem:[%s9606_s2 + $0xe4] ss:$16 sps:$4 sm:$0xff]  }
 0x11d   : > { %v6379_v27 = vld [vmem:[%s9606_s2 + $0xa8] ss:$16 sps:$4 sm:$0xff]   ;;  %v6380_v28 = vld [vmem:[%s9606_s2 + $0xcc] ss:$16 sps:$4 sm:$0xff]   ;;  %v6375_v29 = vld [vmem:[%s9606_s2 + $0xe0] ss:$16 sps:$4 sm:$0xff]  }
 0x11e   : > { %v6382_v30 = vld [vmem:[%s9606_s2 + $0xc8] ss:$16 sps:$4 sm:$0xff]   ;;  %v6383_v31 = vld [vmem:[%s9606_s2 + $0xec] ss:$16 sps:$4 sm:$0xff]   ;;  %s432_s6 = scalar_lea.vmem [#allocation2], %s6081_s5  ;;  %s5622_s7 = sshll.u32 %s7244_s0, 3 }
 0x11f   : > { %635 = vmatpush1.bf16.msra.mxu0 %v6346_v8  ;;  %676 = vmatpush1.bf16.msra.mxu1 %v6364_v15  ;;  %v6385_v33 = vld [vmem:[%s9606_s2 + $0xe8] ss:$16 sps:$4 sm:$0xff]   ;;  %v433_v34 = vld [vmem:[%s432_s6] sm:$0xff]  ;;  %v435_v58 = vld [vmem:[%s432_s6 + $0x10] sm:$0xff]  ;;  %s741_s10 = scalar_lea.vmem %s9607_s4, %s5622_s7  ;;  %s427_s0 = sadd.s32 1, %s7244_s0  }
 0x120   : > { %636 = vmatprep.subr.bf16.mxu0 %v6347_v9  ;;  %677 = vmatprep.subr.bf16.mxu1 %v6367_v16  ;;  %v434_v35 = vld [vmem:[%s432_s6 + $0x8] sm:$0xff]  ;;  %v436_v44 = vld [vmem:[%s432_s6 + $0x18] sm:$0xff]  ;;  %p424_p0 = scmp.ge.s32.totalorder %s427_s0, 8  }
 0x121   :  { %v7673_v8 = vmov (%p424_p0), 0.0   ;;  %v7675_v9 = vmov (%p424_p0), 0.0   ;;  %s7677_s11 = smov (%p424_p0), 0  }
 0x123   : > { %637 = vmatpush1.bf16.msra.mxu0 %v6351_v12  ;;  %678 = vmatpush1.bf16.msra.mxu1 %v6370_v19 }
 0x124   : > { %638 = vmatprep.subr.bf16.mxu0 %v6353_v13  ;;  %679 = vmatprep.subr.bf16.mxu1 %v6373_v20 }
 0x127   : > { %639 = vmatpush1.bf16.msra.mxu0 %v6357_v17  ;;  %680 = vmatpush1.bf16.msra.mxu1 %v6376_v23 }
 0x128   : > { %640 = vmatprep.subr.bf16.mxu0 %v6359_v18  ;;  %681 = vmatprep.subr.bf16.mxu1 %v6377_v24 }
 0x12b   : > { %641 = vmatpush1.bf16.msra.mxu0 %v6363_v21  ;;  %682 = vmatpush1.bf16.msra.mxu1 %v6379_v27 }
 0x12c   : > { %642 = vmatprep.subr.bf16.mxu0 %v6365_v22  ;;  %683 = vmatprep.subr.bf16.mxu1 %v6380_v28 }
 0x12f   : > { %643 = vmatpush1.bf16.msra.mxu0 %v6369_v25  ;;  %684 = vmatpush1.bf16.msra.mxu1 %v6382_v30 }
 0x130   : > { %644 = vmatprep.subr.bf16.mxu0 %v6371_v26  ;;  %685 = vmatprep.subr.bf16.mxu1 %v6383_v31 }
 0x133   : > { %645 = vmatpush1.bf16.msra.mxu0 %v6375_v29  ;;  %686 = vmatpush1.bf16.msra.mxu1 %v6385_v33 }
 0x136   : > { %663 = vmatmul.mubr.bf16.vlgmr.msra.gmra.mrb[0].mxu0 %v437_v32  ;;  %704 = vmatmul.mubr.bf16.vlgmr.msra.gmra.mrb[0].mxu1 %v437_v32 }
 0x209   : > { %v664_v36 = vpop.f32.mrb[0].mxu0  ;;  %v705_v45 = vpop.f32.mrb[0].mxu1 }
 0x20a   : > { %v712_v37 = vadd.f32 %v664_v36, %v433_v34  ;;  %v666_v38 = vpop.f32.mrb[1].mxu0  ;;  %v707_v46 = vpop.f32.mrb[1].mxu1  ;;  %v714_v60 = vadd.f32 %v705_v45, %v435_v58 }
 0x20b   : > { %v713_v39 = vadd.f32 %v666_v38, %v434_v35  ;;  %v668_v40 = vpop.f32.mrb[2].mxu0  ;;  %v715_v49 = vadd.f32 %v707_v46, %v436_v44  ;;  %v709_v56 = vpop.f32.mrb[2].mxu1 }
 0x20c   : > { %v5619_v41 = vmul.f32 -1.442695, %v712_v37  ;;  %v669_v42 = vpop.f32.mrb[3].mxu0  ;;  %v710_v57 = vpop.f32.mrb[3].mxu1 }
 0x20d   : > { %v5620_v43 = vmul.f32 -1.442695, %v713_v39  ;;  %v5621_v59 = vmul.f32 -1.442695, %v715_v49 }
 0x20e   : > { %6386 = vpow2.f32 %v5619_v41 }
 0x20f   : > { %6388 = vpow2.f32 %v5620_v43 }
 0x210   : > { %6390 = vpow2.f32 %v5621_v59 }
 0x211   : > { %6392 = vtanh.f32 %v714_v60 }
 0x218   : > { %v6387_v61 = vpop.eup %6386 }
 0x219   : > { %v6389_v62 = vpop.eup %6388  ;;  %v719_v63 = vadd.f32 1.0, %v6387_v61 }
 0x21a   : > { %v725_v0 = vadd.f32 1.0, %v6389_v62  ;;  %v6391_v3 = vpop.eup %6390 }
 0x21b   : > { %6394 = vrcp.f32 %v719_v63  ;;  %v6393_v52 = vpop.eup %6392  ;;  %v732_v54 = vadd.f32 1.0, %v6391_v3 }
 0x21c   : > { %6396 = vrcp.f32 %v725_v0 }
 0x21d   : > { %6398 = vrcp.f32 %v732_v54 }
 0x225   : > { %v6395_v53 = vpop.eup %6394 }
 0x226   : > { %v6397_v55 = vpop.eup %6396  ;;  %v736_v4 = vmul.f32 %v6395_v53, %v6393_v52 }
 0x227   : > { %v735_v5 = vmul.f32 %v7236_v2, %v6397_v55  ;;  %v6399_v6 = vpop.eup %6398 }
 0x229   : > { %v737_v2 = vadd.f32 %v736_v4, %v735_v5  }
 0x22b   : > { %6400 = vtanh.f32 %v737_v2 }
 0x232   :  { %426 = sbr.rel (!%p424_p0) target bundleno = 276 (0x114), region = 108 }
 0x235   : > { %v6401_v7 = vpop.eup %6400 }
 0x236   : > { %v739_v3 = vmul.f32 %v6401_v7, %v6399_v6  }
 0x238   : > { %742 = vst [vmem:[%s741_s10] sm:$0xff] %v739_v3 }
 0x239 LB: > { %v6402_v2 = vld [vmem:[%s9606_s2 + $0x4] ss:$16 sps:$4 sm:$0xff]   ;;  %v6404_v10 = vld [vmem:[%s9606_s2] ss:$16 sps:$4 sm:$0xff]   ;;  %v7332_v11 = vmov 0   ;;  %v759_v41 = vpack.c.bf16 %v7252_v9, %v7252_v9  ;;  %s751_s23 = ssub.s32 7, %s7256_s11  ;;  %s7256_s11 = sphi %s7677_s11, %s748_s11   ;;  %v7252_v9 = vphi %v7675_v9, %v1061_v9   ;;  %v7248_v8 = vphi %v7673_v8, %v1059_v8  }
 0x23a   : > { %984 = vmatprep.mubr.bf16.mxu0 %v7332_v11  ;;  %1025 = vmatprep.mubr.bf16.mxu1 %v7332_v11  ;;  %v6405_v12 = vld [vmem:[%s9606_s2 + $0x24] ss:$16 sps:$4 sm:$0xff]   ;;  %v6407_v13 = vld [vmem:[%s9606_s2 + $0x20] ss:$16 sps:$4 sm:$0xff]   ;;  %v6413_v15 = vld [vmem:[%s9606_s2 + $0xc] ss:$16 sps:$4 sm:$0xff]  }
 0x23b   : > { %952 = vmatprep.subr.bf16.mxu0 %v6402_v2  ;;  %v6408_v14 = vld [vmem:[%s9606_s2 + $0x44] ss:$16 sps:$4 sm:$0xff]   ;;  %v6416_v16 = vld [vmem:[%s9606_s2 + $0x8] ss:$16 sps:$4 sm:$0xff]   ;;  %v6410_v17 = vld [vmem:[%s9606_s2 + $0x40] ss:$16 sps:$4 sm:$0xff]   ;;  %993 = vmatprep.subr.bf16.mxu1 %v6413_v15 }
 0x23c   : > { %953 = vmatpush1.bf16.msra.mxu0 %v6404_v10  ;;  %v6411_v18 = vld [vmem:[%s9606_s2 + $0x64] ss:$16 sps:$4 sm:$0xff]   ;;  %994 = vmatpush1.bf16.msra.mxu1 %v6416_v16  ;;  %v6419_v19 = vld [vmem:[%s9606_s2 + $0x2c] ss:$16 sps:$4 sm:$0xff]   ;;  %v6422_v20 = vld [vmem:[%s9606_s2 + $0x28] ss:$16 sps:$4 sm:$0xff]  }
 0x23d   : > { %954 = vmatprep.subr.bf16.mxu0 %v6405_v12  ;;  %995 = vmatprep.subr.bf16.mxu1 %v6419_v19  ;;  %v6415_v21 = vld [vmem:[%s9606_s2 + $0x60] ss:$16 sps:$4 sm:$0xff]   ;;  %v6417_v22 = vld [vmem:[%s9606_s2 + $0x84] ss:$16 sps:$4 sm:$0xff]   ;;  %v6425_v23 = vld [vmem:[%s9606_s2 + $0x4c] ss:$16 sps:$4 sm:$0xff]  }
 0x23e   : > { %v6428_v24 = vld [vmem:[%s9606_s2 + $0x48] ss:$16 sps:$4 sm:$0xff]   ;;  %v6431_v25 = vld [vmem:[%s9606_s2 + $0x6c] ss:$16 sps:$4 sm:$0xff]   ;;  %v6421_v26 = vld [vmem:[%s9606_s2 + $0x80] ss:$16 sps:$4 sm:$0xff]  }
 0x23f   : > { %v6423_v27 = vld [vmem:[%s9606_s2 + $0xa4] ss:$16 sps:$4 sm:$0xff]   ;;  %v6434_v28 = vld [vmem:[%s9606_s2 + $0x68] ss:$16 sps:$4 sm:$0xff]   ;;  %v6437_v29 = vld [vmem:[%s9606_s2 + $0x8c] ss:$16 sps:$4 sm:$0xff]  }
 0x240   : > { %955 = vmatpush1.bf16.msra.mxu0 %v6407_v13  ;;  %996 = vmatpush1.bf16.msra.mxu1 %v6422_v20  ;;  %v6427_v30 = vld [vmem:[%s9606_s2 + $0xa0] ss:$16 sps:$4 sm:$0xff]   ;;  %v6429_v31 = vld [vmem:[%s9606_s2 + $0xc4] ss:$16 sps:$4 sm:$0xff]   ;;  %v6440_v32 = vld [vmem:[%s9606_s2 + $0x88] ss:$16 sps:$4 sm:$0xff]  }
 0x241   : > { %956 = vmatprep.subr.bf16.mxu0 %v6408_v14  ;;  %997 = vmatprep.subr.bf16.mxu1 %v6425_v23  ;;  %v6441_v33 = vld [vmem:[%s9606_s2 + $0xac] ss:$16 sps:$4 sm:$0xff]   ;;  %v6433_v34 = vld [vmem:[%s9606_s2 + $0xc0] ss:$16 sps:$4 sm:$0xff]   ;;  %v6435_v35 = vld [vmem:[%s9606_s2 + $0xe4] ss:$16 sps:$4 sm:$0xff]  }
 0x242   : > { %v6443_v36 = vld [vmem:[%s9606_s2 + $0xa8] ss:$16 sps:$4 sm:$0xff]   ;;  %v6444_v37 = vld [vmem:[%s9606_s2 + $0xcc] ss:$16 sps:$4 sm:$0xff]   ;;  %v6439_v38 = vld [vmem:[%s9606_s2 + $0xe0] ss:$16 sps:$4 sm:$0xff]  }
 0x243   : > { %v6446_v39 = vld [vmem:[%s9606_s2 + $0xc8] ss:$16 sps:$4 sm:$0xff]   ;;  %v6447_v40 = vld [vmem:[%s9606_s2 + $0xec] ss:$16 sps:$4 sm:$0xff]   ;;  %s6082_s24 = sshll.u32 %s751_s23, 5  ;;  %s5660_s26 = sshll.u32 %s7256_s11, 3 }
 0x244   : > { %957 = vmatpush1.bf16.msra.mxu0 %v6410_v17  ;;  %998 = vmatpush1.bf16.msra.mxu1 %v6428_v24  ;;  %v6449_v42 = vld [vmem:[%s9606_s2 + $0xe8] ss:$16 sps:$4 sm:$0xff]   ;;  %s754_s25 = scalar_lea.vmem [#allocation2], %s6082_s24  ;;  %s1063_s29 = scalar_lea.vmem %s9607_s4, %s5660_s26 }
 0x245   : > { %958 = vmatprep.subr.bf16.mxu0 %v6411_v18  ;;  %999 = vmatprep.subr.bf16.mxu1 %v6431_v25  ;;  %v755_v43 = vld [vmem:[%s754_s25] sm:$0xff]  ;;  %v756_v44 = vld [vmem:[%s754_s25 + $0x8] sm:$0xff]  ;;  %v758_v61 = vld [vmem:[%s754_s25 + $0x18] sm:$0xff]  ;;  %s748_s11 = sadd.s32 1, %s7256_s11  }
 0x246   : > { %v757_v53 = vld [vmem:[%s754_s25 + $0x10] sm:$0xff]  ;;  %v1064_v17 = vld [vmem:[%s1063_s29] sm:$0xff]  ;;  %p745_p1 = scmp.ge.s32.totalorder %s748_s11, 8  }
 0x247   :  { %v6466_v19 = vld [vmem:[%s9605_s1 + $0x4] ss:$16 sps:$4 sm:$0xff] (%p745_p1)   ;;  %v6468_v20 = vld [vmem:[%s9605_s1 + $0xc] ss:$16 sps:$4 sm:$0xff] (%p745_p1)   ;;  %v6476_v24 = vld [vmem:[%s9605_s1 + $0x20] ss:$16 sps:$4 sm:$0xff] (%p745_p1)  }
 0x248   : > { %959 = vmatpush1.bf16.msra.mxu0 %v6415_v21  ;;  %1000 = vmatpush1.bf16.msra.mxu1 %v6434_v28  ;;  %v6470_v21 = vld [vmem:[%s9605_s1] ss:$16 sps:$4 sm:$0xff] (%p745_p1)   ;;  %v6474_v23 = vld [vmem:[%s9605_s1 + $0x2c] ss:$16 sps:$4 sm:$0xff] (%p745_p1)   ;;  %v6477_v25 = vld [vmem:[%s9605_s1 + $0x28] ss:$16 sps:$4 sm:$0xff] (%p745_p1)  }
 0x249   : > { %960 = vmatprep.subr.bf16.mxu0 %v6417_v22  ;;  %1001 = vmatprep.subr.bf16.mxu1 %v6437_v29  ;;  %v6472_v22 = vld [vmem:[%s9605_s1 + $0x24] ss:$16 sps:$4 sm:$0xff] (%p745_p1)   ;;  %v6482_v28 = vld [vmem:[%s9605_s1 + $0x40] ss:$16 sps:$4 sm:$0xff] (%p745_p1)   ;;  %v6483_v29 = vld [vmem:[%s9605_s1 + $0x48] ss:$16 sps:$4 sm:$0xff] (%p745_p1)  }
 0x24a   :  { %s7978_s5 = smov (%p745_p1), 0  }
 0x24c   : > { %961 = vmatpush1.bf16.msra.mxu0 %v6421_v26  ;;  %1002 = vmatpush1.bf16.msra.mxu1 %v6440_v32  ;;  %v6478_v26 = vld [vmem:[%s9605_s1 + $0x44] ss:$16 sps:$4 sm:$0xff] (%p745_p1)   ;;  %v6488_v32 = vld [vmem:[%s9605_s1 + $0x60] ss:$16 sps:$4 sm:$0xff] (%p745_p1)  }
 0x24d   : > { %962 = vmatprep.subr.bf16.mxu0 %v6423_v27  ;;  %1003 = vmatprep.subr.bf16.mxu1 %v6441_v33  ;;  %v6480_v27 = vld [vmem:[%s9605_s1 + $0x4c] ss:$16 sps:$4 sm:$0xff] (%p745_p1)   ;;  %v6489_v33 = vld [vmem:[%s9605_s1 + $0x68] ss:$16 sps:$4 sm:$0xff] (%p745_p1)  }
 0x250   : > { %963 = vmatpush1.bf16.msra.mxu0 %v6427_v30  ;;  %1004 = vmatpush1.bf16.msra.mxu1 %v6443_v36  ;;  %v6484_v30 = vld [vmem:[%s9605_s1 + $0x64] ss:$16 sps:$4 sm:$0xff] (%p745_p1)   ;;  %v6494_v36 = vld [vmem:[%s9605_s1 + $0x80] ss:$16 sps:$4 sm:$0xff] (%p745_p1)  }
 0x251   : > { %964 = vmatprep.subr.bf16.mxu0 %v6429_v31  ;;  %1005 = vmatprep.subr.bf16.mxu1 %v6444_v37  ;;  %v6486_v31 = vld [vmem:[%s9605_s1 + $0x6c] ss:$16 sps:$4 sm:$0xff] (%p745_p1)   ;;  %v6495_v37 = vld [vmem:[%s9605_s1 + $0x88] ss:$16 sps:$4 sm:$0xff] (%p745_p1)  }
 0x254   : > { %965 = vmatpush1.bf16.msra.mxu0 %v6433_v34  ;;  %1006 = vmatpush1.bf16.msra.mxu1 %v6446_v39  ;;  %v6490_v34 = vld [vmem:[%s9605_s1 + $0x84] ss:$16 sps:$4 sm:$0xff] (%p745_p1)   ;;  %v6498_v39 = vld [vmem:[%s9605_s1 + $0xac] ss:$16 sps:$4 sm:$0xff] (%p745_p1)  }
 0x255   : > { %966 = vmatprep.subr.bf16.mxu0 %v6435_v35  ;;  %1007 = vmatprep.subr.bf16.mxu1 %v6447_v40  ;;  %v6492_v35 = vld [vmem:[%s9605_s1 + $0x8c] ss:$16 sps:$4 sm:$0xff] (%p745_p1)   ;;  %v6500_v40 = vld [vmem:[%s9605_s1 + $0xa0] ss:$16 sps:$4 sm:$0xff] (%p745_p1)  }
 0x258   : > { %967 = vmatpush1.bf16.msra.mxu0 %v6439_v38  ;;  %1008 = vmatpush1.bf16.msra.mxu1 %v6449_v42  ;;  %v6496_v38 = vld [vmem:[%s9605_s1 + $0xa4] ss:$16 sps:$4 sm:$0xff] (%p745_p1)  }
 0x259   :  { %1293 = vmatprep.subr.bf16.mxu0 (%p745_p1), %v6466_v19  ;;  %1366 = vmatprep.subr.bf16.mxu1 (%p745_p1), %v6468_v20  ;;  %v6502_v42 = vld [vmem:[%s9605_s1 + $0xc4] ss:$16 sps:$4 sm:$0xff] (%p745_p1)  }
 0x25b   : > { %985 = vmatmul.mubr.bf16.vlgmr.msra.gmra.mrb[0].mxu0 %v759_v41  ;;  %1026 = vmatmul.mubr.bf16.vlgmr.msra.gmra.mrb[0].mxu1 %v759_v41  ;;  %v6501_v41 = vld [vmem:[%s9605_s1 + $0xa8] ss:$16 sps:$4 sm:$0xff] (%p745_p1)  }
 0x25c   :  { %1325 = vmatprep.mubr.bf16.mxu0 (%p745_p1), %v7330_v1  ;;  %1398 = vmatprep.mubr.bf16.mxu1 (%p745_p1), %v7330_v1 }
 0x25d   :  { %1294 = vmatpush1.bf16.msra.mxu0 (%p745_p1), %v6470_v21 }
 0x25e   :  { %1295 = vmatprep.subr.bf16.mxu0 (%p745_p1), %v6472_v22 }
 0x261   :  { %1296 = vmatpush1.bf16.msra.mxu0 (%p745_p1), %v6476_v24 }
 0x262   :  { %1297 = vmatprep.subr.bf16.mxu0 (%p745_p1), %v6478_v26 }
 0x265   :  { %1298 = vmatpush1.bf16.msra.mxu0 (%p745_p1), %v6482_v28 }
 0x266   :  { %1299 = vmatprep.subr.bf16.mxu0 (%p745_p1), %v6484_v30 }
 0x269   :  { %1300 = vmatpush1.bf16.msra.mxu0 (%p745_p1), %v6488_v32 }
 0x26a   :  { %1301 = vmatprep.subr.bf16.mxu0 (%p745_p1), %v6490_v34 }
 0x26d   :  { %1302 = vmatpush1.bf16.msra.mxu0 (%p745_p1), %v6494_v36 }
 0x26e   :  { %1303 = vmatprep.subr.bf16.mxu0 (%p745_p1), %v6496_v38 }
 0x271   :  { %1304 = vmatpush1.bf16.msra.mxu0 (%p745_p1), %v6500_v40 }
 0x272   :  { %1305 = vmatprep.subr.bf16.mxu0 (%p745_p1), %v6502_v42 }
 0x32e   : > { %v986_v45 = vpop.f32.mrb[0].mxu0  ;;  %v1027_v62 = vpop.f32.mrb[0].mxu1 }
 0x32f   : > { %v1034_v46 = vadd.f32 %v986_v45, %v755_v43  ;;  %v988_v49 = vpop.f32.mrb[1].mxu0  ;;  %v1029_v63 = vpop.f32.mrb[1].mxu1  ;;  %v1036_v55 = vadd.f32 %v1027_v62, %v757_v53  ;;  %v6504_v43 = vld [vmem:[%s9605_s1 + $0xcc] ss:$16 sps:$4 sm:$0xff] (%p745_p1)   ;;  %v6507_v45 = vld [vmem:[%s9605_s1 + $0xc8] ss:$16 sps:$4 sm:$0xff] (%p745_p1)  }
 0x330   : > { %v1035_v56 = vadd.f32 %v988_v49, %v756_v44  ;;  %v990_v57 = vpop.f32.mrb[2].mxu0  ;;  %v1037_v0 = vadd.f32 %v1029_v63, %v758_v61  ;;  %v1031_v3 = vpop.f32.mrb[2].mxu1  ;;  %v6506_v44 = vld [vmem:[%s9605_s1 + $0xc0] ss:$16 sps:$4 sm:$0xff] (%p745_p1)   ;;  %v6510_v49 = vld [vmem:[%s9605_s1 + $0xec] ss:$16 sps:$4 sm:$0xff] (%p745_p1)  }
 0x331   : > { %v5657_v58 = vmul.f32 -1.442695, %v1034_v46  ;;  %v991_v59 = vpop.f32.mrb[3].mxu0  ;;  %v1032_v52 = vpop.f32.mrb[3].mxu1  ;;  %v6508_v46 = vld [vmem:[%s9605_s1 + $0xe4] ss:$16 sps:$4 sm:$0xff] (%p745_p1)   ;;  %1306 = vmatpush1.bf16.msra.mxu0 (%p745_p1), %v6506_v44 }
 0x332   : > { %v5658_v60 = vmul.f32 -1.442695, %v1035_v56  ;;  %v5659_v54 = vmul.f32 -1.442695, %v1037_v0  ;;  %v6512_v56 = vld [vmem:[%s9605_s1 + $0xe0] ss:$16 sps:$4 sm:$0xff] (%p745_p1)   ;;  %1307 = vmatprep.subr.bf16.mxu0 (%p745_p1), %v6508_v46 }
 0x333   : > { %6450 = vpow2.f32 %v5657_v58  ;;  %v6513_v57 = vld [vmem:[%s9605_s1 + $0xe8] ss:$16 sps:$4 sm:$0xff] (%p745_p1)  }
 0x334   : > { %6452 = vpow2.f32 %v5658_v60 }
 0x335   : > { %6454 = vpow2.f32 %v5659_v54  ;;  %1308 = vmatpush1.bf16.msra.mxu0 (%p745_p1), %v6512_v56 }
 0x336   : > { %6456 = vtanh.f32 %v1036_v55 }
 0x33d   : > { %v6451_v4 = vpop.eup %6450 }
 0x33e   : > { %v6453_v5 = vpop.eup %6452  ;;  %v1041_v6 = vadd.f32 1.0, %v6451_v4  ;;  %v1111_v4 = vld [vmem:[%s9609_s3] sm:$0xf] (%p745_p1) }
 0x33f   : > { %v1047_v7 = vadd.f32 1.0, %v6453_v5  ;;  %v6455_v9 = vpop.eup %6454  ;;  %v7931_v5 = vrot.slane (%p745_p1), %v1111_v4, %v7492_v47 }
 0x340   : > { %6458 = vrcp.f32 %v1041_v6  ;;  %v6457_v2 = vpop.eup %6456  ;;  %v1054_v11 = vadd.f32 1.0, %v6455_v9  ;;  %v7934_v6 = vrot.slane (%p745_p1), %v1111_v4, %v7494_v48 }
 0x341   : > { %6460 = vrcp.f32 %v1047_v7  ;;  %v7937_v7 = vrot.slane (%p745_p1), %v1111_v4, %v7499_v50 }
 0x342   : > { %6462 = vrcp.f32 %v1054_v11 }
 0x34a   : > { %v6459_v10 = vpop.eup %6458 }
 0x34b   : > { %v6461_v12 = vpop.eup %6460  ;;  %v1058_v13 = vmul.f32 %v6459_v10, %v6457_v2 }
 0x34c   : > { %v1057_v14 = vmul.f32 %v7248_v8, %v6461_v12  ;;  %v6463_v15 = vpop.eup %6462 }
 0x34e   : > { %v1059_v8 = vadd.f32 %v1058_v13, %v1057_v14  }
 0x350   : > { %6464 = vtanh.f32 %v1059_v8  ;;  %v6471_v8 = vld [vmem:[%s9605_s1 + $0x8] ss:$16 sps:$4 sm:$0xff] (%p745_p1)  }
 0x351   :  { %1367 = vmatpush1.bf16.msra.mxu1 (%p745_p1), %v6471_v8 }
 0x352   :  { %1368 = vmatprep.subr.bf16.mxu1 (%p745_p1), %v6474_v23 }
 0x355   :  { %1369 = vmatpush1.bf16.msra.mxu1 (%p745_p1), %v6477_v25 }
 0x356   :  { %1370 = vmatprep.subr.bf16.mxu1 (%p745_p1), %v6480_v27 }
 0x359   :  { %747 = sbr.rel (!%p745_p1) target bundleno = 569 (0x239), region = 119  ;;  %1371 = vmatpush1.bf16.msra.mxu1 (%p745_p1), %v6483_v29 }
 0x35a   : > { %v6465_v16 = vpop.eup %6464  ;;  %1372 = vmatprep.subr.bf16.mxu1 (%p745_p1), %v6486_v31 }
 0x35b   : > { %v1061_v9 = vmul.f32 %v6465_v16, %v6463_v15  }
 0x35d   : > { %v1065_v18 = vadd.f32 %v1064_v17, %v1061_v9  ;;  %1373 = vmatpush1.bf16.msra.mxu1 (%p745_p1), %v6489_v33  ;;  %v7940_v9 = vrot.slane (%p745_p1), %v1111_v4, %v7501_v51 }
 0x35e   :  { %1374 = vmatprep.subr.bf16.mxu1 (%p745_p1), %v6492_v35 }
 0x35f   : > { %1066 = vst [vmem:[%s1063_s29] sm:$0xff] %v1065_v18 }
 0x361   :  { %1375 = vmatpush1.bf16.msra.mxu1 %v6495_v37 }
 0x362   :  { %1376 = vmatprep.subr.bf16.mxu1 %v6498_v39 }
 0x365   :  { %1377 = vmatpush1.bf16.msra.mxu1 %v6501_v41 }
 0x366   :  { %1378 = vmatprep.subr.bf16.mxu1 %v6504_v43  ;;  %v1067_v58 = vld [vmem:[%s9607_s4] sm:$0xff]  ;;  %v1068_v59 = vld [vmem:[%s9607_s4 + $0x8] sm:$0xff]  ;;  %v1069_v61 = vld [vmem:[%s9607_s4 + $0x10] sm:$0xff] }
 0x367   :  { %v1075_v60 = vpack.c.bf16 %v1068_v59, %v1067_v58  ;;  %v1070_v62 = vld [vmem:[%s9607_s4 + $0x18] sm:$0xff]  ;;  %v1071_v0 = vld [vmem:[%s9607_s4 + $0x20] sm:$0xff]  ;;  %v1072_v3 = vld [vmem:[%s9607_s4 + $0x28] sm:$0xff] }
 0x368   :  { %v1076_v63 = vpack.c.bf16 %v1070_v62, %v1069_v61  ;;  %v1077_v52 = vpack.c.bf16 %v1072_v3, %v1071_v0  ;;  %v1073_v53 = vld [vmem:[%s9607_s4 + $0x30] sm:$0xff]  ;;  %v1074_v54 = vld [vmem:[%s9607_s4 + $0x38] sm:$0xff] }
 0x369   :  { %1379 = vmatpush1.bf16.msra.mxu1 %v6507_v45  ;;  %1326 = vmatmul.mubr.bf16.vlgmr.msra.gmra.mrb[0].mxu0 %v1075_v60  ;;  %v1078_v55 = vpack.c.bf16 %v1074_v54, %v1073_v53 }
 0x36a   :  { %1380 = vmatprep.subr.bf16.mxu1 %v6510_v49  ;;  %1335 = vmatprep.mubr.bf16.mxu0 %v7330_v1 }
 0x36d   :  { %1381 = vmatpush1.bf16.msra.mxu1 %v6513_v57 }
 0x370   :  { %1399 = vmatmul.mubr.bf16.vlgmr.msra.gmra.mrb[0].mxu1 %v1075_v60 }
 0x371   :  { %1408 = vmatprep.mubr.bf16.mxu1 %v7330_v1  ;;  %1336 = vmatmul.mubr.bf16.gmra.mrb[4].mxu0 %v1076_v63 }
 0x372   :  { %1345 = vmatprep.mubr.bf16.mxu0 %v7330_v1 }
 0x378   :  { %1409 = vmatmul.mubr.bf16.gmra.mrb[4].mxu1 %v1076_v63 }
 0x379   :  { %1418 = vmatprep.mubr.bf16.mxu1 %v7330_v1  ;;  %1346 = vmatmul.mubr.bf16.gmra.mrb[8].mxu0 %v1077_v52 }
 0x37a   :  { %1355 = vmatprep.mubr.bf16.mxu0 %v7330_v1 }
 0x380   :  { %1419 = vmatmul.mubr.bf16.gmra.mrb[8].mxu1 %v1077_v52 }
 0x381   :  { %1428 = vmatprep.mubr.bf16.mxu1 %v7330_v1  ;;  %1356 = vmatmul.mubr.bf16.gmra.mrb[12].mxu0 %v1078_v55 }
 0x388   :  { %1429 = vmatmul.mubr.bf16.gmra.mrb[12].mxu1 %v1078_v55 }
 0x43c   :  { %v1327_v2 = vpop.f32.mrb[0].mxu0 }
 0x43d   :  { %v1328_v11 = vadd.f32 %v1327_v2, %v7931_v5  ;;  %v1329_v13 = vpop.f32.mrb[1].mxu0 }
 0x43e   :  { %v1330_v15 = vadd.f32 %v1329_v13, %v7937_v7  ;;  %v1331_v17 = vpop.f32.mrb[2].mxu0 }
 0x43f   :  { %1439 = vst [vmem:[#allocation2] sm:$0xff] %v1328_v11  ;;  %v1332_v19 = vadd.f32 %v1331_v17, %v7931_v5  ;;  %v1333_v21 = vpop.f32.mrb[3].mxu0 }
 0x440   :  { %1440 = vst [vmem:[#allocation2 + $0x8] sm:$0xff] %v1330_v15  ;;  %v1334_v22 = vadd.f32 %v1333_v21, %v7937_v7 }
 0x441   :  { %1443 = vst [vmem:[#allocation2 + $0x20] sm:$0xff] %v1332_v19  ;;  %v7976_v19 = vmov 0.0  }
 0x442   :  { %1444 = vst [vmem:[#allocation2 + $0x28] sm:$0xff] %v1334_v22 }
 0x443   :  { %v1400_v10 = vpop.f32.mrb[0].mxu1 }
 0x444   :  { %v1401_v12 = vadd.f32 %v1400_v10, %v7934_v6  ;;  %v1402_v14 = vpop.f32.mrb[1].mxu1  ;;  %v1337_v24 = vpop.f32.mrb[4].mxu0 }
 0x445   :  { %v1403_v16 = vadd.f32 %v1402_v14, %v7940_v9  ;;  %v1404_v18 = vpop.f32.mrb[2].mxu1  ;;  %v1338_v26 = vadd.f32 %v1337_v24, %v7931_v5  ;;  %v1339_v28 = vpop.f32.mrb[5].mxu0 }
 0x446   :  { %1441 = vst [vmem:[#allocation2 + $0x10] sm:$0xff] %v1401_v12  ;;  %v1405_v20 = vadd.f32 %v1404_v18, %v7934_v6  ;;  %v1406_v8 = vpop.f32.mrb[3].mxu1  ;;  %v1340_v30 = vadd.f32 %v1339_v28, %v7937_v7  ;;  %v1341_v32 = vpop.f32.mrb[6].mxu0  ;;  %v7974_v18 = vmov 0.0  }
 0x447   :  { %1442 = vst [vmem:[#allocation2 + $0x18] sm:$0xff] %v1403_v16  ;;  %v1407_v23 = vadd.f32 %v1406_v8, %v7940_v9  ;;  %1447 = vst [vmem:[#allocation2 + $0x40] sm:$0xff] %v1338_v26  ;;  %v1342_v34 = vadd.f32 %v1341_v32, %v7931_v5  ;;  %v1343_v36 = vpop.f32.mrb[7].mxu0 }
 0x448   :  { %1445 = vst [vmem:[#allocation2 + $0x30] sm:$0xff] %v1405_v20  ;;  %1448 = vst [vmem:[#allocation2 + $0x48] sm:$0xff] %v1340_v30  ;;  %v1344_v38 = vadd.f32 %v1343_v36, %v7937_v7 }
 0x449   :  { %1446 = vst [vmem:[#allocation2 + $0x38] sm:$0xff] %v1407_v23  ;;  %1451 = vst [vmem:[#allocation2 + $0x60] sm:$0xff] %v1342_v34 }
 0x44a   :  { %1452 = vst [vmem:[#allocation2 + $0x68] sm:$0xff] %v1344_v38 }
 0x44b   :  { %v1410_v25 = vpop.f32.mrb[4].mxu1 }
 0x44c   :  { %v1411_v27 = vadd.f32 %v1410_v25, %v7934_v6  ;;  %v1412_v29 = vpop.f32.mrb[5].mxu1  ;;  %v1347_v40 = vpop.f32.mrb[8].mxu0 }
 0x44d   :  { %v1413_v31 = vadd.f32 %v1412_v29, %v7940_v9  ;;  %v1414_v33 = vpop.f32.mrb[6].mxu1  ;;  %v1348_v42 = vadd.f32 %v1347_v40, %v7931_v5  ;;  %v1349_v44 = vpop.f32.mrb[9].mxu0 }
 0x44e   :  { %1449 = vst [vmem:[#allocation2 + $0x50] sm:$0xff] %v1411_v27  ;;  %v1415_v35 = vadd.f32 %v1414_v33, %v7934_v6  ;;  %v1416_v37 = vpop.f32.mrb[7].mxu1  ;;  %v1350_v46 = vadd.f32 %v1349_v44, %v7937_v7  ;;  %v1351_v56 = vpop.f32.mrb[10].mxu0 }
 0x44f   :  { %1450 = vst [vmem:[#allocation2 + $0x58] sm:$0xff] %v1413_v31  ;;  %v1417_v39 = vadd.f32 %v1416_v37, %v7940_v9  ;;  %1455 = vst [vmem:[#allocation2 + $0x80] sm:$0xff] %v1348_v42  ;;  %v1352_v58 = vadd.f32 %v1351_v56, %v7931_v5  ;;  %v1353_v60 = vpop.f32.mrb[11].mxu0 }
 0x450   :  { %1453 = vst [vmem:[#allocation2 + $0x70] sm:$0xff] %v1415_v35  ;;  %1456 = vst [vmem:[#allocation2 + $0x88] sm:$0xff] %v1350_v46  ;;  %v1354_v62 = vadd.f32 %v1353_v60, %v7937_v7 }
 0x451   :  { %1454 = vst [vmem:[#allocation2 + $0x78] sm:$0xff] %v1417_v39  ;;  %1459 = vst [vmem:[#allocation2 + $0xa0] sm:$0xff] %v1352_v58 }
 0x452   :  { %1460 = vst [vmem:[#allocation2 + $0xa8] sm:$0xff] %v1354_v62 }
 0x453   :  { %v1420_v41 = vpop.f32.mrb[8].mxu1 }
 0x454   :  { %v1421_v43 = vadd.f32 %v1420_v41, %v7934_v6  ;;  %v1422_v45 = vpop.f32.mrb[9].mxu1  ;;  %v1357_v0 = vpop.f32.mrb[12].mxu0 }
 0x455   :  { %v1423_v49 = vadd.f32 %v1422_v45, %v7940_v9  ;;  %v1424_v57 = vpop.f32.mrb[10].mxu1  ;;  %v1358_v52 = vadd.f32 %v1357_v0, %v7931_v5  ;;  %v1359_v54 = vpop.f32.mrb[13].mxu0 }
 0x456   :  { %1457 = vst [vmem:[#allocation2 + $0x90] sm:$0xff] %v1421_v43  ;;  %v1425_v59 = vadd.f32 %v1424_v57, %v7934_v6  ;;  %v1426_v61 = vpop.f32.mrb[11].mxu1  ;;  %v1360_v4 = vadd.f32 %v1359_v54, %v7937_v7  ;;  %v1361_v10 = vpop.f32.mrb[14].mxu0 }
 0x457   :  { %1458 = vst [vmem:[#allocation2 + $0x98] sm:$0xff] %v1423_v49  ;;  %v1427_v63 = vadd.f32 %v1426_v61, %v7940_v9  ;;  %1463 = vst [vmem:[#allocation2 + $0xc0] sm:$0xff] %v1358_v52  ;;  %v1362_v12 = vadd.f32 %v1361_v10, %v7931_v5  ;;  %v1363_v14 = vpop.f32.mrb[15].mxu0 }
 0x458   :  { %1461 = vst [vmem:[#allocation2 + $0xb0] sm:$0xff] %v1425_v59  ;;  %1464 = vst [vmem:[#allocation2 + $0xc8] sm:$0xff] %v1360_v4  ;;  %v1364_v16 = vadd.f32 %v1363_v14, %v7937_v7 }
 0x459   :  { %1462 = vst [vmem:[#allocation2 + $0xb8] sm:$0xff] %v1427_v63  ;;  %1467 = vst [vmem:[#allocation2 + $0xe0] sm:$0xff] %v1362_v12 }
 0x45a   :  { %1468 = vst [vmem:[#allocation2 + $0xe8] sm:$0xff] %v1364_v16 }
 0x45b   :  { %v1430_v3 = vpop.f32.mrb[12].mxu1 }
 0x45c   :  { %v1431_v53 = vadd.f32 %v1430_v3, %v7934_v6  ;;  %v1432_v55 = vpop.f32.mrb[13].mxu1 }
 0x45d   :  { %v1433_v2 = vadd.f32 %v1432_v55, %v7940_v9  ;;  %v1434_v11 = vpop.f32.mrb[14].mxu1 }
 0x45e   :  { %1465 = vst [vmem:[#allocation2 + $0xd0] sm:$0xff] %v1431_v53  ;;  %v1435_v13 = vadd.f32 %v1434_v11, %v7934_v6  ;;  %v1436_v15 = vpop.f32.mrb[15].mxu1 }
 0x45f   :  { %1466 = vst [vmem:[#allocation2 + $0xd8] sm:$0xff] %v1433_v2  ;;  %v1437_v17 = vadd.f32 %v1436_v15, %v7940_v9 }
 0x460   :  { %1469 = vst [vmem:[#allocation2 + $0xf0] sm:$0xff] %v1435_v13 }
 0x461   :  { %1470 = vst [vmem:[#allocation2 + $0xf8] sm:$0xff] %v1437_v17 }
 0x462 LB: > { %v6514_v5 = vld [vmem:[%s9606_s2 + $0x4] ss:$16 sps:$4 sm:$0xff]   ;;  %v6516_v6 = vld [vmem:[%s9606_s2] ss:$16 sps:$4 sm:$0xff]   ;;  %v7333_v7 = vmov 0   ;;  %v1486_v49 = vpack.c.bf16 %v7264_v19, %v7264_v19  ;;  %s6083_s17 = sshll.u32 %s7268_s5, 5  ;;  %s7268_s5 = sphi %s7978_s5, %s1476_s5   ;;  %v7264_v19 = vphi %v7976_v19, %v1788_v19   ;;  %v7260_v18 = vphi %v7974_v18, %v1786_v18  }
 0x463   : > { %1711 = vmatprep.mubr.bf16.mxu0 %v7333_v7  ;;  %1752 = vmatprep.mubr.bf16.mxu1 %v7333_v7  ;;  %v6517_v9 = vld [vmem:[%s9606_s2 + $0x24] ss:$16 sps:$4 sm:$0xff]   ;;  %v6519_v20 = vld [vmem:[%s9606_s2 + $0x20] ss:$16 sps:$4 sm:$0xff]   ;;  %v6525_v8 = vld [vmem:[%s9606_s2 + $0xc] ss:$16 sps:$4 sm:$0xff]  }
 0x464   : > { %1679 = vmatprep.subr.bf16.mxu0 %v6514_v5  ;;  %v6520_v21 = vld [vmem:[%s9606_s2 + $0x44] ss:$16 sps:$4 sm:$0xff]   ;;  %v6528_v22 = vld [vmem:[%s9606_s2 + $0x8] ss:$16 sps:$4 sm:$0xff]   ;;  %v6522_v23 = vld [vmem:[%s9606_s2 + $0x40] ss:$16 sps:$4 sm:$0xff]   ;;  %1720 = vmatprep.subr.bf16.mxu1 %v6525_v8 }
 0x465   : > { %1680 = vmatpush1.bf16.msra.mxu0 %v6516_v6  ;;  %v6523_v24 = vld [vmem:[%s9606_s2 + $0x64] ss:$16 sps:$4 sm:$0xff]   ;;  %1721 = vmatpush1.bf16.msra.mxu1 %v6528_v22  ;;  %v6531_v25 = vld [vmem:[%s9606_s2 + $0x2c] ss:$16 sps:$4 sm:$0xff]   ;;  %v6534_v26 = vld [vmem:[%s9606_s2 + $0x28] ss:$16 sps:$4 sm:$0xff]  }
 0x466   : > { %1681 = vmatprep.subr.bf16.mxu0 %v6517_v9  ;;  %1722 = vmatprep.subr.bf16.mxu1 %v6531_v25  ;;  %v6527_v27 = vld [vmem:[%s9606_s2 + $0x60] ss:$16 sps:$4 sm:$0xff]   ;;  %v6529_v28 = vld [vmem:[%s9606_s2 + $0x84] ss:$16 sps:$4 sm:$0xff]   ;;  %v6537_v29 = vld [vmem:[%s9606_s2 + $0x4c] ss:$16 sps:$4 sm:$0xff]  }
 0x467   : > { %v6540_v30 = vld [vmem:[%s9606_s2 + $0x48] ss:$16 sps:$4 sm:$0xff]   ;;  %v6543_v31 = vld [vmem:[%s9606_s2 + $0x6c] ss:$16 sps:$4 sm:$0xff]   ;;  %v6533_v32 = vld [vmem:[%s9606_s2 + $0x80] ss:$16 sps:$4 sm:$0xff]  }
 0x468   : > { %v6535_v33 = vld [vmem:[%s9606_s2 + $0xa4] ss:$16 sps:$4 sm:$0xff]   ;;  %v6546_v34 = vld [vmem:[%s9606_s2 + $0x68] ss:$16 sps:$4 sm:$0xff]   ;;  %v6549_v35 = vld [vmem:[%s9606_s2 + $0x8c] ss:$16 sps:$4 sm:$0xff]  }
 0x469   : > { %1682 = vmatpush1.bf16.msra.mxu0 %v6519_v20  ;;  %1723 = vmatpush1.bf16.msra.mxu1 %v6534_v26  ;;  %v6539_v36 = vld [vmem:[%s9606_s2 + $0xa0] ss:$16 sps:$4 sm:$0xff]   ;;  %v6541_v37 = vld [vmem:[%s9606_s2 + $0xc4] ss:$16 sps:$4 sm:$0xff]   ;;  %v6552_v38 = vld [vmem:[%s9606_s2 + $0x88] ss:$16 sps:$4 sm:$0xff]  }
 0x46a   : > { %1683 = vmatprep.subr.bf16.mxu0 %v6520_v21  ;;  %1724 = vmatprep.subr.bf16.mxu1 %v6537_v29  ;;  %v6553_v39 = vld [vmem:[%s9606_s2 + $0xac] ss:$16 sps:$4 sm:$0xff]   ;;  %v6545_v40 = vld [vmem:[%s9606_s2 + $0xc0] ss:$16 sps:$4 sm:$0xff]   ;;  %v6547_v41 = vld [vmem:[%s9606_s2 + $0xe4] ss:$16 sps:$4 sm:$0xff]  }
 0x46b   : > { %v6555_v42 = vld [vmem:[%s9606_s2 + $0xa8] ss:$16 sps:$4 sm:$0xff]   ;;  %v6556_v43 = vld [vmem:[%s9606_s2 + $0xcc] ss:$16 sps:$4 sm:$0xff]   ;;  %v6551_v44 = vld [vmem:[%s9606_s2 + $0xe0] ss:$16 sps:$4 sm:$0xff]  }
 0x46c   : > { %v6558_v45 = vld [vmem:[%s9606_s2 + $0xc8] ss:$16 sps:$4 sm:$0xff]   ;;  %v6559_v46 = vld [vmem:[%s9606_s2 + $0xec] ss:$16 sps:$4 sm:$0xff]   ;;  %s1481_s18 = scalar_lea.vmem [#allocation2], %s6083_s17  ;;  %s5730_s19 = sshll.u32 %s7268_s5, 3 }
 0x46d   : > { %1684 = vmatpush1.bf16.msra.mxu0 %v6522_v23  ;;  %1725 = vmatpush1.bf16.msra.mxu1 %v6540_v30  ;;  %v6561_v56 = vld [vmem:[%s9606_s2 + $0xe8] ss:$16 sps:$4 sm:$0xff]   ;;  %v1482_v57 = vld [vmem:[%s1481_s18] sm:$0xff]  ;;  %v1484_v11 = vld [vmem:[%s1481_s18 + $0x10] sm:$0xff]  ;;  %s1790_s22 = scalar_lea.vmem %s9607_s4, %s5730_s19  ;;  %s1476_s5 = sadd.s32 1, %s7268_s5  }
 0x46e   : > { %1685 = vmatprep.subr.bf16.mxu0 %v6523_v24  ;;  %1726 = vmatprep.subr.bf16.mxu1 %v6543_v31  ;;  %v1483_v58 = vld [vmem:[%s1481_s18 + $0x8] sm:$0xff]  ;;  %v1485_v53 = vld [vmem:[%s1481_s18 + $0x18] sm:$0xff]  ;;  %v1791_v23 = vld [vmem:[%s1790_s22] sm:$0xff]  ;;  %p1473_p2 = scmp.ge.s32.totalorder %s1476_s5, 8  }
 0x46f   :  { %v6578_v25 = vld [vmem:[%s9605_s1 + $0x4] ss:$16 sps:$4 sm:$0xff] (%p1473_p2)   ;;  %v6580_v26 = vld [vmem:[%s9605_s1 + $0xc] ss:$16 sps:$4 sm:$0xff] (%p1473_p2)   ;;  %v6588_v30 = vld [vmem:[%s9605_s1 + $0x20] ss:$16 sps:$4 sm:$0xff] (%p1473_p2)  }
 0x470   :  { %v6586_v29 = vld [vmem:[%s9605_s1 + $0x2c] ss:$16 sps:$4 sm:$0xff] (%p1473_p2)   ;;  %v6589_v31 = vld [vmem:[%s9605_s1 + $0x28] ss:$16 sps:$4 sm:$0xff] (%p1473_p2)   ;;  %s8279_s24 = smov (%p1473_p2), 0  }
 0x471   : > { %1686 = vmatpush1.bf16.msra.mxu0 %v6527_v27  ;;  %1727 = vmatpush1.bf16.msra.mxu1 %v6546_v34  ;;  %v6582_v27 = vld [vmem:[%s9605_s1] ss:$16 sps:$4 sm:$0xff] (%p1473_p2)  }
 0x472   : > { %1687 = vmatprep.subr.bf16.mxu0 %v6529_v28  ;;  %1728 = vmatprep.subr.bf16.mxu1 %v6549_v35  ;;  %v6584_v28 = vld [vmem:[%s9605_s1 + $0x24] ss:$16 sps:$4 sm:$0xff] (%p1473_p2)   ;;  %v6594_v34 = vld [vmem:[%s9605_s1 + $0x40] ss:$16 sps:$4 sm:$0xff] (%p1473_p2)   ;;  %v6595_v35 = vld [vmem:[%s9605_s1 + $0x48] ss:$16 sps:$4 sm:$0xff] (%p1473_p2)  }
 0x475   : > { %1688 = vmatpush1.bf16.msra.mxu0 %v6533_v32  ;;  %1729 = vmatpush1.bf16.msra.mxu1 %v6552_v38  ;;  %v6590_v32 = vld [vmem:[%s9605_s1 + $0x44] ss:$16 sps:$4 sm:$0xff] (%p1473_p2)   ;;  %v6600_v38 = vld [vmem:[%s9605_s1 + $0x60] ss:$16 sps:$4 sm:$0xff] (%p1473_p2)  }
 0x476   : > { %1689 = vmatprep.subr.bf16.mxu0 %v6535_v33  ;;  %1730 = vmatprep.subr.bf16.mxu1 %v6553_v39  ;;  %v6592_v33 = vld [vmem:[%s9605_s1 + $0x4c] ss:$16 sps:$4 sm:$0xff] (%p1473_p2)   ;;  %v6601_v39 = vld [vmem:[%s9605_s1 + $0x68] ss:$16 sps:$4 sm:$0xff] (%p1473_p2)  }
 0x479   : > { %1690 = vmatpush1.bf16.msra.mxu0 %v6539_v36  ;;  %1731 = vmatpush1.bf16.msra.mxu1 %v6555_v42  ;;  %v6596_v36 = vld [vmem:[%s9605_s1 + $0x64] ss:$16 sps:$4 sm:$0xff] (%p1473_p2)   ;;  %v6606_v42 = vld [vmem:[%s9605_s1 + $0x80] ss:$16 sps:$4 sm:$0xff] (%p1473_p2)  }
 0x47a   : > { %1691 = vmatprep.subr.bf16.mxu0 %v6541_v37  ;;  %1732 = vmatprep.subr.bf16.mxu1 %v6556_v43  ;;  %v6598_v37 = vld [vmem:[%s9605_s1 + $0x6c] ss:$16 sps:$4 sm:$0xff] (%p1473_p2)   ;;  %v6607_v43 = vld [vmem:[%s9605_s1 + $0x88] ss:$16 sps:$4 sm:$0xff] (%p1473_p2)  }
 0x47d   : > { %1692 = vmatpush1.bf16.msra.mxu0 %v6545_v40  ;;  %1733 = vmatpush1.bf16.msra.mxu1 %v6558_v45  ;;  %v6602_v40 = vld [vmem:[%s9605_s1 + $0x84] ss:$16 sps:$4 sm:$0xff] (%p1473_p2)   ;;  %v6610_v45 = vld [vmem:[%s9605_s1 + $0xac] ss:$16 sps:$4 sm:$0xff] (%p1473_p2)  }
 0x47e   : > { %1693 = vmatprep.subr.bf16.mxu0 %v6547_v41  ;;  %1734 = vmatprep.subr.bf16.mxu1 %v6559_v46  ;;  %v6604_v41 = vld [vmem:[%s9605_s1 + $0x8c] ss:$16 sps:$4 sm:$0xff] (%p1473_p2)   ;;  %v6612_v46 = vld [vmem:[%s9605_s1 + $0xa0] ss:$16 sps:$4 sm:$0xff] (%p1473_p2)  }
 0x481   : > { %1694 = vmatpush1.bf16.msra.mxu0 %v6551_v44  ;;  %1735 = vmatpush1.bf16.msra.mxu1 %v6561_v56  ;;  %v6608_v44 = vld [vmem:[%s9605_s1 + $0xa4] ss:$16 sps:$4 sm:$0xff] (%p1473_p2)  }
 0x482   :  { %2020 = vmatprep.subr.bf16.mxu0 (%p1473_p2), %v6578_v25  ;;  %2093 = vmatprep.subr.bf16.mxu1 (%p1473_p2), %v6580_v26  ;;  %v6614_v56 = vld [vmem:[%s9605_s1 + $0xc4] ss:$16 sps:$4 sm:$0xff] (%p1473_p2)  }
 0x484   : > { %1712 = vmatmul.mubr.bf16.vlgmr.msra.gmra.mrb[0].mxu0 %v1486_v49  ;;  %1753 = vmatmul.mubr.bf16.vlgmr.msra.gmra.mrb[0].mxu1 %v1486_v49  ;;  %v6613_v49 = vld [vmem:[%s9605_s1 + $0xa8] ss:$16 sps:$4 sm:$0xff] (%p1473_p2)  }
 0x485   :  { %2052 = vmatprep.mubr.bf16.mxu0 (%p1473_p2), %v7330_v1  ;;  %2125 = vmatprep.mubr.bf16.mxu1 (%p1473_p2), %v7330_v1 }
 0x486   :  { %2021 = vmatpush1.bf16.msra.mxu0 (%p1473_p2), %v6582_v27 }
 0x487   :  { %2022 = vmatprep.subr.bf16.mxu0 (%p1473_p2), %v6584_v28 }
 0x48a   :  { %2023 = vmatpush1.bf16.msra.mxu0 (%p1473_p2), %v6588_v30 }
 0x48b   :  { %2024 = vmatprep.subr.bf16.mxu0 (%p1473_p2), %v6590_v32 }
 0x48e   :  { %2025 = vmatpush1.bf16.msra.mxu0 (%p1473_p2), %v6594_v34 }
 0x48f   :  { %2026 = vmatprep.subr.bf16.mxu0 (%p1473_p2), %v6596_v36 }
 0x492   :  { %2027 = vmatpush1.bf16.msra.mxu0 (%p1473_p2), %v6600_v38 }
 0x493   :  { %2028 = vmatprep.subr.bf16.mxu0 (%p1473_p2), %v6602_v40 }
 0x496   :  { %2029 = vmatpush1.bf16.msra.mxu0 (%p1473_p2), %v6606_v42 }
 0x497   :  { %2030 = vmatprep.subr.bf16.mxu0 (%p1473_p2), %v6608_v44 }
 0x49a   :  { %2031 = vmatpush1.bf16.msra.mxu0 (%p1473_p2), %v6612_v46 }
 0x49b   :  { %2032 = vmatprep.subr.bf16.mxu0 (%p1473_p2), %v6614_v56 }
 0x557   : > { %v1713_v59 = vpop.f32.mrb[0].mxu0  ;;  %v1754_v54 = vpop.f32.mrb[0].mxu1 }
 0x558   : > { %v1761_v60 = vadd.f32 %v1713_v59, %v1482_v57  ;;  %v1715_v61 = vpop.f32.mrb[1].mxu0  ;;  %v1756_v55 = vpop.f32.mrb[1].mxu1  ;;  %v1763_v13 = vadd.f32 %v1754_v54, %v1484_v11  ;;  %v6616_v57 = vld [vmem:[%s9605_s1 + $0xcc] ss:$16 sps:$4 sm:$0xff] (%p1473_p2)   ;;  %v6619_v59 = vld [vmem:[%s9605_s1 + $0xc8] ss:$16 sps:$4 sm:$0xff] (%p1473_p2)  }
 0x559   : > { %v1762_v62 = vadd.f32 %v1715_v61, %v1483_v58  ;;  %v1717_v63 = vpop.f32.mrb[2].mxu0  ;;  %v1764_v4 = vadd.f32 %v1756_v55, %v1485_v53  ;;  %v1758_v2 = vpop.f32.mrb[2].mxu1  ;;  %v6618_v58 = vld [vmem:[%s9605_s1 + $0xc0] ss:$16 sps:$4 sm:$0xff] (%p1473_p2)   ;;  %v6622_v61 = vld [vmem:[%s9605_s1 + $0xec] ss:$16 sps:$4 sm:$0xff] (%p1473_p2)  }
 0x55a   : > { %v5727_v0 = vmul.f32 -1.442695, %v1761_v60  ;;  %v1718_v3 = vpop.f32.mrb[3].mxu0  ;;  %v1759_v10 = vpop.f32.mrb[3].mxu1  ;;  %v6620_v60 = vld [vmem:[%s9605_s1 + $0xe4] ss:$16 sps:$4 sm:$0xff] (%p1473_p2)   ;;  %2033 = vmatpush1.bf16.msra.mxu0 (%p1473_p2), %v6618_v58 }
 0x55b   : > { %v5728_v52 = vmul.f32 -1.442695, %v1762_v62  ;;  %v5729_v12 = vmul.f32 -1.442695, %v1764_v4  ;;  %v6624_v62 = vld [vmem:[%s9605_s1 + $0xe0] ss:$16 sps:$4 sm:$0xff] (%p1473_p2)   ;;  %2034 = vmatprep.subr.bf16.mxu0 (%p1473_p2), %v6620_v60 }
 0x55c   : > { %6562 = vpow2.f32 %v5727_v0  ;;  %v6625_v63 = vld [vmem:[%s9605_s1 + $0xe8] ss:$16 sps:$4 sm:$0xff] (%p1473_p2)  }
 0x55d   : > { %6564 = vpow2.f32 %v5728_v52 }
 0x55e   : > { %6566 = vpow2.f32 %v5729_v12  ;;  %2035 = vmatpush1.bf16.msra.mxu0 (%p1473_p2), %v6624_v62 }
 0x55f   : > { %6568 = vtanh.f32 %v1763_v13 }
 0x566   : > { %v6563_v14 = vpop.eup %6562 }
 0x567   : > { %v6565_v15 = vpop.eup %6564  ;;  %v1768_v16 = vadd.f32 1.0, %v6563_v14  ;;  %v1838_v14 = vld [vmem:[%s9609_s3] sm:$0xf] (%p1473_p2) }
 0x568   : > { %v1774_v17 = vadd.f32 1.0, %v6565_v15  ;;  %v6567_v19 = vpop.eup %6566  ;;  %v8232_v15 = vrot.slane (%p1473_p2), %v1838_v14, %v7492_v47 }
 0x569   : > { %6570 = vrcp.f32 %v1768_v16  ;;  %v6569_v5 = vpop.eup %6568  ;;  %v1781_v7 = vadd.f32 1.0, %v6567_v19  ;;  %v8235_v16 = vrot.slane (%p1473_p2), %v1838_v14, %v7494_v48 }
 0x56a   : > { %6572 = vrcp.f32 %v1774_v17  ;;  %v8238_v17 = vrot.slane (%p1473_p2), %v1838_v14, %v7499_v50 }
 0x56b   : > { %6574 = vrcp.f32 %v1781_v7 }
 0x573   : > { %v6571_v6 = vpop.eup %6570 }
 0x574   : > { %v6573_v9 = vpop.eup %6572  ;;  %v1785_v20 = vmul.f32 %v6571_v6, %v6569_v5 }
 0x575   : > { %v1784_v21 = vmul.f32 %v7260_v18, %v6573_v9  ;;  %v6575_v8 = vpop.eup %6574 }
 0x577   : > { %v1786_v18 = vadd.f32 %v1785_v20, %v1784_v21  }
 0x579   : > { %6576 = vtanh.f32 %v1786_v18  ;;  %v6583_v18 = vld [vmem:[%s9605_s1 + $0x8] ss:$16 sps:$4 sm:$0xff] (%p1473_p2)  }
 0x57a   :  { %2094 = vmatpush1.bf16.msra.mxu1 (%p1473_p2), %v6583_v18 }
 0x57b   :  { %2095 = vmatprep.subr.bf16.mxu1 (%p1473_p2), %v6586_v29 }
 0x57e   :  { %2096 = vmatpush1.bf16.msra.mxu1 (%p1473_p2), %v6589_v31 }
 0x57f   :  { %2097 = vmatprep.subr.bf16.mxu1 (%p1473_p2), %v6592_v33 }
 0x582   :  { %1475 = sbr.rel (!%p1473_p2) target bundleno = 1122 (0x462), region = 130  ;;  %2098 = vmatpush1.bf16.msra.mxu1 (%p1473_p2), %v6595_v35 }
 0x583   : > { %v6577_v22 = vpop.eup %6576  ;;  %2099 = vmatprep.subr.bf16.mxu1 (%p1473_p2), %v6598_v37 }
 0x584   : > { %v1788_v19 = vmul.f32 %v6577_v22, %v6575_v8  }
 0x586   : > { %v1792_v24 = vadd.f32 %v1791_v23, %v1788_v19  ;;  %2100 = vmatpush1.bf16.msra.mxu1 (%p1473_p2), %v6601_v39  ;;  %v8241_v19 = vrot.slane (%p1473_p2), %v1838_v14, %v7501_v51 }
 0x587   :  { %2101 = vmatprep.subr.bf16.mxu1 (%p1473_p2), %v6604_v41 }
 0x588   : > { %1793 = vst [vmem:[%s1790_s22] sm:$0xff] %v1792_v24 }
 0x58a   :  { %2102 = vmatpush1.bf16.msra.mxu1 %v6607_v43 }
 0x58b   :  { %2103 = vmatprep.subr.bf16.mxu1 %v6610_v45 }
 0x58e   :  { %2104 = vmatpush1.bf16.msra.mxu1 %v6613_v49 }
 0x58f   :  { %2105 = vmatprep.subr.bf16.mxu1 %v6616_v57  ;;  %v1794_v0 = vld [vmem:[%s9607_s4] sm:$0xff]  ;;  %v1795_v3 = vld [vmem:[%s9607_s4 + $0x8] sm:$0xff]  ;;  %v1796_v53 = vld [vmem:[%s9607_s4 + $0x10] sm:$0xff] }
 0x590   :  { %v1802_v52 = vpack.c.bf16 %v1795_v3, %v1794_v0  ;;  %v1797_v54 = vld [vmem:[%s9607_s4 + $0x18] sm:$0xff]  ;;  %v1798_v4 = vld [vmem:[%s9607_s4 + $0x20] sm:$0xff]  ;;  %v1799_v2 = vld [vmem:[%s9607_s4 + $0x28] sm:$0xff] }
 0x591   :  { %v1803_v55 = vpack.c.bf16 %v1797_v54, %v1796_v53  ;;  %v1804_v10 = vpack.c.bf16 %v1799_v2, %v1798_v4  ;;  %v1800_v11 = vld [vmem:[%s9607_s4 + $0x30] sm:$0xff]  ;;  %v1801_v12 = vld [vmem:[%s9607_s4 + $0x38] sm:$0xff] }
 0x592   :  { %2106 = vmatpush1.bf16.msra.mxu1 %v6619_v59  ;;  %2053 = vmatmul.mubr.bf16.vlgmr.msra.gmra.mrb[0].mxu0 %v1802_v52  ;;  %v1805_v13 = vpack.c.bf16 %v1801_v12, %v1800_v11 }
 0x593   :  { %2107 = vmatprep.subr.bf16.mxu1 %v6622_v61  ;;  %2062 = vmatprep.mubr.bf16.mxu0 %v7330_v1 }
 0x596   :  { %2108 = vmatpush1.bf16.msra.mxu1 %v6625_v63 }
 0x599   :  { %2126 = vmatmul.mubr.bf16.vlgmr.msra.gmra.mrb[0].mxu1 %v1802_v52 }
 0x59a   :  { %2135 = vmatprep.mubr.bf16.mxu1 %v7330_v1  ;;  %2063 = vmatmul.mubr.bf16.gmra.mrb[4].mxu0 %v1803_v55 }
 0x59b   :  { %2072 = vmatprep.mubr.bf16.mxu0 %v7330_v1 }
 0x5a1   :  { %2136 = vmatmul.mubr.bf16.gmra.mrb[4].mxu1 %v1803_v55 }
 0x5a2   :  { %2145 = vmatprep.mubr.bf16.mxu1 %v7330_v1  ;;  %2073 = vmatmul.mubr.bf16.gmra.mrb[8].mxu0 %v1804_v10 }
 0x5a3   :  { %2082 = vmatprep.mubr.bf16.mxu0 %v7330_v1 }
 0x5a9   :  { %2146 = vmatmul.mubr.bf16.gmra.mrb[8].mxu1 %v1804_v10 }
 0x5aa   :  { %2155 = vmatprep.mubr.bf16.mxu1 %v7330_v1  ;;  %2083 = vmatmul.mubr.bf16.gmra.mrb[12].mxu0 %v1805_v13 }
 0x5b1   :  { %2156 = vmatmul.mubr.bf16.gmra.mrb[12].mxu1 %v1805_v13 }
 0x665   :  { %v2054_v5 = vpop.f32.mrb[0].mxu0 }
 0x666   :  { %v2055_v7 = vadd.f32 %v2054_v5, %v8232_v15  ;;  %v2056_v20 = vpop.f32.mrb[1].mxu0 }
 0x667   :  { %v2057_v8 = vadd.f32 %v2056_v20, %v8238_v17  ;;  %v2058_v23 = vpop.f32.mrb[2].mxu0 }
 0x668   :  { %2166 = vst [vmem:[#allocation2] sm:$0xff] %v2055_v7  ;;  %v2059_v25 = vadd.f32 %v2058_v23, %v8232_v15  ;;  %v2060_v27 = vpop.f32.mrb[3].mxu0 }
 0x669   :  { %2167 = vst [vmem:[#allocation2 + $0x8] sm:$0xff] %v2057_v8  ;;  %v2061_v28 = vadd.f32 %v2060_v27, %v8238_v17 }
 0x66a   :  { %2170 = vst [vmem:[#allocation2 + $0x20] sm:$0xff] %v2059_v25  ;;  %v8277_v25 = vmov 0.0  }
 0x66b   :  { %2171 = vst [vmem:[#allocation2 + $0x28] sm:$0xff] %v2061_v28 }
 0x66c   :  { %v2127_v6 = vpop.f32.mrb[0].mxu1 }
 0x66d   :  { %v2128_v9 = vadd.f32 %v2127_v6, %v8235_v16  ;;  %v2129_v21 = vpop.f32.mrb[1].mxu1  ;;  %v2064_v30 = vpop.f32.mrb[4].mxu0 }
 0x66e   :  { %v2130_v22 = vadd.f32 %v2129_v21, %v8241_v19  ;;  %v2131_v24 = vpop.f32.mrb[2].mxu1  ;;  %v2065_v32 = vadd.f32 %v2064_v30, %v8232_v15  ;;  %v2066_v34 = vpop.f32.mrb[5].mxu0 }
 0x66f   :  { %2168 = vst [vmem:[#allocation2 + $0x10] sm:$0xff] %v2128_v9  ;;  %v2132_v26 = vadd.f32 %v2131_v24, %v8235_v16  ;;  %v2133_v18 = vpop.f32.mrb[3].mxu1  ;;  %v2067_v36 = vadd.f32 %v2066_v34, %v8238_v17  ;;  %v2068_v38 = vpop.f32.mrb[6].mxu0  ;;  %v8275_v24 = vmov 0.0  }
 0x670   :  { %2169 = vst [vmem:[#allocation2 + $0x18] sm:$0xff] %v2130_v22  ;;  %v2134_v29 = vadd.f32 %v2133_v18, %v8241_v19  ;;  %2174 = vst [vmem:[#allocation2 + $0x40] sm:$0xff] %v2065_v32  ;;  %v2069_v40 = vadd.f32 %v2068_v38, %v8232_v15  ;;  %v2070_v42 = vpop.f32.mrb[7].mxu0 }
 0x671   :  { %2172 = vst [vmem:[#allocation2 + $0x30] sm:$0xff] %v2132_v26  ;;  %2175 = vst [vmem:[#allocation2 + $0x48] sm:$0xff] %v2067_v36  ;;  %v2071_v44 = vadd.f32 %v2070_v42, %v8238_v17 }
 0x672   :  { %2173 = vst [vmem:[#allocation2 + $0x38] sm:$0xff] %v2134_v29  ;;  %2178 = vst [vmem:[#allocation2 + $0x60] sm:$0xff] %v2069_v40 }
 0x673   :  { %2179 = vst [vmem:[#allocation2 + $0x68] sm:$0xff] %v2071_v44 }
 0x674   :  { %v2137_v31 = vpop.f32.mrb[4].mxu1 }
 0x675   :  { %v2138_v33 = vadd.f32 %v2137_v31, %v8235_v16  ;;  %v2139_v35 = vpop.f32.mrb[5].mxu1  ;;  %v2074_v46 = vpop.f32.mrb[8].mxu0 }
 0x676   :  { %v2140_v37 = vadd.f32 %v2139_v35, %v8241_v19  ;;  %v2141_v39 = vpop.f32.mrb[6].mxu1  ;;  %v2075_v56 = vadd.f32 %v2074_v46, %v8232_v15  ;;  %v2076_v58 = vpop.f32.mrb[9].mxu0 }
 0x677   :  { %2176 = vst [vmem:[#allocation2 + $0x50] sm:$0xff] %v2138_v33  ;;  %v2142_v41 = vadd.f32 %v2141_v39, %v8235_v16  ;;  %v2143_v43 = vpop.f32.mrb[7].mxu1  ;;  %v2077_v60 = vadd.f32 %v2076_v58, %v8238_v17  ;;  %v2078_v62 = vpop.f32.mrb[10].mxu0 }
 0x678   :  { %2177 = vst [vmem:[#allocation2 + $0x58] sm:$0xff] %v2140_v37  ;;  %v2144_v45 = vadd.f32 %v2143_v43, %v8241_v19  ;;  %2182 = vst [vmem:[#allocation2 + $0x80] sm:$0xff] %v2075_v56  ;;  %v2079_v0 = vadd.f32 %v2078_v62, %v8232_v15  ;;  %v2080_v52 = vpop.f32.mrb[11].mxu0 }
 0x679   :  { %2180 = vst [vmem:[#allocation2 + $0x70] sm:$0xff] %v2142_v41  ;;  %2183 = vst [vmem:[#allocation2 + $0x88] sm:$0xff] %v2077_v60  ;;  %v2081_v54 = vadd.f32 %v2080_v52, %v8238_v17 }
 0x67a   :  { %2181 = vst [vmem:[#allocation2 + $0x78] sm:$0xff] %v2144_v45  ;;  %2186 = vst [vmem:[#allocation2 + $0xa0] sm:$0xff] %v2079_v0 }
 0x67b   :  { %2187 = vst [vmem:[#allocation2 + $0xa8] sm:$0xff] %v2081_v54 }
 0x67c   :  { %v2147_v49 = vpop.f32.mrb[8].mxu1 }
 0x67d   :  { %v2148_v57 = vadd.f32 %v2147_v49, %v8235_v16  ;;  %v2149_v59 = vpop.f32.mrb[9].mxu1  ;;  %v2084_v4 = vpop.f32.mrb[12].mxu0 }
 0x67e   :  { %v2150_v61 = vadd.f32 %v2149_v59, %v8241_v19  ;;  %v2151_v63 = vpop.f32.mrb[10].mxu1  ;;  %v2085_v10 = vadd.f32 %v2084_v4, %v8232_v15  ;;  %v2086_v12 = vpop.f32.mrb[13].mxu0 }
 0x67f   :  { %2184 = vst [vmem:[#allocation2 + $0x90] sm:$0xff] %v2148_v57  ;;  %v2152_v3 = vadd.f32 %v2151_v63, %v8235_v16  ;;  %v2153_v53 = vpop.f32.mrb[11].mxu1  ;;  %v2087_v14 = vadd.f32 %v2086_v12, %v8238_v17  ;;  %v2088_v6 = vpop.f32.mrb[14].mxu0 }
 0x680   :  { %2185 = vst [vmem:[#allocation2 + $0x98] sm:$0xff] %v2150_v61  ;;  %v2154_v55 = vadd.f32 %v2153_v53, %v8241_v19  ;;  %2190 = vst [vmem:[#allocation2 + $0xc0] sm:$0xff] %v2085_v10  ;;  %v2089_v9 = vadd.f32 %v2088_v6, %v8232_v15  ;;  %v2090_v21 = vpop.f32.mrb[15].mxu0 }
 0x681   :  { %2188 = vst [vmem:[#allocation2 + $0xb0] sm:$0xff] %v2152_v3  ;;  %2191 = vst [vmem:[#allocation2 + $0xc8] sm:$0xff] %v2087_v14  ;;  %v2091_v22 = vadd.f32 %v2090_v21, %v8238_v17 }
 0x682   :  { %2189 = vst [vmem:[#allocation2 + $0xb8] sm:$0xff] %v2154_v55  ;;  %2194 = vst [vmem:[#allocation2 + $0xe0] sm:$0xff] %v2089_v9 }
 0x683   :  { %2195 = vst [vmem:[#allocation2 + $0xe8] sm:$0xff] %v2091_v22 }
 0x684   :  { %v2157_v2 = vpop.f32.mrb[12].mxu1 }
 0x685   :  { %v2158_v11 = vadd.f32 %v2157_v2, %v8235_v16  ;;  %v2159_v13 = vpop.f32.mrb[13].mxu1 }
 0x686   :  { %v2160_v5 = vadd.f32 %v2159_v13, %v8241_v19  ;;  %v2161_v7 = vpop.f32.mrb[14].mxu1 }
 0x687   :  { %2192 = vst [vmem:[#allocation2 + $0xd0] sm:$0xff] %v2158_v11  ;;  %v2162_v20 = vadd.f32 %v2161_v7, %v8235_v16  ;;  %v2163_v8 = vpop.f32.mrb[15].mxu1 }
 0x688   :  { %2193 = vst [vmem:[#allocation2 + $0xd8] sm:$0xff] %v2160_v5  ;;  %v2164_v23 = vadd.f32 %v2163_v8, %v8241_v19 }
 0x689   :  { %2196 = vst [vmem:[#allocation2 + $0xf0] sm:$0xff] %v2162_v20 }
 0x68a   :  { %2197 = vst [vmem:[#allocation2 + $0xf8] sm:$0xff] %v2164_v23 }
 0x68b LB: > { %v6626_v15 = vld [vmem:[%s9606_s2 + $0x4] ss:$16 sps:$4 sm:$0xff]   ;;  %v6628_v16 = vld [vmem:[%s9606_s2] ss:$16 sps:$4 sm:$0xff]   ;;  %v7334_v17 = vmov 0   ;;  %v2213_v61 = vpack.c.bf16 %v7276_v25, %v7276_v25  ;;  %s6084_s11 = sshll.u32 %s7280_s24, 5  ;;  %s7280_s24 = sphi %s8279_s24, %s2203_s24   ;;  %v7276_v25 = vphi %v8277_v25, %v2515_v25   ;;  %v7272_v24 = vphi %v8275_v24, %v2513_v24  }
 0x68c   : > { %2438 = vmatprep.mubr.bf16.mxu0 %v7334_v17  ;;  %2479 = vmatprep.mubr.bf16.mxu1 %v7334_v17  ;;  %v6629_v19 = vld [vmem:[%s9606_s2 + $0x24] ss:$16 sps:$4 sm:$0xff]   ;;  %v6631_v26 = vld [vmem:[%s9606_s2 + $0x20] ss:$16 sps:$4 sm:$0xff]   ;;  %v6637_v18 = vld [vmem:[%s9606_s2 + $0xc] ss:$16 sps:$4 sm:$0xff]  }
 0x68d   : > { %2406 = vmatprep.subr.bf16.mxu0 %v6626_v15  ;;  %v6632_v27 = vld [vmem:[%s9606_s2 + $0x44] ss:$16 sps:$4 sm:$0xff]   ;;  %v6640_v28 = vld [vmem:[%s9606_s2 + $0x8] ss:$16 sps:$4 sm:$0xff]   ;;  %v6634_v29 = vld [vmem:[%s9606_s2 + $0x40] ss:$16 sps:$4 sm:$0xff]   ;;  %2447 = vmatprep.subr.bf16.mxu1 %v6637_v18 }
 0x68e   : > { %2407 = vmatpush1.bf16.msra.mxu0 %v6628_v16  ;;  %v6635_v30 = vld [vmem:[%s9606_s2 + $0x64] ss:$16 sps:$4 sm:$0xff]   ;;  %2448 = vmatpush1.bf16.msra.mxu1 %v6640_v28  ;;  %v6643_v31 = vld [vmem:[%s9606_s2 + $0x2c] ss:$16 sps:$4 sm:$0xff]   ;;  %v6646_v32 = vld [vmem:[%s9606_s2 + $0x28] ss:$16 sps:$4 sm:$0xff]  }
 0x68f   : > { %2408 = vmatprep.subr.bf16.mxu0 %v6629_v19  ;;  %2449 = vmatprep.subr.bf16.mxu1 %v6643_v31  ;;  %v6639_v33 = vld [vmem:[%s9606_s2 + $0x60] ss:$16 sps:$4 sm:$0xff]   ;;  %v6641_v34 = vld [vmem:[%s9606_s2 + $0x84] ss:$16 sps:$4 sm:$0xff]   ;;  %v6649_v35 = vld [vmem:[%s9606_s2 + $0x4c] ss:$16 sps:$4 sm:$0xff]  }
 0x690   : > { %v6652_v36 = vld [vmem:[%s9606_s2 + $0x48] ss:$16 sps:$4 sm:$0xff]   ;;  %v6655_v37 = vld [vmem:[%s9606_s2 + $0x6c] ss:$16 sps:$4 sm:$0xff]   ;;  %v6645_v38 = vld [vmem:[%s9606_s2 + $0x80] ss:$16 sps:$4 sm:$0xff]  }
 0x691   : > { %v6647_v39 = vld [vmem:[%s9606_s2 + $0xa4] ss:$16 sps:$4 sm:$0xff]   ;;  %v6658_v40 = vld [vmem:[%s9606_s2 + $0x68] ss:$16 sps:$4 sm:$0xff]   ;;  %v6661_v41 = vld [vmem:[%s9606_s2 + $0x8c] ss:$16 sps:$4 sm:$0xff]  }
 0x692   : > { %2409 = vmatpush1.bf16.msra.mxu0 %v6631_v26  ;;  %2450 = vmatpush1.bf16.msra.mxu1 %v6646_v32  ;;  %v6651_v42 = vld [vmem:[%s9606_s2 + $0xa0] ss:$16 sps:$4 sm:$0xff]   ;;  %v6653_v43 = vld [vmem:[%s9606_s2 + $0xc4] ss:$16 sps:$4 sm:$0xff]   ;;  %v6664_v44 = vld [vmem:[%s9606_s2 + $0x88] ss:$16 sps:$4 sm:$0xff]  }
 0x693   : > { %2410 = vmatprep.subr.bf16.mxu0 %v6632_v27  ;;  %2451 = vmatprep.subr.bf16.mxu1 %v6649_v35  ;;  %v6665_v45 = vld [vmem:[%s9606_s2 + $0xac] ss:$16 sps:$4 sm:$0xff]   ;;  %v6657_v46 = vld [vmem:[%s9606_s2 + $0xc0] ss:$16 sps:$4 sm:$0xff]   ;;  %v6659_v49 = vld [vmem:[%s9606_s2 + $0xe4] ss:$16 sps:$4 sm:$0xff]  }
 0x694   : > { %v6667_v56 = vld [vmem:[%s9606_s2 + $0xa8] ss:$16 sps:$4 sm:$0xff]   ;;  %v6668_v57 = vld [vmem:[%s9606_s2 + $0xcc] ss:$16 sps:$4 sm:$0xff]   ;;  %v6663_v58 = vld [vmem:[%s9606_s2 + $0xe0] ss:$16 sps:$4 sm:$0xff]  }
 0x695   : > { %v6670_v59 = vld [vmem:[%s9606_s2 + $0xc8] ss:$16 sps:$4 sm:$0xff]   ;;  %v6671_v60 = vld [vmem:[%s9606_s2 + $0xec] ss:$16 sps:$4 sm:$0xff]   ;;  %s2208_s12 = scalar_lea.vmem [#allocation2], %s6084_s11  ;;  %s5800_s0 = sshll.u32 %s7280_s24, 3 }
 0x696   : > { %2411 = vmatpush1.bf16.msra.mxu0 %v6634_v29  ;;  %2452 = vmatpush1.bf16.msra.mxu1 %v6652_v36  ;;  %v6673_v62 = vld [vmem:[%s9606_s2 + $0xe8] ss:$16 sps:$4 sm:$0xff]   ;;  %v2209_v63 = vld [vmem:[%s2208_s12] sm:$0xff]  ;;  %v2211_v7 = vld [vmem:[%s2208_s12 + $0x10] sm:$0xff]  ;;  %s2517_s15 = scalar_lea.vmem %s9607_s4, %s5800_s0  ;;  %s2203_s24 = sadd.s32 1, %s7280_s24  }
 0x697   : > { %2412 = vmatprep.subr.bf16.mxu0 %v6635_v30  ;;  %2453 = vmatprep.subr.bf16.mxu1 %v6655_v37  ;;  %v2210_v0 = vld [vmem:[%s2208_s12 + $0x8] sm:$0xff]  ;;  %v2212_v11 = vld [vmem:[%s2208_s12 + $0x18] sm:$0xff]  ;;  %v2518_v29 = vld [vmem:[%s2517_s15] sm:$0xff]  ;;  %p2200_p3 = scmp.ge.s32.totalorder %s2203_s24, 8  }
 0x698   :  { %v6690_v31 = vld [vmem:[%s9605_s1 + $0x4] ss:$16 sps:$4 sm:$0xff] (%p2200_p3)   ;;  %v6692_v32 = vld [vmem:[%s9605_s1 + $0xc] ss:$16 sps:$4 sm:$0xff] (%p2200_p3)   ;;  %v6700_v36 = vld [vmem:[%s9605_s1 + $0x20] ss:$16 sps:$4 sm:$0xff] (%p2200_p3)  }
 0x699   :  { %v6698_v35 = vld [vmem:[%s9605_s1 + $0x2c] ss:$16 sps:$4 sm:$0xff] (%p2200_p3)   ;;  %v6701_v37 = vld [vmem:[%s9605_s1 + $0x28] ss:$16 sps:$4 sm:$0xff] (%p2200_p3)   ;;  %s8580_s17 = smov (%p2200_p3), 0  }
 0x69a   : > { %2413 = vmatpush1.bf16.msra.mxu0 %v6639_v33  ;;  %2454 = vmatpush1.bf16.msra.mxu1 %v6658_v40  ;;  %v6694_v33 = vld [vmem:[%s9605_s1] ss:$16 sps:$4 sm:$0xff] (%p2200_p3)  }
 0x69b   : > { %2414 = vmatprep.subr.bf16.mxu0 %v6641_v34  ;;  %2455 = vmatprep.subr.bf16.mxu1 %v6661_v41  ;;  %v6696_v34 = vld [vmem:[%s9605_s1 + $0x24] ss:$16 sps:$4 sm:$0xff] (%p2200_p3)   ;;  %v6706_v40 = vld [vmem:[%s9605_s1 + $0x40] ss:$16 sps:$4 sm:$0xff] (%p2200_p3)   ;;  %v6707_v41 = vld [vmem:[%s9605_s1 + $0x48] ss:$16 sps:$4 sm:$0xff] (%p2200_p3)  }
 0x69e   : > { %2415 = vmatpush1.bf16.msra.mxu0 %v6645_v38  ;;  %2456 = vmatpush1.bf16.msra.mxu1 %v6664_v44  ;;  %v6702_v38 = vld [vmem:[%s9605_s1 + $0x44] ss:$16 sps:$4 sm:$0xff] (%p2200_p3)   ;;  %v6712_v44 = vld [vmem:[%s9605_s1 + $0x60] ss:$16 sps:$4 sm:$0xff] (%p2200_p3)  }
 0x69f   : > { %2416 = vmatprep.subr.bf16.mxu0 %v6647_v39  ;;  %2457 = vmatprep.subr.bf16.mxu1 %v6665_v45  ;;  %v6704_v39 = vld [vmem:[%s9605_s1 + $0x4c] ss:$16 sps:$4 sm:$0xff] (%p2200_p3)   ;;  %v6713_v45 = vld [vmem:[%s9605_s1 + $0x68] ss:$16 sps:$4 sm:$0xff] (%p2200_p3)  }
 0x6a2   : > { %2417 = vmatpush1.bf16.msra.mxu0 %v6651_v42  ;;  %2458 = vmatpush1.bf16.msra.mxu1 %v6667_v56  ;;  %v6708_v42 = vld [vmem:[%s9605_s1 + $0x64] ss:$16 sps:$4 sm:$0xff] (%p2200_p3)   ;;  %v6718_v56 = vld [vmem:[%s9605_s1 + $0x80] ss:$16 sps:$4 sm:$0xff] (%p2200_p3)  }
 0x6a3   : > { %2418 = vmatprep.subr.bf16.mxu0 %v6653_v43  ;;  %2459 = vmatprep.subr.bf16.mxu1 %v6668_v57  ;;  %v6710_v43 = vld [vmem:[%s9605_s1 + $0x6c] ss:$16 sps:$4 sm:$0xff] (%p2200_p3)   ;;  %v6719_v57 = vld [vmem:[%s9605_s1 + $0x88] ss:$16 sps:$4 sm:$0xff] (%p2200_p3)  }
 0x6a6   : > { %2419 = vmatpush1.bf16.msra.mxu0 %v6657_v46  ;;  %2460 = vmatpush1.bf16.msra.mxu1 %v6670_v59  ;;  %v6714_v46 = vld [vmem:[%s9605_s1 + $0x84] ss:$16 sps:$4 sm:$0xff] (%p2200_p3)   ;;  %v6722_v59 = vld [vmem:[%s9605_s1 + $0xac] ss:$16 sps:$4 sm:$0xff] (%p2200_p3)  }
 0x6a7   : > { %2420 = vmatprep.subr.bf16.mxu0 %v6659_v49  ;;  %2461 = vmatprep.subr.bf16.mxu1 %v6671_v60  ;;  %v6716_v49 = vld [vmem:[%s9605_s1 + $0x8c] ss:$16 sps:$4 sm:$0xff] (%p2200_p3)   ;;  %v6724_v60 = vld [vmem:[%s9605_s1 + $0xa0] ss:$16 sps:$4 sm:$0xff] (%p2200_p3)  }
 0x6aa   : > { %2421 = vmatpush1.bf16.msra.mxu0 %v6663_v58  ;;  %2462 = vmatpush1.bf16.msra.mxu1 %v6673_v62  ;;  %v6720_v58 = vld [vmem:[%s9605_s1 + $0xa4] ss:$16 sps:$4 sm:$0xff] (%p2200_p3)  }
 0x6ab   :  { %2747 = vmatprep.subr.bf16.mxu0 (%p2200_p3), %v6690_v31  ;;  %2820 = vmatprep.subr.bf16.mxu1 (%p2200_p3), %v6692_v32  ;;  %v6726_v62 = vld [vmem:[%s9605_s1 + $0xc4] ss:$16 sps:$4 sm:$0xff] (%p2200_p3)  }
 0x6ad   : > { %2439 = vmatmul.mubr.bf16.vlgmr.msra.gmra.mrb[0].mxu0 %v2213_v61  ;;  %2480 = vmatmul.mubr.bf16.vlgmr.msra.gmra.mrb[0].mxu1 %v2213_v61  ;;  %v6725_v61 = vld [vmem:[%s9605_s1 + $0xa8] ss:$16 sps:$4 sm:$0xff] (%p2200_p3)  }
 0x6ae   :  { %2779 = vmatprep.mubr.bf16.mxu0 (%p2200_p3), %v7330_v1  ;;  %2852 = vmatprep.mubr.bf16.mxu1 (%p2200_p3), %v7330_v1 }
 0x6af   :  { %2748 = vmatpush1.bf16.msra.mxu0 (%p2200_p3), %v6694_v33 }
 0x6b0   :  { %2749 = vmatprep.subr.bf16.mxu0 (%p2200_p3), %v6696_v34 }
 0x6b3   :  { %2750 = vmatpush1.bf16.msra.mxu0 (%p2200_p3), %v6700_v36 }
 0x6b4   :  { %2751 = vmatprep.subr.bf16.mxu0 (%p2200_p3), %v6702_v38 }
 0x6b7   :  { %2752 = vmatpush1.bf16.msra.mxu0 (%p2200_p3), %v6706_v40 }
 0x6b8   :  { %2753 = vmatprep.subr.bf16.mxu0 (%p2200_p3), %v6708_v42 }
 0x6bb   :  { %2754 = vmatpush1.bf16.msra.mxu0 (%p2200_p3), %v6712_v44 }
 0x6bc   :  { %2755 = vmatprep.subr.bf16.mxu0 (%p2200_p3), %v6714_v46 }
 0x6bf   :  { %2756 = vmatpush1.bf16.msra.mxu0 (%p2200_p3), %v6718_v56 }
 0x6c0   :  { %2757 = vmatprep.subr.bf16.mxu0 (%p2200_p3), %v6720_v58 }
 0x6c3   :  { %2758 = vmatpush1.bf16.msra.mxu0 (%p2200_p3), %v6724_v60 }
 0x6c4   :  { %2759 = vmatprep.subr.bf16.mxu0 (%p2200_p3), %v6726_v62 }
 0x780   : > { %v2440_v3 = vpop.f32.mrb[0].mxu0  ;;  %v2481_v12 = vpop.f32.mrb[0].mxu1 }
 0x781   : > { %v2488_v52 = vadd.f32 %v2440_v3, %v2209_v63  ;;  %v2442_v53 = vpop.f32.mrb[1].mxu0  ;;  %v2483_v13 = vpop.f32.mrb[1].mxu1  ;;  %v2490_v20 = vadd.f32 %v2481_v12, %v2211_v7  ;;  %v6728_v63 = vld [vmem:[%s9605_s1 + $0xcc] ss:$16 sps:$4 sm:$0xff] (%p2200_p3)   ;;  %v6731_v3 = vld [vmem:[%s9605_s1 + $0xc8] ss:$16 sps:$4 sm:$0xff] (%p2200_p3)  }
 0x782   : > { %v2489_v54 = vadd.f32 %v2442_v53, %v2210_v0  ;;  %v2444_v55 = vpop.f32.mrb[2].mxu0  ;;  %v2491_v14 = vadd.f32 %v2483_v13, %v2212_v11  ;;  %v2485_v5 = vpop.f32.mrb[2].mxu1  ;;  %v6730_v0 = vld [vmem:[%s9605_s1 + $0xc0] ss:$16 sps:$4 sm:$0xff] (%p2200_p3)   ;;  %v6734_v53 = vld [vmem:[%s9605_s1 + $0xec] ss:$16 sps:$4 sm:$0xff] (%p2200_p3)  }
 0x783   : > { %v5797_v4 = vmul.f32 -1.442695, %v2488_v52  ;;  %v2445_v2 = vpop.f32.mrb[3].mxu0  ;;  %v2486_v6 = vpop.f32.mrb[3].mxu1  ;;  %v6732_v52 = vld [vmem:[%s9605_s1 + $0xe4] ss:$16 sps:$4 sm:$0xff] (%p2200_p3)   ;;  %2760 = vmatpush1.bf16.msra.mxu0 (%p2200_p3), %v6730_v0 }
 0x784   : > { %v5798_v10 = vmul.f32 -1.442695, %v2489_v54  ;;  %v5799_v9 = vmul.f32 -1.442695, %v2491_v14  ;;  %v6736_v54 = vld [vmem:[%s9605_s1 + $0xe0] ss:$16 sps:$4 sm:$0xff] (%p2200_p3)   ;;  %2761 = vmatprep.subr.bf16.mxu0 (%p2200_p3), %v6732_v52 }
 0x785   : > { %6674 = vpow2.f32 %v5797_v4  ;;  %v6737_v55 = vld [vmem:[%s9605_s1 + $0xe8] ss:$16 sps:$4 sm:$0xff] (%p2200_p3)  }
 0x786   : > { %6676 = vpow2.f32 %v5798_v10 }
 0x787   : > { %6678 = vpow2.f32 %v5799_v9  ;;  %2762 = vmatpush1.bf16.msra.mxu0 (%p2200_p3), %v6736_v54 }
 0x788   : > { %6680 = vtanh.f32 %v2490_v20 }
 0x78f   : > { %v6675_v21 = vpop.eup %6674 }
 0x790   : > { %v6677_v8 = vpop.eup %6676  ;;  %v2495_v22 = vadd.f32 1.0, %v6675_v21  ;;  %v2565_v21 = vld [vmem:[%s9609_s3] sm:$0xf] (%p2200_p3) }
 0x791   : > { %v2501_v23 = vadd.f32 1.0, %v6677_v8  ;;  %v6679_v25 = vpop.eup %6678  ;;  %v8533_v8 = vrot.slane (%p2200_p3), %v2565_v21, %v7492_v47 }
 0x792   : > { %6682 = vrcp.f32 %v2495_v22  ;;  %v6681_v15 = vpop.eup %6680  ;;  %v2508_v17 = vadd.f32 1.0, %v6679_v25  ;;  %v8536_v22 = vrot.slane (%p2200_p3), %v2565_v21, %v7494_v48 }
 0x793   : > { %6684 = vrcp.f32 %v2501_v23  ;;  %v8539_v23 = vrot.slane (%p2200_p3), %v2565_v21, %v7499_v50 }
 0x794   : > { %6686 = vrcp.f32 %v2508_v17 }
 0x79c   : > { %v6683_v16 = vpop.eup %6682 }
 0x79d   : > { %v6685_v19 = vpop.eup %6684  ;;  %v2512_v26 = vmul.f32 %v6683_v16, %v6681_v15 }
 0x79e   : > { %v2511_v27 = vmul.f32 %v7272_v24, %v6685_v19  ;;  %v6687_v18 = vpop.eup %6686 }
 0x7a0   : > { %v2513_v24 = vadd.f32 %v2512_v26, %v2511_v27  }
 0x7a2   : > { %6688 = vtanh.f32 %v2513_v24  ;;  %v6695_v24 = vld [vmem:[%s9605_s1 + $0x8] ss:$16 sps:$4 sm:$0xff] (%p2200_p3)  }
 0x7a3   :  { %2821 = vmatpush1.bf16.msra.mxu1 (%p2200_p3), %v6695_v24 }
 0x7a4   :  { %2822 = vmatprep.subr.bf16.mxu1 (%p2200_p3), %v6698_v35 }
 0x7a7   :  { %2823 = vmatpush1.bf16.msra.mxu1 (%p2200_p3), %v6701_v37 }
 0x7a8   :  { %2824 = vmatprep.subr.bf16.mxu1 (%p2200_p3), %v6704_v39 }
 0x7ab   :  { %2202 = sbr.rel (!%p2200_p3) target bundleno = 1675 (0x68b), region = 141  ;;  %2825 = vmatpush1.bf16.msra.mxu1 (%p2200_p3), %v6707_v41 }
 0x7ac   : > { %v6689_v28 = vpop.eup %6688  ;;  %2826 = vmatprep.subr.bf16.mxu1 (%p2200_p3), %v6710_v43 }
 0x7ad   : > { %v2515_v25 = vmul.f32 %v6689_v28, %v6687_v18  }
 0x7af   : > { %v2519_v30 = vadd.f32 %v2518_v29, %v2515_v25  ;;  %2827 = vmatpush1.bf16.msra.mxu1 (%p2200_p3), %v6713_v45  ;;  %v8542_v25 = vrot.slane (%p2200_p3), %v2565_v21, %v7501_v51 }
 0x7b0   :  { %2828 = vmatprep.subr.bf16.mxu1 (%p2200_p3), %v6716_v49 }
 0x7b1   : > { %2520 = vst [vmem:[%s2517_s15] sm:$0xff] %v2519_v30 }
 0x7b3   :  { %2829 = vmatpush1.bf16.msra.mxu1 %v6719_v57 }
 0x7b4   :  { %2830 = vmatprep.subr.bf16.mxu1 %v6722_v59 }
 0x7b7   :  { %2831 = vmatpush1.bf16.msra.mxu1 %v6725_v61 }
 0x7b8   :  { %2832 = vmatprep.subr.bf16.mxu1 %v6728_v63  ;;  %v2521_v4 = vld [vmem:[%s9607_s4] sm:$0xff]  ;;  %v2522_v2 = vld [vmem:[%s9607_s4 + $0x8] sm:$0xff]  ;;  %v2523_v11 = vld [vmem:[%s9607_s4 + $0x10] sm:$0xff] }
 0x7b9   :  { %v2529_v10 = vpack.c.bf16 %v2522_v2, %v2521_v4  ;;  %v2524_v12 = vld [vmem:[%s9607_s4 + $0x18] sm:$0xff]  ;;  %v2525_v14 = vld [vmem:[%s9607_s4 + $0x20] sm:$0xff]  ;;  %v2526_v5 = vld [vmem:[%s9607_s4 + $0x28] sm:$0xff] }
 0x7ba   :  { %v2530_v13 = vpack.c.bf16 %v2524_v12, %v2523_v11  ;;  %v2531_v6 = vpack.c.bf16 %v2526_v5, %v2525_v14  ;;  %v2527_v7 = vld [vmem:[%s9607_s4 + $0x30] sm:$0xff]  ;;  %v2528_v9 = vld [vmem:[%s9607_s4 + $0x38] sm:$0xff] }
 0x7bb   :  { %2833 = vmatpush1.bf16.msra.mxu1 %v6731_v3  ;;  %2780 = vmatmul.mubr.bf16.vlgmr.msra.gmra.mrb[0].mxu0 %v2529_v10  ;;  %v2532_v20 = vpack.c.bf16 %v2528_v9, %v2527_v7 }
 0x7bc   :  { %2834 = vmatprep.subr.bf16.mxu1 %v6734_v53  ;;  %2789 = vmatprep.mubr.bf16.mxu0 %v7330_v1 }
 0x7bf   :  { %2835 = vmatpush1.bf16.msra.mxu1 %v6737_v55 }
 0x7c2   :  { %2853 = vmatmul.mubr.bf16.vlgmr.msra.gmra.mrb[0].mxu1 %v2529_v10 }
 0x7c3   :  { %2862 = vmatprep.mubr.bf16.mxu1 %v7330_v1  ;;  %2790 = vmatmul.mubr.bf16.gmra.mrb[4].mxu0 %v2530_v13 }
 0x7c4   :  { %2799 = vmatprep.mubr.bf16.mxu0 %v7330_v1 }
 0x7ca   :  { %2863 = vmatmul.mubr.bf16.gmra.mrb[4].mxu1 %v2530_v13 }
 0x7cb   :  { %2872 = vmatprep.mubr.bf16.mxu1 %v7330_v1  ;;  %2800 = vmatmul.mubr.bf16.gmra.mrb[8].mxu0 %v2531_v6 }
 0x7cc   :  { %2809 = vmatprep.mubr.bf16.mxu0 %v7330_v1 }
 0x7d2   :  { %2873 = vmatmul.mubr.bf16.gmra.mrb[8].mxu1 %v2531_v6 }
 0x7d3   :  { %2882 = vmatprep.mubr.bf16.mxu1 %v7330_v1  ;;  %2810 = vmatmul.mubr.bf16.gmra.mrb[12].mxu0 %v2532_v20 }
 0x7da   :  { %2883 = vmatmul.mubr.bf16.gmra.mrb[12].mxu1 %v2532_v20 }
 0x88e   :  { %v2781_v15 = vpop.f32.mrb[0].mxu0 }
 0x88f   :  { %v2782_v17 = vadd.f32 %v2781_v15, %v8533_v8  ;;  %v2783_v26 = vpop.f32.mrb[1].mxu0 }
 0x890   :  { %v2784_v18 = vadd.f32 %v2783_v26, %v8539_v23  ;;  %v2785_v29 = vpop.f32.mrb[2].mxu0 }
 0x891   :  { %2893 = vst [vmem:[#allocation2] sm:$0xff] %v2782_v17  ;;  %v2786_v31 = vadd.f32 %v2785_v29, %v8533_v8  ;;  %v2787_v33 = vpop.f32.mrb[3].mxu0 }
 0x892   :  { %2894 = vst [vmem:[#allocation2 + $0x8] sm:$0xff] %v2784_v18  ;;  %v2788_v34 = vadd.f32 %v2787_v33, %v8539_v23 }
 0x893   :  { %2897 = vst [vmem:[#allocation2 + $0x20] sm:$0xff] %v2786_v31  ;;  %v8578_v31 = vmov 0.0  }
 0x894   :  { %2898 = vst [vmem:[#allocation2 + $0x28] sm:$0xff] %v2788_v34 }
 0x895   :  { %v2854_v16 = vpop.f32.mrb[0].mxu1 }
 0x896   :  { %v2855_v19 = vadd.f32 %v2854_v16, %v8536_v22  ;;  %v2856_v27 = vpop.f32.mrb[1].mxu1  ;;  %v2791_v36 = vpop.f32.mrb[4].mxu0 }
 0x897   :  { %v2857_v28 = vadd.f32 %v2856_v27, %v8542_v25  ;;  %v2858_v30 = vpop.f32.mrb[2].mxu1  ;;  %v2792_v38 = vadd.f32 %v2791_v36, %v8533_v8  ;;  %v2793_v40 = vpop.f32.mrb[5].mxu0 }
 0x898   :  { %2895 = vst [vmem:[#allocation2 + $0x10] sm:$0xff] %v2855_v19  ;;  %v2859_v32 = vadd.f32 %v2858_v30, %v8536_v22  ;;  %v2860_v24 = vpop.f32.mrb[3].mxu1  ;;  %v2794_v42 = vadd.f32 %v2793_v40, %v8539_v23  ;;  %v2795_v44 = vpop.f32.mrb[6].mxu0  ;;  %v8576_v30 = vmov 0.0  }
 0x899   :  { %2896 = vst [vmem:[#allocation2 + $0x18] sm:$0xff] %v2857_v28  ;;  %v2861_v35 = vadd.f32 %v2860_v24, %v8542_v25  ;;  %2901 = vst [vmem:[#allocation2 + $0x40] sm:$0xff] %v2792_v38  ;;  %v2796_v46 = vadd.f32 %v2795_v44, %v8533_v8  ;;  %v2797_v56 = vpop.f32.mrb[7].mxu0 }
 0x89a   :  { %2899 = vst [vmem:[#allocation2 + $0x30] sm:$0xff] %v2859_v32  ;;  %2902 = vst [vmem:[#allocation2 + $0x48] sm:$0xff] %v2794_v42  ;;  %v2798_v58 = vadd.f32 %v2797_v56, %v8539_v23 }
 0x89b   :  { %2900 = vst [vmem:[#allocation2 + $0x38] sm:$0xff] %v2861_v35  ;;  %2905 = vst [vmem:[#allocation2 + $0x60] sm:$0xff] %v2796_v46 }
 0x89c   :  { %2906 = vst [vmem:[#allocation2 + $0x68] sm:$0xff] %v2798_v58 }
 0x89d   :  { %v2864_v37 = vpop.f32.mrb[4].mxu1 }
 0x89e   :  { %v2865_v39 = vadd.f32 %v2864_v37, %v8536_v22  ;;  %v2866_v41 = vpop.f32.mrb[5].mxu1  ;;  %v2801_v60 = vpop.f32.mrb[8].mxu0 }
 0x89f   :  { %v2867_v43 = vadd.f32 %v2866_v41, %v8542_v25  ;;  %v2868_v45 = vpop.f32.mrb[6].mxu1  ;;  %v2802_v62 = vadd.f32 %v2801_v60, %v8533_v8  ;;  %v2803_v0 = vpop.f32.mrb[9].mxu0 }
 0x8a0   :  { %2903 = vst [vmem:[#allocation2 + $0x50] sm:$0xff] %v2865_v39  ;;  %v2869_v49 = vadd.f32 %v2868_v45, %v8536_v22  ;;  %v2870_v57 = vpop.f32.mrb[7].mxu1  ;;  %v2804_v52 = vadd.f32 %v2803_v0, %v8539_v23  ;;  %v2805_v54 = vpop.f32.mrb[10].mxu0 }
 0x8a1   :  { %2904 = vst [vmem:[#allocation2 + $0x58] sm:$0xff] %v2867_v43  ;;  %v2871_v59 = vadd.f32 %v2870_v57, %v8542_v25  ;;  %2909 = vst [vmem:[#allocation2 + $0x80] sm:$0xff] %v2802_v62  ;;  %v2806_v4 = vadd.f32 %v2805_v54, %v8533_v8  ;;  %v2807_v10 = vpop.f32.mrb[11].mxu0 }
 0x8a2   :  { %2907 = vst [vmem:[#allocation2 + $0x70] sm:$0xff] %v2869_v49  ;;  %2910 = vst [vmem:[#allocation2 + $0x88] sm:$0xff] %v2804_v52  ;;  %v2808_v12 = vadd.f32 %v2807_v10, %v8539_v23 }
 0x8a3   :  { %2908 = vst [vmem:[#allocation2 + $0x78] sm:$0xff] %v2871_v59  ;;  %2913 = vst [vmem:[#allocation2 + $0xa0] sm:$0xff] %v2806_v4 }
 0x8a4   :  { %2914 = vst [vmem:[#allocation2 + $0xa8] sm:$0xff] %v2808_v12 }
 0x8a5   :  { %v2874_v61 = vpop.f32.mrb[8].mxu1 }
 0x8a6   :  { %v2875_v63 = vadd.f32 %v2874_v61, %v8536_v22  ;;  %v2876_v3 = vpop.f32.mrb[9].mxu1  ;;  %v2811_v14 = vpop.f32.mrb[12].mxu0 }
 0x8a7   :  { %v2877_v53 = vadd.f32 %v2876_v3, %v8542_v25  ;;  %v2878_v55 = vpop.f32.mrb[10].mxu1  ;;  %v2812_v6 = vadd.f32 %v2811_v14, %v8533_v8  ;;  %v2813_v9 = vpop.f32.mrb[13].mxu0 }
 0x8a8   :  { %2911 = vst [vmem:[#allocation2 + $0x90] sm:$0xff] %v2875_v63  ;;  %v2879_v2 = vadd.f32 %v2878_v55, %v8536_v22  ;;  %v2880_v11 = vpop.f32.mrb[11].mxu1  ;;  %v2814_v21 = vadd.f32 %v2813_v9, %v8539_v23  ;;  %v2815_v16 = vpop.f32.mrb[14].mxu0 }
 0x8a9   :  { %2912 = vst [vmem:[#allocation2 + $0x98] sm:$0xff] %v2877_v53  ;;  %v2881_v13 = vadd.f32 %v2880_v11, %v8542_v25  ;;  %2917 = vst [vmem:[#allocation2 + $0xc0] sm:$0xff] %v2812_v6  ;;  %v2816_v19 = vadd.f32 %v2815_v16, %v8533_v8  ;;  %v2817_v27 = vpop.f32.mrb[15].mxu0 }
 0x8aa   :  { %2915 = vst [vmem:[#allocation2 + $0xb0] sm:$0xff] %v2879_v2  ;;  %2918 = vst [vmem:[#allocation2 + $0xc8] sm:$0xff] %v2814_v21  ;;  %v2818_v28 = vadd.f32 %v2817_v27, %v8539_v23 }
 0x8ab   :  { %2916 = vst [vmem:[#allocation2 + $0xb8] sm:$0xff] %v2881_v13  ;;  %2921 = vst [vmem:[#allocation2 + $0xe0] sm:$0xff] %v2816_v19 }
 0x8ac   :  { %2922 = vst [vmem:[#allocation2 + $0xe8] sm:$0xff] %v2818_v28 }
 0x8ad   :  { %v2884_v5 = vpop.f32.mrb[12].mxu1 }
 0x8ae   :  { %v2885_v7 = vadd.f32 %v2884_v5, %v8536_v22  ;;  %v2886_v20 = vpop.f32.mrb[13].mxu1 }
 0x8af   :  { %v2887_v15 = vadd.f32 %v2886_v20, %v8542_v25  ;;  %v2888_v17 = vpop.f32.mrb[14].mxu1 }
 0x8b0   :  { %2919 = vst [vmem:[#allocation2 + $0xd0] sm:$0xff] %v2885_v7  ;;  %v2889_v26 = vadd.f32 %v2888_v17, %v8536_v22  ;;  %v2890_v18 = vpop.f32.mrb[15].mxu1 }
 0x8b1   :  { %2920 = vst [vmem:[#allocation2 + $0xd8] sm:$0xff] %v2887_v15  ;;  %v2891_v29 = vadd.f32 %v2890_v18, %v8542_v25 }
 0x8b2   :  { %2923 = vst [vmem:[#allocation2 + $0xf0] sm:$0xff] %v2889_v26 }
 0x8b3   :  { %2924 = vst [vmem:[#allocation2 + $0xf8] sm:$0xff] %v2891_v29 }
 0x8b4 LB: > { %v6738_v8 = vld [vmem:[%s9606_s2 + $0x4] ss:$16 sps:$4 sm:$0xff]   ;;  %v6740_v22 = vld [vmem:[%s9606_s2] ss:$16 sps:$4 sm:$0xff]   ;;  %v7335_v23 = vmov 0   ;;  %v2940_v53 = vpack.c.bf16 %v7288_v31, %v7288_v31  ;;  %s6085_s5 = sshll.u32 %s7292_s17, 5  ;;  %s7292_s17 = sphi %s8580_s17, %s2930_s17   ;;  %v7288_v31 = vphi %v8578_v31, %v3242_v31   ;;  %v7284_v30 = vphi %v8576_v30, %v3240_v30  }
 0x8b5   : > { %3165 = vmatprep.mubr.bf16.mxu0 %v7335_v23  ;;  %3206 = vmatprep.mubr.bf16.mxu1 %v7335_v23  ;;  %v6741_v25 = vld [vmem:[%s9606_s2 + $0x24] ss:$16 sps:$4 sm:$0xff]   ;;  %v6743_v32 = vld [vmem:[%s9606_s2 + $0x20] ss:$16 sps:$4 sm:$0xff]   ;;  %v6749_v24 = vld [vmem:[%s9606_s2 + $0xc] ss:$16 sps:$4 sm:$0xff]  }
 0x8b6   : > { %3133 = vmatprep.subr.bf16.mxu0 %v6738_v8  ;;  %v6744_v33 = vld [vmem:[%s9606_s2 + $0x44] ss:$16 sps:$4 sm:$0xff]   ;;  %v6752_v34 = vld [vmem:[%s9606_s2 + $0x8] ss:$16 sps:$4 sm:$0xff]   ;;  %v6746_v35 = vld [vmem:[%s9606_s2 + $0x40] ss:$16 sps:$4 sm:$0xff]   ;;  %3174 = vmatprep.subr.bf16.mxu1 %v6749_v24 }
 0x8b7   : > { %3134 = vmatpush1.bf16.msra.mxu0 %v6740_v22  ;;  %v6747_v36 = vld [vmem:[%s9606_s2 + $0x64] ss:$16 sps:$4 sm:$0xff]   ;;  %3175 = vmatpush1.bf16.msra.mxu1 %v6752_v34  ;;  %v6755_v37 = vld [vmem:[%s9606_s2 + $0x2c] ss:$16 sps:$4 sm:$0xff]   ;;  %v6758_v38 = vld [vmem:[%s9606_s2 + $0x28] ss:$16 sps:$4 sm:$0xff]  }
 0x8b8   : > { %3135 = vmatprep.subr.bf16.mxu0 %v6741_v25  ;;  %3176 = vmatprep.subr.bf16.mxu1 %v6755_v37  ;;  %v6751_v39 = vld [vmem:[%s9606_s2 + $0x60] ss:$16 sps:$4 sm:$0xff]   ;;  %v6753_v40 = vld [vmem:[%s9606_s2 + $0x84] ss:$16 sps:$4 sm:$0xff]   ;;  %v6761_v41 = vld [vmem:[%s9606_s2 + $0x4c] ss:$16 sps:$4 sm:$0xff]  }
 0x8b9   : > { %v6764_v42 = vld [vmem:[%s9606_s2 + $0x48] ss:$16 sps:$4 sm:$0xff]   ;;  %v6767_v43 = vld [vmem:[%s9606_s2 + $0x6c] ss:$16 sps:$4 sm:$0xff]   ;;  %v6757_v44 = vld [vmem:[%s9606_s2 + $0x80] ss:$16 sps:$4 sm:$0xff]  }
 0x8ba   : > { %v6759_v45 = vld [vmem:[%s9606_s2 + $0xa4] ss:$16 sps:$4 sm:$0xff]   ;;  %v6770_v46 = vld [vmem:[%s9606_s2 + $0x68] ss:$16 sps:$4 sm:$0xff]   ;;  %v6773_v49 = vld [vmem:[%s9606_s2 + $0x8c] ss:$16 sps:$4 sm:$0xff]  }
 0x8bb   : > { %3136 = vmatpush1.bf16.msra.mxu0 %v6743_v32  ;;  %3177 = vmatpush1.bf16.msra.mxu1 %v6758_v38  ;;  %v6763_v56 = vld [vmem:[%s9606_s2 + $0xa0] ss:$16 sps:$4 sm:$0xff]   ;;  %v6765_v57 = vld [vmem:[%s9606_s2 + $0xc4] ss:$16 sps:$4 sm:$0xff]   ;;  %v6776_v58 = vld [vmem:[%s9606_s2 + $0x88] ss:$16 sps:$4 sm:$0xff]  }
 0x8bc   : > { %3137 = vmatprep.subr.bf16.mxu0 %v6744_v33  ;;  %3178 = vmatprep.subr.bf16.mxu1 %v6761_v41  ;;  %v6777_v59 = vld [vmem:[%s9606_s2 + $0xac] ss:$16 sps:$4 sm:$0xff]   ;;  %v6769_v60 = vld [vmem:[%s9606_s2 + $0xc0] ss:$16 sps:$4 sm:$0xff]   ;;  %v6771_v61 = vld [vmem:[%s9606_s2 + $0xe4] ss:$16 sps:$4 sm:$0xff]  }
 0x8bd   : > { %v6779_v62 = vld [vmem:[%s9606_s2 + $0xa8] ss:$16 sps:$4 sm:$0xff]   ;;  %v6780_v63 = vld [vmem:[%s9606_s2 + $0xcc] ss:$16 sps:$4 sm:$0xff]   ;;  %v6775_v0 = vld [vmem:[%s9606_s2 + $0xe0] ss:$16 sps:$4 sm:$0xff]  }
 0x8be   : > { %v6782_v3 = vld [vmem:[%s9606_s2 + $0xc8] ss:$16 sps:$4 sm:$0xff]   ;;  %v6783_v52 = vld [vmem:[%s9606_s2 + $0xec] ss:$16 sps:$4 sm:$0xff]   ;;  %s2935_s30 = scalar_lea.vmem [#allocation2], %s6085_s5  ;;  %s5870_s6 = sshll.u32 %s7292_s17, 3 }
 0x8bf   : > { %3138 = vmatpush1.bf16.msra.mxu0 %v6746_v35  ;;  %3179 = vmatpush1.bf16.msra.mxu1 %v6764_v42  ;;  %v6785_v54 = vld [vmem:[%s9606_s2 + $0xe8] ss:$16 sps:$4 sm:$0xff]   ;;  %v2936_v55 = vld [vmem:[%s2935_s30] sm:$0xff]  ;;  %v2938_v17 = vld [vmem:[%s2935_s30 + $0x10] sm:$0xff]  ;;  %s3244_s9 = scalar_lea.vmem %s9607_s4, %s5870_s6  ;;  %s2930_s17 = sadd.s32 1, %s7292_s17  }
 0x8c0   : > { %3139 = vmatprep.subr.bf16.mxu0 %v6747_v36  ;;  %3180 = vmatprep.subr.bf16.mxu1 %v6767_v43  ;;  %v2937_v4 = vld [vmem:[%s2935_s30 + $0x8] sm:$0xff]  ;;  %v2939_v7 = vld [vmem:[%s2935_s30 + $0x18] sm:$0xff]  ;;  %v3245_v35 = vld [vmem:[%s3244_s9] sm:$0xff]  ;;  %p2927_p4 = scmp.ge.s32.totalorder %s2930_s17, 8  }
 0x8c1   :  { %v6802_v37 = vld [vmem:[%s9605_s1 + $0x4] ss:$16 sps:$4 sm:$0xff] (%p2927_p4)   ;;  %v6804_v38 = vld [vmem:[%s9605_s1 + $0xc] ss:$16 sps:$4 sm:$0xff] (%p2927_p4)   ;;  %v6812_v42 = vld [vmem:[%s9605_s1 + $0x20] ss:$16 sps:$4 sm:$0xff] (%p2927_p4)  }
 0x8c2   :  { %v6810_v41 = vld [vmem:[%s9605_s1 + $0x2c] ss:$16 sps:$4 sm:$0xff] (%p2927_p4)   ;;  %v6813_v43 = vld [vmem:[%s9605_s1 + $0x28] ss:$16 sps:$4 sm:$0xff] (%p2927_p4)   ;;  %s8881_s11 = smov (%p2927_p4), 0  }
 0x8c3   : > { %3140 = vmatpush1.bf16.msra.mxu0 %v6751_v39  ;;  %3181 = vmatpush1.bf16.msra.mxu1 %v6770_v46  ;;  %v6806_v39 = vld [vmem:[%s9605_s1] ss:$16 sps:$4 sm:$0xff] (%p2927_p4)  }
 0x8c4   : > { %3141 = vmatprep.subr.bf16.mxu0 %v6753_v40  ;;  %3182 = vmatprep.subr.bf16.mxu1 %v6773_v49  ;;  %v6808_v40 = vld [vmem:[%s9605_s1 + $0x24] ss:$16 sps:$4 sm:$0xff] (%p2927_p4)   ;;  %v6818_v46 = vld [vmem:[%s9605_s1 + $0x40] ss:$16 sps:$4 sm:$0xff] (%p2927_p4)   ;;  %v6819_v49 = vld [vmem:[%s9605_s1 + $0x48] ss:$16 sps:$4 sm:$0xff] (%p2927_p4)  }
 0x8c7   : > { %3142 = vmatpush1.bf16.msra.mxu0 %v6757_v44  ;;  %3183 = vmatpush1.bf16.msra.mxu1 %v6776_v58  ;;  %v6814_v44 = vld [vmem:[%s9605_s1 + $0x44] ss:$16 sps:$4 sm:$0xff] (%p2927_p4)   ;;  %v6824_v58 = vld [vmem:[%s9605_s1 + $0x60] ss:$16 sps:$4 sm:$0xff] (%p2927_p4)  }
 0x8c8   : > { %3143 = vmatprep.subr.bf16.mxu0 %v6759_v45  ;;  %3184 = vmatprep.subr.bf16.mxu1 %v6777_v59  ;;  %v6816_v45 = vld [vmem:[%s9605_s1 + $0x4c] ss:$16 sps:$4 sm:$0xff] (%p2927_p4)   ;;  %v6825_v59 = vld [vmem:[%s9605_s1 + $0x68] ss:$16 sps:$4 sm:$0xff] (%p2927_p4)  }
 0x8cb   : > { %3144 = vmatpush1.bf16.msra.mxu0 %v6763_v56  ;;  %3185 = vmatpush1.bf16.msra.mxu1 %v6779_v62  ;;  %v6820_v56 = vld [vmem:[%s9605_s1 + $0x64] ss:$16 sps:$4 sm:$0xff] (%p2927_p4)   ;;  %v6830_v62 = vld [vmem:[%s9605_s1 + $0x80] ss:$16 sps:$4 sm:$0xff] (%p2927_p4)  }
 0x8cc   : > { %3145 = vmatprep.subr.bf16.mxu0 %v6765_v57  ;;  %3186 = vmatprep.subr.bf16.mxu1 %v6780_v63  ;;  %v6822_v57 = vld [vmem:[%s9605_s1 + $0x6c] ss:$16 sps:$4 sm:$0xff] (%p2927_p4)   ;;  %v6831_v63 = vld [vmem:[%s9605_s1 + $0x88] ss:$16 sps:$4 sm:$0xff] (%p2927_p4)  }
 0x8cf   : > { %3146 = vmatpush1.bf16.msra.mxu0 %v6769_v60  ;;  %3187 = vmatpush1.bf16.msra.mxu1 %v6782_v3  ;;  %v6826_v60 = vld [vmem:[%s9605_s1 + $0x84] ss:$16 sps:$4 sm:$0xff] (%p2927_p4)   ;;  %v6834_v3 = vld [vmem:[%s9605_s1 + $0xac] ss:$16 sps:$4 sm:$0xff] (%p2927_p4)  }
 0x8d0   : > { %3147 = vmatprep.subr.bf16.mxu0 %v6771_v61  ;;  %3188 = vmatprep.subr.bf16.mxu1 %v6783_v52  ;;  %v6828_v61 = vld [vmem:[%s9605_s1 + $0x8c] ss:$16 sps:$4 sm:$0xff] (%p2927_p4)   ;;  %v6836_v52 = vld [vmem:[%s9605_s1 + $0xa0] ss:$16 sps:$4 sm:$0xff] (%p2927_p4)  }
 0x8d3   : > { %3148 = vmatpush1.bf16.msra.mxu0 %v6775_v0  ;;  %3189 = vmatpush1.bf16.msra.mxu1 %v6785_v54  ;;  %v6832_v0 = vld [vmem:[%s9605_s1 + $0xa4] ss:$16 sps:$4 sm:$0xff] (%p2927_p4)  }
 0x8d4   :  { %3474 = vmatprep.subr.bf16.mxu0 (%p2927_p4), %v6802_v37  ;;  %3547 = vmatprep.subr.bf16.mxu1 (%p2927_p4), %v6804_v38  ;;  %v6838_v54 = vld [vmem:[%s9605_s1 + $0xc4] ss:$16 sps:$4 sm:$0xff] (%p2927_p4)  }
 0x8d6   : > { %3166 = vmatmul.mubr.bf16.vlgmr.msra.gmra.mrb[0].mxu0 %v2940_v53  ;;  %3207 = vmatmul.mubr.bf16.vlgmr.msra.gmra.mrb[0].mxu1 %v2940_v53  ;;  %v6837_v53 = vld [vmem:[%s9605_s1 + $0xa8] ss:$16 sps:$4 sm:$0xff] (%p2927_p4)  }
 0x8d7   :  { %3506 = vmatprep.mubr.bf16.mxu0 (%p2927_p4), %v7330_v1  ;;  %3579 = vmatprep.mubr.bf16.mxu1 (%p2927_p4), %v7330_v1 }
 0x8d8   :  { %3475 = vmatpush1.bf16.msra.mxu0 (%p2927_p4), %v6806_v39 }
 0x8d9   :  { %3476 = vmatprep.subr.bf16.mxu0 (%p2927_p4), %v6808_v40 }
 0x8dc   :  { %3477 = vmatpush1.bf16.msra.mxu0 (%p2927_p4), %v6812_v42 }
 0x8dd   :  { %3478 = vmatprep.subr.bf16.mxu0 (%p2927_p4), %v6814_v44 }
 0x8e0   :  { %3479 = vmatpush1.bf16.msra.mxu0 (%p2927_p4), %v6818_v46 }
 0x8e1   :  { %3480 = vmatprep.subr.bf16.mxu0 (%p2927_p4), %v6820_v56 }
 0x8e4   :  { %3481 = vmatpush1.bf16.msra.mxu0 (%p2927_p4), %v6824_v58 }
 0x8e5   :  { %3482 = vmatprep.subr.bf16.mxu0 (%p2927_p4), %v6826_v60 }
 0x8e8   :  { %3483 = vmatpush1.bf16.msra.mxu0 (%p2927_p4), %v6830_v62 }
 0x8e9   :  { %3484 = vmatprep.subr.bf16.mxu0 (%p2927_p4), %v6832_v0 }
 0x8ec   :  { %3485 = vmatpush1.bf16.msra.mxu0 (%p2927_p4), %v6836_v52 }
 0x8ed   :  { %3486 = vmatprep.subr.bf16.mxu0 (%p2927_p4), %v6838_v54 }
 0x9a9   : > { %v3167_v2 = vpop.f32.mrb[0].mxu0  ;;  %v3208_v9 = vpop.f32.mrb[0].mxu1 }
 0x9aa   : > { %v3215_v10 = vadd.f32 %v3167_v2, %v2936_v55  ;;  %v3169_v11 = vpop.f32.mrb[1].mxu0  ;;  %v3210_v20 = vpop.f32.mrb[1].mxu1  ;;  %v3217_v26 = vadd.f32 %v3208_v9, %v2938_v17  ;;  %v6840_v55 = vld [vmem:[%s9605_s1 + $0xcc] ss:$16 sps:$4 sm:$0xff] (%p2927_p4)   ;;  %v6843_v2 = vld [vmem:[%s9605_s1 + $0xc8] ss:$16 sps:$4 sm:$0xff] (%p2927_p4)  }
 0x9ab   : > { %v3216_v12 = vadd.f32 %v3169_v11, %v2937_v4  ;;  %v3171_v13 = vpop.f32.mrb[2].mxu0  ;;  %v3218_v21 = vadd.f32 %v3210_v20, %v2939_v7  ;;  %v3212_v15 = vpop.f32.mrb[2].mxu1  ;;  %v6842_v4 = vld [vmem:[%s9605_s1 + $0xc0] ss:$16 sps:$4 sm:$0xff] (%p2927_p4)   ;;  %v6846_v11 = vld [vmem:[%s9605_s1 + $0xec] ss:$16 sps:$4 sm:$0xff] (%p2927_p4)  }
 0x9ac   : > { %v5867_v14 = vmul.f32 -1.442695, %v3215_v10  ;;  %v3172_v5 = vpop.f32.mrb[3].mxu0  ;;  %v3213_v16 = vpop.f32.mrb[3].mxu1  ;;  %v6844_v10 = vld [vmem:[%s9605_s1 + $0xe4] ss:$16 sps:$4 sm:$0xff] (%p2927_p4)   ;;  %3487 = vmatpush1.bf16.msra.mxu0 (%p2927_p4), %v6842_v4 }
 0x9ad   : > { %v5868_v6 = vmul.f32 -1.442695, %v3216_v12  ;;  %v5869_v19 = vmul.f32 -1.442695, %v3218_v21  ;;  %v6848_v12 = vld [vmem:[%s9605_s1 + $0xe0] ss:$16 sps:$4 sm:$0xff] (%p2927_p4)   ;;  %3488 = vmatprep.subr.bf16.mxu0 (%p2927_p4), %v6844_v10 }
 0x9ae   : > { %6786 = vpow2.f32 %v5867_v14  ;;  %v6849_v13 = vld [vmem:[%s9605_s1 + $0xe8] ss:$16 sps:$4 sm:$0xff] (%p2927_p4)  }
 0x9af   : > { %6788 = vpow2.f32 %v5868_v6 }
 0x9b0   : > { %6790 = vpow2.f32 %v5869_v19  ;;  %3489 = vmatpush1.bf16.msra.mxu0 (%p2927_p4), %v6848_v12 }
 0x9b1   : > { %6792 = vtanh.f32 %v3217_v26 }
 0x9b8   : > { %v6787_v27 = vpop.eup %6786 }
 0x9b9   : > { %v6789_v18 = vpop.eup %6788  ;;  %v3222_v28 = vadd.f32 1.0, %v6787_v27  ;;  %v3292_v27 = vld [vmem:[%s9609_s3] sm:$0xf] (%p2927_p4) }
 0x9ba   : > { %v3228_v29 = vadd.f32 1.0, %v6789_v18  ;;  %v6791_v31 = vpop.eup %6790  ;;  %v8834_v18 = vrot.slane (%p2927_p4), %v3292_v27, %v7492_v47 }
 0x9bb   : > { %6794 = vrcp.f32 %v3222_v28  ;;  %v6793_v8 = vpop.eup %6792  ;;  %v3235_v23 = vadd.f32 1.0, %v6791_v31  ;;  %v8837_v28 = vrot.slane (%p2927_p4), %v3292_v27, %v7494_v48 }
 0x9bc   : > { %6796 = vrcp.f32 %v3228_v29  ;;  %v8840_v29 = vrot.slane (%p2927_p4), %v3292_v27, %v7499_v50 }
 0x9bd   : > { %6798 = vrcp.f32 %v3235_v23 }
 0x9c5   : > { %v6795_v22 = vpop.eup %6794 }
 0x9c6   : > { %v6797_v25 = vpop.eup %6796  ;;  %v3239_v32 = vmul.f32 %v6795_v22, %v6793_v8 }
 0x9c7   : > { %v3238_v33 = vmul.f32 %v7284_v30, %v6797_v25  ;;  %v6799_v24 = vpop.eup %6798 }
 0x9c9   : > { %v3240_v30 = vadd.f32 %v3239_v32, %v3238_v33  }
 0x9cb   : > { %6800 = vtanh.f32 %v3240_v30  ;;  %v6807_v30 = vld [vmem:[%s9605_s1 + $0x8] ss:$16 sps:$4 sm:$0xff] (%p2927_p4)  }
 0x9cc   :  { %3548 = vmatpush1.bf16.msra.mxu1 (%p2927_p4), %v6807_v30 }
 0x9cd   :  { %3549 = vmatprep.subr.bf16.mxu1 (%p2927_p4), %v6810_v41 }
 0x9d0   :  { %3550 = vmatpush1.bf16.msra.mxu1 (%p2927_p4), %v6813_v43 }
 0x9d1   :  { %3551 = vmatprep.subr.bf16.mxu1 (%p2927_p4), %v6816_v45 }
 0x9d4   :  { %2929 = sbr.rel (!%p2927_p4) target bundleno = 2228 (0x8b4), region = 152  ;;  %3552 = vmatpush1.bf16.msra.mxu1 (%p2927_p4), %v6819_v49 }
 0x9d5   : > { %v6801_v34 = vpop.eup %6800  ;;  %3553 = vmatprep.subr.bf16.mxu1 (%p2927_p4), %v6822_v57 }
 0x9d6   : > { %v3242_v31 = vmul.f32 %v6801_v34, %v6799_v24  }
 0x9d8   : > { %v3246_v36 = vadd.f32 %v3245_v35, %v3242_v31  ;;  %3554 = vmatpush1.bf16.msra.mxu1 (%p2927_p4), %v6825_v59  ;;  %v8843_v31 = vrot.slane (%p2927_p4), %v3292_v27, %v7501_v51 }
 0x9d9   :  { %3555 = vmatprep.subr.bf16.mxu1 (%p2927_p4), %v6828_v61 }
 0x9da   : > { %3247 = vst [vmem:[%s3244_s9] sm:$0xff] %v3246_v36 }
 0x9dc   :  { %3556 = vmatpush1.bf16.msra.mxu1 %v6831_v63 }
 0x9dd   :  { %3557 = vmatprep.subr.bf16.mxu1 %v6834_v3 }
 0x9e0   :  { %3558 = vmatpush1.bf16.msra.mxu1 %v6837_v53 }
 0x9e1   :  { %3559 = vmatprep.subr.bf16.mxu1 %v6840_v55  ;;  %v3248_v14 = vld [vmem:[%s9607_s4] sm:$0xff]  ;;  %v3249_v5 = vld [vmem:[%s9607_s4 + $0x8] sm:$0xff]  ;;  %v3250_v7 = vld [vmem:[%s9607_s4 + $0x10] sm:$0xff] }
 0x9e2   :  { %v3256_v6 = vpack.c.bf16 %v3249_v5, %v3248_v14  ;;  %v3251_v9 = vld [vmem:[%s9607_s4 + $0x18] sm:$0xff]  ;;  %v3252_v21 = vld [vmem:[%s9607_s4 + $0x20] sm:$0xff]  ;;  %v3253_v15 = vld [vmem:[%s9607_s4 + $0x28] sm:$0xff] }
 0x9e3   :  { %v3257_v20 = vpack.c.bf16 %v3251_v9, %v3250_v7  ;;  %v3258_v16 = vpack.c.bf16 %v3253_v15, %v3252_v21  ;;  %v3254_v17 = vld [vmem:[%s9607_s4 + $0x30] sm:$0xff]  ;;  %v3255_v19 = vld [vmem:[%s9607_s4 + $0x38] sm:$0xff] }
 0x9e4   :  { %3560 = vmatpush1.bf16.msra.mxu1 %v6843_v2  ;;  %3507 = vmatmul.mubr.bf16.vlgmr.msra.gmra.mrb[0].mxu0 %v3256_v6  ;;  %v3259_v26 = vpack.c.bf16 %v3255_v19, %v3254_v17 }
 0x9e5   :  { %3561 = vmatprep.subr.bf16.mxu1 %v6846_v11  ;;  %3516 = vmatprep.mubr.bf16.mxu0 %v7330_v1 }
 0x9e8   :  { %3562 = vmatpush1.bf16.msra.mxu1 %v6849_v13 }
 0x9eb   :  { %3580 = vmatmul.mubr.bf16.vlgmr.msra.gmra.mrb[0].mxu1 %v3256_v6 }
 0x9ec   :  { %3589 = vmatprep.mubr.bf16.mxu1 %v7330_v1  ;;  %3517 = vmatmul.mubr.bf16.gmra.mrb[4].mxu0 %v3257_v20 }
 0x9ed   :  { %3526 = vmatprep.mubr.bf16.mxu0 %v7330_v1 }
 0x9f3   :  { %3590 = vmatmul.mubr.bf16.gmra.mrb[4].mxu1 %v3257_v20 }
 0x9f4   :  { %3599 = vmatprep.mubr.bf16.mxu1 %v7330_v1  ;;  %3527 = vmatmul.mubr.bf16.gmra.mrb[8].mxu0 %v3258_v16 }
 0x9f5   :  { %3536 = vmatprep.mubr.bf16.mxu0 %v7330_v1 }
 0x9fb   :  { %3600 = vmatmul.mubr.bf16.gmra.mrb[8].mxu1 %v3258_v16 }
 0x9fc   :  { %3609 = vmatprep.mubr.bf16.mxu1 %v7330_v1  ;;  %3537 = vmatmul.mubr.bf16.gmra.mrb[12].mxu0 %v3259_v26 }
 0xa03   :  { %3610 = vmatmul.mubr.bf16.gmra.mrb[12].mxu1 %v3259_v26 }
 0xab7   :  { %v3508_v8 = vpop.f32.mrb[0].mxu0 }
 0xab8   :  { %v3509_v23 = vadd.f32 %v3508_v8, %v8834_v18  ;;  %v3510_v32 = vpop.f32.mrb[1].mxu0 }
 0xab9   :  { %v3511_v24 = vadd.f32 %v3510_v32, %v8840_v29  ;;  %v3512_v35 = vpop.f32.mrb[2].mxu0 }
 0xaba   :  { %3620 = vst [vmem:[#allocation2] sm:$0xff] %v3509_v23  ;;  %v3513_v37 = vadd.f32 %v3512_v35, %v8834_v18  ;;  %v3514_v39 = vpop.f32.mrb[3].mxu0 }
 0xabb   :  { %3621 = vst [vmem:[#allocation2 + $0x8] sm:$0xff] %v3511_v24  ;;  %v3515_v40 = vadd.f32 %v3514_v39, %v8840_v29 }
 0xabc   :  { %3624 = vst [vmem:[#allocation2 + $0x20] sm:$0xff] %v3513_v37  ;;  %v8879_v37 = vmov 0.0  }
 0xabd   :  { %3625 = vst [vmem:[#allocation2 + $0x28] sm:$0xff] %v3515_v40 }
 0xabe   :  { %v3581_v22 = vpop.f32.mrb[0].mxu1 }
 0xabf   :  { %v3582_v25 = vadd.f32 %v3581_v22, %v8837_v28  ;;  %v3583_v33 = vpop.f32.mrb[1].mxu1  ;;  %v3518_v42 = vpop.f32.mrb[4].mxu0 }
 0xac0   :  { %v3584_v34 = vadd.f32 %v3583_v33, %v8843_v31  ;;  %v3585_v36 = vpop.f32.mrb[2].mxu1  ;;  %v3519_v44 = vadd.f32 %v3518_v42, %v8834_v18  ;;  %v3520_v46 = vpop.f32.mrb[5].mxu0 }
 0xac1   :  { %3622 = vst [vmem:[#allocation2 + $0x10] sm:$0xff] %v3582_v25  ;;  %v3586_v38 = vadd.f32 %v3585_v36, %v8837_v28  ;;  %v3587_v30 = vpop.f32.mrb[3].mxu1  ;;  %v3521_v56 = vadd.f32 %v3520_v46, %v8840_v29  ;;  %v3522_v58 = vpop.f32.mrb[6].mxu0  ;;  %v8877_v36 = vmov 0.0  }
 0xac2   :  { %3623 = vst [vmem:[#allocation2 + $0x18] sm:$0xff] %v3584_v34  ;;  %v3588_v41 = vadd.f32 %v3587_v30, %v8843_v31  ;;  %3628 = vst [vmem:[#allocation2 + $0x40] sm:$0xff] %v3519_v44  ;;  %v3523_v60 = vadd.f32 %v3522_v58, %v8834_v18  ;;  %v3524_v62 = vpop.f32.mrb[7].mxu0 }
 0xac3   :  { %3626 = vst [vmem:[#allocation2 + $0x30] sm:$0xff] %v3586_v38  ;;  %3629 = vst [vmem:[#allocation2 + $0x48] sm:$0xff] %v3521_v56  ;;  %v3525_v0 = vadd.f32 %v3524_v62, %v8840_v29 }
 0xac4   :  { %3627 = vst [vmem:[#allocation2 + $0x38] sm:$0xff] %v3588_v41  ;;  %3632 = vst [vmem:[#allocation2 + $0x60] sm:$0xff] %v3523_v60 }
 0xac5   :  { %3633 = vst [vmem:[#allocation2 + $0x68] sm:$0xff] %v3525_v0 }
 0xac6   :  { %v3591_v43 = vpop.f32.mrb[4].mxu1 }
 0xac7   :  { %v3592_v45 = vadd.f32 %v3591_v43, %v8837_v28  ;;  %v3593_v49 = vpop.f32.mrb[5].mxu1  ;;  %v3528_v52 = vpop.f32.mrb[8].mxu0 }
 0xac8   :  { %v3594_v57 = vadd.f32 %v3593_v49, %v8843_v31  ;;  %v3595_v59 = vpop.f32.mrb[6].mxu1  ;;  %v3529_v54 = vadd.f32 %v3528_v52, %v8834_v18  ;;  %v3530_v4 = vpop.f32.mrb[9].mxu0 }
 0xac9   :  { %3630 = vst [vmem:[#allocation2 + $0x50] sm:$0xff] %v3592_v45  ;;  %v3596_v61 = vadd.f32 %v3595_v59, %v8837_v28  ;;  %v3597_v63 = vpop.f32.mrb[7].mxu1  ;;  %v3531_v10 = vadd.f32 %v3530_v4, %v8840_v29  ;;  %v3532_v12 = vpop.f32.mrb[10].mxu0 }
 0xaca   :  { %3631 = vst [vmem:[#allocation2 + $0x58] sm:$0xff] %v3594_v57  ;;  %v3598_v3 = vadd.f32 %v3597_v63, %v8843_v31  ;;  %3636 = vst [vmem:[#allocation2 + $0x80] sm:$0xff] %v3529_v54  ;;  %v3533_v14 = vadd.f32 %v3532_v12, %v8834_v18  ;;  %v3534_v6 = vpop.f32.mrb[11].mxu0 }
 0xacb   :  { %3634 = vst [vmem:[#allocation2 + $0x70] sm:$0xff] %v3596_v61  ;;  %3637 = vst [vmem:[#allocation2 + $0x88] sm:$0xff] %v3531_v10  ;;  %v3535_v9 = vadd.f32 %v3534_v6, %v8840_v29 }
 0xacc   :  { %3635 = vst [vmem:[#allocation2 + $0x78] sm:$0xff] %v3598_v3  ;;  %3640 = vst [vmem:[#allocation2 + $0xa0] sm:$0xff] %v3533_v14 }
 0xacd   :  { %3641 = vst [vmem:[#allocation2 + $0xa8] sm:$0xff] %v3535_v9 }
 0xace   :  { %v3601_v53 = vpop.f32.mrb[8].mxu1 }
 0xacf   :  { %v3602_v55 = vadd.f32 %v3601_v53, %v8837_v28  ;;  %v3603_v2 = vpop.f32.mrb[9].mxu1  ;;  %v3538_v21 = vpop.f32.mrb[12].mxu0 }
 0xad0   :  { %v3604_v11 = vadd.f32 %v3603_v2, %v8843_v31  ;;  %v3605_v13 = vpop.f32.mrb[10].mxu1  ;;  %v3539_v16 = vadd.f32 %v3538_v21, %v8834_v18  ;;  %v3540_v19 = vpop.f32.mrb[13].mxu0 }
 0xad1   :  { %3638 = vst [vmem:[#allocation2 + $0x90] sm:$0xff] %v3602_v55  ;;  %v3606_v5 = vadd.f32 %v3605_v13, %v8837_v28  ;;  %v3607_v7 = vpop.f32.mrb[11].mxu1  ;;  %v3541_v27 = vadd.f32 %v3540_v19, %v8840_v29  ;;  %v3542_v22 = vpop.f32.mrb[14].mxu0 }
 0xad2   :  { %3639 = vst [vmem:[#allocation2 + $0x98] sm:$0xff] %v3604_v11  ;;  %v3608_v20 = vadd.f32 %v3607_v7, %v8843_v31  ;;  %3644 = vst [vmem:[#allocation2 + $0xc0] sm:$0xff] %v3539_v16  ;;  %v3543_v25 = vadd.f32 %v3542_v22, %v8834_v18  ;;  %v3544_v33 = vpop.f32.mrb[15].mxu0 }
 0xad3   :  { %3642 = vst [vmem:[#allocation2 + $0xb0] sm:$0xff] %v3606_v5  ;;  %3645 = vst [vmem:[#allocation2 + $0xc8] sm:$0xff] %v3541_v27  ;;  %v3545_v34 = vadd.f32 %v3544_v33, %v8840_v29 }
 0xad4   :  { %3643 = vst [vmem:[#allocation2 + $0xb8] sm:$0xff] %v3608_v20  ;;  %3648 = vst [vmem:[#allocation2 + $0xe0] sm:$0xff] %v3543_v25 }
 0xad5   :  { %3649 = vst [vmem:[#allocation2 + $0xe8] sm:$0xff] %v3545_v34 }
 0xad6   :  { %v3611_v15 = vpop.f32.mrb[12].mxu1 }
 0xad7   :  { %v3612_v17 = vadd.f32 %v3611_v15, %v8837_v28  ;;  %v3613_v26 = vpop.f32.mrb[13].mxu1 }
 0xad8   :  { %v3614_v8 = vadd.f32 %v3613_v26, %v8843_v31  ;;  %v3615_v23 = vpop.f32.mrb[14].mxu1 }
 0xad9   :  { %3646 = vst [vmem:[#allocation2 + $0xd0] sm:$0xff] %v3612_v17  ;;  %v3616_v32 = vadd.f32 %v3615_v23, %v8837_v28  ;;  %v3617_v24 = vpop.f32.mrb[15].mxu1 }
 0xada   :  { %3647 = vst [vmem:[#allocation2 + $0xd8] sm:$0xff] %v3614_v8  ;;  %v3618_v35 = vadd.f32 %v3617_v24, %v8843_v31 }
 0xadb   :  { %3650 = vst [vmem:[#allocation2 + $0xf0] sm:$0xff] %v3616_v32 }
 0xadc   :  { %3651 = vst [vmem:[#allocation2 + $0xf8] sm:$0xff] %v3618_v35 }
 0xadd LB: > { %v6850_v18 = vld [vmem:[%s9606_s2 + $0x4] ss:$16 sps:$4 sm:$0xff]   ;;  %v6852_v28 = vld [vmem:[%s9606_s2] ss:$16 sps:$4 sm:$0xff]   ;;  %v7336_v29 = vmov 0   ;;  %v3667_v11 = vpack.c.bf16 %v7300_v37, %v7300_v37  ;;  %s6086_s24 = sshll.u32 %s7304_s11, 5  ;;  %s7304_s11 = sphi %s8881_s11, %s3657_s11   ;;  %v7300_v37 = vphi %v8879_v37, %v3969_v37   ;;  %v7296_v36 = vphi %v8877_v36, %v3967_v36  }
 0xade   : > { %3892 = vmatprep.mubr.bf16.mxu0 %v7336_v29  ;;  %3933 = vmatprep.mubr.bf16.mxu1 %v7336_v29  ;;  %v6853_v31 = vld [vmem:[%s9606_s2 + $0x24] ss:$16 sps:$4 sm:$0xff]   ;;  %v6855_v38 = vld [vmem:[%s9606_s2 + $0x20] ss:$16 sps:$4 sm:$0xff]   ;;  %v6861_v30 = vld [vmem:[%s9606_s2 + $0xc] ss:$16 sps:$4 sm:$0xff]  }
 0xadf   : > { %3860 = vmatprep.subr.bf16.mxu0 %v6850_v18  ;;  %v6856_v39 = vld [vmem:[%s9606_s2 + $0x44] ss:$16 sps:$4 sm:$0xff]   ;;  %v6864_v40 = vld [vmem:[%s9606_s2 + $0x8] ss:$16 sps:$4 sm:$0xff]   ;;  %v6858_v41 = vld [vmem:[%s9606_s2 + $0x40] ss:$16 sps:$4 sm:$0xff]   ;;  %3901 = vmatprep.subr.bf16.mxu1 %v6861_v30 }
 0xae0   : > { %3861 = vmatpush1.bf16.msra.mxu0 %v6852_v28  ;;  %v6859_v42 = vld [vmem:[%s9606_s2 + $0x64] ss:$16 sps:$4 sm:$0xff]   ;;  %3902 = vmatpush1.bf16.msra.mxu1 %v6864_v40  ;;  %v6867_v43 = vld [vmem:[%s9606_s2 + $0x2c] ss:$16 sps:$4 sm:$0xff]   ;;  %v6870_v44 = vld [vmem:[%s9606_s2 + $0x28] ss:$16 sps:$4 sm:$0xff]  }
 0xae1   : > { %3862 = vmatprep.subr.bf16.mxu0 %v6853_v31  ;;  %3903 = vmatprep.subr.bf16.mxu1 %v6867_v43  ;;  %v6863_v45 = vld [vmem:[%s9606_s2 + $0x60] ss:$16 sps:$4 sm:$0xff]   ;;  %v6865_v46 = vld [vmem:[%s9606_s2 + $0x84] ss:$16 sps:$4 sm:$0xff]   ;;  %v6873_v49 = vld [vmem:[%s9606_s2 + $0x4c] ss:$16 sps:$4 sm:$0xff]  }
 0xae2   : > { %v6876_v56 = vld [vmem:[%s9606_s2 + $0x48] ss:$16 sps:$4 sm:$0xff]   ;;  %v6879_v57 = vld [vmem:[%s9606_s2 + $0x6c] ss:$16 sps:$4 sm:$0xff]   ;;  %v6869_v58 = vld [vmem:[%s9606_s2 + $0x80] ss:$16 sps:$4 sm:$0xff]  }
 0xae3   : > { %v6871_v59 = vld [vmem:[%s9606_s2 + $0xa4] ss:$16 sps:$4 sm:$0xff]   ;;  %v6882_v60 = vld [vmem:[%s9606_s2 + $0x68] ss:$16 sps:$4 sm:$0xff]   ;;  %v6885_v61 = vld [vmem:[%s9606_s2 + $0x8c] ss:$16 sps:$4 sm:$0xff]  }
 0xae4   : > { %3863 = vmatpush1.bf16.msra.mxu0 %v6855_v38  ;;  %3904 = vmatpush1.bf16.msra.mxu1 %v6870_v44  ;;  %v6875_v62 = vld [vmem:[%s9606_s2 + $0xa0] ss:$16 sps:$4 sm:$0xff]   ;;  %v6877_v63 = vld [vmem:[%s9606_s2 + $0xc4] ss:$16 sps:$4 sm:$0xff]   ;;  %v6888_v0 = vld [vmem:[%s9606_s2 + $0x88] ss:$16 sps:$4 sm:$0xff]  }
 0xae5   : > { %3864 = vmatprep.subr.bf16.mxu0 %v6856_v39  ;;  %3905 = vmatprep.subr.bf16.mxu1 %v6873_v49  ;;  %v6889_v3 = vld [vmem:[%s9606_s2 + $0xac] ss:$16 sps:$4 sm:$0xff]   ;;  %v6881_v52 = vld [vmem:[%s9606_s2 + $0xc0] ss:$16 sps:$4 sm:$0xff]   ;;  %v6883_v53 = vld [vmem:[%s9606_s2 + $0xe4] ss:$16 sps:$4 sm:$0xff]  }
 0xae6   : > { %v6891_v54 = vld [vmem:[%s9606_s2 + $0xa8] ss:$16 sps:$4 sm:$0xff]   ;;  %v6892_v55 = vld [vmem:[%s9606_s2 + $0xcc] ss:$16 sps:$4 sm:$0xff]   ;;  %v6887_v4 = vld [vmem:[%s9606_s2 + $0xe0] ss:$16 sps:$4 sm:$0xff]  }
 0xae7   : > { %v6894_v2 = vld [vmem:[%s9606_s2 + $0xc8] ss:$16 sps:$4 sm:$0xff]   ;;  %v6895_v10 = vld [vmem:[%s9606_s2 + $0xec] ss:$16 sps:$4 sm:$0xff]   ;;  %s3662_s23 = scalar_lea.vmem [#allocation2], %s6086_s24  ;;  %s5940_s25 = sshll.u32 %s7304_s11, 3 }
 0xae8   : > { %3865 = vmatpush1.bf16.msra.mxu0 %v6858_v41  ;;  %3906 = vmatpush1.bf16.msra.mxu1 %v6876_v56  ;;  %v6897_v12 = vld [vmem:[%s9606_s2 + $0xe8] ss:$16 sps:$4 sm:$0xff]   ;;  %v3663_v13 = vld [vmem:[%s3662_s23] sm:$0xff]  ;;  %v3665_v23 = vld [vmem:[%s3662_s23 + $0x10] sm:$0xff]  ;;  %s3971_s28 = scalar_lea.vmem %s9607_s4, %s5940_s25  ;;  %s3657_s11 = sadd.s32 1, %s7304_s11  }
 0xae9   : > { %3866 = vmatprep.subr.bf16.mxu0 %v6859_v42  ;;  %3907 = vmatprep.subr.bf16.mxu1 %v6879_v57  ;;  %v3664_v14 = vld [vmem:[%s3662_s23 + $0x8] sm:$0xff]  ;;  %v3666_v17 = vld [vmem:[%s3662_s23 + $0x18] sm:$0xff]  ;;  %v3972_v41 = vld [vmem:[%s3971_s28] sm:$0xff]  ;;  %p3654_p5 = scmp.ge.s32.totalorder %s3657_s11, 8  }
 0xaea   :  { %v6914_v43 = vld [vmem:[%s9605_s1 + $0x4] ss:$16 sps:$4 sm:$0xff] (%p3654_p5)   ;;  %v6916_v44 = vld [vmem:[%s9605_s1 + $0xc] ss:$16 sps:$4 sm:$0xff] (%p3654_p5)   ;;  %v6924_v56 = vld [vmem:[%s9605_s1 + $0x20] ss:$16 sps:$4 sm:$0xff] (%p3654_p5)  }
 0xaeb   :  { %v6922_v49 = vld [vmem:[%s9605_s1 + $0x2c] ss:$16 sps:$4 sm:$0xff] (%p3654_p5)   ;;  %v6925_v57 = vld [vmem:[%s9605_s1 + $0x28] ss:$16 sps:$4 sm:$0xff] (%p3654_p5)   ;;  %s9182_s5 = smov (%p3654_p5), 0  }
 0xaec   : > { %3867 = vmatpush1.bf16.msra.mxu0 %v6863_v45  ;;  %3908 = vmatpush1.bf16.msra.mxu1 %v6882_v60  ;;  %v6918_v45 = vld [vmem:[%s9605_s1] ss:$16 sps:$4 sm:$0xff] (%p3654_p5)  }
 0xaed   : > { %3868 = vmatprep.subr.bf16.mxu0 %v6865_v46  ;;  %3909 = vmatprep.subr.bf16.mxu1 %v6885_v61  ;;  %v6920_v46 = vld [vmem:[%s9605_s1 + $0x24] ss:$16 sps:$4 sm:$0xff] (%p3654_p5)   ;;  %v6930_v60 = vld [vmem:[%s9605_s1 + $0x40] ss:$16 sps:$4 sm:$0xff] (%p3654_p5)   ;;  %v6931_v61 = vld [vmem:[%s9605_s1 + $0x48] ss:$16 sps:$4 sm:$0xff] (%p3654_p5)  }
 0xaf0   : > { %3869 = vmatpush1.bf16.msra.mxu0 %v6869_v58  ;;  %3910 = vmatpush1.bf16.msra.mxu1 %v6888_v0  ;;  %v6926_v58 = vld [vmem:[%s9605_s1 + $0x44] ss:$16 sps:$4 sm:$0xff] (%p3654_p5)   ;;  %v6936_v0 = vld [vmem:[%s9605_s1 + $0x60] ss:$16 sps:$4 sm:$0xff] (%p3654_p5)  }
 0xaf1   : > { %3870 = vmatprep.subr.bf16.mxu0 %v6871_v59  ;;  %3911 = vmatprep.subr.bf16.mxu1 %v6889_v3  ;;  %v6928_v59 = vld [vmem:[%s9605_s1 + $0x4c] ss:$16 sps:$4 sm:$0xff] (%p3654_p5)   ;;  %v6937_v3 = vld [vmem:[%s9605_s1 + $0x68] ss:$16 sps:$4 sm:$0xff] (%p3654_p5)  }
 0xaf4   : > { %3871 = vmatpush1.bf16.msra.mxu0 %v6875_v62  ;;  %3912 = vmatpush1.bf16.msra.mxu1 %v6891_v54  ;;  %v6932_v62 = vld [vmem:[%s9605_s1 + $0x64] ss:$16 sps:$4 sm:$0xff] (%p3654_p5)   ;;  %v6942_v54 = vld [vmem:[%s9605_s1 + $0x80] ss:$16 sps:$4 sm:$0xff] (%p3654_p5)  }
 0xaf5   : > { %3872 = vmatprep.subr.bf16.mxu0 %v6877_v63  ;;  %3913 = vmatprep.subr.bf16.mxu1 %v6892_v55  ;;  %v6934_v63 = vld [vmem:[%s9605_s1 + $0x6c] ss:$16 sps:$4 sm:$0xff] (%p3654_p5)   ;;  %v6943_v55 = vld [vmem:[%s9605_s1 + $0x88] ss:$16 sps:$4 sm:$0xff] (%p3654_p5)  }
 0xaf8   : > { %3873 = vmatpush1.bf16.msra.mxu0 %v6881_v52  ;;  %3914 = vmatpush1.bf16.msra.mxu1 %v6894_v2  ;;  %v6938_v52 = vld [vmem:[%s9605_s1 + $0x84] ss:$16 sps:$4 sm:$0xff] (%p3654_p5)   ;;  %v6946_v2 = vld [vmem:[%s9605_s1 + $0xac] ss:$16 sps:$4 sm:$0xff] (%p3654_p5)  }
 0xaf9   : > { %3874 = vmatprep.subr.bf16.mxu0 %v6883_v53  ;;  %3915 = vmatprep.subr.bf16.mxu1 %v6895_v10  ;;  %v6940_v53 = vld [vmem:[%s9605_s1 + $0x8c] ss:$16 sps:$4 sm:$0xff] (%p3654_p5)   ;;  %v6948_v10 = vld [vmem:[%s9605_s1 + $0xa0] ss:$16 sps:$4 sm:$0xff] (%p3654_p5)  }
 0xafc   : > { %3875 = vmatpush1.bf16.msra.mxu0 %v6887_v4  ;;  %3916 = vmatpush1.bf16.msra.mxu1 %v6897_v12  ;;  %v6944_v4 = vld [vmem:[%s9605_s1 + $0xa4] ss:$16 sps:$4 sm:$0xff] (%p3654_p5)  }
 0xafd   :  { %4201 = vmatprep.subr.bf16.mxu0 (%p3654_p5), %v6914_v43  ;;  %4274 = vmatprep.subr.bf16.mxu1 (%p3654_p5), %v6916_v44  ;;  %v6950_v12 = vld [vmem:[%s9605_s1 + $0xc4] ss:$16 sps:$4 sm:$0xff] (%p3654_p5)  }
 0xaff   : > { %3893 = vmatmul.mubr.bf16.vlgmr.msra.gmra.mrb[0].mxu0 %v3667_v11  ;;  %3934 = vmatmul.mubr.bf16.vlgmr.msra.gmra.mrb[0].mxu1 %v3667_v11  ;;  %v6949_v11 = vld [vmem:[%s9605_s1 + $0xa8] ss:$16 sps:$4 sm:$0xff] (%p3654_p5)  }
 0xb00   :  { %4233 = vmatprep.mubr.bf16.mxu0 (%p3654_p5), %v7330_v1  ;;  %4306 = vmatprep.mubr.bf16.mxu1 (%p3654_p5), %v7330_v1 }
 0xb01   :  { %4202 = vmatpush1.bf16.msra.mxu0 (%p3654_p5), %v6918_v45 }
 0xb02   :  { %4203 = vmatprep.subr.bf16.mxu0 (%p3654_p5), %v6920_v46 }
 0xb05   :  { %4204 = vmatpush1.bf16.msra.mxu0 (%p3654_p5), %v6924_v56 }
 0xb06   :  { %4205 = vmatprep.subr.bf16.mxu0 (%p3654_p5), %v6926_v58 }
 0xb09   :  { %4206 = vmatpush1.bf16.msra.mxu0 (%p3654_p5), %v6930_v60 }
 0xb0a   :  { %4207 = vmatprep.subr.bf16.mxu0 (%p3654_p5), %v6932_v62 }
 0xb0d   :  { %4208 = vmatpush1.bf16.msra.mxu0 (%p3654_p5), %v6936_v0 }
 0xb0e   :  { %4209 = vmatprep.subr.bf16.mxu0 (%p3654_p5), %v6938_v52 }
 0xb11   :  { %4210 = vmatpush1.bf16.msra.mxu0 (%p3654_p5), %v6942_v54 }
 0xb12   :  { %4211 = vmatprep.subr.bf16.mxu0 (%p3654_p5), %v6944_v4 }
 0xb15   :  { %4212 = vmatpush1.bf16.msra.mxu0 (%p3654_p5), %v6948_v10 }
 0xb16   :  { %4213 = vmatprep.subr.bf16.mxu0 (%p3654_p5), %v6950_v12 }
 0xbd2   : > { %v3894_v5 = vpop.f32.mrb[0].mxu0  ;;  %v3935_v19 = vpop.f32.mrb[0].mxu1 }
 0xbd3   : > { %v3942_v6 = vadd.f32 %v3894_v5, %v3663_v13  ;;  %v3896_v7 = vpop.f32.mrb[1].mxu0  ;;  %v3937_v26 = vpop.f32.mrb[1].mxu1  ;;  %v3944_v32 = vadd.f32 %v3935_v19, %v3665_v23  ;;  %v6952_v13 = vld [vmem:[%s9605_s1 + $0xcc] ss:$16 sps:$4 sm:$0xff] (%p3654_p5)   ;;  %v6955_v5 = vld [vmem:[%s9605_s1 + $0xc8] ss:$16 sps:$4 sm:$0xff] (%p3654_p5)  }
 0xbd4   : > { %v3943_v9 = vadd.f32 %v3896_v7, %v3664_v14  ;;  %v3898_v20 = vpop.f32.mrb[2].mxu0  ;;  %v3945_v27 = vadd.f32 %v3937_v26, %v3666_v17  ;;  %v3939_v8 = vpop.f32.mrb[2].mxu1  ;;  %v6954_v14 = vld [vmem:[%s9605_s1 + $0xc0] ss:$16 sps:$4 sm:$0xff] (%p3654_p5)   ;;  %v6958_v7 = vld [vmem:[%s9605_s1 + $0xec] ss:$16 sps:$4 sm:$0xff] (%p3654_p5)  }
 0xbd5   : > { %v5937_v21 = vmul.f32 -1.442695, %v3942_v6  ;;  %v3899_v15 = vpop.f32.mrb[3].mxu0  ;;  %v3940_v22 = vpop.f32.mrb[3].mxu1  ;;  %v6956_v6 = vld [vmem:[%s9605_s1 + $0xe4] ss:$16 sps:$4 sm:$0xff] (%p3654_p5)   ;;  %4214 = vmatpush1.bf16.msra.mxu0 (%p3654_p5), %v6954_v14 }
 0xbd6   : > { %v5938_v16 = vmul.f32 -1.442695, %v3943_v9  ;;  %v5939_v25 = vmul.f32 -1.442695, %v3945_v27  ;;  %v6960_v9 = vld [vmem:[%s9605_s1 + $0xe0] ss:$16 sps:$4 sm:$0xff] (%p3654_p5)   ;;  %4215 = vmatprep.subr.bf16.mxu0 (%p3654_p5), %v6956_v6 }
 0xbd7   : > { %6898 = vpow2.f32 %v5937_v21  ;;  %v6961_v20 = vld [vmem:[%s9605_s1 + $0xe8] ss:$16 sps:$4 sm:$0xff] (%p3654_p5)  }
 0xbd8   : > { %6900 = vpow2.f32 %v5938_v16 }
 0xbd9   : > { %6902 = vpow2.f32 %v5939_v25  ;;  %4216 = vmatpush1.bf16.msra.mxu0 (%p3654_p5), %v6960_v9 }
 0xbda   : > { %6904 = vtanh.f32 %v3944_v32 }
 0xbe1   : > { %v6899_v33 = vpop.eup %6898 }
 0xbe2   : > { %v6901_v24 = vpop.eup %6900  ;;  %v3949_v34 = vadd.f32 1.0, %v6899_v33  ;;  %v4019_v33 = vld [vmem:[%s9609_s3] sm:$0xf] (%p3654_p5) }
 0xbe3   : > { %v3955_v35 = vadd.f32 1.0, %v6901_v24  ;;  %v6903_v37 = vpop.eup %6902  ;;  %v9135_v24 = vrot.slane (%p3654_p5), %v4019_v33, %v7492_v47 }
 0xbe4   : > { %6906 = vrcp.f32 %v3949_v34  ;;  %v6905_v18 = vpop.eup %6904  ;;  %v3962_v29 = vadd.f32 1.0, %v6903_v37  ;;  %v9138_v34 = vrot.slane (%p3654_p5), %v4019_v33, %v7494_v48 }
 0xbe5   : > { %6908 = vrcp.f32 %v3955_v35  ;;  %v9141_v35 = vrot.slane (%p3654_p5), %v4019_v33, %v7499_v50 }
 0xbe6   : > { %6910 = vrcp.f32 %v3962_v29 }
 0xbee   : > { %v6907_v28 = vpop.eup %6906 }
 0xbef   : > { %v6909_v31 = vpop.eup %6908  ;;  %v3966_v38 = vmul.f32 %v6907_v28, %v6905_v18 }
 0xbf0   : > { %v3965_v39 = vmul.f32 %v7296_v36, %v6909_v31  ;;  %v6911_v30 = vpop.eup %6910 }
 0xbf2   : > { %v3967_v36 = vadd.f32 %v3966_v38, %v3965_v39  }
 0xbf4   : > { %6912 = vtanh.f32 %v3967_v36  ;;  %v6919_v36 = vld [vmem:[%s9605_s1 + $0x8] ss:$16 sps:$4 sm:$0xff] (%p3654_p5)  }
 0xbf5   :  { %4275 = vmatpush1.bf16.msra.mxu1 (%p3654_p5), %v6919_v36 }
 0xbf6   :  { %4276 = vmatprep.subr.bf16.mxu1 (%p3654_p5), %v6922_v49 }
 0xbf9   :  { %4277 = vmatpush1.bf16.msra.mxu1 (%p3654_p5), %v6925_v57 }
 0xbfa   :  { %4278 = vmatprep.subr.bf16.mxu1 (%p3654_p5), %v6928_v59 }
 0xbfd   :  { %3656 = sbr.rel (!%p3654_p5) target bundleno = 2781 (0xadd), region = 163  ;;  %4279 = vmatpush1.bf16.msra.mxu1 (%p3654_p5), %v6931_v61 }
 0xbfe   : > { %v6913_v40 = vpop.eup %6912  ;;  %4280 = vmatprep.subr.bf16.mxu1 (%p3654_p5), %v6934_v63 }
 0xbff   : > { %v3969_v37 = vmul.f32 %v6913_v40, %v6911_v30  }
 0xc01   : > { %v3973_v42 = vadd.f32 %v3972_v41, %v3969_v37  ;;  %4281 = vmatpush1.bf16.msra.mxu1 (%p3654_p5), %v6937_v3  ;;  %v9144_v37 = vrot.slane (%p3654_p5), %v4019_v33, %v7501_v51 }
 0xc02   :  { %4282 = vmatprep.subr.bf16.mxu1 (%p3654_p5), %v6940_v53 }
 0xc03   : > { %3974 = vst [vmem:[%s3971_s28] sm:$0xff] %v3973_v42 }
 0xc05   :  { %4283 = vmatpush1.bf16.msra.mxu1 %v6943_v55 }
 0xc06   :  { %4284 = vmatprep.subr.bf16.mxu1 %v6946_v2 }
 0xc09   :  { %4285 = vmatpush1.bf16.msra.mxu1 %v6949_v11 }
 0xc0a   :  { %4286 = vmatprep.subr.bf16.mxu1 %v6952_v13  ;;  %v3975_v21 = vld [vmem:[%s9607_s4] sm:$0xff]  ;;  %v3976_v15 = vld [vmem:[%s9607_s4 + $0x8] sm:$0xff]  ;;  %v3977_v17 = vld [vmem:[%s9607_s4 + $0x10] sm:$0xff] }
 0xc0b   :  { %v3983_v16 = vpack.c.bf16 %v3976_v15, %v3975_v21  ;;  %v3978_v19 = vld [vmem:[%s9607_s4 + $0x18] sm:$0xff]  ;;  %v3979_v27 = vld [vmem:[%s9607_s4 + $0x20] sm:$0xff]  ;;  %v3980_v8 = vld [vmem:[%s9607_s4 + $0x28] sm:$0xff] }
 0xc0c   :  { %v3984_v26 = vpack.c.bf16 %v3978_v19, %v3977_v17  ;;  %v3985_v22 = vpack.c.bf16 %v3980_v8, %v3979_v27  ;;  %v3981_v23 = vld [vmem:[%s9607_s4 + $0x30] sm:$0xff]  ;;  %v3982_v25 = vld [vmem:[%s9607_s4 + $0x38] sm:$0xff] }
 0xc0d   :  { %4287 = vmatpush1.bf16.msra.mxu1 %v6955_v5  ;;  %4234 = vmatmul.mubr.bf16.vlgmr.msra.gmra.mrb[0].mxu0 %v3983_v16  ;;  %v3986_v32 = vpack.c.bf16 %v3982_v25, %v3981_v23 }
 0xc0e   :  { %4288 = vmatprep.subr.bf16.mxu1 %v6958_v7  ;;  %4243 = vmatprep.mubr.bf16.mxu0 %v7330_v1 }
 0xc11   :  { %4289 = vmatpush1.bf16.msra.mxu1 %v6961_v20 }
 0xc14   :  { %4307 = vmatmul.mubr.bf16.vlgmr.msra.gmra.mrb[0].mxu1 %v3983_v16 }
 0xc15   :  { %4316 = vmatprep.mubr.bf16.mxu1 %v7330_v1  ;;  %4244 = vmatmul.mubr.bf16.gmra.mrb[4].mxu0 %v3984_v26 }
 0xc16   :  { %4253 = vmatprep.mubr.bf16.mxu0 %v7330_v1 }
 0xc1c   :  { %4317 = vmatmul.mubr.bf16.gmra.mrb[4].mxu1 %v3984_v26 }
 0xc1d   :  { %4326 = vmatprep.mubr.bf16.mxu1 %v7330_v1  ;;  %4254 = vmatmul.mubr.bf16.gmra.mrb[8].mxu0 %v3985_v22 }
 0xc1e   :  { %4263 = vmatprep.mubr.bf16.mxu0 %v7330_v1 }
 0xc24   :  { %4327 = vmatmul.mubr.bf16.gmra.mrb[8].mxu1 %v3985_v22 }
 0xc25   :  { %4336 = vmatprep.mubr.bf16.mxu1 %v7330_v1  ;;  %4264 = vmatmul.mubr.bf16.gmra.mrb[12].mxu0 %v3986_v32 }
 0xc2c   :  { %4337 = vmatmul.mubr.bf16.gmra.mrb[12].mxu1 %v3986_v32 }
 0xce0   :  { %v4235_v18 = vpop.f32.mrb[0].mxu0 }
 0xce1   :  { %v4236_v29 = vadd.f32 %v4235_v18, %v9135_v24  ;;  %v4237_v38 = vpop.f32.mrb[1].mxu0 }
 0xce2   :  { %v4238_v30 = vadd.f32 %v4237_v38, %v9141_v35  ;;  %v4239_v41 = vpop.f32.mrb[2].mxu0 }
 0xce3   :  { %4347 = vst [vmem:[#allocation2] sm:$0xff] %v4236_v29  ;;  %v4240_v43 = vadd.f32 %v4239_v41, %v9135_v24  ;;  %v4241_v45 = vpop.f32.mrb[3].mxu0 }
 0xce4   :  { %4348 = vst [vmem:[#allocation2 + $0x8] sm:$0xff] %v4238_v30  ;;  %v4242_v46 = vadd.f32 %v4241_v45, %v9141_v35 }
 0xce5   :  { %4351 = vst [vmem:[#allocation2 + $0x20] sm:$0xff] %v4240_v43  ;;  %v9180_v43 = vmov 0.0  }
 0xce6   :  { %4352 = vst [vmem:[#allocation2 + $0x28] sm:$0xff] %v4242_v46 }
 0xce7   :  { %v4308_v28 = vpop.f32.mrb[0].mxu1 }
 0xce8   :  { %v4309_v31 = vadd.f32 %v4308_v28, %v9138_v34  ;;  %v4310_v39 = vpop.f32.mrb[1].mxu1  ;;  %v4245_v56 = vpop.f32.mrb[4].mxu0 }
 0xce9   :  { %v4311_v40 = vadd.f32 %v4310_v39, %v9144_v37  ;;  %v4312_v42 = vpop.f32.mrb[2].mxu1  ;;  %v4246_v58 = vadd.f32 %v4245_v56, %v9135_v24  ;;  %v4247_v60 = vpop.f32.mrb[5].mxu0 }
 0xcea   :  { %4349 = vst [vmem:[#allocation2 + $0x10] sm:$0xff] %v4309_v31  ;;  %v4313_v44 = vadd.f32 %v4312_v42, %v9138_v34  ;;  %v4314_v36 = vpop.f32.mrb[3].mxu1  ;;  %v4248_v62 = vadd.f32 %v4247_v60, %v9141_v35  ;;  %v4249_v0 = vpop.f32.mrb[6].mxu0  ;;  %v9178_v42 = vmov 0.0  }
 0xceb   :  { %4350 = vst [vmem:[#allocation2 + $0x18] sm:$0xff] %v4311_v40  ;;  %v4315_v49 = vadd.f32 %v4314_v36, %v9144_v37  ;;  %4355 = vst [vmem:[#allocation2 + $0x40] sm:$0xff] %v4246_v58  ;;  %v4250_v52 = vadd.f32 %v4249_v0, %v9135_v24  ;;  %v4251_v54 = vpop.f32.mrb[7].mxu0 }
 0xcec   :  { %4353 = vst [vmem:[#allocation2 + $0x30] sm:$0xff] %v4313_v44  ;;  %4356 = vst [vmem:[#allocation2 + $0x48] sm:$0xff] %v4248_v62  ;;  %v4252_v4 = vadd.f32 %v4251_v54, %v9141_v35 }
 0xced   :  { %4354 = vst [vmem:[#allocation2 + $0x38] sm:$0xff] %v4315_v49  ;;  %4359 = vst [vmem:[#allocation2 + $0x60] sm:$0xff] %v4250_v52 }
 0xcee   :  { %4360 = vst [vmem:[#allocation2 + $0x68] sm:$0xff] %v4252_v4 }
 0xcef   :  { %v4318_v57 = vpop.f32.mrb[4].mxu1 }
 0xcf0   :  { %v4319_v59 = vadd.f32 %v4318_v57, %v9138_v34  ;;  %v4320_v61 = vpop.f32.mrb[5].mxu1  ;;  %v4255_v10 = vpop.f32.mrb[8].mxu0 }
 0xcf1   :  { %v4321_v63 = vadd.f32 %v4320_v61, %v9144_v37  ;;  %v4322_v3 = vpop.f32.mrb[6].mxu1  ;;  %v4256_v12 = vadd.f32 %v4255_v10, %v9135_v24  ;;  %v4257_v14 = vpop.f32.mrb[9].mxu0 }
 0xcf2   :  { %4357 = vst [vmem:[#allocation2 + $0x50] sm:$0xff] %v4319_v59  ;;  %v4323_v53 = vadd.f32 %v4322_v3, %v9138_v34  ;;  %v4324_v55 = vpop.f32.mrb[7].mxu1  ;;  %v4258_v6 = vadd.f32 %v4257_v14, %v9141_v35  ;;  %v4259_v9 = vpop.f32.mrb[10].mxu0 }
 0xcf3   :  { %4358 = vst [vmem:[#allocation2 + $0x58] sm:$0xff] %v4321_v63  ;;  %v4325_v2 = vadd.f32 %v4324_v55, %v9144_v37  ;;  %4363 = vst [vmem:[#allocation2 + $0x80] sm:$0xff] %v4256_v12  ;;  %v4260_v21 = vadd.f32 %v4259_v9, %v9135_v24  ;;  %v4261_v16 = vpop.f32.mrb[11].mxu0 }
 0xcf4   :  { %4361 = vst [vmem:[#allocation2 + $0x70] sm:$0xff] %v4323_v53  ;;  %4364 = vst [vmem:[#allocation2 + $0x88] sm:$0xff] %v4258_v6  ;;  %v4262_v19 = vadd.f32 %v4261_v16, %v9141_v35 }
 0xcf5   :  { %4362 = vst [vmem:[#allocation2 + $0x78] sm:$0xff] %v4325_v2  ;;  %4367 = vst [vmem:[#allocation2 + $0xa0] sm:$0xff] %v4260_v21 }
 0xcf6   :  { %4368 = vst [vmem:[#allocation2 + $0xa8] sm:$0xff] %v4262_v19 }
 0xcf7   :  { %v4328_v11 = vpop.f32.mrb[8].mxu1 }
 0xcf8   :  { %v4329_v13 = vadd.f32 %v4328_v11, %v9138_v34  ;;  %v4330_v5 = vpop.f32.mrb[9].mxu1  ;;  %v4265_v27 = vpop.f32.mrb[12].mxu0 }
 0xcf9   :  { %v4331_v7 = vadd.f32 %v4330_v5, %v9144_v37  ;;  %v4332_v20 = vpop.f32.mrb[10].mxu1  ;;  %v4266_v22 = vadd.f32 %v4265_v27, %v9135_v24  ;;  %v4267_v25 = vpop.f32.mrb[13].mxu0 }
 0xcfa   :  { %4365 = vst [vmem:[#allocation2 + $0x90] sm:$0xff] %v4329_v13  ;;  %v4333_v15 = vadd.f32 %v4332_v20, %v9138_v34  ;;  %v4334_v17 = vpop.f32.mrb[11].mxu1  ;;  %v4268_v33 = vadd.f32 %v4267_v25, %v9141_v35  ;;  %v4269_v28 = vpop.f32.mrb[14].mxu0 }
 0xcfb   :  { %4366 = vst [vmem:[#allocation2 + $0x98] sm:$0xff] %v4331_v7  ;;  %v4335_v26 = vadd.f32 %v4334_v17, %v9144_v37  ;;  %4371 = vst [vmem:[#allocation2 + $0xc0] sm:$0xff] %v4266_v22  ;;  %v4270_v31 = vadd.f32 %v4269_v28, %v9135_v24  ;;  %v4271_v39 = vpop.f32.mrb[15].mxu0 }
 0xcfc   :  { %4369 = vst [vmem:[#allocation2 + $0xb0] sm:$0xff] %v4333_v15  ;;  %4372 = vst [vmem:[#allocation2 + $0xc8] sm:$0xff] %v4268_v33  ;;  %v4272_v40 = vadd.f32 %v4271_v39, %v9141_v35 }
 0xcfd   :  { %4370 = vst [vmem:[#allocation2 + $0xb8] sm:$0xff] %v4335_v26  ;;  %4375 = vst [vmem:[#allocation2 + $0xe0] sm:$0xff] %v4270_v31 }
 0xcfe   :  { %4376 = vst [vmem:[#allocation2 + $0xe8] sm:$0xff] %v4272_v40 }
 0xcff   :  { %v4338_v8 = vpop.f32.mrb[12].mxu1 }
 0xd00   :  { %v4339_v23 = vadd.f32 %v4338_v8, %v9138_v34  ;;  %v4340_v32 = vpop.f32.mrb[13].mxu1 }
 0xd01   :  { %v4341_v18 = vadd.f32 %v4340_v32, %v9144_v37  ;;  %v4342_v29 = vpop.f32.mrb[14].mxu1 }
 0xd02   :  { %4373 = vst [vmem:[#allocation2 + $0xd0] sm:$0xff] %v4339_v23  ;;  %v4343_v38 = vadd.f32 %v4342_v29, %v9138_v34  ;;  %v4344_v30 = vpop.f32.mrb[15].mxu1 }
 0xd03   :  { %4374 = vst [vmem:[#allocation2 + $0xd8] sm:$0xff] %v4341_v18  ;;  %v4345_v41 = vadd.f32 %v4344_v30, %v9144_v37 }
 0xd04   :  { %4377 = vst [vmem:[#allocation2 + $0xf0] sm:$0xff] %v4343_v38 }
 0xd05   :  { %4378 = vst [vmem:[#allocation2 + $0xf8] sm:$0xff] %v4345_v41 }
 0xd06 LB: > { %v6962_v24 = vld [vmem:[%s9606_s2 + $0x4] ss:$16 sps:$4 sm:$0xff]   ;;  %v6964_v34 = vld [vmem:[%s9606_s2] ss:$16 sps:$4 sm:$0xff]   ;;  %v7337_v35 = vmov 0   ;;  %v4394_v7 = vpack.c.bf16 %v7312_v43, %v7312_v43  ;;  %s6087_s17 = sshll.u32 %s7316_s5, 5  ;;  %s7316_s5 = sphi %s9182_s5, %s4384_s5   ;;  %v7312_v43 = vphi %v9180_v43, %v4696_v43   ;;  %v7308_v42 = vphi %v9178_v42, %v4694_v42  }
 0xd07   : > { %4619 = vmatprep.mubr.bf16.mxu0 %v7337_v35  ;;  %4660 = vmatprep.mubr.bf16.mxu1 %v7337_v35  ;;  %v6965_v37 = vld [vmem:[%s9606_s2 + $0x24] ss:$16 sps:$4 sm:$0xff]   ;;  %v6967_v44 = vld [vmem:[%s9606_s2 + $0x20] ss:$16 sps:$4 sm:$0xff]   ;;  %v6973_v36 = vld [vmem:[%s9606_s2 + $0xc] ss:$16 sps:$4 sm:$0xff]  }
 0xd08   : > { %4587 = vmatprep.subr.bf16.mxu0 %v6962_v24  ;;  %v6968_v45 = vld [vmem:[%s9606_s2 + $0x44] ss:$16 sps:$4 sm:$0xff]   ;;  %v6976_v46 = vld [vmem:[%s9606_s2 + $0x8] ss:$16 sps:$4 sm:$0xff]   ;;  %v6970_v49 = vld [vmem:[%s9606_s2 + $0x40] ss:$16 sps:$4 sm:$0xff]   ;;  %4628 = vmatprep.subr.bf16.mxu1 %v6973_v36 }
 0xd09   : > { %4588 = vmatpush1.bf16.msra.mxu0 %v6964_v34  ;;  %v6971_v56 = vld [vmem:[%s9606_s2 + $0x64] ss:$16 sps:$4 sm:$0xff]   ;;  %4629 = vmatpush1.bf16.msra.mxu1 %v6976_v46  ;;  %v6979_v57 = vld [vmem:[%s9606_s2 + $0x2c] ss:$16 sps:$4 sm:$0xff]   ;;  %v6982_v58 = vld [vmem:[%s9606_s2 + $0x28] ss:$16 sps:$4 sm:$0xff]  }
 0xd0a   : > { %4589 = vmatprep.subr.bf16.mxu0 %v6965_v37  ;;  %4630 = vmatprep.subr.bf16.mxu1 %v6979_v57  ;;  %v6975_v59 = vld [vmem:[%s9606_s2 + $0x60] ss:$16 sps:$4 sm:$0xff]   ;;  %v6977_v60 = vld [vmem:[%s9606_s2 + $0x84] ss:$16 sps:$4 sm:$0xff]   ;;  %v6985_v61 = vld [vmem:[%s9606_s2 + $0x4c] ss:$16 sps:$4 sm:$0xff]  }
 0xd0b   : > { %v6988_v62 = vld [vmem:[%s9606_s2 + $0x48] ss:$16 sps:$4 sm:$0xff]   ;;  %v6991_v63 = vld [vmem:[%s9606_s2 + $0x6c] ss:$16 sps:$4 sm:$0xff]   ;;  %v6981_v0 = vld [vmem:[%s9606_s2 + $0x80] ss:$16 sps:$4 sm:$0xff]  }
 0xd0c   : > { %v6983_v3 = vld [vmem:[%s9606_s2 + $0xa4] ss:$16 sps:$4 sm:$0xff]   ;;  %v6994_v52 = vld [vmem:[%s9606_s2 + $0x68] ss:$16 sps:$4 sm:$0xff]   ;;  %v6997_v53 = vld [vmem:[%s9606_s2 + $0x8c] ss:$16 sps:$4 sm:$0xff]  }
 0xd0d   : > { %4590 = vmatpush1.bf16.msra.mxu0 %v6967_v44  ;;  %4631 = vmatpush1.bf16.msra.mxu1 %v6982_v58  ;;  %v6987_v54 = vld [vmem:[%s9606_s2 + $0xa0] ss:$16 sps:$4 sm:$0xff]   ;;  %v6989_v55 = vld [vmem:[%s9606_s2 + $0xc4] ss:$16 sps:$4 sm:$0xff]   ;;  %v7000_v4 = vld [vmem:[%s9606_s2 + $0x88] ss:$16 sps:$4 sm:$0xff]  }
 0xd0e   : > { %4591 = vmatprep.subr.bf16.mxu0 %v6968_v45  ;;  %4632 = vmatprep.subr.bf16.mxu1 %v6985_v61  ;;  %v7001_v2 = vld [vmem:[%s9606_s2 + $0xac] ss:$16 sps:$4 sm:$0xff]   ;;  %v6993_v10 = vld [vmem:[%s9606_s2 + $0xc0] ss:$16 sps:$4 sm:$0xff]   ;;  %v6995_v11 = vld [vmem:[%s9606_s2 + $0xe4] ss:$16 sps:$4 sm:$0xff]  }
 0xd0f   : > { %v7003_v12 = vld [vmem:[%s9606_s2 + $0xa8] ss:$16 sps:$4 sm:$0xff]   ;;  %v7004_v13 = vld [vmem:[%s9606_s2 + $0xcc] ss:$16 sps:$4 sm:$0xff]   ;;  %v6999_v14 = vld [vmem:[%s9606_s2 + $0xe0] ss:$16 sps:$4 sm:$0xff]  }
 0xd10   : > { %v7006_v5 = vld [vmem:[%s9606_s2 + $0xc8] ss:$16 sps:$4 sm:$0xff]   ;;  %v7007_v6 = vld [vmem:[%s9606_s2 + $0xec] ss:$16 sps:$4 sm:$0xff]   ;;  %s4389_s16 = scalar_lea.vmem [#allocation2], %s6087_s17  ;;  %s6010_s18 = sshll.u32 %s7316_s5, 3 }
 0xd11   : > { %4592 = vmatpush1.bf16.msra.mxu0 %v6970_v49  ;;  %4633 = vmatpush1.bf16.msra.mxu1 %v6988_v62  ;;  %v7009_v9 = vld [vmem:[%s9606_s2 + $0xe8] ss:$16 sps:$4 sm:$0xff]   ;;  %v4390_v20 = vld [vmem:[%s4389_s16] sm:$0xff]  ;;  %v4392_v29 = vld [vmem:[%s4389_s16 + $0x10] sm:$0xff]  ;;  %s4698_s21 = scalar_lea.vmem %s9607_s4, %s6010_s18  ;;  %s4384_s5 = sadd.s32 1, %s7316_s5  }
 0xd12   : > { %4593 = vmatprep.subr.bf16.mxu0 %v6971_v56  ;;  %4634 = vmatprep.subr.bf16.mxu1 %v6991_v63  ;;  %v4391_v21 = vld [vmem:[%s4389_s16 + $0x8] sm:$0xff]  ;;  %v4393_v23 = vld [vmem:[%s4389_s16 + $0x18] sm:$0xff]  ;;  %v4699_v49 = vld [vmem:[%s4698_s21] sm:$0xff]  ;;  %p4381_p6 = scmp.ge.s32.totalorder %s4384_s5, 8  }
 0xd13   :  { %v7026_v57 = vld [vmem:[%s9605_s1 + $0x4] ss:$16 sps:$4 sm:$0xff] (%p4381_p6)   ;;  %v7028_v58 = vld [vmem:[%s9605_s1 + $0xc] ss:$16 sps:$4 sm:$0xff] (%p4381_p6)   ;;  %v7036_v62 = vld [vmem:[%s9605_s1 + $0x20] ss:$16 sps:$4 sm:$0xff] (%p4381_p6)  }
 0xd14   :  { %v7034_v61 = vld [vmem:[%s9605_s1 + $0x2c] ss:$16 sps:$4 sm:$0xff] (%p4381_p6)   ;;  %v7037_v63 = vld [vmem:[%s9605_s1 + $0x28] ss:$16 sps:$4 sm:$0xff] (%p4381_p6)  }
 0xd15   : > { %4594 = vmatpush1.bf16.msra.mxu0 %v6975_v59  ;;  %4635 = vmatpush1.bf16.msra.mxu1 %v6994_v52  ;;  %v7030_v59 = vld [vmem:[%s9605_s1] ss:$16 sps:$4 sm:$0xff] (%p4381_p6)  }
 0xd16   : > { %4595 = vmatprep.subr.bf16.mxu0 %v6977_v60  ;;  %4636 = vmatprep.subr.bf16.mxu1 %v6997_v53  ;;  %v7032_v60 = vld [vmem:[%s9605_s1 + $0x24] ss:$16 sps:$4 sm:$0xff] (%p4381_p6)   ;;  %v7042_v52 = vld [vmem:[%s9605_s1 + $0x40] ss:$16 sps:$4 sm:$0xff] (%p4381_p6)   ;;  %v7043_v53 = vld [vmem:[%s9605_s1 + $0x48] ss:$16 sps:$4 sm:$0xff] (%p4381_p6)  }
 0xd19   : > { %4596 = vmatpush1.bf16.msra.mxu0 %v6981_v0  ;;  %4637 = vmatpush1.bf16.msra.mxu1 %v7000_v4  ;;  %v7038_v0 = vld [vmem:[%s9605_s1 + $0x44] ss:$16 sps:$4 sm:$0xff] (%p4381_p6)   ;;  %v7048_v4 = vld [vmem:[%s9605_s1 + $0x60] ss:$16 sps:$4 sm:$0xff] (%p4381_p6)  }
 0xd1a   : > { %4597 = vmatprep.subr.bf16.mxu0 %v6983_v3  ;;  %4638 = vmatprep.subr.bf16.mxu1 %v7001_v2  ;;  %v7040_v3 = vld [vmem:[%s9605_s1 + $0x4c] ss:$16 sps:$4 sm:$0xff] (%p4381_p6)   ;;  %v7049_v2 = vld [vmem:[%s9605_s1 + $0x68] ss:$16 sps:$4 sm:$0xff] (%p4381_p6)  }
 0xd1d   : > { %4598 = vmatpush1.bf16.msra.mxu0 %v6987_v54  ;;  %4639 = vmatpush1.bf16.msra.mxu1 %v7003_v12  ;;  %v7044_v54 = vld [vmem:[%s9605_s1 + $0x64] ss:$16 sps:$4 sm:$0xff] (%p4381_p6)   ;;  %v7054_v12 = vld [vmem:[%s9605_s1 + $0x80] ss:$16 sps:$4 sm:$0xff] (%p4381_p6)  }
 0xd1e   : > { %4599 = vmatprep.subr.bf16.mxu0 %v6989_v55  ;;  %4640 = vmatprep.subr.bf16.mxu1 %v7004_v13  ;;  %v7046_v55 = vld [vmem:[%s9605_s1 + $0x6c] ss:$16 sps:$4 sm:$0xff] (%p4381_p6)   ;;  %v7055_v13 = vld [vmem:[%s9605_s1 + $0x88] ss:$16 sps:$4 sm:$0xff] (%p4381_p6)  }
 0xd21   : > { %4600 = vmatpush1.bf16.msra.mxu0 %v6993_v10  ;;  %4641 = vmatpush1.bf16.msra.mxu1 %v7006_v5  ;;  %v7050_v10 = vld [vmem:[%s9605_s1 + $0x84] ss:$16 sps:$4 sm:$0xff] (%p4381_p6)   ;;  %v7058_v5 = vld [vmem:[%s9605_s1 + $0xac] ss:$16 sps:$4 sm:$0xff] (%p4381_p6)  }
 0xd22   : > { %4601 = vmatprep.subr.bf16.mxu0 %v6995_v11  ;;  %4642 = vmatprep.subr.bf16.mxu1 %v7007_v6  ;;  %v7052_v11 = vld [vmem:[%s9605_s1 + $0x8c] ss:$16 sps:$4 sm:$0xff] (%p4381_p6)   ;;  %v7060_v6 = vld [vmem:[%s9605_s1 + $0xa0] ss:$16 sps:$4 sm:$0xff] (%p4381_p6)  }
 0xd25   : > { %4602 = vmatpush1.bf16.msra.mxu0 %v6999_v14  ;;  %4643 = vmatpush1.bf16.msra.mxu1 %v7009_v9  ;;  %v7056_v14 = vld [vmem:[%s9605_s1 + $0xa4] ss:$16 sps:$4 sm:$0xff] (%p4381_p6)  }
 0xd26   :  { %4928 = vmatprep.subr.bf16.mxu0 (%p4381_p6), %v7026_v57  ;;  %5001 = vmatprep.subr.bf16.mxu1 (%p4381_p6), %v7028_v58  ;;  %v7062_v9 = vld [vmem:[%s9605_s1 + $0xc4] ss:$16 sps:$4 sm:$0xff] (%p4381_p6)  }
 0xd28   : > { %4620 = vmatmul.mubr.bf16.vlgmr.msra.gmra.mrb[0].mxu0 %v4394_v7  ;;  %4661 = vmatmul.mubr.bf16.vlgmr.msra.gmra.mrb[0].mxu1 %v4394_v7  ;;  %v7061_v7 = vld [vmem:[%s9605_s1 + $0xa8] ss:$16 sps:$4 sm:$0xff] (%p4381_p6)  }
 0xd29   :  { %4960 = vmatprep.mubr.bf16.mxu0 (%p4381_p6), %v7330_v1  ;;  %5033 = vmatprep.mubr.bf16.mxu1 (%p4381_p6), %v7330_v1 }
 0xd2a   :  { %4929 = vmatpush1.bf16.msra.mxu0 (%p4381_p6), %v7030_v59 }
 0xd2b   :  { %4930 = vmatprep.subr.bf16.mxu0 (%p4381_p6), %v7032_v60 }
 0xd2e   :  { %4931 = vmatpush1.bf16.msra.mxu0 (%p4381_p6), %v7036_v62 }
 0xd2f   :  { %4932 = vmatprep.subr.bf16.mxu0 (%p4381_p6), %v7038_v0 }
 0xd32   :  { %4933 = vmatpush1.bf16.msra.mxu0 (%p4381_p6), %v7042_v52 }
 0xd33   :  { %4934 = vmatprep.subr.bf16.mxu0 (%p4381_p6), %v7044_v54 }
 0xd36   :  { %4935 = vmatpush1.bf16.msra.mxu0 (%p4381_p6), %v7048_v4 }
 0xd37   :  { %4936 = vmatprep.subr.bf16.mxu0 (%p4381_p6), %v7050_v10 }
 0xd3a   :  { %4937 = vmatpush1.bf16.msra.mxu0 (%p4381_p6), %v7054_v12 }
 0xd3b   :  { %4938 = vmatprep.subr.bf16.mxu0 (%p4381_p6), %v7056_v14 }
 0xd3e   :  { %4939 = vmatpush1.bf16.msra.mxu0 (%p4381_p6), %v7060_v6 }
 0xd3f   :  { %4940 = vmatprep.subr.bf16.mxu0 (%p4381_p6), %v7062_v9 }
 0xdfb   : > { %v4621_v15 = vpop.f32.mrb[0].mxu0  ;;  %v4662_v25 = vpop.f32.mrb[0].mxu1 }
 0xdfc   : > { %v4669_v16 = vadd.f32 %v4621_v15, %v4390_v20  ;;  %v4623_v17 = vpop.f32.mrb[1].mxu0  ;;  %v4664_v32 = vpop.f32.mrb[1].mxu1  ;;  %v4671_v38 = vadd.f32 %v4662_v25, %v4392_v29  ;;  %v7064_v20 = vld [vmem:[%s9605_s1 + $0xcc] ss:$16 sps:$4 sm:$0xff] (%p4381_p6)   ;;  %v7067_v15 = vld [vmem:[%s9605_s1 + $0xc8] ss:$16 sps:$4 sm:$0xff] (%p4381_p6)  }
 0xdfd   : > { %v4670_v19 = vadd.f32 %v4623_v17, %v4391_v21  ;;  %v4625_v26 = vpop.f32.mrb[2].mxu0  ;;  %v4672_v33 = vadd.f32 %v4664_v32, %v4393_v23  ;;  %v4666_v18 = vpop.f32.mrb[2].mxu1  ;;  %v7066_v21 = vld [vmem:[%s9605_s1 + $0xc0] ss:$16 sps:$4 sm:$0xff] (%p4381_p6)   ;;  %v7070_v17 = vld [vmem:[%s9605_s1 + $0xec] ss:$16 sps:$4 sm:$0xff] (%p4381_p6)  }
 0xdfe   : > { %v6007_v27 = vmul.f32 -1.442695, %v4669_v16  ;;  %v4626_v8 = vpop.f32.mrb[3].mxu0  ;;  %v4667_v28 = vpop.f32.mrb[3].mxu1  ;;  %v7068_v16 = vld [vmem:[%s9605_s1 + $0xe4] ss:$16 sps:$4 sm:$0xff] (%p4381_p6)   ;;  %4941 = vmatpush1.bf16.msra.mxu0 (%p4381_p6), %v7066_v21 }
 0xdff   : > { %v6008_v22 = vmul.f32 -1.442695, %v4670_v19  ;;  %v6009_v31 = vmul.f32 -1.442695, %v4672_v33  ;;  %v7072_v19 = vld [vmem:[%s9605_s1 + $0xe0] ss:$16 sps:$4 sm:$0xff] (%p4381_p6)   ;;  %4942 = vmatprep.subr.bf16.mxu0 (%p4381_p6), %v7068_v16 }
 0xe00   : > { %7010 = vpow2.f32 %v6007_v27  ;;  %v7073_v26 = vld [vmem:[%s9605_s1 + $0xe8] ss:$16 sps:$4 sm:$0xff] (%p4381_p6)  }
 0xe01   : > { %7012 = vpow2.f32 %v6008_v22 }
 0xe02   : > { %7014 = vpow2.f32 %v6009_v31  ;;  %4943 = vmatpush1.bf16.msra.mxu0 (%p4381_p6), %v7072_v19 }
 0xe03   : > { %7016 = vtanh.f32 %v4671_v38 }
 0xe0a   : > { %v7011_v39 = vpop.eup %7010 }
 0xe0b   : > { %v7013_v30 = vpop.eup %7012  ;;  %v4676_v40 = vadd.f32 1.0, %v7011_v39  ;;  %v4746_v39 = vld [vmem:[%s9609_s3] sm:$0xf] (%p4381_p6)  ;;  %s9483_s3 = smov (%p4381_p6), 0  }
 0xe0c   : > { %v4682_v41 = vadd.f32 1.0, %v7013_v30  ;;  %v7015_v43 = vpop.eup %7014  ;;  %v9436_v30 = vrot.slane (%p4381_p6), %v4746_v39, %v7492_v47 }
 0xe0d   : > { %7018 = vrcp.f32 %v4676_v40  ;;  %v7017_v24 = vpop.eup %7016  ;;  %v4689_v35 = vadd.f32 1.0, %v7015_v43  ;;  %v9442_v40 = vrot.slane (%p4381_p6), %v4746_v39, %v7499_v50 }
 0xe0e   : > { %7020 = vrcp.f32 %v4682_v41  ;;  %v9445_v41 = vrot.slane (%p4381_p6), %v4746_v39, %v7501_v51 }
 0xe0f   : > { %7022 = vrcp.f32 %v4689_v35 }
 0xe17   : > { %v7019_v34 = vpop.eup %7018 }
 0xe18   : > { %v7021_v37 = vpop.eup %7020  ;;  %v4693_v44 = vmul.f32 %v7019_v34, %v7017_v24 }
 0xe19   : > { %v4692_v45 = vmul.f32 %v7308_v42, %v7021_v37  ;;  %v7023_v36 = vpop.eup %7022 }
 0xe1b   : > { %v4694_v42 = vadd.f32 %v4693_v44, %v4692_v45  }
 0xe1d   : > { %7024 = vtanh.f32 %v4694_v42  ;;  %v7031_v42 = vld [vmem:[%s9605_s1 + $0x8] ss:$16 sps:$4 sm:$0xff] (%p4381_p6)  }
 0xe1e   :  { %5002 = vmatpush1.bf16.msra.mxu1 (%p4381_p6), %v7031_v42 }
 0xe1f   :  { %5003 = vmatprep.subr.bf16.mxu1 (%p4381_p6), %v7034_v61 }
 0xe22   :  { %5004 = vmatpush1.bf16.msra.mxu1 (%p4381_p6), %v7037_v63 }
 0xe23   :  { %5005 = vmatprep.subr.bf16.mxu1 (%p4381_p6), %v7040_v3 }
 0xe26   :  { %4383 = sbr.rel (!%p4381_p6) target bundleno = 3334 (0xd06), region = 174  ;;  %5006 = vmatpush1.bf16.msra.mxu1 (%p4381_p6), %v7043_v53 }
 0xe27   : > { %v7025_v46 = vpop.eup %7024  ;;  %5007 = vmatprep.subr.bf16.mxu1 (%p4381_p6), %v7046_v55 }
 0xe28   : > { %v4696_v43 = vmul.f32 %v7025_v46, %v7023_v36  }
 0xe2a   : > { %v4700_v56 = vadd.f32 %v4699_v49, %v4696_v43  ;;  %5008 = vmatpush1.bf16.msra.mxu1 (%p4381_p6), %v7049_v2 }
 0xe2b   :  { %5009 = vmatprep.subr.bf16.mxu1 (%p4381_p6), %v7052_v11 }
 0xe2c   : > { %4701 = vst [vmem:[%s4698_s21] sm:$0xff] %v4700_v56 }
 0xe2e   :  { %5010 = vmatpush1.bf16.msra.mxu1 %v7055_v13 }
 0xe2f   :  { %5011 = vmatprep.subr.bf16.mxu1 %v7058_v5 }
 0xe32   :  { %5012 = vmatpush1.bf16.msra.mxu1 %v7061_v7 }
 0xe33   :  { %5013 = vmatprep.subr.bf16.mxu1 %v7064_v20  ;;  %v4702_v27 = vld [vmem:[%s9607_s4] sm:$0xff]  ;;  %v4703_v8 = vld [vmem:[%s9607_s4 + $0x8] sm:$0xff]  ;;  %v4704_v23 = vld [vmem:[%s9607_s4 + $0x10] sm:$0xff] }
 0xe34   :  { %v4710_v22 = vpack.c.bf16 %v4703_v8, %v4702_v27  ;;  %v4705_v25 = vld [vmem:[%s9607_s4 + $0x18] sm:$0xff]  ;;  %v4706_v33 = vld [vmem:[%s9607_s4 + $0x20] sm:$0xff]  ;;  %v4707_v18 = vld [vmem:[%s9607_s4 + $0x28] sm:$0xff] }
 0xe35   :  { %v4711_v32 = vpack.c.bf16 %v4705_v25, %v4704_v23  ;;  %v4712_v28 = vpack.c.bf16 %v4707_v18, %v4706_v33  ;;  %v4708_v29 = vld [vmem:[%s9607_s4 + $0x30] sm:$0xff]  ;;  %v4709_v31 = vld [vmem:[%s9607_s4 + $0x38] sm:$0xff] }
 0xe36   :  { %5014 = vmatpush1.bf16.msra.mxu1 %v7067_v15  ;;  %4961 = vmatmul.mubr.bf16.vlgmr.msra.gmra.mrb[0].mxu0 %v4710_v22  ;;  %v4713_v38 = vpack.c.bf16 %v4709_v31, %v4708_v29 }
 0xe37   :  { %5015 = vmatprep.subr.bf16.mxu1 %v7070_v17  ;;  %4970 = vmatprep.mubr.bf16.mxu0 %v7330_v1 }
 0xe3a   :  { %5016 = vmatpush1.bf16.msra.mxu1 %v7073_v26 }
 0xe3d   :  { %5034 = vmatmul.mubr.bf16.vlgmr.msra.gmra.mrb[0].mxu1 %v4710_v22 }
 0xe3e   :  { %5043 = vmatprep.mubr.bf16.mxu1 %v7330_v1  ;;  %4971 = vmatmul.mubr.bf16.gmra.mrb[4].mxu0 %v4711_v32 }
 0xe3f   :  { %4980 = vmatprep.mubr.bf16.mxu0 %v7330_v1 }
 0xe45   :  { %5044 = vmatmul.mubr.bf16.gmra.mrb[4].mxu1 %v4711_v32 }
 0xe46   :  { %5053 = vmatprep.mubr.bf16.mxu1 %v7330_v1  ;;  %4981 = vmatmul.mubr.bf16.gmra.mrb[8].mxu0 %v4712_v28 }
 0xe47   :  { %4990 = vmatprep.mubr.bf16.mxu0 %v7330_v1 }
 0xe4d   :  { %5054 = vmatmul.mubr.bf16.gmra.mrb[8].mxu1 %v4712_v28 }
 0xe4e   :  { %5063 = vmatprep.mubr.bf16.mxu1 %v7330_v1  ;;  %4991 = vmatmul.mubr.bf16.gmra.mrb[12].mxu0 %v4713_v38  ;;  %v9439_v1 = vrot.slane %v4746_v39, %v7494_v48 }
 0xe55   :  { %5064 = vmatmul.mubr.bf16.gmra.mrb[12].mxu1 %v4713_v38 }
 0xf09   :  { %v4962_v43 = vpop.f32.mrb[0].mxu0 }
 0xf0a   :  { %v4963_v34 = vadd.f32 %v4962_v43, %v9436_v30  ;;  %v4964_v37 = vpop.f32.mrb[1].mxu0 }
 0xf0b   :  { %v4965_v47 = vadd.f32 %v4964_v37, %v9442_v40  ;;  %v4966_v48 = vpop.f32.mrb[2].mxu0  ;;  %v9479_v37 = vmov 0.0  }
 0xf0c   :  { %5074 = vst [vmem:[#allocation2] sm:$0xff] %v4963_v34  ;;  %v4967_v50 = vadd.f32 %v4966_v48, %v9436_v30  ;;  %v4968_v46 = vpop.f32.mrb[3].mxu0 }
 0xf0d   :  { %5075 = vst [vmem:[#allocation2 + $0x8] sm:$0xff] %v4965_v47  ;;  %v4969_v56 = vadd.f32 %v4968_v46, %v9442_v40 }
 0xf0e   :  { %5078 = vst [vmem:[#allocation2 + $0x20] sm:$0xff] %v4967_v50 }
 0xf0f   :  { %5079 = vst [vmem:[#allocation2 + $0x28] sm:$0xff] %v4969_v56 }
 0xf10   :  { %v5035_v24 = vpop.f32.mrb[0].mxu1 }
 0xf11   :  { %v5036_v35 = vadd.f32 %v5035_v24, %v9439_v1  ;;  %v5037_v44 = vpop.f32.mrb[1].mxu1  ;;  %v4972_v58 = vpop.f32.mrb[4].mxu0 }
 0xf12   :  { %v5038_v45 = vadd.f32 %v5037_v44, %v9445_v41  ;;  %v5039_v36 = vpop.f32.mrb[2].mxu1  ;;  %v4973_v42 = vadd.f32 %v4972_v58, %v9436_v30  ;;  %v4974_v61 = vpop.f32.mrb[5].mxu0  ;;  %v9481_v44 = vmov 0.0  }
 0xf13   :  { %5076 = vst [vmem:[#allocation2 + $0x10] sm:$0xff] %v5036_v35  ;;  %v5040_v51 = vadd.f32 %v5039_v36, %v9439_v1  ;;  %v5041_v49 = vpop.f32.mrb[3].mxu1  ;;  %v4975_v63 = vadd.f32 %v4974_v61, %v9442_v40  ;;  %v4976_v3 = vpop.f32.mrb[6].mxu0 }
 0xf14   :  { %5077 = vst [vmem:[#allocation2 + $0x18] sm:$0xff] %v5038_v45  ;;  %v5042_v57 = vadd.f32 %v5041_v49, %v9445_v41  ;;  %5082 = vst [vmem:[#allocation2 + $0x40] sm:$0xff] %v4973_v42  ;;  %v4977_v53 = vadd.f32 %v4976_v3, %v9436_v30  ;;  %v4978_v55 = vpop.f32.mrb[7].mxu0 }
 0xf15   :  { %5080 = vst [vmem:[#allocation2 + $0x30] sm:$0xff] %v5040_v51  ;;  %5083 = vst [vmem:[#allocation2 + $0x48] sm:$0xff] %v4975_v63  ;;  %v4979_v2 = vadd.f32 %v4978_v55, %v9442_v40 }
 0xf16   :  { %5081 = vst [vmem:[#allocation2 + $0x38] sm:$0xff] %v5042_v57  ;;  %5086 = vst [vmem:[#allocation2 + $0x60] sm:$0xff] %v4977_v53 }
 0xf17   :  { %5087 = vst [vmem:[#allocation2 + $0x68] sm:$0xff] %v4979_v2 }
 0xf18   :  { %v5045_v59 = vpop.f32.mrb[4].mxu1 }
 0xf19   :  { %v5046_v60 = vadd.f32 %v5045_v59, %v9439_v1  ;;  %v5047_v62 = vpop.f32.mrb[5].mxu1  ;;  %v4982_v11 = vpop.f32.mrb[8].mxu0 }
 0xf1a   :  { %v5048_v0 = vadd.f32 %v5047_v62, %v9445_v41  ;;  %v5049_v52 = vpop.f32.mrb[6].mxu1  ;;  %v4983_v13 = vadd.f32 %v4982_v11, %v9436_v30  ;;  %v4984_v5 = vpop.f32.mrb[9].mxu0 }
 0xf1b   :  { %5084 = vst [vmem:[#allocation2 + $0x50] sm:$0xff] %v5046_v60  ;;  %v5050_v54 = vadd.f32 %v5049_v52, %v9439_v1  ;;  %v5051_v4 = vpop.f32.mrb[7].mxu1  ;;  %v4985_v7 = vadd.f32 %v4984_v5, %v9442_v40  ;;  %v4986_v20 = vpop.f32.mrb[10].mxu0 }
 0xf1c   :  { %5085 = vst [vmem:[#allocation2 + $0x58] sm:$0xff] %v5048_v0  ;;  %v5052_v10 = vadd.f32 %v5051_v4, %v9445_v41  ;;  %5090 = vst [vmem:[#allocation2 + $0x80] sm:$0xff] %v4983_v13  ;;  %v4987_v15 = vadd.f32 %v4986_v20, %v9436_v30  ;;  %v4988_v17 = vpop.f32.mrb[11].mxu0 }
 0xf1d   :  { %5088 = vst [vmem:[#allocation2 + $0x70] sm:$0xff] %v5050_v54  ;;  %5091 = vst [vmem:[#allocation2 + $0x88] sm:$0xff] %v4985_v7  ;;  %v4989_v26 = vadd.f32 %v4988_v17, %v9442_v40 }
 0xf1e   :  { %5089 = vst [vmem:[#allocation2 + $0x78] sm:$0xff] %v5052_v10  ;;  %5094 = vst [vmem:[#allocation2 + $0xa0] sm:$0xff] %v4987_v15 }
 0xf1f   :  { %5095 = vst [vmem:[#allocation2 + $0xa8] sm:$0xff] %v4989_v26 }
 0xf20   :  { %v5055_v12 = vpop.f32.mrb[8].mxu1 }
 0xf21   :  { %v5056_v14 = vadd.f32 %v5055_v12, %v9439_v1  ;;  %v5057_v6 = vpop.f32.mrb[9].mxu1  ;;  %v4992_v8 = vpop.f32.mrb[12].mxu0 }
 0xf22   :  { %v5058_v9 = vadd.f32 %v5057_v6, %v9445_v41  ;;  %v5059_v21 = vpop.f32.mrb[10].mxu1  ;;  %v4993_v23 = vadd.f32 %v4992_v8, %v9436_v30  ;;  %v4994_v32 = vpop.f32.mrb[13].mxu0 }
 0xf23   :  { %5092 = vst [vmem:[#allocation2 + $0x90] sm:$0xff] %v5056_v14  ;;  %v5060_v16 = vadd.f32 %v5059_v21, %v9439_v1  ;;  %v5061_v19 = vpop.f32.mrb[11].mxu1  ;;  %v4995_v18 = vadd.f32 %v4994_v32, %v9442_v40  ;;  %v4996_v29 = vpop.f32.mrb[14].mxu0 }
 0xf24   :  { %5093 = vst [vmem:[#allocation2 + $0x98] sm:$0xff] %v5058_v9  ;;  %v5062_v27 = vadd.f32 %v5061_v19, %v9445_v41  ;;  %5098 = vst [vmem:[#allocation2 + $0xc0] sm:$0xff] %v4993_v23  ;;  %v4997_v38 = vadd.f32 %v4996_v29, %v9436_v30  ;;  %v4998_v43 = vpop.f32.mrb[15].mxu0 }
 0xf25   :  { %5096 = vst [vmem:[#allocation2 + $0xb0] sm:$0xff] %v5060_v16  ;;  %5099 = vst [vmem:[#allocation2 + $0xc8] sm:$0xff] %v4995_v18  ;;  %v4999_v34 = vadd.f32 %v4998_v43, %v9442_v40 }
 0xf26   :  { %5097 = vst [vmem:[#allocation2 + $0xb8] sm:$0xff] %v5062_v27  ;;  %5102 = vst [vmem:[#allocation2 + $0xe0] sm:$0xff] %v4997_v38 }
 0xf27   :  { %5103 = vst [vmem:[#allocation2 + $0xe8] sm:$0xff] %v4999_v34 }
 0xf28   :  { %v5065_v22 = vpop.f32.mrb[12].mxu1 }
 0xf29   :  { %v5066_v25 = vadd.f32 %v5065_v22, %v9439_v1  ;;  %v5067_v33 = vpop.f32.mrb[13].mxu1 }
 0xf2a   :  { %v5068_v28 = vadd.f32 %v5067_v33, %v9445_v41  ;;  %v5069_v31 = vpop.f32.mrb[14].mxu1 }
 0xf2b   :  { %5100 = vst [vmem:[#allocation2 + $0xd0] sm:$0xff] %v5066_v25  ;;  %v5070_v39 = vadd.f32 %v5069_v31, %v9439_v1  ;;  %v5071_v24 = vpop.f32.mrb[15].mxu1 }
 0xf2c   :  { %5101 = vst [vmem:[#allocation2 + $0xd8] sm:$0xff] %v5068_v28  ;;  %v5072_v35 = vadd.f32 %v5071_v24, %v9445_v41 }
 0xf2d   :  { %5104 = vst [vmem:[#allocation2 + $0xf0] sm:$0xff] %v5070_v39 }
 0xf2e   :  { %5105 = vst [vmem:[#allocation2 + $0xf8] sm:$0xff] %v5072_v35 }
 0xf2f LB: > { %v7074_v30 = vld [vmem:[%s9606_s2 + $0x4] ss:$16 sps:$4 sm:$0xff]   ;;  %v7076_v1 = vld [vmem:[%s9606_s2] ss:$16 sps:$4 sm:$0xff]   ;;  %v7338_v40 = vmov 0   ;;  %v5121_v13 = vpack.c.bf16 %v7324_v44, %v7324_v44  ;;  %s6088_s29 = sshll.u32 %s7328_s3, 5  ;;  %s7328_s3 = sphi %s9483_s3, %s5111_s3   ;;  %v7324_v44 = vphi %v9481_v44, %v5423_v44   ;;  %v7320_v37 = vphi %v9479_v37, %v5421_v37  }
 0xf30   : > { %5346 = vmatprep.mubr.bf16.mxu0 %v7338_v40  ;;  %5387 = vmatprep.mubr.bf16.mxu1 %v7338_v40  ;;  %v7077_v41 = vld [vmem:[%s9606_s2 + $0x24] ss:$16 sps:$4 sm:$0xff]   ;;  %v7079_v47 = vld [vmem:[%s9606_s2 + $0x20] ss:$16 sps:$4 sm:$0xff]   ;;  %v7085_v48 = vld [vmem:[%s9606_s2 + $0xc] ss:$16 sps:$4 sm:$0xff]  }
 0xf31   : > { %5314 = vmatprep.subr.bf16.mxu0 %v7074_v30  ;;  %v7080_v45 = vld [vmem:[%s9606_s2 + $0x44] ss:$16 sps:$4 sm:$0xff]   ;;  %v7088_v36 = vld [vmem:[%s9606_s2 + $0x8] ss:$16 sps:$4 sm:$0xff]   ;;  %v7082_v50 = vld [vmem:[%s9606_s2 + $0x40] ss:$16 sps:$4 sm:$0xff]   ;;  %5355 = vmatprep.subr.bf16.mxu1 %v7085_v48 }
 0xf32   : > { %5315 = vmatpush1.bf16.msra.mxu0 %v7076_v1  ;;  %v7083_v51 = vld [vmem:[%s9606_s2 + $0x64] ss:$16 sps:$4 sm:$0xff]   ;;  %5356 = vmatpush1.bf16.msra.mxu1 %v7088_v36  ;;  %v7091_v46 = vld [vmem:[%s9606_s2 + $0x2c] ss:$16 sps:$4 sm:$0xff]   ;;  %v7094_v49 = vld [vmem:[%s9606_s2 + $0x28] ss:$16 sps:$4 sm:$0xff]  }
 0xf33   : > { %5316 = vmatprep.subr.bf16.mxu0 %v7077_v41  ;;  %5357 = vmatprep.subr.bf16.mxu1 %v7091_v46  ;;  %v7087_v56 = vld [vmem:[%s9606_s2 + $0x60] ss:$16 sps:$4 sm:$0xff]   ;;  %v7089_v57 = vld [vmem:[%s9606_s2 + $0x84] ss:$16 sps:$4 sm:$0xff]   ;;  %v7097_v58 = vld [vmem:[%s9606_s2 + $0x4c] ss:$16 sps:$4 sm:$0xff]  }
 0xf34   : > { %v7100_v59 = vld [vmem:[%s9606_s2 + $0x48] ss:$16 sps:$4 sm:$0xff]   ;;  %v7103_v42 = vld [vmem:[%s9606_s2 + $0x6c] ss:$16 sps:$4 sm:$0xff]   ;;  %v7093_v60 = vld [vmem:[%s9606_s2 + $0x80] ss:$16 sps:$4 sm:$0xff]  }
 0xf35   : > { %v7095_v61 = vld [vmem:[%s9606_s2 + $0xa4] ss:$16 sps:$4 sm:$0xff]   ;;  %v7106_v62 = vld [vmem:[%s9606_s2 + $0x68] ss:$16 sps:$4 sm:$0xff]   ;;  %v7109_v63 = vld [vmem:[%s9606_s2 + $0x8c] ss:$16 sps:$4 sm:$0xff]  }
 0xf36   : > { %5317 = vmatpush1.bf16.msra.mxu0 %v7079_v47  ;;  %5358 = vmatpush1.bf16.msra.mxu1 %v7094_v49  ;;  %v7099_v0 = vld [vmem:[%s9606_s2 + $0xa0] ss:$16 sps:$4 sm:$0xff]   ;;  %v7101_v3 = vld [vmem:[%s9606_s2 + $0xc4] ss:$16 sps:$4 sm:$0xff]   ;;  %v7112_v52 = vld [vmem:[%s9606_s2 + $0x88] ss:$16 sps:$4 sm:$0xff]  }
 0xf37   : > { %5318 = vmatprep.subr.bf16.mxu0 %v7080_v45  ;;  %5359 = vmatprep.subr.bf16.mxu1 %v7097_v58  ;;  %v7113_v53 = vld [vmem:[%s9606_s2 + $0xac] ss:$16 sps:$4 sm:$0xff]   ;;  %v7105_v54 = vld [vmem:[%s9606_s2 + $0xc0] ss:$16 sps:$4 sm:$0xff]   ;;  %v7107_v55 = vld [vmem:[%s9606_s2 + $0xe4] ss:$16 sps:$4 sm:$0xff]  }
 0xf38   : > { %v7115_v4 = vld [vmem:[%s9606_s2 + $0xa8] ss:$16 sps:$4 sm:$0xff]   ;;  %v7116_v2 = vld [vmem:[%s9606_s2 + $0xcc] ss:$16 sps:$4 sm:$0xff]   ;;  %v7111_v10 = vld [vmem:[%s9606_s2 + $0xe0] ss:$16 sps:$4 sm:$0xff]  }
 0xf39   : > { %v7118_v11 = vld [vmem:[%s9606_s2 + $0xc8] ss:$16 sps:$4 sm:$0xff]   ;;  %v7119_v12 = vld [vmem:[%s9606_s2 + $0xec] ss:$16 sps:$4 sm:$0xff]   ;;  %s5116_s30 = scalar_lea.vmem [#allocation2], %s6088_s29  ;;  %s6080_s6 = sshll.u32 %s7328_s3, 3 }
 0xf3a   : > { %5319 = vmatpush1.bf16.msra.mxu0 %v7082_v50  ;;  %5360 = vmatpush1.bf16.msra.mxu1 %v7100_v59  ;;  %v7121_v14 = vld [vmem:[%s9606_s2 + $0xe8] ss:$16 sps:$4 sm:$0xff]   ;;  %v5117_v5 = vld [vmem:[%s5116_s30] sm:$0xff]  ;;  %v5119_v32 = vld [vmem:[%s5116_s30 + $0x10] sm:$0xff]  ;;  %s5425_s9 = scalar_lea.vmem %s9607_s4, %s6080_s6  ;;  %s5111_s3 = sadd.s32 1, %s7328_s3  }
 0xf3b   : > { %5320 = vmatprep.subr.bf16.mxu0 %v7083_v51  ;;  %5361 = vmatprep.subr.bf16.mxu1 %v7103_v42  ;;  %v5118_v6 = vld [vmem:[%s5116_s30 + $0x8] sm:$0xff]  ;;  %v5120_v26 = vld [vmem:[%s5116_s30 + $0x18] sm:$0xff]  ;;  %v5426_v41 = vld [vmem:[%s5425_s9] sm:$0xff]  ;;  %p5108_p7 = scmp.ge.s32.totalorder %s5111_s3, 8  }
 0xf3e   : > { %5321 = vmatpush1.bf16.msra.mxu0 %v7087_v56  ;;  %5362 = vmatpush1.bf16.msra.mxu1 %v7106_v62 }
 0xf3f   : > { %5322 = vmatprep.subr.bf16.mxu0 %v7089_v57  ;;  %5363 = vmatprep.subr.bf16.mxu1 %v7109_v63 }
 0xf42   : > { %5323 = vmatpush1.bf16.msra.mxu0 %v7093_v60  ;;  %5364 = vmatpush1.bf16.msra.mxu1 %v7112_v52 }
 0xf43   : > { %5324 = vmatprep.subr.bf16.mxu0 %v7095_v61  ;;  %5365 = vmatprep.subr.bf16.mxu1 %v7113_v53 }
 0xf46   : > { %5325 = vmatpush1.bf16.msra.mxu0 %v7099_v0  ;;  %5366 = vmatpush1.bf16.msra.mxu1 %v7115_v4 }
 0xf47   : > { %5326 = vmatprep.subr.bf16.mxu0 %v7101_v3  ;;  %5367 = vmatprep.subr.bf16.mxu1 %v7116_v2 }
 0xf4a   : > { %5327 = vmatpush1.bf16.msra.mxu0 %v7105_v54  ;;  %5368 = vmatpush1.bf16.msra.mxu1 %v7118_v11 }
 0xf4b   : > { %5328 = vmatprep.subr.bf16.mxu0 %v7107_v55  ;;  %5369 = vmatprep.subr.bf16.mxu1 %v7119_v12 }
 0xf4e   : > { %5329 = vmatpush1.bf16.msra.mxu0 %v7111_v10  ;;  %5370 = vmatpush1.bf16.msra.mxu1 %v7121_v14 }
 0xf51   : > { %5347 = vmatmul.mubr.bf16.vlgmr.msra.gmra.mrb[0].mxu0 %v5121_v13  ;;  %5388 = vmatmul.mubr.bf16.vlgmr.msra.gmra.mrb[0].mxu1 %v5121_v13 }
0x1024   : > { %v5348_v7 = vpop.f32.mrb[0].mxu0  ;;  %v5389_v27 = vpop.f32.mrb[0].mxu1 }
0x1025   : > { %v5396_v9 = vadd.f32 %v5348_v7, %v5117_v5  ;;  %v5350_v20 = vpop.f32.mrb[1].mxu0  ;;  %v5391_v8 = vpop.f32.mrb[1].mxu1  ;;  %v5398_v18 = vadd.f32 %v5389_v27, %v5119_v32 }
0x1026   : > { %v5397_v21 = vadd.f32 %v5350_v20, %v5118_v6  ;;  %v5352_v15 = vpop.f32.mrb[2].mxu0  ;;  %v5399_v22 = vadd.f32 %v5391_v8, %v5120_v26  ;;  %v5393_v23 = vpop.f32.mrb[2].mxu1 }
0x1027   : > { %v6077_v16 = vmul.f32 -1.442695, %v5396_v9  ;;  %v5353_v17 = vpop.f32.mrb[3].mxu0  ;;  %v5394_v25 = vpop.f32.mrb[3].mxu1 }
0x1028   : > { %v6078_v19 = vmul.f32 -1.442695, %v5397_v21  ;;  %v6079_v33 = vmul.f32 -1.442695, %v5399_v22 }
0x1029   : > { %7122 = vpow2.f32 %v6077_v16 }
0x102a   : > { %7124 = vpow2.f32 %v6078_v19 }
0x102b   : > { %7126 = vpow2.f32 %v6079_v33 }
0x102c   : > { %7128 = vtanh.f32 %v5398_v18 }
0x1033   : > { %v7123_v28 = vpop.eup %7122 }
0x1034   : > { %v7125_v29 = vpop.eup %7124  ;;  %v5403_v31 = vadd.f32 1.0, %v7123_v28 }
0x1035   : > { %v5409_v38 = vadd.f32 1.0, %v7125_v29  ;;  %v7127_v39 = vpop.eup %7126 }
0x1036   : > { %7130 = vrcp.f32 %v5403_v31  ;;  %v7129_v43 = vpop.eup %7128  ;;  %v5416_v34 = vadd.f32 1.0, %v7127_v39 }
0x1037   : > { %7132 = vrcp.f32 %v5409_v38 }
0x1038   : > { %7134 = vrcp.f32 %v5416_v34 }
0x1040   : > { %v7131_v24 = vpop.eup %7130 }
0x1041   : > { %v7133_v35 = vpop.eup %7132  ;;  %v5420_v44 = vmul.f32 %v7131_v24, %v7129_v43 }
0x1042   : > { %v5419_v30 = vmul.f32 %v7320_v37, %v7133_v35  ;;  %v7135_v1 = vpop.eup %7134 }
0x1044   : > { %v5421_v37 = vadd.f32 %v5420_v44, %v5419_v30  }
0x1046   : > { %7136 = vtanh.f32 %v5421_v37 }
0x104f   :  { %5110 = sbr.rel (!%p5108_p7) target bundleno = 3887 (0xf2f), region = 185 }
0x1050   : > { %v7137_v40 = vpop.eup %7136 }
0x1051   : > { %v5423_v44 = vmul.f32 %v7137_v40, %v7135_v1  }
0x1053   : > { %v5427_v47 = vadd.f32 %v5426_v41, %v5423_v44 }
0x1055   : > { %5428 = vst [vmem:[%s5425_s9] sm:$0xff] %v5427_v47 }

// kernel: gnmt_forward.3
= control target key start
LH: loop header
LB: loop body
LE: loop exit
PB: predicated region body
PF: predicated region fallthrough
CT: control target
= control target key end

     0   :  { %13 = vsyncpa [#allocation6], 0  ;;  %s10062_s0 = inlined_call_operand.vmem [shape: f32[8,128], index: 0, kind: input, shape index: {}]   ;;  %s10063_s1 = inlined_call_operand.vmem [shape: bf16[8,8,128], index: 1, kind: input, shape index: {}]   ;;  %s10064_s2 = inlined_call_operand.vmem [shape: bf16[128,512], index: 2, kind: input, shape index: {}]   ;;  %s10065_s3 = inlined_call_operand.vmem [shape: bf16[128,512], index: 3, kind: input, shape index: {}]   ;;  %s10066_s4 = inlined_call_operand.vmem [shape: f32[1,512], index: 4, kind: input, shape index: {}]   ;;  %s10067_s5 = inlined_call_operand.vmem [shape: bf16[128,128], index: 5, kind: input, shape index: {}]   ;;  %s10068_s6 = inlined_call_operand.vmem [shape: bf16[128,128], index: 6, kind: input, shape index: {}]   ;;  %s10069_s7 = inlined_call_operand.vmem [shape: bf16[128,128], index: 7, kind: input, shape index: {}]   ;;  %s10070_s8 = inlined_call_operand.hbm [shape: f32[8,8,128], index: 8, kind: output, shape index: {}]  }
   0x1   :  { %15 = vsyncpa [#allocation6 + $0x1], 0  ;;  %s8006_s27 = smov 0   ;;  %s8008_s28 = smov 0  }
   0x2   :  { %s8010_s29 = smov 0   ;;  %s8012_s30 = smov 0  }
   0x3   :  { %s8014_s9 = smov 0   ;;  %s8016_s10 = smov 0  }
   0x4 LB: > { %s6541_s11 = sadd.s32 4294967295, %s7953_s10   ;;  %s6542_s12 = sadd.s32 4294967294, %s7953_s10   ;;  %s7953_s10 = sphi %s8016_s10, %s21_s10   ;;  %s7949_s9 = sphi %s8014_s9, %s10279_s9   ;;  %s7945_s30 = sphi %s8012_s30, %s10278_s30   ;;  %s7941_s29 = sphi %s8010_s29, %s10277_s29   ;;  %s7937_s28 = sphi %s8008_s28, %s10276_s28   ;;  %s7933_s27 = sphi %s8006_s27, %s10275_s27  }
   0x5   : > { %s30_s13 = sadd.s32 1, %s7949_s9  ;;  %s220_s14 = sadd.s32 1, %s7941_s29 }
   0x6   : > { %p31_p0 = scmp.ge.s32.totalorder %s30_s13, 8  ;;  %p230_p1 = scmp.ne.s32.totalorder %s7941_s29, %s7937_s28 }
   0x7   : > { %p231_p2 = scmp.eq.s32.totalorder %s6541_s11, 7  ;;  %p236_p3 = scmp.ne.s32.totalorder %s7937_s28, %s7933_s27 }
   0x8   : > { %s10281_s13 = smov (%p31_p0, %s30_s13), 0  ;;  %p237_p5 = scmp.eq.s32.totalorder %s6542_s12, 7 }
   0x9   : > { %p8046_p4 = por %p231_p2, %p230_p1  ;;  %s215_s16 = ssub.s32 %s7949_s9, %s10281_s13 }
   0xa   : > { %p6546_p6 = scmp.ge.s32.totalorder %s7953_s10, 1  ;;  %p218_p7 = scmp.eq.s32.totalorder %s215_s16, 0 }
   0xb   : > { %p8053_p8 = por %p237_p5, %p236_p3  ;;  %p289_p9 = scmp.lt.s32.totalorder %s7953_s10, 9 }
   0xc   : > { %s8059_s18 = scalar_select %p218_p7, %s7941_s29, %s220_s14  }
   0xd   : > { %p290_p10 = pnand %p6546_p6, %p289_p9 }
   0xf   : > { %293 = sbr.rel (%p290_p10) target bundleno = 3472 (0xd90), region = 52 }
  0x16   : > { %s324_s19 = sand.u32 1, %s7937_s28   ;;  %p6548_p11 = scmp.ne.s32.totalorder %s7945_s30, 0 }
  0x17   : > { %s8064_s20 = sshll.u32 %s324_s19, 3  ;;  %v358_v0 = vld [vmem:[%s10062_s0] sm:$0xff] (!%p6548_p11)  ;;  %v7955_v1 = vmov (!%p6548_p11), 0.0  }
  0x18   : > { %s326_s21 = scalar_lea.vmem [#allocation5], %s8064_s20  ;;  %341 = sbr.rel (%p6548_p11) target bundleno = 33 (0x21), region = 56  ;;  %342 = vst [vmem:[#allocation2] sm:$0xff] (!%p6548_p11), %v7955_v1  ;;  %343 = vst [vmem:[#allocation2 + $0x8] sm:$0xff] (!%p6548_p11), %v7955_v1 }
  0x19   : > { %344 = vst [vmem:[#allocation2 + $0x10] sm:$0xff] (!%p6548_p11), %v7955_v1  ;;  %345 = vst [vmem:[#allocation2 + $0x18] sm:$0xff] (!%p6548_p11), %v7955_v1 }
  0x1a   : > { %346 = vst [vmem:[#allocation2 + $0x20] sm:$0xff] (!%p6548_p11), %v7955_v1  ;;  %347 = vst [vmem:[#allocation2 + $0x28] sm:$0xff] (!%p6548_p11), %v7955_v1 }
  0x1b   : > { %348 = vst [vmem:[#allocation2 + $0x30] sm:$0xff] (!%p6548_p11), %v7955_v1  ;;  %349 = vst [vmem:[#allocation2 + $0x38] sm:$0xff] (!%p6548_p11), %v7955_v1 }
  0x1c   : > { %350 = vst [vmem:[#allocation3] sm:$0xff] (!%p6548_p11), %v7955_v1  ;;  %351 = vst [vmem:[#allocation3 + $0x8] sm:$0xff] (!%p6548_p11), %v7955_v1 }
  0x1d   : > { %352 = vst [vmem:[#allocation3 + $0x10] sm:$0xff] (!%p6548_p11), %v7955_v1  ;;  %353 = vst [vmem:[#allocation3 + $0x18] sm:$0xff] (!%p6548_p11), %v7955_v1 }
  0x1e   : > { %354 = vst [vmem:[#allocation3 + $0x20] sm:$0xff] (!%p6548_p11), %v7955_v1  ;;  %355 = vst [vmem:[#allocation3 + $0x28] sm:$0xff] (!%p6548_p11), %v7955_v1 }
  0x1f   : > { %356 = vst [vmem:[#allocation3 + $0x30] sm:$0xff] %v7955_v1  ;;  %357 = vst [vmem:[#allocation3 + $0x38] sm:$0xff] %v7955_v1 }
  0x20   : > { %359 = vst [vmem:[#allocation4] sm:$0xff] %v358_v0 }
  0x21 PF: > { %v8074_v2 = vld [vmem:[%s10065_s3 + $0x4] ss:$16 sps:$4 sm:$0xff]   ;;  %v10071_v4 = vmov 0   ;;  %v8087_v5 = vld [vmem:[%s10065_s3] ss:$16 sps:$4 sm:$0xff]   ;;  %vm7958_vm0 = vmmov 0  }
  0x22   : > { %v8079_v3 = vld [vmem:[%s10064_s2 + $0x4] ss:$16 sps:$4 sm:$0xff]   ;;  %621 = vmatprep.mubr.bf16.mxu1 %v10071_v4  ;;  %863 = vmatprep.mubr.bf16.mxu0 %v10071_v4  ;;  %v8092_v6 = vld [vmem:[%s10064_s2] ss:$16 sps:$4 sm:$0xff]   ;;  %v8268_v37 = vld [vmem:[%s10065_s3 + $0xc] ss:$16 sps:$4 sm:$0xff]  }
  0x23   : > { %589 = vmatprep.subr.bf16.mxu1 %v8074_v2  ;;  %831 = vmatprep.subr.bf16.mxu0 %v8079_v3  ;;  %v8098_v7 = vld [vmem:[%s10065_s3 + $0x24] ss:$16 sps:$4 sm:$0xff]   ;;  %v8110_v9 = vld [vmem:[%s10065_s3 + $0x20] ss:$16 sps:$4 sm:$0xff]   ;;  %v8279_v40 = vld [vmem:[%s10065_s3 + $0x8] ss:$16 sps:$4 sm:$0xff]  }
  0x24   : > { %590 = vmatpush1.bf16.msra.mxu1 %v8087_v5  ;;  %832 = vmatpush1.bf16.msra.mxu0 %v8092_v6  ;;  %v8105_v8 = vld [vmem:[%s10064_s2 + $0x24] ss:$16 sps:$4 sm:$0xff]   ;;  %v8116_v10 = vld [vmem:[%s10064_s2 + $0x20] ss:$16 sps:$4 sm:$0xff]   ;;  %v8285_v41 = vld [vmem:[%s10065_s3 + $0x2c] ss:$16 sps:$4 sm:$0xff]  }
  0x25   : > { %591 = vmatprep.subr.bf16.mxu1 %v8098_v7  ;;  %833 = vmatprep.subr.bf16.mxu0 %v8105_v8  ;;  %v8122_v11 = vld [vmem:[%s10065_s3 + $0x44] ss:$16 sps:$4 sm:$0xff]   ;;  %v8132_v13 = vld [vmem:[%s10065_s3 + $0x40] ss:$16 sps:$4 sm:$0xff]   ;;  %v8293_v42 = vld [vmem:[%s10065_s3 + $0x28] ss:$16 sps:$4 sm:$0xff]  }
  0x26   : > { %v8127_v12 = vld [vmem:[%s10064_s2 + $0x44] ss:$16 sps:$4 sm:$0xff]   ;;  %v8137_v14 = vld [vmem:[%s10064_s2 + $0x40] ss:$16 sps:$4 sm:$0xff]   ;;  %v8300_v43 = vld [vmem:[%s10065_s3 + $0x4c] ss:$16 sps:$4 sm:$0xff]  }
  0x27   : > { %v8144_v15 = vld [vmem:[%s10065_s3 + $0x64] ss:$16 sps:$4 sm:$0xff]   ;;  %v8156_v17 = vld [vmem:[%s10065_s3 + $0x60] ss:$16 sps:$4 sm:$0xff]   ;;  %v8309_v44 = vld [vmem:[%s10065_s3 + $0x48] ss:$16 sps:$4 sm:$0xff]  }
  0x28   : > { %592 = vmatpush1.bf16.msra.mxu1 %v8110_v9  ;;  %834 = vmatpush1.bf16.msra.mxu0 %v8116_v10  ;;  %v8151_v16 = vld [vmem:[%s10064_s2 + $0x64] ss:$16 sps:$4 sm:$0xff]   ;;  %v8163_v18 = vld [vmem:[%s10064_s2 + $0x60] ss:$16 sps:$4 sm:$0xff]   ;;  %v8315_v45 = vld [vmem:[%s10065_s3 + $0x6c] ss:$16 sps:$4 sm:$0xff]  }
  0x29   : > { %593 = vmatprep.subr.bf16.mxu1 %v8122_v11  ;;  %835 = vmatprep.subr.bf16.mxu0 %v8127_v12  ;;  %v8168_v19 = vld [vmem:[%s10065_s3 + $0x84] ss:$16 sps:$4 sm:$0xff]   ;;  %v8180_v21 = vld [vmem:[%s10065_s3 + $0x80] ss:$16 sps:$4 sm:$0xff]   ;;  %v8321_v46 = vld [vmem:[%s10065_s3 + $0x68] ss:$16 sps:$4 sm:$0xff]  }
  0x2a   : > { %v8175_v20 = vld [vmem:[%s10064_s2 + $0x84] ss:$16 sps:$4 sm:$0xff]   ;;  %v8185_v22 = vld [vmem:[%s10064_s2 + $0x80] ss:$16 sps:$4 sm:$0xff]   ;;  %v8327_v47 = vld [vmem:[%s10065_s3 + $0x8c] ss:$16 sps:$4 sm:$0xff]  }
  0x2b   : > { %v8192_v23 = vld [vmem:[%s10065_s3 + $0xa4] ss:$16 sps:$4 sm:$0xff]   ;;  %v8206_v25 = vld [vmem:[%s10065_s3 + $0xa0] ss:$16 sps:$4 sm:$0xff]   ;;  %v8335_v48 = vld [vmem:[%s10065_s3 + $0x88] ss:$16 sps:$4 sm:$0xff]  }
  0x2c   : > { %594 = vmatpush1.bf16.msra.mxu1 %v8132_v13  ;;  %836 = vmatpush1.bf16.msra.mxu0 %v8137_v14  ;;  %v8199_v24 = vld [vmem:[%s10064_s2 + $0xa4] ss:$16 sps:$4 sm:$0xff]   ;;  %v8211_v26 = vld [vmem:[%s10064_s2 + $0xa0] ss:$16 sps:$4 sm:$0xff]   ;;  %v8341_v49 = vld [vmem:[%s10065_s3 + $0xac] ss:$16 sps:$4 sm:$0xff]  }
  0x2d   : > { %595 = vmatprep.subr.bf16.mxu1 %v8144_v15  ;;  %837 = vmatprep.subr.bf16.mxu0 %v8151_v16  ;;  %v8218_v27 = vld [vmem:[%s10065_s3 + $0xc4] ss:$16 sps:$4 sm:$0xff]   ;;  %v8230_v29 = vld [vmem:[%s10065_s3 + $0xc0] ss:$16 sps:$4 sm:$0xff]   ;;  %v8349_v50 = vld [vmem:[%s10065_s3 + $0xa8] ss:$16 sps:$4 sm:$0xff]  }
  0x2e   : > { %v8223_v28 = vld [vmem:[%s10064_s2 + $0xc4] ss:$16 sps:$4 sm:$0xff]   ;;  %v8235_v30 = vld [vmem:[%s10064_s2 + $0xc0] ss:$16 sps:$4 sm:$0xff]   ;;  %v8355_v51 = vld [vmem:[%s10065_s3 + $0xcc] ss:$16 sps:$4 sm:$0xff]  }
  0x2f   : > { %v8242_v31 = vld [vmem:[%s10065_s3 + $0xe4] ss:$16 sps:$4 sm:$0xff]   ;;  %v8252_v33 = vld [vmem:[%s10065_s3 + $0xe0] ss:$16 sps:$4 sm:$0xff]   ;;  %v8363_v52 = vld [vmem:[%s10065_s3 + $0xc8] ss:$16 sps:$4 sm:$0xff]  }
  0x30   : > { %596 = vmatpush1.bf16.msra.mxu1 %v8156_v17  ;;  %838 = vmatpush1.bf16.msra.mxu0 %v8163_v18  ;;  %v8247_v32 = vld [vmem:[%s10064_s2 + $0xe4] ss:$16 sps:$4 sm:$0xff]   ;;  %v8257_v34 = vld [vmem:[%s10064_s2 + $0xe0] ss:$16 sps:$4 sm:$0xff]   ;;  %v8369_v53 = vld [vmem:[%s10065_s3 + $0xec] ss:$16 sps:$4 sm:$0xff]  }
  0x31   : > { %597 = vmatprep.subr.bf16.mxu1 %v8168_v19  ;;  %839 = vmatprep.subr.bf16.mxu0 %v8175_v20  ;;  %v361_v35 = vld [vmem:[#allocation2] sm:$0xff]  ;;  %v8377_v54 = vld [vmem:[%s10065_s3 + $0xe8] ss:$16 sps:$4 sm:$0xff]   ;;  %v8383_v55 = vld [vmem:[%s10064_s2 + $0xc] ss:$16 sps:$4 sm:$0xff]   ;;  %vm5714_vm1 = vcmask 57344  }
  0x32   : > { %v8261_v36 = vld [vmem:[#allocation4] sm:$0xff]  ;;  %v396_v38 = vpack.c.bf16 %v361_v35, %v361_v35  ;;  %v8391_v56 = vld [vmem:[%s10064_s2 + $0x8] ss:$16 sps:$4 sm:$0xff]   ;;  %v8397_v57 = vld [vmem:[%s10064_s2 + $0x2c] ss:$16 sps:$4 sm:$0xff]   ;;  %vm5815_vm2 = vcmask 1043456  }
  0x33   : > { %v8272_v39 = vpack.c.bf16 %v8261_v36, %v8261_v36  ;;  %v8405_v58 = vld [vmem:[%s10064_s2 + $0x28] ss:$16 sps:$4 sm:$0xff]   ;;  %v8411_v59 = vld [vmem:[%s10064_s2 + $0x4c] ss:$16 sps:$4 sm:$0xff]   ;;  %vm5811_vm3 = vcmask 64512   ;;  %vm6327_vm4 = vcmask 1041409  }
  0x34   : > { %598 = vmatpush1.bf16.msra.mxu1 %v8180_v21  ;;  %840 = vmatpush1.bf16.msra.mxu0 %v8185_v22  ;;  %v8419_v60 = vld [vmem:[%s10064_s2 + $0x48] ss:$16 sps:$4 sm:$0xff]   ;;  %v8424_v61 = vld [vmem:[%s10064_s2 + $0x6c] ss:$16 sps:$4 sm:$0xff]   ;;  %vm6330_vm5 = vcmask 1042434   ;;  %vm6333_vm6 = vcmask 1043459  }
  0x35   : > { %599 = vmatprep.subr.bf16.mxu1 %v8192_v23  ;;  %841 = vmatprep.subr.bf16.mxu0 %v8199_v24  ;;  %v8431_v62 = vld [vmem:[%s10064_s2 + $0x68] ss:$16 sps:$4 sm:$0xff]   ;;  %v8436_v63 = vld [vmem:[%s10064_s2 + $0x8c] ss:$16 sps:$4 sm:$0xff]   ;;  %vm6336_vm7 = vcmask 1044484   ;;  %vm6339_vm8 = vcmask 1045509  }
  0x36   : > { %v8443_v0 = vld [vmem:[%s10064_s2 + $0x88] ss:$16 sps:$4 sm:$0xff]   ;;  %v8448_v1 = vld [vmem:[%s10064_s2 + $0xac] ss:$16 sps:$4 sm:$0xff]   ;;  %vm6342_vm9 = vcmask 1046534   ;;  %vm6345_vm10 = vcmask 1047559  }
  0x37   : > { %s7118_s22 = sshll.u32 %s7945_s30, 7  ;;  %s6455_s23 = sshll.u32 %s326_s21, 4  ;;  %s10013_s23 = int_to_ptr.vmem [resolvable:$true] %s6455_s23 }
  0x38   : > { %600 = vmatpush1.bf16.msra.mxu1 %v8206_v25  ;;  %842 = vmatpush1.bf16.msra.mxu0 %v8211_v26  ;;  %s10011_s26 = scalar_lea.hbm %s10070_s8, %s7118_s22  ;;  %s6441_s11 = scalar_lea.sflag [#allocation6], %s324_s19 }
  0x39   : > { %601 = vmatprep.subr.bf16.mxu1 %v8218_v27  ;;  %843 = vmatprep.subr.bf16.mxu0 %v8223_v28  ;;  %s7875_s12 = scalar_lea.vmem %s10013_s23, 128  ;;  %s7960_s30 = smov [#allocation5]  }
  0x3a   : > { %p7876_p12 = scmp.ne.s32.totalorder %s10013_s23, %s7875_s12  ;;  %s7879_s14 = sshll.u32 %s7960_s30, 4  ;;  %s7880_s14 = int_to_ptr.vmem [resolvable:$false] %s7879_s14 }
  0x3b   : > { %s7881_s16 = scalar_lea.vmem %s7880_s14, 256  ;;  %p7882_p1 = scmp.lt.s32.totalorder %s10013_s23, %s7880_s14 }
  0x3c   : > { %602 = vmatpush1.bf16.msra.mxu1 %v8230_v29  ;;  %844 = vmatpush1.bf16.msra.mxu0 %v8235_v30  ;;  %p7877_p13 = pnand %p7876_p12, %p8046_p4  ;;  %p7883_p2 = scmp.lt.s32.totalorder %s7881_s16, %s7875_s12 }
  0x3d   : > { %603 = vmatprep.subr.bf16.mxu1 %v8242_v31  ;;  %845 = vmatprep.subr.bf16.mxu0 %v8247_v32 }
  0x3e   : > { %p7878_p0 = pneg %p7877_p13  ;;  %p7884_p3 = por %p7883_p2, %p7882_p1 }
  0x40   : > { %604 = vmatpush1.bf16.msra.mxu1 %v8252_v33  ;;  %846 = vmatpush1.bf16.msra.mxu0 %v8257_v34  ;;  %p7885_p5 = pnand %p7884_p3, %p7878_p0 }
  0x41   : > { %630 = vmatprep.subr.bf16.mxu1 %v8268_v37  ;;  %1196 = vmatprep.subr.bf16.mxu0 %v8074_v2 }
  0x43   : > { %622 = vmatmul.mubr.bf16.vlgmr.msra.gmra.mrb[0].mxu1 %v396_v38  ;;  %864 = vmatmul.mubr.bf16.vlgmr.msra.gmra.mrb[0].mxu0 %v8272_v39 }
  0x44   : > { %631 = vmatpush1.bf16.msra.mxu1 %v8279_v40  ;;  %662 = vmatprep.mubr.bf16.mxu1 %v10071_v4 }
  0x45   : > { %632 = vmatprep.subr.bf16.mxu1 %v8285_v41  ;;  %1197 = vmatpush1.bf16.msra.mxu0 %v8087_v5  ;;  %v8460_v5 = vld [vmem:[%s10064_s2 + $0xcc] ss:$16 sps:$4 sm:$0xff]  }
  0x46   : > { %1198 = vmatprep.subr.bf16.mxu0 %v8098_v7  ;;  %1228 = vmatprep.mubr.bf16.mxu0 %v10071_v4 }
  0x48   : > { %633 = vmatpush1.bf16.msra.mxu1 %v8293_v42 }
  0x49   : > { %634 = vmatprep.subr.bf16.mxu1 %v8300_v43  ;;  %1199 = vmatpush1.bf16.msra.mxu0 %v8110_v9 }
  0x4a   : > { %1200 = vmatprep.subr.bf16.mxu0 %v8122_v11 }
  0x4c   : > { %635 = vmatpush1.bf16.msra.mxu1 %v8309_v44 }
  0x4d   : > { %636 = vmatprep.subr.bf16.mxu1 %v8315_v45  ;;  %1201 = vmatpush1.bf16.msra.mxu0 %v8132_v13 }
  0x4e   : > { %1202 = vmatprep.subr.bf16.mxu0 %v8144_v15 }
  0x50   : > { %637 = vmatpush1.bf16.msra.mxu1 %v8321_v46 }
  0x51   : > { %638 = vmatprep.subr.bf16.mxu1 %v8327_v47  ;;  %1203 = vmatpush1.bf16.msra.mxu0 %v8156_v17 }
  0x52   : > { %1204 = vmatprep.subr.bf16.mxu0 %v8168_v19  ;;  %v8467_v19 = vld [vmem:[%s10064_s2 + $0xc8] ss:$16 sps:$4 sm:$0xff]  }
  0x54   : > { %639 = vmatpush1.bf16.msra.mxu1 %v8335_v48 }
  0x55   : > { %640 = vmatprep.subr.bf16.mxu1 %v8341_v49  ;;  %1205 = vmatpush1.bf16.msra.mxu0 %v8180_v21  ;;  %v8472_v21 = vld [vmem:[%s10064_s2 + $0xec] ss:$16 sps:$4 sm:$0xff]  }
  0x56   : > { %1206 = vmatprep.subr.bf16.mxu0 %v8192_v23  ;;  %v8479_v23 = vld [vmem:[%s10064_s2 + $0xe8] ss:$16 sps:$4 sm:$0xff]  }
  0x58   : > { %641 = vmatpush1.bf16.msra.mxu1 %v8349_v50 }
  0x59   : > { %642 = vmatprep.subr.bf16.mxu1 %v8355_v51  ;;  %1207 = vmatpush1.bf16.msra.mxu0 %v8206_v25  ;;  %v967_v25 = vld [vmem:[#allocation2 + $0x8] sm:$0xff] }
  0x5a   : > { %1208 = vmatprep.subr.bf16.mxu0 %v8218_v27  ;;  %v1003_v27 = vpack.c.bf16 %v967_v25, %v967_v25 }
  0x5c   : > { %643 = vmatpush1.bf16.msra.mxu1 %v8363_v52 }
  0x5d   : > { %644 = vmatprep.subr.bf16.mxu1 %v8369_v53  ;;  %1209 = vmatpush1.bf16.msra.mxu0 %v8230_v29 }
  0x5e   : > { %1210 = vmatprep.subr.bf16.mxu0 %v8242_v31 }
  0x60   : > { %645 = vmatpush1.bf16.msra.mxu1 %v8377_v54 }
  0x61   : > { %872 = vmatprep.subr.bf16.mxu1 %v8383_v55  ;;  %1211 = vmatpush1.bf16.msra.mxu0 %v8252_v33 }
  0x62   : > { %1438 = vmatprep.subr.bf16.mxu0 %v8079_v3  ;;  %v8455_v3 = vld [vmem:[%s10064_s2 + $0xa8] ss:$16 sps:$4 sm:$0xff]  }
  0x63   : > { %663 = vmatmul.mubr.bf16.vlgmr.msra.gmra.mrb[4].mxu1 %v396_v38 }
  0x64   : > { %873 = vmatpush1.bf16.msra.mxu1 %v8391_v56  ;;  %904 = vmatprep.mubr.bf16.mxu1 %v10071_v4 }
  0x65   : > { %874 = vmatprep.subr.bf16.mxu1 %v8397_v57  ;;  %1229 = vmatmul.mubr.bf16.vlgmr.msra.gmra.mrb[4].mxu0 %v1003_v27 }
  0x66   : > { %1439 = vmatpush1.bf16.msra.mxu0 %v8092_v6  ;;  %1470 = vmatprep.mubr.bf16.mxu0 %v10071_v4 }
  0x67   : > { %1440 = vmatprep.subr.bf16.mxu0 %v8105_v8 }
  0x68   : > { %875 = vmatpush1.bf16.msra.mxu1 %v8405_v58 }
  0x69   : > { %876 = vmatprep.subr.bf16.mxu1 %v8411_v59 }
  0x6a   : > { %1441 = vmatpush1.bf16.msra.mxu0 %v8116_v10 }
  0x6b   : > { %1442 = vmatprep.subr.bf16.mxu0 %v8127_v12 }
  0x6c   : > { %877 = vmatpush1.bf16.msra.mxu1 %v8419_v60 }
  0x6d   : > { %878 = vmatprep.subr.bf16.mxu1 %v8424_v61 }
  0x6e   : > { %1443 = vmatpush1.bf16.msra.mxu0 %v8137_v14 }
  0x6f   : > { %1444 = vmatprep.subr.bf16.mxu0 %v8151_v16 }
  0x70   : > { %879 = vmatpush1.bf16.msra.mxu1 %v8431_v62 }
  0x71   : > { %880 = vmatprep.subr.bf16.mxu1 %v8436_v63 }
  0x72   : > { %1445 = vmatpush1.bf16.msra.mxu0 %v8163_v18 }
  0x73   : > { %1446 = vmatprep.subr.bf16.mxu0 %v8175_v20 }
  0x74   : > { %881 = vmatpush1.bf16.msra.mxu1 %v8443_v0 }
  0x75   : > { %882 = vmatprep.subr.bf16.mxu1 %v8448_v1 }
  0x76   : > { %1447 = vmatpush1.bf16.msra.mxu0 %v8185_v22 }
  0x77   : > { %1448 = vmatprep.subr.bf16.mxu0 %v8199_v24 }
  0x78   : > { %883 = vmatpush1.bf16.msra.mxu1 %v8455_v3 }
  0x79   : > { %884 = vmatprep.subr.bf16.mxu1 %v8460_v5 }
  0x7a   : > { %1449 = vmatpush1.bf16.msra.mxu0 %v8211_v26  ;;  %v915_v26 = vlaneseq }
  0x7b   : > { %1450 = vmatprep.subr.bf16.mxu0 %v8223_v28 }
  0x7c   : > { %885 = vmatpush1.bf16.msra.mxu1 %v8467_v19  ;;  %v8537_v28 = vshrl.u32 %v915_v26, 7 }
  0x7d   : > { %886 = vmatprep.subr.bf16.mxu1 %v8472_v21 }
  0x7e   : > { %1451 = vmatpush1.bf16.msra.mxu0 %v8235_v30  ;;  %10151 = vst [vmem:[#allocation8_spill] sm:$0xff] %v8537_v28  ;;  %v8540_v31 = vsub.s32 1, %v8537_v28  ;;  %v8546_v33 = vsub.s32 0, %v8537_v28 }
  0x7f   : > { %1452 = vmatprep.subr.bf16.mxu0 %v8247_v32  ;;  %v913_v32 = vld [vmem:[%s10066_s4] sm:$0xf] }
  0x80   : > { %887 = vmatpush1.bf16.msra.mxu1 %v8479_v23  ;;  %10152 = vst [vmem:[#allocation9_spill] sm:$0xff] %v8540_v31  ;;  %10153 = vst [vmem:[#allocation10_spill] sm:$0xff] %v8546_v33  ;;  %v922_v35 = vrot.slane %v913_v32, %v8540_v31 }
  0x81   : > { %1237 = vmatprep.subr.bf16.mxu1 %v8268_v37 }
  0x82   : > { %1453 = vmatpush1.bf16.msra.mxu0 %v8257_v34 }
  0x83   : > { %905 = vmatmul.mubr.bf16.vlgmr.msra.gmra.mrb[8].mxu1 %v8272_v39  ;;  %1803 = vmatprep.subr.bf16.mxu0 %v8074_v2 }
  0x84   : > { %1238 = vmatpush1.bf16.msra.mxu1 %v8279_v40  ;;  %1269 = vmatprep.mubr.bf16.mxu1 %v10071_v4 }
  0x85   : > { %1239 = vmatprep.subr.bf16.mxu1 %v8285_v41 }
  0x88   : > { %1240 = vmatpush1.bf16.msra.mxu1 %v8293_v42 }
  0x89   : > { %1241 = vmatprep.subr.bf16.mxu1 %v8300_v43 }
  0x8c   : > { %1242 = vmatpush1.bf16.msra.mxu1 %v8309_v44 }
  0x8d   : > { %1243 = vmatprep.subr.bf16.mxu1 %v8315_v45 }
  0x90   : > { %1244 = vmatpush1.bf16.msra.mxu1 %v8321_v46 }
  0x91   : > { %1245 = vmatprep.subr.bf16.mxu1 %v8327_v47 }
  0x94   : > { %1246 = vmatpush1.bf16.msra.mxu1 %v8335_v48 }
  0x95   : > { %1247 = vmatprep.subr.bf16.mxu1 %v8341_v49 }
  0x98   : > { %1248 = vmatpush1.bf16.msra.mxu1 %v8349_v50 }
  0x99   : > { %1249 = vmatprep.subr.bf16.mxu1 %v8355_v51 }
  0x9c   : > { %1250 = vmatpush1.bf16.msra.mxu1 %v8363_v52 }
  0x9d   : > { %1251 = vmatprep.subr.bf16.mxu1 %v8369_v53 }
  0xa0   : > { %1252 = vmatpush1.bf16.msra.mxu1 %v8377_v54 }
  0xa1   : > { %1479 = vmatprep.subr.bf16.mxu1 %v8383_v55 }
  0xa3   : > { %1270 = vmatmul.mubr.bf16.vlgmr.msra.gmra.mrb[12].mxu1 %v1003_v27 }
  0xa4   : > { %1480 = vmatpush1.bf16.msra.mxu1 %v8391_v56  ;;  %1511 = vmatprep.mubr.bf16.mxu1 %v10071_v4 }
  0xa5   : > { %1481 = vmatprep.subr.bf16.mxu1 %v8397_v57 }
  0xa8   : > { %1482 = vmatpush1.bf16.msra.mxu1 %v8405_v58 }
  0xa9   : > { %1483 = vmatprep.subr.bf16.mxu1 %v8411_v59 }
  0xac   : > { %1484 = vmatpush1.bf16.msra.mxu1 %v8419_v60 }
  0xad   : > { %1485 = vmatprep.subr.bf16.mxu1 %v8424_v61 }
  0xb0   : > { %1486 = vmatpush1.bf16.msra.mxu1 %v8431_v62 }
  0xb1   : > { %1487 = vmatprep.subr.bf16.mxu1 %v8436_v63 }
  0xb4   : > { %1488 = vmatpush1.bf16.msra.mxu1 %v8443_v0 }
  0xb5   : > { %1489 = vmatprep.subr.bf16.mxu1 %v8448_v1 }
  0xb8   : > { %1490 = vmatpush1.bf16.msra.mxu1 %v8455_v3 }
  0xb9   : > { %1491 = vmatprep.subr.bf16.mxu1 %v8460_v5 }
  0xbc   : > { %1492 = vmatpush1.bf16.msra.mxu1 %v8467_v19 }
  0xbd   : > { %1493 = vmatprep.subr.bf16.mxu1 %v8472_v21 }
  0xc0   : > { %1494 = vmatpush1.bf16.msra.mxu1 %v8479_v23 }
  0xc1   : > { %1844 = vmatprep.subr.bf16.mxu1 %v8268_v37  ;;  %v918_v37 = vrot.slane %v913_v32, %v8546_v33 }
 0x116   : > { %v623_v6 = vpop.f32.mrb[0].mxu1  ;;  %v865_v8 = vpop.f32.mrb[0].mxu0 }
 0x117   : > { %v866_v10 = vadd.f32 %v865_v8, %v623_v6  ;;  %v625_v12 = vpop.f32.mrb[1].mxu1  ;;  %v867_v14 = vpop.f32.mrb[1].mxu0  ;;  %v8551_v6 = vsub.s32 2, %v8537_v28 }
 0x118   : > { %v868_v16 = vadd.f32 %v867_v14, %v625_v12  ;;  %v627_v18 = vpop.f32.mrb[2].mxu1  ;;  %v869_v20 = vpop.f32.mrb[2].mxu0  ;;  %v8554_v12 = vsub.s32 3, %v8537_v28 }
 0x119   : > { %v628_v22 = vpop.f32.mrb[3].mxu1  ;;  %v870_v24 = vpop.f32.mrb[3].mxu0  ;;  %v935_v39 = vadd.f32 %v918_v37, %v866_v10  ;;  %10154 = vst [vmem:[#allocation11_spill] sm:$0xff] %v8551_v6  ;;  %v926_v20 = vrot.slane %v913_v32, %v8551_v6 }
 0x11a   : > { %v936_v38 = vadd.f32 %v922_v35, %v868_v16  ;;  %v930_v16 = vrot.slane %v913_v32, %v8554_v12 }
 0x11b   : > { %v6613_v27 = vmul.f32 -1.442695, %v935_v39 }
 0x11c   : > { %v6614_v25 = vmul.f32 -1.442695, %v936_v38 }
 0x11e   : > { %7712 = vpow2.f32 %v6614_v25 }
 0x11f   : > { %7714 = vpow2.f32 %v6613_v27  ;;  %v362_v27 = vld [vmem:[#allocation3] sm:$0xff] }
 0x128   : > { %v7713_v8 = vpop.eup %7712 }
 0x129   : > { %v7715_v14 = vpop.eup %7714  ;;  %v948_v18 = vadd.f32 1.0, %v7713_v8 }
 0x12a   : > { %v942_v22 = vadd.f32 1.0, %v7715_v14 }
 0x12b   : > { %7716 = vrcp.f32 %v948_v18 }
 0x12c   : > { %7718 = vrcp.f32 %v942_v22 }
 0x135   : > { %v7717_v25 = vpop.eup %7716 }
 0x136   : > { %v664_v29 = vpop.f32.mrb[4].mxu1  ;;  %v7719_v8 = vpop.eup %7718  ;;  %v958_v14 = vmul.f32 %v7717_v25, %v362_v27 }
 0x137   : > { %v666_v30 = vpop.f32.mrb[5].mxu1 }
 0x138   : > { %v668_v2 = vpop.f32.mrb[6].mxu1 }
 0x139   : > { %v669_v34 = vpop.f32.mrb[7].mxu1 }
 0x156   : > { %v906_v24 = vpop.f32.mrb[8].mxu1 }
 0x157   : > { %v907_v10 = vadd.f32 %v906_v24, %v664_v29  ;;  %v908_v26 = vpop.f32.mrb[9].mxu1 }
 0x158   : > { %v909_v2 = vadd.f32 %v908_v26, %v666_v30  ;;  %v910_v34 = vpop.f32.mrb[10].mxu1 }
 0x159   : > { %v937_v35 = vadd.f32 %v926_v20, %v907_v10  ;;  %v911_v37 = vpop.f32.mrb[11].mxu1 }
 0x15a   : > { %v938_v38 = vadd.f32 %v930_v16, %v909_v2 }
 0x15b   : > { %7720 = vtanh.f32 %v937_v35 }
 0x15c   : > { %v6615_v39 = vmul.f32 -1.442695, %v938_v38 }
 0x15e   : > { %7722 = vpow2.f32 %v6615_v39 }
 0x165   : > { %v7721_v4 = vpop.eup %7720 }
 0x166   : > { %v959_v28 = vmul.f32 %v7721_v4, %v7719_v8  ;;  %v7874_v4 = vld [vmem:[%s10065_s3] ss:$16 sps:$4 sm:$0xff]  }
 0x168   : > { %v7723_v6 = vpop.eup %7722  ;;  %v960_v32 = vadd.f32 %v959_v28, %v958_v14  ;;  %v10155_v28 = vmov 0  }
 0x169   : > { %v955_v29 = vadd.f32 1.0, %v7723_v6 }
 0x16a   : > { %7724 = vtanh.f32 %v960_v32  ;;  %964 = vst [vmem:[#allocation3] sm:$0xff] %v960_v32 }
 0x16b   : > { %7726 = vrcp.f32 %v955_v29 }
 0x174   : > { %v7725_v30 = vpop.eup %7724 }
 0x175   : > { %v7727_v18 = vpop.eup %7726 }
 0x176   : > { %v962_v20 = vmul.f32 %v7727_v18, %v7725_v30 }
 0x178   : > { %963 = vst [vmem:[#allocation2] sm:$0xff] %v962_v20  ;;  %v8559_v22 = vadd.f32 %v962_v20, %v8261_v36 }
 0x17a   : > { %v970_v24 = vpack.c.bf16 %v8559_v22, %v8559_v22 }
 0x17c   : > { %1471 = vmatmul.mubr.bf16.vlgmr.msra.gmra.mrb[8].mxu0 %v970_v24  ;;  %1512 = vmatmul.mubr.bf16.vlgmr.msra.gmra.mrb[16].mxu1 %v970_v24  ;;  %v10171_v24 = vld [vmem:[#allocation11_spill] sm:$0xff] }
 0x17d   : > { %1804 = vmatpush1.bf16.msra.mxu0 %v7874_v4  ;;  %1845 = vmatpush1.bf16.msra.mxu1 %v8279_v40 }
 0x17e   : > { %1805 = vmatprep.subr.bf16.mxu0 %v8098_v7  ;;  %1846 = vmatprep.subr.bf16.mxu1 %v8285_v41  ;;  %v8590_v7 = vpop.f32.mrb[4].mxu0  ;;  %v8601_v41 = vld [vmem:[%s10065_s3 + $0x84] ss:$16 sps:$4 sm:$0xff]  }
 0x17f   : > { %1835 = vmatprep.mubr.bf16.mxu0 %v10155_v28  ;;  %1876 = vmatprep.mubr.bf16.mxu1 %v10155_v28 }
 0x181   : > { %1806 = vmatpush1.bf16.msra.mxu0 %v8110_v9  ;;  %1847 = vmatpush1.bf16.msra.mxu1 %v8293_v42  ;;  %v8592_v9 = vpop.f32.mrb[12].mxu1  ;;  %v8606_v42 = vld [vmem:[%s10065_s3 + $0x80] ss:$16 sps:$4 sm:$0xff]  }
 0x182   : > { %1807 = vmatprep.subr.bf16.mxu0 %v8122_v11  ;;  %1848 = vmatprep.subr.bf16.mxu1 %v8300_v43  ;;  %v8594_v11 = vpop.f32.mrb[5].mxu0  ;;  %v8613_v43 = vld [vmem:[%s10065_s3 + $0xa4] ss:$16 sps:$4 sm:$0xff]  }
 0x185   : > { %1808 = vmatpush1.bf16.msra.mxu0 %v8132_v13  ;;  %1849 = vmatpush1.bf16.msra.mxu1 %v8309_v44  ;;  %v8596_v13 = vpop.f32.mrb[13].mxu1  ;;  %v8618_v44 = vld [vmem:[%s10065_s3 + $0xa0] ss:$16 sps:$4 sm:$0xff]  }
 0x186   : > { %1809 = vmatprep.subr.bf16.mxu0 %v8144_v15  ;;  %1850 = vmatprep.subr.bf16.mxu1 %v8315_v45  ;;  %v1234_v15 = vpop.f32.mrb[6].mxu0  ;;  %v8625_v45 = vld [vmem:[%s10065_s3 + $0xc4] ss:$16 sps:$4 sm:$0xff]  }
 0x187   : > { %v1235_v36 = vpop.f32.mrb[7].mxu0 }
 0x189   : > { %1810 = vmatpush1.bf16.msra.mxu0 %v8156_v17  ;;  %1851 = vmatpush1.bf16.msra.mxu1 %v8321_v46  ;;  %v1275_v17 = vpop.f32.mrb[14].mxu1  ;;  %v8630_v46 = vld [vmem:[%s10065_s3 + $0xc0] ss:$16 sps:$4 sm:$0xff]  }
 0x18a   : > { %1852 = vmatprep.subr.bf16.mxu1 %v8327_v47  ;;  %v1276_v40 = vpop.f32.mrb[15].mxu1  ;;  %1811 = vmatprep.subr.bf16.mxu0 %v8601_v41  ;;  %v8637_v47 = vld [vmem:[%s10065_s3 + $0xe4] ss:$16 sps:$4 sm:$0xff]  }
 0x18d   : > { %1853 = vmatpush1.bf16.msra.mxu1 %v8335_v48  ;;  %1812 = vmatpush1.bf16.msra.mxu0 %v8606_v42  ;;  %v8642_v48 = vld [vmem:[%s10065_s3 + $0xe0] ss:$16 sps:$4 sm:$0xff]  }
 0x18e   : > { %1854 = vmatprep.subr.bf16.mxu1 %v8341_v49  ;;  %1813 = vmatprep.subr.bf16.mxu0 %v8613_v43  ;;  %v1574_v49 = vld [vmem:[#allocation2 + $0x10] sm:$0xff] }
 0x191   : > { %1855 = vmatpush1.bf16.msra.mxu1 %v8349_v50  ;;  %1814 = vmatpush1.bf16.msra.mxu0 %v8618_v44  ;;  %v1610_v50 = vpack.c.bf16 %v1574_v49, %v1574_v49  ;;  %v969_v49 = vld [vmem:[#allocation3 + $0x8] sm:$0xff] }
 0x192   : > { %1856 = vmatprep.subr.bf16.mxu1 %v8355_v51  ;;  %1815 = vmatprep.subr.bf16.mxu0 %v8625_v45  ;;  %v8649_v51 = vld [vmem:[%s10064_s2 + $0x4] ss:$16 sps:$4 sm:$0xff]  }
 0x195   : > { %1857 = vmatpush1.bf16.msra.mxu1 %v8363_v52  ;;  %1816 = vmatpush1.bf16.msra.mxu0 %v8630_v46  ;;  %v8654_v52 = vld [vmem:[%s10064_s2] ss:$16 sps:$4 sm:$0xff]  }
 0x196   : > { %1858 = vmatprep.subr.bf16.mxu1 %v8369_v53  ;;  %1817 = vmatprep.subr.bf16.mxu0 %v8637_v47  ;;  %v8665_v53 = vld [vmem:[%s10064_s2 + $0x24] ss:$16 sps:$4 sm:$0xff]  }
 0x199   : > { %1859 = vmatpush1.bf16.msra.mxu1 %v8377_v54  ;;  %1818 = vmatpush1.bf16.msra.mxu0 %v8642_v48  ;;  %v8670_v54 = vld [vmem:[%s10064_s2 + $0x20] ss:$16 sps:$4 sm:$0xff]  }
 0x19a   : > { %2086 = vmatprep.subr.bf16.mxu1 %v8383_v55  ;;  %2045 = vmatprep.subr.bf16.mxu0 %v8649_v51  ;;  %10156 = vst [vmem:[#allocation12_spill] sm:$0xff] %v8670_v54  ;;  %v8679_v55 = vld [vmem:[%s10064_s2 + $0x44] ss:$16 sps:$4 sm:$0xff]  }
 0x19b   : > { %10157 = vst [vmem:[#allocation13_spill] sm:$0xff] %v8679_v55 }
 0x19c   : > { %1836 = vmatmul.mubr.bf16.vlgmr.msra.gmra.mrb[12].mxu0 %v1610_v50  ;;  %1877 = vmatmul.mubr.bf16.vlgmr.msra.gmra.mrb[20].mxu1 %v1610_v50 }
 0x19d   : > { %2087 = vmatpush1.bf16.msra.mxu1 %v8391_v56  ;;  %2077 = vmatprep.mubr.bf16.mxu0 %v10155_v28  ;;  %v8684_v56 = vld [vmem:[%s10064_s2 + $0x40] ss:$16 sps:$4 sm:$0xff]  }
 0x19e   : > { %2088 = vmatprep.subr.bf16.mxu1 %v8397_v57  ;;  %2046 = vmatpush1.bf16.msra.mxu0 %v8654_v52  ;;  %10158 = vst [vmem:[#allocation14_spill] sm:$0xff] %v8684_v56  ;;  %v8693_v57 = vld [vmem:[%s10064_s2 + $0x64] ss:$16 sps:$4 sm:$0xff]  }
 0x19f   : > { %2118 = vmatprep.mubr.bf16.mxu1 %v10155_v28  ;;  %2047 = vmatprep.subr.bf16.mxu0 %v8665_v53  ;;  %10159 = vst [vmem:[#allocation15_spill] sm:$0xff] %v8693_v57 }
 0x1a1   : > { %2089 = vmatpush1.bf16.msra.mxu1 %v8405_v58  ;;  %v8698_v58 = vld [vmem:[%s10064_s2 + $0x60] ss:$16 sps:$4 sm:$0xff]  }
 0x1a2   : > { %2090 = vmatprep.subr.bf16.mxu1 %v8411_v59  ;;  %2048 = vmatpush1.bf16.msra.mxu0 %v8670_v54  ;;  %10160 = vst [vmem:[#allocation16_spill] sm:$0xff] %v8698_v58  ;;  %v8707_v59 = vld [vmem:[%s10064_s2 + $0x80] ss:$16 sps:$4 sm:$0xff]  }
 0x1a3   : > { %2049 = vmatprep.subr.bf16.mxu0 %v8679_v55  ;;  %10161 = vst [vmem:[#allocation17_spill] sm:$0xff] %v8707_v59 }
 0x1a5   : > { %2091 = vmatpush1.bf16.msra.mxu1 %v8419_v60  ;;  %v8712_v60 = vld [vmem:[%s10064_s2 + $0x84] ss:$16 sps:$4 sm:$0xff]  }
 0x1a6   : > { %2092 = vmatprep.subr.bf16.mxu1 %v8424_v61  ;;  %2050 = vmatpush1.bf16.msra.mxu0 %v8684_v56  ;;  %10162 = vst [vmem:[#allocation18_spill] sm:$0xff] %v8712_v60  ;;  %v8718_v61 = vld [vmem:[%s10064_s2 + $0xa4] ss:$16 sps:$4 sm:$0xff]  }
 0x1a7   : > { %2051 = vmatprep.subr.bf16.mxu0 %v8693_v57  ;;  %10163 = vst [vmem:[#allocation19_spill] sm:$0xff] %v8718_v61 }
 0x1a9   : > { %2093 = vmatpush1.bf16.msra.mxu1 %v8431_v62  ;;  %v8726_v62 = vld [vmem:[%s10064_s2 + $0xa0] ss:$16 sps:$4 sm:$0xff]  }
 0x1aa   : > { %2094 = vmatprep.subr.bf16.mxu1 %v8436_v63  ;;  %2052 = vmatpush1.bf16.msra.mxu0 %v8698_v58  ;;  %10164 = vst [vmem:[#allocation20_spill] sm:$0xff] %v8726_v62  ;;  %v8732_v63 = vld [vmem:[%s10064_s2 + $0xc4] ss:$16 sps:$4 sm:$0xff]  }
 0x1ab   : > { %2053 = vmatprep.subr.bf16.mxu0 %v8712_v60  ;;  %10165 = vst [vmem:[#allocation21_spill] sm:$0xff] %v8732_v63 }
 0x1ad   : > { %2095 = vmatpush1.bf16.msra.mxu1 %v8443_v0  ;;  %v8740_v0 = vld [vmem:[%s10064_s2 + $0xc0] ss:$16 sps:$4 sm:$0xff]  }
 0x1ae   : > { %2096 = vmatprep.subr.bf16.mxu1 %v8448_v1  ;;  %2054 = vmatpush1.bf16.msra.mxu0 %v8707_v59  ;;  %10166 = vst [vmem:[#allocation22_spill] sm:$0xff] %v8740_v0  ;;  %v8746_v1 = vld [vmem:[%s10064_s2 + $0xe4] ss:$16 sps:$4 sm:$0xff]  }
 0x1af   : > { %2055 = vmatprep.subr.bf16.mxu0 %v8718_v61  ;;  %10167 = vst [vmem:[#allocation23_spill] sm:$0xff] %v8746_v1 }
 0x1b1   : > { %2097 = vmatpush1.bf16.msra.mxu1 %v8455_v3  ;;  %v8754_v3 = vld [vmem:[%s10064_s2 + $0xe0] ss:$16 sps:$4 sm:$0xff]  }
 0x1b2   : > { %2098 = vmatprep.subr.bf16.mxu1 %v8460_v5  ;;  %2056 = vmatpush1.bf16.msra.mxu0 %v8726_v62  ;;  %10168 = vst [vmem:[#allocation24_spill] sm:$0xff] %v8754_v3  ;;  %v8762_v5 = vld [vmem:[%s10065_s3 + $0x4] ss:$16 sps:$4 sm:$0xff]  }
 0x1b3   : > { %2057 = vmatprep.subr.bf16.mxu0 %v8732_v63  ;;  %10169 = vst [vmem:[#allocation25_spill] sm:$0xff] %v8762_v5 }
 0x1b5   : > { %2099 = vmatpush1.bf16.msra.mxu1 %v8467_v19  ;;  %v8767_v19 = vld [vmem:[%s10065_s3 + $0xc] ss:$16 sps:$4 sm:$0xff]  }
 0x1b6   : > { %2100 = vmatprep.subr.bf16.mxu1 %v8472_v21  ;;  %2058 = vmatpush1.bf16.msra.mxu0 %v8740_v0  ;;  %10170 = vst [vmem:[#allocation26_spill] sm:$0xff] %v8767_v19  ;;  %v1520_v21 = vld [vmem:[%s10066_s4] sm:$0xf] }
 0x1b7   : > { %2059 = vmatprep.subr.bf16.mxu0 %v8746_v1  ;;  %v1529_v10 = vrot.slane %v1520_v21, %v8540_v31  ;;  %v1537_v18 = vrot.slane %v1520_v21, %v8554_v12  ;;  %v1533_v4 = vrot.slane %v1520_v21, %v10171_v24 }
 0x1b9   : > { %2101 = vmatpush1.bf16.msra.mxu1 %v8479_v23  ;;  %v1525_v23 = vrot.slane %v1520_v21, %v8546_v33 }
 0x1ba   : > { %2060 = vmatpush1.bf16.msra.mxu0 %v8754_v3  ;;  %2451 = vmatprep.subr.bf16.mxu1 %v8767_v19 }
 0x1bb   : > { %2410 = vmatprep.subr.bf16.mxu0 %v8762_v5 }
 0x24f   : > { %v1472_v6 = vpop.f32.mrb[8].mxu0  ;;  %v1513_v16 = vpop.f32.mrb[16].mxu1 }
 0x250   : > { %v1473_v26 = vadd.f32 %v1472_v6, %v8590_v7  ;;  %v1514_v2 = vadd.f32 %v1513_v16, %v8592_v9  ;;  %v1474_v34 = vpop.f32.mrb[9].mxu0  ;;  %v1515_v35 = vpop.f32.mrb[17].mxu1 }
 0x251   : > { %v1475_v37 = vadd.f32 %v1474_v34, %v8594_v11  ;;  %v1516_v38 = vadd.f32 %v1515_v35, %v8596_v13  ;;  %v1476_v39 = vpop.f32.mrb[10].mxu0  ;;  %v1517_v25 = vpop.f32.mrb[18].mxu1 }
 0x252   : > { %v1542_v27 = vadd.f32 %v1525_v23, %v1473_v26  ;;  %v1477_v8 = vpop.f32.mrb[11].mxu0  ;;  %v1518_v14 = vpop.f32.mrb[19].mxu1  ;;  %v1544_v9 = vadd.f32 %v1533_v4, %v1514_v2  ;;  %v8800_v25 = vld [vmem:[%s10065_s3 + $0x24] ss:$16 sps:$4 sm:$0xff]  }
 0x253   : > { %v1543_v32 = vadd.f32 %v1529_v10, %v1475_v37  ;;  %v1545_v20 = vadd.f32 %v1537_v18, %v1516_v38  ;;  %v8788_v37 = vld [vmem:[%s10065_s3] ss:$16 sps:$4 sm:$0xff]   ;;  %v8793_v38 = vld [vmem:[%s10065_s3 + $0x8] ss:$16 sps:$4 sm:$0xff]   ;;  %v8824_v14 = vld [vmem:[%s10065_s3 + $0x44] ss:$16 sps:$4 sm:$0xff]  }
 0x254   : > { %v6680_v29 = vmul.f32 -1.442695, %v1542_v27  ;;  %v8812_v27 = vld [vmem:[%s10065_s3 + $0x20] ss:$16 sps:$4 sm:$0xff]   ;;  %v8817_v8 = vld [vmem:[%s10065_s3 + $0x28] ss:$16 sps:$4 sm:$0xff]  }
 0x255   : > { %v6681_v30 = vmul.f32 -1.442695, %v1543_v32  ;;  %v6682_v7 = vmul.f32 -1.442695, %v1545_v20  ;;  %v8829_v32 = vld [vmem:[%s10065_s3 + $0x4c] ss:$16 sps:$4 sm:$0xff]  }
 0x256   : > { %7728 = vpow2.f32 %v6680_v29  ;;  %v8838_v29 = vld [vmem:[%s10065_s3 + $0x40] ss:$16 sps:$4 sm:$0xff]   ;;  %v8850_v18 = vld [vmem:[%s10065_s3 + $0x64] ss:$16 sps:$4 sm:$0xff]  }
 0x257   : > { %7730 = vpow2.f32 %v6681_v30  ;;  %v8843_v30 = vld [vmem:[%s10065_s3 + $0x48] ss:$16 sps:$4 sm:$0xff]   ;;  %v8857_v20 = vld [vmem:[%s10065_s3 + $0x60] ss:$16 sps:$4 sm:$0xff]  }
 0x258   : > { %7732 = vpow2.f32 %v6682_v7 }
 0x259   : > { %7734 = vtanh.f32 %v1544_v9 }
 0x260   : > { %v7729_v11 = vpop.eup %7728 }
 0x261   : > { %v7731_v15 = vpop.eup %7730  ;;  %v1549_v13 = vadd.f32 1.0, %v7729_v11 }
 0x262   : > { %v1555_v17 = vadd.f32 1.0, %v7731_v15  ;;  %v7733_v36 = vpop.eup %7732 }
 0x263   : > { %7736 = vrcp.f32 %v1549_v13  ;;  %v7735_v40 = vpop.eup %7734  ;;  %v1562_v16 = vadd.f32 1.0, %v7733_v36 }
 0x264   : > { %7738 = vrcp.f32 %v1555_v17 }
 0x265   : > { %7740 = vrcp.f32 %v1562_v16  ;;  %v8910_v16 = vld [vmem:[%s10065_s3 + $0xa8] ss:$16 sps:$4 sm:$0xff]  }
 0x26d   : > { %v7737_v50 = vpop.eup %7736 }
 0x26e   : > { %v7739_v23 = vpop.eup %7738  ;;  %v1566_v6 = vmul.f32 %v7737_v50, %v7735_v40  ;;  %v8881_v40 = vld [vmem:[%s10065_s3 + $0x6c] ss:$16 sps:$4 sm:$0xff]  }
 0x26f   : > { %v1565_v10 = vmul.f32 %v7739_v23, %v969_v49  ;;  %v7741_v21 = vpop.eup %7740  ;;  %v8870_v4 = vpop.f32.mrb[12].mxu0  ;;  %v8886_v49 = vld [vmem:[%s10065_s3 + $0x68] ss:$16 sps:$4 sm:$0xff]   ;;  %v8893_v50 = vld [vmem:[%s10065_s3 + $0x8c] ss:$16 sps:$4 sm:$0xff]  }
 0x270   : > { %v8872_v7 = vpop.f32.mrb[20].mxu1  ;;  %v8874_v9 = vpop.f32.mrb[13].mxu0  ;;  %v8898_v23 = vld [vmem:[%s10065_s3 + $0x88] ss:$16 sps:$4 sm:$0xff]  }
 0x271   : > { %v1567_v26 = vadd.f32 %v1566_v6, %v1565_v10  ;;  %v8876_v11 = vpop.f32.mrb[21].mxu1  ;;  %v1841_v15 = vpop.f32.mrb[14].mxu0  ;;  %v8905_v6 = vld [vmem:[%s10065_s3 + $0xac] ss:$16 sps:$4 sm:$0xff]  }
 0x272   : > { %v1882_v13 = vpop.f32.mrb[22].mxu1  ;;  %v1842_v17 = vpop.f32.mrb[15].mxu0  ;;  %v8917_v10 = vld [vmem:[%s10065_s3 + $0xcc] ss:$16 sps:$4 sm:$0xff]  }
 0x273   : > { %7742 = vtanh.f32 %v1567_v26  ;;  %1571 = vst [vmem:[#allocation3 + $0x8] sm:$0xff] %v1567_v26  ;;  %v1883_v36 = vpop.f32.mrb[23].mxu1  ;;  %v8922_v26 = vld [vmem:[%s10065_s3 + $0xc8] ss:$16 sps:$4 sm:$0xff]   ;;  %v8941_v15 = vld [vmem:[%s10064_s2 + $0xc] ss:$16 sps:$4 sm:$0xff]  }
 0x274   : > { %v8946_v13 = vld [vmem:[%s10064_s2 + $0x8] ss:$16 sps:$4 sm:$0xff]   ;;  %v8956_v17 = vld [vmem:[%s10064_s2 + $0x2c] ss:$16 sps:$4 sm:$0xff]  }
 0x275   : > { %v8962_v36 = vld [vmem:[%s10064_s2 + $0x28] ss:$16 sps:$4 sm:$0xff]  }
 0x276   : > { %10172 = vst [vmem:[#allocation11_spill] sm:$0xff] %v8962_v36 }
 0x27d   : > { %v7743_v2 = vpop.eup %7742 }
 0x27e   : > { %v1569_v34 = vmul.f32 %v7743_v2, %v7741_v21  ;;  %v8929_v21 = vld [vmem:[%s10065_s3 + $0xec] ss:$16 sps:$4 sm:$0xff]   ;;  %v8934_v2 = vld [vmem:[%s10065_s3 + $0xe8] ss:$16 sps:$4 sm:$0xff]  }
 0x280   : > { %1570 = vst [vmem:[#allocation2 + $0x8] sm:$0xff] %v1569_v34  ;;  %v8783_v35 = vadd.f32 %v1569_v34, %v8559_v22  ;;  %v8805_v22 = vld [vmem:[%s10065_s3 + $0x2c] ss:$16 sps:$4 sm:$0xff]  }
 0x281   : > { %v2181_v34 = vld [vmem:[#allocation2 + $0x18] sm:$0xff] }
 0x282   : > { %v1577_v39 = vpack.c.bf16 %v8783_v35, %v8783_v35 }
 0x284   : > { %2078 = vmatmul.mubr.bf16.vlgmr.msra.gmra.mrb[16].mxu0 %v1577_v39  ;;  %2119 = vmatmul.mubr.bf16.vlgmr.msra.gmra.mrb[24].mxu1 %v1577_v39  ;;  %v2217_v39 = vpack.c.bf16 %v2181_v34, %v2181_v34  ;;  %v8971_v34 = vld [vmem:[%s10064_s2 + $0x4c] ss:$16 sps:$4 sm:$0xff]  }
 0x285   : > { %2411 = vmatpush1.bf16.msra.mxu0 %v8788_v37  ;;  %2452 = vmatpush1.bf16.msra.mxu1 %v8793_v38  ;;  %10173 = vst [vmem:[#allocation27_spill] sm:$0xff] %v8971_v34 }
 0x286   : > { %2412 = vmatprep.subr.bf16.mxu0 %v8800_v25  ;;  %2453 = vmatprep.subr.bf16.mxu1 %v8805_v22 }
 0x287   : > { %2442 = vmatprep.mubr.bf16.mxu0 %v10155_v28  ;;  %2483 = vmatprep.mubr.bf16.mxu1 %v10155_v28 }
 0x289   : > { %2413 = vmatpush1.bf16.msra.mxu0 %v8812_v27  ;;  %2454 = vmatpush1.bf16.msra.mxu1 %v8817_v8 }
 0x28a   : > { %2414 = vmatprep.subr.bf16.mxu0 %v8824_v14  ;;  %2455 = vmatprep.subr.bf16.mxu1 %v8829_v32 }
 0x28d   : > { %2415 = vmatpush1.bf16.msra.mxu0 %v8838_v29  ;;  %2456 = vmatpush1.bf16.msra.mxu1 %v8843_v30 }
 0x28e   : > { %2416 = vmatprep.subr.bf16.mxu0 %v8850_v18  ;;  %2457 = vmatprep.subr.bf16.mxu1 %v8881_v40 }
 0x291   : > { %2417 = vmatpush1.bf16.msra.mxu0 %v8857_v20  ;;  %2458 = vmatpush1.bf16.msra.mxu1 %v8886_v49 }
 0x292   : > { %2418 = vmatprep.subr.bf16.mxu0 %v8601_v41  ;;  %2459 = vmatprep.subr.bf16.mxu1 %v8893_v50 }
 0x295   : > { %2419 = vmatpush1.bf16.msra.mxu0 %v8606_v42  ;;  %2460 = vmatpush1.bf16.msra.mxu1 %v8898_v23 }
 0x296   : > { %2420 = vmatprep.subr.bf16.mxu0 %v8613_v43  ;;  %2461 = vmatprep.subr.bf16.mxu1 %v8905_v6 }
 0x299   : > { %2421 = vmatpush1.bf16.msra.mxu0 %v8618_v44  ;;  %2462 = vmatpush1.bf16.msra.mxu1 %v8910_v16 }
 0x29a   : > { %2422 = vmatprep.subr.bf16.mxu0 %v8625_v45  ;;  %2463 = vmatprep.subr.bf16.mxu1 %v8917_v10 }
 0x29d   : > { %2423 = vmatpush1.bf16.msra.mxu0 %v8630_v46  ;;  %2464 = vmatpush1.bf16.msra.mxu1 %v8922_v26 }
 0x29e   : > { %2424 = vmatprep.subr.bf16.mxu0 %v8637_v47  ;;  %2465 = vmatprep.subr.bf16.mxu1 %v8929_v21 }
 0x2a1   : > { %2425 = vmatpush1.bf16.msra.mxu0 %v8642_v48  ;;  %2466 = vmatpush1.bf16.msra.mxu1 %v8934_v2 }
 0x2a2   : > { %2652 = vmatprep.subr.bf16.mxu0 %v8649_v51  ;;  %2693 = vmatprep.subr.bf16.mxu1 %v8941_v15 }
 0x2a4   : > { %2443 = vmatmul.mubr.bf16.vlgmr.msra.gmra.mrb[20].mxu0 %v2217_v39  ;;  %2484 = vmatmul.mubr.bf16.vlgmr.msra.gmra.mrb[28].mxu1 %v2217_v39  ;;  %v8976_v39 = vld [vmem:[%s10064_s2 + $0x48] ss:$16 sps:$4 sm:$0xff]  }
 0x2a5   : > { %2653 = vmatpush1.bf16.msra.mxu0 %v8654_v52  ;;  %2684 = vmatprep.mubr.bf16.mxu0 %v10155_v28  ;;  %10174 = vst [vmem:[#allocation28_spill] sm:$0xff] %v8976_v39 }
 0x2a6   : > { %2694 = vmatpush1.bf16.msra.mxu1 %v8946_v13  ;;  %2654 = vmatprep.subr.bf16.mxu0 %v8665_v53 }
 0x2a7   : > { %2725 = vmatprep.mubr.bf16.mxu1 %v10155_v28  ;;  %2695 = vmatprep.subr.bf16.mxu1 %v8956_v17 }
 0x2a9   : > { %2655 = vmatpush1.bf16.msra.mxu0 %v8670_v54 }
 0x2aa   : > { %2656 = vmatprep.subr.bf16.mxu0 %v8679_v55  ;;  %2696 = vmatpush1.bf16.msra.mxu1 %v8962_v36  ;;  %v8985_v55 = vld [vmem:[%s10064_s2 + $0x6c] ss:$16 sps:$4 sm:$0xff]   ;;  %v8990_v36 = vld [vmem:[%s10064_s2 + $0x68] ss:$16 sps:$4 sm:$0xff]  }
 0x2ab   : > { %2697 = vmatprep.subr.bf16.mxu1 %v8971_v34  ;;  %10175 = vst [vmem:[#allocation29_spill] sm:$0xff] %v8985_v55  ;;  %10176 = vst [vmem:[#allocation30_spill] sm:$0xff] %v8990_v36 }
 0x2ad   : > { %2657 = vmatpush1.bf16.msra.mxu0 %v8684_v56 }
 0x2ae   : > { %2658 = vmatprep.subr.bf16.mxu0 %v8693_v57  ;;  %2698 = vmatpush1.bf16.msra.mxu1 %v8976_v39  ;;  %v8999_v57 = vld [vmem:[%s10064_s2 + $0x88] ss:$16 sps:$4 sm:$0xff]   ;;  %v9004_v39 = vld [vmem:[%s10064_s2 + $0x8c] ss:$16 sps:$4 sm:$0xff]  }
 0x2af   : > { %2699 = vmatprep.subr.bf16.mxu1 %v8985_v55  ;;  %10177 = vst [vmem:[#allocation31_spill] sm:$0xff] %v8999_v57  ;;  %10178 = vst [vmem:[#allocation32_spill] sm:$0xff] %v9004_v39 }
 0x2b1   : > { %2659 = vmatpush1.bf16.msra.mxu0 %v8698_v58  ;;  %v9010_v58 = vld [vmem:[%s10064_s2 + $0xac] ss:$16 sps:$4 sm:$0xff]  }
 0x2b2   : > { %2660 = vmatprep.subr.bf16.mxu0 %v8712_v60  ;;  %2700 = vmatpush1.bf16.msra.mxu1 %v8990_v36  ;;  %10179 = vst [vmem:[#allocation33_spill] sm:$0xff] %v9010_v58  ;;  %v9018_v60 = vld [vmem:[%s10064_s2 + $0xa8] ss:$16 sps:$4 sm:$0xff]  }
 0x2b3   : > { %2701 = vmatprep.subr.bf16.mxu1 %v9004_v39  ;;  %10180 = vst [vmem:[#allocation34_spill] sm:$0xff] %v9018_v60 }
 0x2b5   : > { %2661 = vmatpush1.bf16.msra.mxu0 %v8707_v59  ;;  %v9024_v59 = vld [vmem:[%s10064_s2 + $0xcc] ss:$16 sps:$4 sm:$0xff]  }
 0x2b6   : > { %2662 = vmatprep.subr.bf16.mxu0 %v8718_v61  ;;  %2702 = vmatpush1.bf16.msra.mxu1 %v8999_v57  ;;  %10181 = vst [vmem:[#allocation35_spill] sm:$0xff] %v9024_v59  ;;  %v9032_v61 = vld [vmem:[%s10064_s2 + $0xc8] ss:$16 sps:$4 sm:$0xff]  }
 0x2b7   : > { %2703 = vmatprep.subr.bf16.mxu1 %v9010_v58  ;;  %10182 = vst [vmem:[#allocation36_spill] sm:$0xff] %v9032_v61  ;;  %v9038_v58 = vld [vmem:[%s10064_s2 + $0xec] ss:$16 sps:$4 sm:$0xff]  }
 0x2b8   : > { %10183 = vst [vmem:[#allocation37_spill] sm:$0xff] %v9038_v58 }
 0x2b9   : > { %2663 = vmatpush1.bf16.msra.mxu0 %v8726_v62 }
 0x2ba   : > { %2664 = vmatprep.subr.bf16.mxu0 %v8732_v63  ;;  %2704 = vmatpush1.bf16.msra.mxu1 %v9018_v60  ;;  %v9046_v63 = vld [vmem:[%s10064_s2 + $0xe8] ss:$16 sps:$4 sm:$0xff]  }
 0x2bb   : > { %2705 = vmatprep.subr.bf16.mxu1 %v9024_v59  ;;  %10184 = vst [vmem:[#allocation38_spill] sm:$0xff] %v9046_v63 }
 0x2bd   : > { %2665 = vmatpush1.bf16.msra.mxu0 %v8740_v0 }
 0x2be   : > { %2666 = vmatprep.subr.bf16.mxu0 %v8746_v1  ;;  %2706 = vmatpush1.bf16.msra.mxu1 %v9032_v61  ;;  %v2127_v1 = vld [vmem:[%s10066_s4] sm:$0xf] }
 0x2bf   : > { %2707 = vmatprep.subr.bf16.mxu1 %v9038_v58  ;;  %v2132_v61 = vrot.slane %v2127_v1, %v8546_v33  ;;  %v2136_v60 = vrot.slane %v2127_v1, %v8540_v31  ;;  %v2144_v31 = vrot.slane %v2127_v1, %v8554_v12 }
 0x2c1   : > { %2667 = vmatpush1.bf16.msra.mxu0 %v8754_v3 }
 0x2c2   : > { %3017 = vmatprep.subr.bf16.mxu0 %v8762_v5  ;;  %2708 = vmatpush1.bf16.msra.mxu1 %v9046_v63 }
 0x2c3   : > { %3058 = vmatprep.subr.bf16.mxu1 %v8767_v19 }
 0x357   : > { %v2079_v0 = vpop.f32.mrb[16].mxu0  ;;  %v2120_v59 = vpop.f32.mrb[24].mxu1 }
 0x358   : > { %v2080_v58 = vadd.f32 %v2079_v0, %v8870_v4  ;;  %v2121_v3 = vadd.f32 %v2120_v59, %v8872_v7  ;;  %v2081_v62 = vpop.f32.mrb[17].mxu0  ;;  %v2122_v5 = vpop.f32.mrb[25].mxu1  ;;  %v2140_v59 = vrot.slane %v2127_v1, %v10171_v24 }
 0x359   : > { %v2082_v63 = vadd.f32 %v2081_v62, %v8874_v9  ;;  %v2123_v19 = vadd.f32 %v2122_v5, %v8876_v11  ;;  %v2083_v57 = vpop.f32.mrb[18].mxu0  ;;  %v2124_v39 = vpop.f32.mrb[26].mxu1 }
 0x35a   : > { %v2149_v36 = vadd.f32 %v2132_v61, %v2080_v58  ;;  %v2084_v55 = vpop.f32.mrb[19].mxu0  ;;  %v2125_v56 = vpop.f32.mrb[27].mxu1  ;;  %v2151_v7 = vadd.f32 %v2140_v59, %v2121_v3  ;;  %v2788_v39 = vld [vmem:[#allocation2 + $0x20] sm:$0xff]  ;;  %v10188_v59 = vld [vmem:[#allocation27_spill] sm:$0xff] }
 0x35b   : > { %v2150_v33 = vadd.f32 %v2136_v60, %v2082_v63  ;;  %v2152_v0 = vadd.f32 %v2144_v31, %v2123_v19 }
 0x35c   : > { %v6747_v34 = vmul.f32 -1.442695, %v2149_v36 }
 0x35d   : > { %v6748_v54 = vmul.f32 -1.442695, %v2150_v33  ;;  %v6749_v4 = vmul.f32 -1.442695, %v2152_v0  ;;  %v1576_v33 = vld [vmem:[#allocation3 + $0x10] sm:$0xff]  ;;  %v10187_v0 = vld [vmem:[#allocation13_spill] sm:$0xff] }
 0x35e   : > { %7744 = vpow2.f32 %v6747_v34 }
 0x35f   : > { %7746 = vpow2.f32 %v6748_v54 }
 0x360   : > { %7748 = vpow2.f32 %v6749_v4  ;;  %v10189_v4 = vld [vmem:[#allocation14_spill] sm:$0xff] }
 0x361   : > { %7750 = vtanh.f32 %v2151_v7  ;;  %v10191_v7 = vld [vmem:[#allocation15_spill] sm:$0xff] }
 0x368   : > { %v7745_v62 = vpop.eup %7744 }
 0x369   : > { %v7747_v9 = vpop.eup %7746  ;;  %v2156_v5 = vadd.f32 1.0, %v7745_v62  ;;  %v10193_v62 = vld [vmem:[#allocation16_spill] sm:$0xff] }
 0x36a   : > { %v2162_v57 = vadd.f32 1.0, %v7747_v9  ;;  %v7749_v55 = vpop.eup %7748  ;;  %v10194_v9 = vld [vmem:[#allocation30_spill] sm:$0xff] }
 0x36b   : > { %7752 = vrcp.f32 %v2156_v5  ;;  %v7751_v56 = vpop.eup %7750  ;;  %v2169_v54 = vadd.f32 1.0, %v7749_v55  ;;  %v10195_v5 = vld [vmem:[#allocation18_spill] sm:$0xff]  ;;  %v10197_v55 = vld [vmem:[#allocation17_spill] sm:$0xff] }
 0x36c   : > { %7754 = vrcp.f32 %v2162_v57  ;;  %v10196_v57 = vld [vmem:[#allocation32_spill] sm:$0xff] }
 0x36d   : > { %7756 = vrcp.f32 %v2169_v54  ;;  %v10203_v54 = vld [vmem:[#allocation21_spill] sm:$0xff] }
 0x375   : > { %v7753_v58 = vpop.eup %7752 }
 0x376   : > { %v7755_v60 = vpop.eup %7754  ;;  %v2173_v61 = vmul.f32 %v7753_v58, %v7751_v56  ;;  %v10198_v56 = vld [vmem:[#allocation31_spill] sm:$0xff]  ;;  %v10200_v58 = vld [vmem:[#allocation33_spill] sm:$0xff] }
 0x377   : > { %v2172_v31 = vmul.f32 %v7755_v60, %v1576_v33  ;;  %v7757_v1 = vpop.eup %7756  ;;  %v10199_v33 = vld [vmem:[#allocation19_spill] sm:$0xff]  ;;  %v10201_v60 = vld [vmem:[#allocation20_spill] sm:$0xff] }
 0x379   : > { %v2174_v63 = vadd.f32 %v2173_v61, %v2172_v31  ;;  %v10202_v61 = vld [vmem:[#allocation34_spill] sm:$0xff]  ;;  %v10204_v31 = vld [vmem:[#allocation35_spill] sm:$0xff] }
 0x37b   : > { %7758 = vtanh.f32 %v2174_v63  ;;  %2178 = vst [vmem:[#allocation3 + $0x10] sm:$0xff] %v2174_v63  ;;  %v10205_v63 = vld [vmem:[#allocation22_spill] sm:$0xff] }
 0x385   : > { %v7759_v3 = vpop.eup %7758 }
 0x386   : > { %v2176_v19 = vmul.f32 %v7759_v3, %v7757_v1  ;;  %v10206_v1 = vld [vmem:[#allocation36_spill] sm:$0xff]  ;;  %v10207_v3 = vld [vmem:[#allocation23_spill] sm:$0xff] }
 0x388   : > { %2177 = vst [vmem:[#allocation2 + $0x10] sm:$0xff] %v2176_v19  ;;  %v9065_v11 = vadd.f32 %v2176_v19, %v8783_v35  ;;  %v10208_v19 = vld [vmem:[#allocation37_spill] sm:$0xff] }
 0x38a   : > { %v2184_v36 = vpack.c.bf16 %v9065_v11, %v9065_v11 }
 0x38c   : > { %2685 = vmatmul.mubr.bf16.vlgmr.msra.gmra.mrb[24].mxu0 %v2184_v36  ;;  %2726 = vmatmul.mubr.bf16.vlgmr.msra.gmra.mrb[32].mxu1 %v2184_v36  ;;  %v10209_v36 = vld [vmem:[#allocation24_spill] sm:$0xff] }
 0x38d   : > { %3018 = vmatpush1.bf16.msra.mxu0 %v8788_v37  ;;  %3059 = vmatpush1.bf16.msra.mxu1 %v8793_v38 }
 0x38e   : > { %3019 = vmatprep.subr.bf16.mxu0 %v8800_v25  ;;  %3060 = vmatprep.subr.bf16.mxu1 %v8805_v22 }
 0x38f   : > { %3049 = vmatprep.mubr.bf16.mxu0 %v10155_v28  ;;  %3090 = vmatprep.mubr.bf16.mxu1 %v10155_v28 }
 0x391   : > { %3020 = vmatpush1.bf16.msra.mxu0 %v8812_v27  ;;  %3061 = vmatpush1.bf16.msra.mxu1 %v8817_v8 }
 0x392   : > { %3021 = vmatprep.subr.bf16.mxu0 %v8824_v14  ;;  %3062 = vmatprep.subr.bf16.mxu1 %v8829_v32 }
 0x395   : > { %3022 = vmatpush1.bf16.msra.mxu0 %v8838_v29  ;;  %3063 = vmatpush1.bf16.msra.mxu1 %v8843_v30 }
 0x396   : > { %3023 = vmatprep.subr.bf16.mxu0 %v8850_v18  ;;  %3064 = vmatprep.subr.bf16.mxu1 %v8881_v40 }
 0x399   : > { %3024 = vmatpush1.bf16.msra.mxu0 %v8857_v20  ;;  %3065 = vmatpush1.bf16.msra.mxu1 %v8886_v49 }
 0x39a   : > { %3025 = vmatprep.subr.bf16.mxu0 %v8601_v41  ;;  %3066 = vmatprep.subr.bf16.mxu1 %v8893_v50  ;;  %v2444_v41 = vpop.f32.mrb[20].mxu0 }
 0x39d   : > { %3026 = vmatpush1.bf16.msra.mxu0 %v8606_v42  ;;  %3067 = vmatpush1.bf16.msra.mxu1 %v8898_v23  ;;  %v2446_v42 = vpop.f32.mrb[21].mxu0 }
 0x39e   : > { %3027 = vmatprep.subr.bf16.mxu0 %v8613_v43  ;;  %3068 = vmatprep.subr.bf16.mxu1 %v8905_v6  ;;  %v2448_v43 = vpop.f32.mrb[22].mxu0 }
 0x39f   : > { %v10210_v43 = vld [vmem:[#allocation38_spill] sm:$0xff] }
 0x3a1   : > { %3028 = vmatpush1.bf16.msra.mxu0 %v8618_v44  ;;  %3069 = vmatpush1.bf16.msra.mxu1 %v8910_v16  ;;  %v2485_v44 = vpop.f32.mrb[28].mxu1 }
 0x3a2   : > { %3029 = vmatprep.subr.bf16.mxu0 %v8625_v45  ;;  %3070 = vmatprep.subr.bf16.mxu1 %v8917_v10  ;;  %v2449_v45 = vpop.f32.mrb[23].mxu0 }
 0x3a3   : > { %v10211_v45 = vld [vmem:[#allocation25_spill] sm:$0xff] }
 0x3a5   : > { %3030 = vmatpush1.bf16.msra.mxu0 %v8630_v46  ;;  %3071 = vmatpush1.bf16.msra.mxu1 %v8922_v26  ;;  %v2487_v46 = vpop.f32.mrb[29].mxu1 }
 0x3a6   : > { %3031 = vmatprep.subr.bf16.mxu0 %v8637_v47  ;;  %3072 = vmatprep.subr.bf16.mxu1 %v8929_v21  ;;  %v2489_v35 = vpop.f32.mrb[30].mxu1  ;;  %v2824_v47 = vpack.c.bf16 %v2788_v39, %v2788_v39  ;;  %v10213_v39 = vld [vmem:[#allocation10_spill] sm:$0xff] }
 0x3a7   : > { %v2490_v34 = vpop.f32.mrb[31].mxu1  ;;  %v10212_v35 = vld [vmem:[#allocation26_spill] sm:$0xff] }
 0x3a8   : > { %v2734_v34 = vld [vmem:[%s10066_s4] sm:$0xf] }
 0x3a9   : > { %3032 = vmatpush1.bf16.msra.mxu0 %v8642_v48  ;;  %3073 = vmatpush1.bf16.msra.mxu1 %v8934_v2  ;;  %v10185_v48 = vld [vmem:[#allocation12_spill] sm:$0xff] }
 0x3aa   : > { %3259 = vmatprep.subr.bf16.mxu0 %v8649_v51  ;;  %3300 = vmatprep.subr.bf16.mxu1 %v8941_v15  ;;  %v10186_v51 = vld [vmem:[#allocation11_spill] sm:$0xff] }
 0x3ac   : > { %3050 = vmatmul.mubr.bf16.vlgmr.msra.gmra.mrb[28].mxu0 %v2824_v47  ;;  %3091 = vmatmul.mubr.bf16.vlgmr.msra.gmra.mrb[36].mxu1 %v2824_v47  ;;  %v2739_v47 = vrot.slane %v2734_v34, %v10213_v39  ;;  %v2751_v39 = vrot.slane %v2734_v34, %v8554_v12 }
 0x3ad   : > { %3260 = vmatpush1.bf16.msra.mxu0 %v8654_v52  ;;  %3301 = vmatpush1.bf16.msra.mxu1 %v8946_v13  ;;  %v10190_v52 = vld [vmem:[#allocation28_spill] sm:$0xff] }
 0x3ae   : > { %3261 = vmatprep.subr.bf16.mxu0 %v8665_v53  ;;  %3302 = vmatprep.subr.bf16.mxu1 %v8956_v17  ;;  %v10192_v53 = vld [vmem:[#allocation29_spill] sm:$0xff] }
 0x3af   : > { %3291 = vmatprep.mubr.bf16.mxu0 %v10155_v28  ;;  %3332 = vmatprep.mubr.bf16.mxu1 %v10155_v28 }
 0x3b1   : > { %3262 = vmatpush1.bf16.msra.mxu0 %v10185_v48  ;;  %3303 = vmatpush1.bf16.msra.mxu1 %v10186_v51 }
 0x3b2   : > { %3263 = vmatprep.subr.bf16.mxu0 %v10187_v0  ;;  %3304 = vmatprep.subr.bf16.mxu1 %v10188_v59 }
 0x3b5   : > { %3264 = vmatpush1.bf16.msra.mxu0 %v10189_v4  ;;  %3305 = vmatpush1.bf16.msra.mxu1 %v10190_v52  ;;  %v10214_v4 = vld [vmem:[#allocation9_spill] sm:$0xff] }
 0x3b6   : > { %3265 = vmatprep.subr.bf16.mxu0 %v10191_v7  ;;  %3306 = vmatprep.subr.bf16.mxu1 %v10192_v53  ;;  %v2743_v7 = vrot.slane %v2734_v34, %v10214_v4 }
 0x3b9   : > { %3266 = vmatpush1.bf16.msra.mxu0 %v10193_v62  ;;  %3307 = vmatpush1.bf16.msra.mxu1 %v10194_v9 }
 0x3ba   : > { %3267 = vmatprep.subr.bf16.mxu0 %v10195_v5  ;;  %3308 = vmatprep.subr.bf16.mxu1 %v10196_v57 }
 0x3bd   : > { %3268 = vmatpush1.bf16.msra.mxu0 %v10197_v55  ;;  %3309 = vmatpush1.bf16.msra.mxu1 %v10198_v56 }
 0x3be   : > { %3269 = vmatprep.subr.bf16.mxu0 %v10199_v33  ;;  %3310 = vmatprep.subr.bf16.mxu1 %v10200_v58 }
 0x3c1   : > { %3270 = vmatpush1.bf16.msra.mxu0 %v10201_v60  ;;  %3311 = vmatpush1.bf16.msra.mxu1 %v10202_v61 }
 0x3c2   : > { %3271 = vmatprep.subr.bf16.mxu0 %v10203_v54  ;;  %3312 = vmatprep.subr.bf16.mxu1 %v10204_v31 }
 0x3c5   : > { %3272 = vmatpush1.bf16.msra.mxu0 %v10205_v63  ;;  %3313 = vmatpush1.bf16.msra.mxu1 %v10206_v1 }
 0x3c6   : > { %3273 = vmatprep.subr.bf16.mxu0 %v10207_v3  ;;  %3314 = vmatprep.subr.bf16.mxu1 %v10208_v19 }
 0x3c9   : > { %3274 = vmatpush1.bf16.msra.mxu0 %v10209_v36  ;;  %3315 = vmatpush1.bf16.msra.mxu1 %v10210_v43 }
 0x3ca   : > { %3624 = vmatprep.subr.bf16.mxu0 %v10211_v45  ;;  %3665 = vmatprep.subr.bf16.mxu1 %v10212_v35 }
 0x45f   : > { %v2686_v48 = vpop.f32.mrb[24].mxu0  ;;  %v2727_v0 = vpop.f32.mrb[32].mxu1 }
 0x460   : > { %v2687_v62 = vadd.f32 %v2686_v48, %v2444_v41  ;;  %v2728_v5 = vadd.f32 %v2727_v0, %v2485_v44  ;;  %v2688_v55 = vpop.f32.mrb[25].mxu0  ;;  %v2729_v33 = vpop.f32.mrb[33].mxu1  ;;  %v2747_v41 = vrot.slane %v2734_v34, %v10171_v24 }
 0x461   : > { %v2689_v60 = vadd.f32 %v2688_v55, %v2446_v42  ;;  %v2730_v54 = vadd.f32 %v2729_v33, %v2487_v46  ;;  %v2690_v63 = vpop.f32.mrb[26].mxu0  ;;  %v2731_v3 = vpop.f32.mrb[34].mxu1 }
 0x462   : > { %v2756_v36 = vadd.f32 %v2739_v47, %v2687_v62  ;;  %v2691_v45 = vpop.f32.mrb[27].mxu0  ;;  %v2732_v35 = vpop.f32.mrb[35].mxu1  ;;  %v2758_v48 = vadd.f32 %v2747_v41, %v2728_v5  ;;  %v10228_v3 = vld [vmem:[#allocation36_spill] sm:$0xff] }
 0x463   : > { %v2757_v43 = vadd.f32 %v2743_v7, %v2689_v60  ;;  %v2759_v31 = vadd.f32 %v2751_v39, %v2730_v54  ;;  %v10231_v45 = vld [vmem:[#allocation38_spill] sm:$0xff]  ;;  %v9346_v35 = vld [vmem:[%s10065_s3 + $0x4] ss:$16 sps:$4 sm:$0xff]  }
 0x464   : > { %v6814_v19 = vmul.f32 -1.442695, %v2756_v36  ;;  %v10229_v36 = vld [vmem:[#allocation37_spill] sm:$0xff]  ;;  %v9351_v41 = vld [vmem:[%s10065_s3 + $0xc] ss:$16 sps:$4 sm:$0xff]  }
 0x465   : > { %v6815_v1 = vmul.f32 -1.442695, %v2757_v43  ;;  %v6816_v44 = vmul.f32 -1.442695, %v2759_v31  ;;  %v2183_v43 = vld [vmem:[#allocation3 + $0x18] sm:$0xff] }
 0x466   : > { %7760 = vpow2.f32 %v6814_v19 }
 0x467   : > { %7762 = vpow2.f32 %v6815_v1 }
 0x468   : > { %7764 = vpow2.f32 %v6816_v44  ;;  %v3341_v44 = vld [vmem:[%s10066_s4] sm:$0xf] }
 0x469   : > { %7766 = vtanh.f32 %v2758_v48  ;;  %v10232_v48 = vld [vmem:[#allocation10_spill] sm:$0xff] }
 0x470   : > { %v7761_v0 = vpop.eup %7760 }
 0x471   : > { %v7763_v42 = vpop.eup %7762  ;;  %v2763_v46 = vadd.f32 1.0, %v7761_v0  ;;  %v3346_v0 = vrot.slane %v3341_v44, %v10232_v48 }
 0x472   : > { %v2769_v47 = vadd.f32 1.0, %v7763_v42  ;;  %v7765_v7 = vpop.eup %7764 }
 0x473   : > { %7768 = vrcp.f32 %v2763_v46  ;;  %v7767_v62 = vpop.eup %7766  ;;  %v2776_v1 = vadd.f32 1.0, %v7765_v7 }
 0x474   : > { %7770 = vrcp.f32 %v2769_v47  ;;  %v3350_v47 = vrot.slane %v3341_v44, %v10214_v4 }
 0x475   : > { %7772 = vrcp.f32 %v2776_v1 }
 0x47d   : > { %v7769_v55 = vpop.eup %7768 }
 0x47e   : > { %v7771_v33 = vpop.eup %7770  ;;  %v2780_v19 = vmul.f32 %v7769_v55, %v7767_v62 }
 0x47f   : > { %v2779_v39 = vmul.f32 %v7771_v33, %v2183_v43  ;;  %v7773_v31 = vpop.eup %7772 }
 0x481   : > { %v2781_v60 = vadd.f32 %v2780_v19, %v2779_v39 }
 0x483   : > { %7774 = vtanh.f32 %v2781_v60  ;;  %2785 = vst [vmem:[#allocation3 + $0x18] sm:$0xff] %v2781_v60 }
 0x48d   : > { %v7775_v34 = vpop.eup %7774 }
 0x48e   : > { %v2783_v5 = vmul.f32 %v7775_v34, %v7773_v31 }
 0x490   : > { %2784 = vst [vmem:[#allocation2 + $0x18] sm:$0xff] %v2783_v5  ;;  %v9145_v54 = vadd.f32 %v2783_v5, %v9065_v11  ;;  %v9282_v11 = vld [vmem:[%s10064_s2 + $0x60] ss:$16 sps:$4 sm:$0xff]  }
 0x491   : > { %10219 = vst [vmem:[#allocation14_spill] sm:$0xff] %v9282_v11 }
 0x492   : > { %v2791_v63 = vpack.c.bf16 %v9145_v54, %v9145_v54 }
 0x494   : > { %3292 = vmatmul.mubr.bf16.vlgmr.msra.gmra.mrb[32].mxu0 %v2791_v63  ;;  %3333 = vmatmul.mubr.bf16.vlgmr.msra.gmra.mrb[40].mxu1 %v2791_v63 }
 0x495   : > { %3625 = vmatpush1.bf16.msra.mxu0 %v8788_v37  ;;  %3666 = vmatpush1.bf16.msra.mxu1 %v8793_v38  ;;  %v9174_v37 = vpop.f32.mrb[28].mxu0  ;;  %v9176_v38 = vpop.f32.mrb[36].mxu1 }
 0x496   : > { %3626 = vmatprep.subr.bf16.mxu0 %v8800_v25  ;;  %3667 = vmatprep.subr.bf16.mxu1 %v8805_v22  ;;  %v9178_v25 = vpop.f32.mrb[29].mxu0  ;;  %v9180_v22 = vpop.f32.mrb[37].mxu1 }
 0x497   : > { %3656 = vmatprep.mubr.bf16.mxu0 %v10155_v28  ;;  %3697 = vmatprep.mubr.bf16.mxu1 %v10155_v28 }
 0x499   : > { %3627 = vmatpush1.bf16.msra.mxu0 %v8812_v27  ;;  %3668 = vmatpush1.bf16.msra.mxu1 %v8817_v8  ;;  %v3055_v27 = vpop.f32.mrb[30].mxu0  ;;  %v3096_v8 = vpop.f32.mrb[38].mxu1 }
 0x49a   : > { %3628 = vmatprep.subr.bf16.mxu0 %v8824_v14  ;;  %3669 = vmatprep.subr.bf16.mxu1 %v8829_v32  ;;  %v3056_v14 = vpop.f32.mrb[31].mxu0  ;;  %v3097_v32 = vpop.f32.mrb[39].mxu1  ;;  %v3358_v8 = vrot.slane %v3341_v44, %v8554_v12 }
 0x49d   : > { %3629 = vmatpush1.bf16.msra.mxu0 %v8838_v29  ;;  %3670 = vmatpush1.bf16.msra.mxu1 %v8843_v30  ;;  %v9185_v29 = vld [vmem:[%s10065_s3 + $0x84] ss:$16 sps:$4 sm:$0xff]   ;;  %v9190_v30 = vld [vmem:[%s10065_s3 + $0x80] ss:$16 sps:$4 sm:$0xff]  }
 0x49e   : > { %3630 = vmatprep.subr.bf16.mxu0 %v8850_v18  ;;  %3671 = vmatprep.subr.bf16.mxu1 %v8881_v40  ;;  %v9197_v18 = vld [vmem:[%s10065_s3 + $0xa4] ss:$16 sps:$4 sm:$0xff]  }
 0x49f   : > { %v9209_v40 = vld [vmem:[%s10065_s3 + $0xc4] ss:$16 sps:$4 sm:$0xff]  }
 0x4a1   : > { %3631 = vmatpush1.bf16.msra.mxu0 %v8857_v20  ;;  %3672 = vmatpush1.bf16.msra.mxu1 %v8886_v49  ;;  %v9202_v20 = vld [vmem:[%s10065_s3 + $0xa0] ss:$16 sps:$4 sm:$0xff]  }
 0x4a2   : > { %3673 = vmatprep.subr.bf16.mxu1 %v8893_v50  ;;  %3632 = vmatprep.subr.bf16.mxu0 %v9185_v29  ;;  %v9214_v49 = vld [vmem:[%s10065_s3 + $0xc0] ss:$16 sps:$4 sm:$0xff]   ;;  %v9221_v50 = vld [vmem:[%s10065_s3 + $0xe4] ss:$16 sps:$4 sm:$0xff]  }
 0x4a5   : > { %3674 = vmatpush1.bf16.msra.mxu1 %v8898_v23  ;;  %3633 = vmatpush1.bf16.msra.mxu0 %v9190_v30  ;;  %v9226_v23 = vld [vmem:[%s10065_s3 + $0xe0] ss:$16 sps:$4 sm:$0xff]  }
 0x4a6   : > { %3675 = vmatprep.subr.bf16.mxu1 %v8905_v6  ;;  %3634 = vmatprep.subr.bf16.mxu0 %v9197_v18  ;;  %v3395_v6 = vld [vmem:[#allocation2 + $0x28] sm:$0xff] }
 0x4a9   : > { %3676 = vmatpush1.bf16.msra.mxu1 %v8910_v16  ;;  %3635 = vmatpush1.bf16.msra.mxu0 %v9202_v20  ;;  %v3431_v16 = vpack.c.bf16 %v3395_v6, %v3395_v6 }
 0x4aa   : > { %3677 = vmatprep.subr.bf16.mxu1 %v8917_v10  ;;  %3636 = vmatprep.subr.bf16.mxu0 %v9209_v40  ;;  %v9233_v10 = vld [vmem:[%s10064_s2 + $0x4] ss:$16 sps:$4 sm:$0xff]  }
 0x4ad   : > { %3678 = vmatpush1.bf16.msra.mxu1 %v8922_v26  ;;  %3637 = vmatpush1.bf16.msra.mxu0 %v9214_v49  ;;  %v9238_v26 = vld [vmem:[%s10064_s2] ss:$16 sps:$4 sm:$0xff]  }
 0x4ae   : > { %3679 = vmatprep.subr.bf16.mxu1 %v8929_v21  ;;  %3638 = vmatprep.subr.bf16.mxu0 %v9221_v50  ;;  %v9249_v21 = vld [vmem:[%s10064_s2 + $0x24] ss:$16 sps:$4 sm:$0xff]  }
 0x4b1   : > { %3680 = vmatpush1.bf16.msra.mxu1 %v8934_v2  ;;  %3639 = vmatpush1.bf16.msra.mxu0 %v9226_v23  ;;  %v9254_v2 = vld [vmem:[%s10064_s2 + $0x20] ss:$16 sps:$4 sm:$0xff]  }
 0x4b2   : > { %3907 = vmatprep.subr.bf16.mxu1 %v8941_v15  ;;  %3866 = vmatprep.subr.bf16.mxu0 %v9233_v10  ;;  %10215 = vst [vmem:[#allocation12_spill] sm:$0xff] %v9254_v2  ;;  %v9263_v15 = vld [vmem:[%s10064_s2 + $0x44] ss:$16 sps:$4 sm:$0xff]  }
 0x4b3   : > { %10216 = vst [vmem:[#allocation11_spill] sm:$0xff] %v9263_v15 }
 0x4b4   : > { %3657 = vmatmul.mubr.bf16.vlgmr.msra.gmra.mrb[36].mxu0 %v3431_v16  ;;  %3698 = vmatmul.mubr.bf16.vlgmr.msra.gmra.mrb[44].mxu1 %v3431_v16 }
 0x4b5   : > { %3908 = vmatpush1.bf16.msra.mxu1 %v8946_v13  ;;  %3898 = vmatprep.mubr.bf16.mxu0 %v10155_v28  ;;  %v9268_v13 = vld [vmem:[%s10064_s2 + $0x40] ss:$16 sps:$4 sm:$0xff]  }
 0x4b6   : > { %3909 = vmatprep.subr.bf16.mxu1 %v8956_v17  ;;  %3867 = vmatpush1.bf16.msra.mxu0 %v9238_v26  ;;  %10217 = vst [vmem:[#allocation13_spill] sm:$0xff] %v9268_v13  ;;  %v9277_v17 = vld [vmem:[%s10064_s2 + $0x64] ss:$16 sps:$4 sm:$0xff]  }
 0x4b7   : > { %3939 = vmatprep.mubr.bf16.mxu1 %v10155_v28  ;;  %3868 = vmatprep.subr.bf16.mxu0 %v9249_v21  ;;  %10218 = vst [vmem:[#allocation27_spill] sm:$0xff] %v9277_v17 }
 0x4b9   : > { %3910 = vmatpush1.bf16.msra.mxu1 %v10186_v51  ;;  %v9291_v51 = vld [vmem:[%s10064_s2 + $0x80] ss:$16 sps:$4 sm:$0xff]  }
 0x4ba   : > { %3911 = vmatprep.subr.bf16.mxu1 %v10188_v59  ;;  %3869 = vmatpush1.bf16.msra.mxu0 %v9254_v2  ;;  %10220 = vst [vmem:[#allocation28_spill] sm:$0xff] %v9291_v51  ;;  %v9296_v59 = vld [vmem:[%s10064_s2 + $0x84] ss:$16 sps:$4 sm:$0xff]  }
 0x4bb   : > { %3870 = vmatprep.subr.bf16.mxu0 %v9263_v15  ;;  %10221 = vst [vmem:[#allocation15_spill] sm:$0xff] %v9296_v59 }
 0x4bd   : > { %3912 = vmatpush1.bf16.msra.mxu1 %v10190_v52  ;;  %v9302_v52 = vld [vmem:[%s10064_s2 + $0xa4] ss:$16 sps:$4 sm:$0xff]  }
 0x4be   : > { %3913 = vmatprep.subr.bf16.mxu1 %v10192_v53  ;;  %3871 = vmatpush1.bf16.msra.mxu0 %v9268_v13  ;;  %10222 = vst [vmem:[#allocation29_spill] sm:$0xff] %v9302_v52  ;;  %v9310_v53 = vld [vmem:[%s10064_s2 + $0xa0] ss:$16 sps:$4 sm:$0xff]  }
 0x4bf   : > { %3872 = vmatprep.subr.bf16.mxu0 %v9277_v17  ;;  %10223 = vst [vmem:[#allocation16_spill] sm:$0xff] %v9310_v53 }
 0x4c1   : > { %3914 = vmatpush1.bf16.msra.mxu1 %v10194_v9  ;;  %v9316_v9 = vld [vmem:[%s10064_s2 + $0xc4] ss:$16 sps:$4 sm:$0xff]  }
 0x4c2   : > { %3915 = vmatprep.subr.bf16.mxu1 %v10196_v57  ;;  %3873 = vmatpush1.bf16.msra.mxu0 %v9282_v11  ;;  %10224 = vst [vmem:[#allocation30_spill] sm:$0xff] %v9316_v9  ;;  %v10225_v57 = vld [vmem:[#allocation35_spill] sm:$0xff] }
 0x4c3   : > { %3874 = vmatprep.subr.bf16.mxu0 %v9296_v59 }
 0x4c5   : > { %3916 = vmatpush1.bf16.msra.mxu1 %v10198_v56  ;;  %v9324_v56 = vld [vmem:[%s10064_s2 + $0xc0] ss:$16 sps:$4 sm:$0xff]  }
 0x4c6   : > { %3917 = vmatprep.subr.bf16.mxu1 %v10200_v58  ;;  %3875 = vmatpush1.bf16.msra.mxu0 %v9291_v51  ;;  %10226 = vst [vmem:[#allocation18_spill] sm:$0xff] %v9324_v56  ;;  %v9330_v58 = vld [vmem:[%s10064_s2 + $0xe4] ss:$16 sps:$4 sm:$0xff]  }
 0x4c7   : > { %3876 = vmatprep.subr.bf16.mxu0 %v9302_v52  ;;  %10227 = vst [vmem:[#allocation32_spill] sm:$0xff] %v9330_v58 }
 0x4c9   : > { %3918 = vmatpush1.bf16.msra.mxu1 %v10202_v61  ;;  %v9338_v61 = vld [vmem:[%s10064_s2 + $0xe0] ss:$16 sps:$4 sm:$0xff]  }
 0x4ca   : > { %3919 = vmatprep.subr.bf16.mxu1 %v10225_v57  ;;  %3877 = vmatpush1.bf16.msra.mxu0 %v9310_v53  ;;  %10230 = vst [vmem:[#allocation17_spill] sm:$0xff] %v9338_v61 }
 0x4cb   : > { %3878 = vmatprep.subr.bf16.mxu0 %v9316_v9 }
 0x4cd   : > { %3920 = vmatpush1.bf16.msra.mxu1 %v10228_v3 }
 0x4ce   : > { %3921 = vmatprep.subr.bf16.mxu1 %v10229_v36  ;;  %3879 = vmatpush1.bf16.msra.mxu0 %v9324_v56  ;;  %v2790_v36 = vld [vmem:[#allocation3 + $0x20] sm:$0xff] }
 0x4cf   : > { %3880 = vmatprep.subr.bf16.mxu0 %v9330_v58 }
 0x4d1   : > { %3922 = vmatpush1.bf16.msra.mxu1 %v10231_v45 }
 0x4d2   : > { %3881 = vmatpush1.bf16.msra.mxu0 %v9338_v61  ;;  %4272 = vmatprep.subr.bf16.mxu1 %v9351_v41 }
 0x4d3   : > { %4231 = vmatprep.subr.bf16.mxu0 %v9346_v35 }
 0x567   : > { %v3293_v42 = vpop.f32.mrb[32].mxu0  ;;  %v3334_v46 = vpop.f32.mrb[40].mxu1 }
 0x568   : > { %v3294_v7 = vadd.f32 %v3293_v42, %v9174_v37  ;;  %v3335_v62 = vadd.f32 %v3334_v46, %v9176_v38  ;;  %v3295_v43 = vpop.f32.mrb[33].mxu0  ;;  %v3336_v55 = vpop.f32.mrb[41].mxu1  ;;  %v3354_v38 = vrot.slane %v3341_v44, %v10171_v24 }
 0x569   : > { %v3296_v33 = vadd.f32 %v3295_v43, %v9178_v25  ;;  %v3337_v19 = vadd.f32 %v3336_v55, %v9180_v22  ;;  %v3297_v1 = vpop.f32.mrb[34].mxu0  ;;  %v3338_v39 = vpop.f32.mrb[42].mxu1 }
 0x56a   : > { %v3363_v60 = vadd.f32 %v3346_v0, %v3294_v7  ;;  %v3298_v31 = vpop.f32.mrb[35].mxu0  ;;  %v3339_v34 = vpop.f32.mrb[43].mxu1  ;;  %v3365_v32 = vadd.f32 %v3354_v38, %v3335_v62  ;;  %v9384_v39 = vld [vmem:[%s10065_s3 + $0x24] ss:$16 sps:$4 sm:$0xff]  }
 0x56b   : > { %v3364_v5 = vadd.f32 %v3350_v47, %v3296_v33  ;;  %v3366_v37 = vadd.f32 %v3358_v8, %v3337_v19  ;;  %v9372_v33 = vld [vmem:[%s10065_s3] ss:$16 sps:$4 sm:$0xff]   ;;  %v9377_v19 = vld [vmem:[%s10065_s3 + $0x8] ss:$16 sps:$4 sm:$0xff]   ;;  %v9408_v34 = vld [vmem:[%s10065_s3 + $0x44] ss:$16 sps:$4 sm:$0xff]  }
 0x56c   : > { %v6881_v63 = vmul.f32 -1.442695, %v3363_v60  ;;  %v9396_v60 = vld [vmem:[%s10065_s3 + $0x20] ss:$16 sps:$4 sm:$0xff]   ;;  %v9401_v31 = vld [vmem:[%s10065_s3 + $0x28] ss:$16 sps:$4 sm:$0xff]  }
 0x56d   : > { %v6882_v27 = vmul.f32 -1.442695, %v3364_v5  ;;  %v6883_v14 = vmul.f32 -1.442695, %v3366_v37  ;;  %v9413_v5 = vld [vmem:[%s10065_s3 + $0x4c] ss:$16 sps:$4 sm:$0xff]  }
 0x56e   : > { %7776 = vpow2.f32 %v6881_v63  ;;  %v9422_v63 = vld [vmem:[%s10065_s3 + $0x40] ss:$16 sps:$4 sm:$0xff]   ;;  %v9434_v8 = vld [vmem:[%s10065_s3 + $0x64] ss:$16 sps:$4 sm:$0xff]  }
 0x56f   : > { %7778 = vpow2.f32 %v6882_v27  ;;  %v9427_v27 = vld [vmem:[%s10065_s3 + $0x48] ss:$16 sps:$4 sm:$0xff]   ;;  %v9441_v37 = vld [vmem:[%s10065_s3 + $0x60] ss:$16 sps:$4 sm:$0xff]  }
 0x570   : > { %7780 = vpow2.f32 %v6883_v14 }
 0x571   : > { %7782 = vtanh.f32 %v3365_v32 }
 0x578   : > { %v7777_v25 = vpop.eup %7776 }
 0x579   : > { %v7779_v6 = vpop.eup %7778  ;;  %v3370_v22 = vadd.f32 1.0, %v7777_v25 }
 0x57a   : > { %v3376_v16 = vadd.f32 1.0, %v7779_v6  ;;  %v7781_v57 = vpop.eup %7780 }
 0x57b   : > { %7784 = vrcp.f32 %v3370_v22  ;;  %v7783_v3 = vpop.eup %7782  ;;  %v3383_v46 = vadd.f32 1.0, %v7781_v57 }
 0x57c   : > { %7786 = vrcp.f32 %v3376_v16 }
 0x57d   : > { %7788 = vrcp.f32 %v3383_v46  ;;  %v9494_v46 = vld [vmem:[%s10065_s3 + $0xa8] ss:$16 sps:$4 sm:$0xff]  }
 0x585   : > { %v7785_v45 = vpop.eup %7784 }
 0x586   : > { %v7787_v0 = vpop.eup %7786  ;;  %v3387_v42 = vmul.f32 %v7785_v45, %v7783_v3  ;;  %v9465_v3 = vld [vmem:[%s10065_s3 + $0x6c] ss:$16 sps:$4 sm:$0xff]  }
 0x587   : > { %v3386_v47 = vmul.f32 %v7787_v0, %v2790_v36  ;;  %v7789_v44 = vpop.eup %7788  ;;  %v9454_v38 = vpop.f32.mrb[36].mxu0  ;;  %v9470_v36 = vld [vmem:[%s10065_s3 + $0x68] ss:$16 sps:$4 sm:$0xff]   ;;  %v9477_v45 = vld [vmem:[%s10065_s3 + $0x8c] ss:$16 sps:$4 sm:$0xff]  }
 0x588   : > { %v9456_v14 = vpop.f32.mrb[44].mxu1  ;;  %v9458_v32 = vpop.f32.mrb[37].mxu0  ;;  %v9482_v0 = vld [vmem:[%s10065_s3 + $0x88] ss:$16 sps:$4 sm:$0xff]  }
 0x589   : > { %v3388_v7 = vadd.f32 %v3387_v42, %v3386_v47  ;;  %v9460_v25 = vpop.f32.mrb[45].mxu1  ;;  %v3662_v6 = vpop.f32.mrb[38].mxu0  ;;  %v9489_v42 = vld [vmem:[%s10065_s3 + $0xac] ss:$16 sps:$4 sm:$0xff]  }
 0x58a   : > { %v3703_v22 = vpop.f32.mrb[46].mxu1  ;;  %v3663_v16 = vpop.f32.mrb[39].mxu0  ;;  %v9501_v47 = vld [vmem:[%s10065_s3 + $0xcc] ss:$16 sps:$4 sm:$0xff]  }
 0x58b   : > { %7790 = vtanh.f32 %v3388_v7  ;;  %3392 = vst [vmem:[#allocation3 + $0x20] sm:$0xff] %v3388_v7  ;;  %v3704_v57 = vpop.f32.mrb[47].mxu1  ;;  %v9506_v7 = vld [vmem:[%s10065_s3 + $0xc8] ss:$16 sps:$4 sm:$0xff]   ;;  %v9525_v6 = vld [vmem:[%s10064_s2 + $0xc] ss:$16 sps:$4 sm:$0xff]  }
 0x58c   : > { %v9530_v22 = vld [vmem:[%s10064_s2 + $0x8] ss:$16 sps:$4 sm:$0xff]   ;;  %v9540_v16 = vld [vmem:[%s10064_s2 + $0x2c] ss:$16 sps:$4 sm:$0xff]  }
 0x58d   : > { %v9546_v57 = vld [vmem:[%s10064_s2 + $0x28] ss:$16 sps:$4 sm:$0xff]  }
 0x58e   : > { %10233 = vst [vmem:[#allocation31_spill] sm:$0xff] %v9546_v57 }
 0x595   : > { %v7791_v62 = vpop.eup %7790 }
 0x596   : > { %v3390_v43 = vmul.f32 %v7791_v62, %v7789_v44  ;;  %v9513_v44 = vld [vmem:[%s10065_s3 + $0xec] ss:$16 sps:$4 sm:$0xff]   ;;  %v9518_v62 = vld [vmem:[%s10065_s3 + $0xe8] ss:$16 sps:$4 sm:$0xff]  }
 0x598   : > { %3391 = vst [vmem:[#allocation2 + $0x20] sm:$0xff] %v3390_v43  ;;  %v9367_v55 = vadd.f32 %v3390_v43, %v9145_v54  ;;  %v9389_v54 = vld [vmem:[%s10065_s3 + $0x2c] ss:$16 sps:$4 sm:$0xff]   ;;  %v4002_v43 = vld [vmem:[#allocation2 + $0x30] sm:$0xff] }
 0x59a   : > { %v3398_v1 = vpack.c.bf16 %v9367_v55, %v9367_v55 }
 0x59c   : > { %3899 = vmatmul.mubr.bf16.vlgmr.msra.gmra.mrb[40].mxu0 %v3398_v1  ;;  %3940 = vmatmul.mubr.bf16.vlgmr.msra.gmra.mrb[48].mxu1 %v3398_v1  ;;  %v4038_v1 = vpack.c.bf16 %v4002_v43, %v4002_v43  ;;  %v9555_v43 = vld [vmem:[%s10064_s2 + $0x4c] ss:$16 sps:$4 sm:$0xff]  }
 0x59d   : > { %4232 = vmatpush1.bf16.msra.mxu0 %v9372_v33  ;;  %4273 = vmatpush1.bf16.msra.mxu1 %v9377_v19  ;;  %10234 = vst [vmem:[#allocation19_spill] sm:$0xff] %v9555_v43 }
 0x59e   : > { %4233 = vmatprep.subr.bf16.mxu0 %v9384_v39  ;;  %4274 = vmatprep.subr.bf16.mxu1 %v9389_v54 }
 0x59f   : > { %4263 = vmatprep.mubr.bf16.mxu0 %v10155_v28  ;;  %4304 = vmatprep.mubr.bf16.mxu1 %v10155_v28 }
 0x5a1   : > { %4234 = vmatpush1.bf16.msra.mxu0 %v9396_v60  ;;  %4275 = vmatpush1.bf16.msra.mxu1 %v9401_v31 }
 0x5a2   : > { %4235 = vmatprep.subr.bf16.mxu0 %v9408_v34  ;;  %4276 = vmatprep.subr.bf16.mxu1 %v9413_v5 }
 0x5a5   : > { %4236 = vmatpush1.bf16.msra.mxu0 %v9422_v63  ;;  %4277 = vmatpush1.bf16.msra.mxu1 %v9427_v27 }
 0x5a6   : > { %4237 = vmatprep.subr.bf16.mxu0 %v9434_v8  ;;  %4278 = vmatprep.subr.bf16.mxu1 %v9465_v3 }
 0x5a9   : > { %4238 = vmatpush1.bf16.msra.mxu0 %v9441_v37  ;;  %4279 = vmatpush1.bf16.msra.mxu1 %v9470_v36 }
 0x5aa   : > { %4239 = vmatprep.subr.bf16.mxu0 %v9185_v29  ;;  %4280 = vmatprep.subr.bf16.mxu1 %v9477_v45 }
 0x5ad   : > { %4240 = vmatpush1.bf16.msra.mxu0 %v9190_v30  ;;  %4281 = vmatpush1.bf16.msra.mxu1 %v9482_v0 }
 0x5ae   : > { %4241 = vmatprep.subr.bf16.mxu0 %v9197_v18  ;;  %4282 = vmatprep.subr.bf16.mxu1 %v9489_v42 }
 0x5b1   : > { %4242 = vmatpush1.bf16.msra.mxu0 %v9202_v20  ;;  %4283 = vmatpush1.bf16.msra.mxu1 %v9494_v46 }
 0x5b2   : > { %4243 = vmatprep.subr.bf16.mxu0 %v9209_v40  ;;  %4284 = vmatprep.subr.bf16.mxu1 %v9501_v47 }
 0x5b5   : > { %4244 = vmatpush1.bf16.msra.mxu0 %v9214_v49  ;;  %4285 = vmatpush1.bf16.msra.mxu1 %v9506_v7 }
 0x5b6   : > { %4245 = vmatprep.subr.bf16.mxu0 %v9221_v50  ;;  %4286 = vmatprep.subr.bf16.mxu1 %v9513_v44 }
 0x5b9   : > { %4246 = vmatpush1.bf16.msra.mxu0 %v9226_v23  ;;  %4287 = vmatpush1.bf16.msra.mxu1 %v9518_v62 }
 0x5ba   : > { %4473 = vmatprep.subr.bf16.mxu0 %v9233_v10  ;;  %4514 = vmatprep.subr.bf16.mxu1 %v9525_v6 }
 0x5bc   : > { %4264 = vmatmul.mubr.bf16.vlgmr.msra.gmra.mrb[44].mxu0 %v4038_v1  ;;  %4305 = vmatmul.mubr.bf16.vlgmr.msra.gmra.mrb[52].mxu1 %v4038_v1  ;;  %v9560_v1 = vld [vmem:[%s10064_s2 + $0x48] ss:$16 sps:$4 sm:$0xff]  }
 0x5bd   : > { %4474 = vmatpush1.bf16.msra.mxu0 %v9238_v26  ;;  %4505 = vmatprep.mubr.bf16.mxu0 %v10155_v28  ;;  %10235 = vst [vmem:[#allocation33_spill] sm:$0xff] %v9560_v1 }
 0x5be   : > { %4515 = vmatpush1.bf16.msra.mxu1 %v9530_v22  ;;  %4475 = vmatprep.subr.bf16.mxu0 %v9249_v21 }
 0x5bf   : > { %4546 = vmatprep.mubr.bf16.mxu1 %v10155_v28  ;;  %4516 = vmatprep.subr.bf16.mxu1 %v9540_v16 }
 0x5c1   : > { %4476 = vmatpush1.bf16.msra.mxu0 %v9254_v2 }
 0x5c2   : > { %4477 = vmatprep.subr.bf16.mxu0 %v9263_v15  ;;  %4517 = vmatpush1.bf16.msra.mxu1 %v9546_v57  ;;  %v9569_v15 = vld [vmem:[%s10064_s2 + $0x6c] ss:$16 sps:$4 sm:$0xff]   ;;  %v9574_v57 = vld [vmem:[%s10064_s2 + $0x68] ss:$16 sps:$4 sm:$0xff]  }
 0x5c3   : > { %4518 = vmatprep.subr.bf16.mxu1 %v9555_v43  ;;  %10236 = vst [vmem:[#allocation20_spill] sm:$0xff] %v9569_v15  ;;  %10237 = vst [vmem:[#allocation34_spill] sm:$0xff] %v9574_v57 }
 0x5c5   : > { %4478 = vmatpush1.bf16.msra.mxu0 %v9268_v13 }
 0x5c6   : > { %4479 = vmatprep.subr.bf16.mxu0 %v9277_v17  ;;  %4519 = vmatpush1.bf16.msra.mxu1 %v9560_v1  ;;  %v9583_v17 = vld [vmem:[%s10064_s2 + $0x88] ss:$16 sps:$4 sm:$0xff]   ;;  %v9588_v1 = vld [vmem:[%s10064_s2 + $0x8c] ss:$16 sps:$4 sm:$0xff]  }
 0x5c7   : > { %4520 = vmatprep.subr.bf16.mxu1 %v9569_v15  ;;  %10238 = vst [vmem:[#allocation21_spill] sm:$0xff] %v9583_v17  ;;  %10239 = vst [vmem:[#allocation22_spill] sm:$0xff] %v9588_v1 }
 0x5c9   : > { %4480 = vmatpush1.bf16.msra.mxu0 %v9282_v11  ;;  %v9594_v11 = vld [vmem:[%s10064_s2 + $0xac] ss:$16 sps:$4 sm:$0xff]  }
 0x5ca   : > { %4481 = vmatprep.subr.bf16.mxu0 %v9296_v59  ;;  %4521 = vmatpush1.bf16.msra.mxu1 %v9574_v57  ;;  %10240 = vst [vmem:[#allocation23_spill] sm:$0xff] %v9594_v11  ;;  %v9602_v59 = vld [vmem:[%s10064_s2 + $0xa8] ss:$16 sps:$4 sm:$0xff]  }
 0x5cb   : > { %4522 = vmatprep.subr.bf16.mxu1 %v9588_v1  ;;  %10241 = vst [vmem:[#allocation24_spill] sm:$0xff] %v9602_v59 }
 0x5cd   : > { %4482 = vmatpush1.bf16.msra.mxu0 %v9291_v51  ;;  %v9608_v51 = vld [vmem:[%s10064_s2 + $0xcc] ss:$16 sps:$4 sm:$0xff]  }
 0x5ce   : > { %4483 = vmatprep.subr.bf16.mxu0 %v9302_v52  ;;  %4523 = vmatpush1.bf16.msra.mxu1 %v9583_v17  ;;  %10242 = vst [vmem:[#allocation25_spill] sm:$0xff] %v9608_v51  ;;  %v9616_v52 = vld [vmem:[%s10064_s2 + $0xc8] ss:$16 sps:$4 sm:$0xff]  }
 0x5cf   : > { %4524 = vmatprep.subr.bf16.mxu1 %v9594_v11  ;;  %10243 = vst [vmem:[#allocation26_spill] sm:$0xff] %v9616_v52  ;;  %v9622_v11 = vld [vmem:[%s10064_s2 + $0xec] ss:$16 sps:$4 sm:$0xff]  }
 0x5d0   : > { %10244 = vst [vmem:[#allocation35_spill] sm:$0xff] %v9622_v11 }
 0x5d1   : > { %4484 = vmatpush1.bf16.msra.mxu0 %v9310_v53 }
 0x5d2   : > { %4485 = vmatprep.subr.bf16.mxu0 %v9316_v9  ;;  %4525 = vmatpush1.bf16.msra.mxu1 %v9602_v59  ;;  %v9630_v9 = vld [vmem:[%s10064_s2 + $0xe8] ss:$16 sps:$4 sm:$0xff]  }
 0x5d3   : > { %4526 = vmatprep.subr.bf16.mxu1 %v9608_v51  ;;  %10245 = vst [vmem:[#allocation36_spill] sm:$0xff] %v9630_v9 }
 0x5d5   : > { %4486 = vmatpush1.bf16.msra.mxu0 %v9324_v56 }
 0x5d6   : > { %4487 = vmatprep.subr.bf16.mxu0 %v9330_v58  ;;  %4527 = vmatpush1.bf16.msra.mxu1 %v9616_v52  ;;  %v3948_v58 = vld [vmem:[%s10066_s4] sm:$0xf] }
 0x5d7   : > { %4528 = vmatprep.subr.bf16.mxu1 %v9622_v11  ;;  %v3953_v52 = vrot.slane %v3948_v58, %v10232_v48  ;;  %v3957_v59 = vrot.slane %v3948_v58, %v10214_v4  ;;  %v3965_v4 = vrot.slane %v3948_v58, %v8554_v12 }
 0x5d9   : > { %4488 = vmatpush1.bf16.msra.mxu0 %v9338_v61 }
 0x5da   : > { %4838 = vmatprep.subr.bf16.mxu0 %v9346_v35  ;;  %4529 = vmatpush1.bf16.msra.mxu1 %v9630_v9 }
 0x5db   : > { %4879 = vmatprep.subr.bf16.mxu1 %v9351_v41 }
 0x66f   : > { %v3900_v56 = vpop.f32.mrb[40].mxu0  ;;  %v3941_v51 = vpop.f32.mrb[48].mxu1 }
 0x670   : > { %v3901_v11 = vadd.f32 %v3900_v56, %v9454_v38  ;;  %v3942_v61 = vadd.f32 %v3941_v51, %v9456_v14  ;;  %v3902_v53 = vpop.f32.mrb[41].mxu0  ;;  %v3943_v35 = vpop.f32.mrb[49].mxu1  ;;  %v3961_v51 = vrot.slane %v3948_v58, %v10171_v24 }
 0x671   : > { %v3903_v9 = vadd.f32 %v3902_v53, %v9458_v32  ;;  %v3944_v41 = vadd.f32 %v3943_v35, %v9460_v25  ;;  %v3904_v17 = vpop.f32.mrb[42].mxu0  ;;  %v3945_v1 = vpop.f32.mrb[50].mxu1 }
 0x672   : > { %v3970_v57 = vadd.f32 %v3953_v52, %v3901_v11  ;;  %v3905_v15 = vpop.f32.mrb[43].mxu0  ;;  %v3946_v13 = vpop.f32.mrb[51].mxu1  ;;  %v3972_v14 = vadd.f32 %v3961_v51, %v3942_v61  ;;  %v3397_v11 = vld [vmem:[#allocation3 + $0x28] sm:$0xff]  ;;  %v10273_v51 = vld [vmem:[#allocation9_spill] sm:$0xff] }
 0x673   : > { %v3971_v48 = vadd.f32 %v3957_v59, %v3903_v9  ;;  %v3973_v56 = vadd.f32 %v3965_v4, %v3944_v41 }
 0x674   : > { %v6948_v43 = vmul.f32 -1.442695, %v3970_v57 }
 0x675   : > { %v6949_v2 = vmul.f32 -1.442695, %v3971_v48  ;;  %v6950_v38 = vmul.f32 -1.442695, %v3973_v56 }
 0x676   : > { %7792 = vpow2.f32 %v6948_v43 }
 0x677   : > { %7794 = vpow2.f32 %v6949_v2 }
 0x678   : > { %7796 = vpow2.f32 %v6950_v38 }
 0x679   : > { %7798 = vtanh.f32 %v3972_v14 }
 0x680   : > { %v7793_v53 = vpop.eup %7792 }
 0x681   : > { %v7795_v32 = vpop.eup %7794  ;;  %v3977_v25 = vadd.f32 1.0, %v7793_v53 }
 0x682   : > { %v3983_v17 = vadd.f32 1.0, %v7795_v32  ;;  %v7797_v15 = vpop.eup %7796 }
 0x683   : > { %7800 = vrcp.f32 %v3977_v25  ;;  %v7799_v13 = vpop.eup %7798  ;;  %v3990_v2 = vadd.f32 1.0, %v7797_v15 }
 0x684   : > { %7802 = vrcp.f32 %v3983_v17 }
 0x685   : > { %7804 = vrcp.f32 %v3990_v2 }
 0x68d   : > { %v7801_v59 = vpop.eup %7800 }
 0x68e   : > { %v7803_v52 = vpop.eup %7802  ;;  %v3994_v9 = vmul.f32 %v7801_v59, %v7799_v13 }
 0x68f   : > { %v3993_v4 = vmul.f32 %v7803_v52, %v3397_v11  ;;  %v7805_v58 = vpop.eup %7804 }
 0x691   : > { %v3995_v48 = vadd.f32 %v3994_v9, %v3993_v4 }
 0x693   : > { %7806 = vtanh.f32 %v3995_v48  ;;  %3999 = vst [vmem:[#allocation3 + $0x28] sm:$0xff] %v3995_v48 }
 0x69d   : > { %v7807_v61 = vpop.eup %7806 }
 0x69e   : > { %v3997_v57 = vmul.f32 %v7807_v61, %v7805_v58 }
 0x6a0   : > { %3998 = vst [vmem:[#allocation2 + $0x28] sm:$0xff] %v3997_v57  ;;  %v9649_v43 = vadd.f32 %v3997_v57, %v9367_v55 }
 0x6a2   : > { %v4005_v1 = vpack.c.bf16 %v9649_v43, %v9649_v43 }
 0x6a4   : > { %4506 = vmatmul.mubr.bf16.vlgmr.msra.gmra.mrb[48].mxu0 %v4005_v1  ;;  %4547 = vmatmul.mubr.bf16.vlgmr.msra.gmra.mrb[56].mxu1 %v4005_v1 }
 0x6a5   : > { %4839 = vmatpush1.bf16.msra.mxu0 %v9372_v33  ;;  %4880 = vmatpush1.bf16.msra.mxu1 %v9377_v19  ;;  %v4609_v19 = vld [vmem:[#allocation2 + $0x38] sm:$0xff] }
 0x6a6   : > { %4840 = vmatprep.subr.bf16.mxu0 %v9384_v39  ;;  %4881 = vmatprep.subr.bf16.mxu1 %v9389_v54  ;;  %v10248_v39 = vld [vmem:[#allocation11_spill] sm:$0xff] }
 0x6a7   : > { %4870 = vmatprep.mubr.bf16.mxu0 %v10155_v28  ;;  %4911 = vmatprep.mubr.bf16.mxu1 %v10155_v28  ;;  %v10249_v54 = vld [vmem:[#allocation19_spill] sm:$0xff] }
 0x6a9   : > { %4841 = vmatpush1.bf16.msra.mxu0 %v9396_v60  ;;  %4882 = vmatpush1.bf16.msra.mxu1 %v9401_v31  ;;  %v10250_v60 = vld [vmem:[#allocation13_spill] sm:$0xff]  ;;  %v10252_v31 = vld [vmem:[#allocation27_spill] sm:$0xff] }
 0x6aa   : > { %4842 = vmatprep.subr.bf16.mxu0 %v9408_v34  ;;  %4883 = vmatprep.subr.bf16.mxu1 %v9413_v5  ;;  %v10254_v34 = vld [vmem:[#allocation14_spill] sm:$0xff] }
 0x6ab   : > { %v10255_v5 = vld [vmem:[#allocation34_spill] sm:$0xff] }
 0x6ad   : > { %4843 = vmatpush1.bf16.msra.mxu0 %v9422_v63  ;;  %4884 = vmatpush1.bf16.msra.mxu1 %v9427_v27  ;;  %v10257_v63 = vld [vmem:[#allocation22_spill] sm:$0xff]  ;;  %v10258_v27 = vld [vmem:[#allocation28_spill] sm:$0xff] }
 0x6ae   : > { %4844 = vmatprep.subr.bf16.mxu0 %v9434_v8  ;;  %4885 = vmatprep.subr.bf16.mxu1 %v9465_v3  ;;  %v10259_v8 = vld [vmem:[#allocation21_spill] sm:$0xff]  ;;  %v10261_v3 = vld [vmem:[#allocation23_spill] sm:$0xff] }
 0x6b1   : > { %4845 = vmatpush1.bf16.msra.mxu0 %v9441_v37  ;;  %4886 = vmatpush1.bf16.msra.mxu1 %v9470_v36  ;;  %v10260_v37 = vld [vmem:[#allocation29_spill] sm:$0xff]  ;;  %v10262_v36 = vld [vmem:[#allocation16_spill] sm:$0xff] }
 0x6b2   : > { %4846 = vmatprep.subr.bf16.mxu0 %v9185_v29  ;;  %4887 = vmatprep.subr.bf16.mxu1 %v9477_v45  ;;  %v4265_v29 = vpop.f32.mrb[44].mxu0  ;;  %v10263_v45 = vld [vmem:[#allocation24_spill] sm:$0xff] }
 0x6b5   : > { %4847 = vmatpush1.bf16.msra.mxu0 %v9190_v30  ;;  %4888 = vmatpush1.bf16.msra.mxu1 %v9482_v0  ;;  %v4267_v30 = vpop.f32.mrb[45].mxu0  ;;  %v10264_v0 = vld [vmem:[#allocation30_spill] sm:$0xff] }
 0x6b6   : > { %4848 = vmatprep.subr.bf16.mxu0 %v9197_v18  ;;  %4889 = vmatprep.subr.bf16.mxu1 %v9489_v42  ;;  %v4269_v18 = vpop.f32.mrb[46].mxu0  ;;  %v10265_v42 = vld [vmem:[#allocation25_spill] sm:$0xff] }
 0x6b9   : > { %4849 = vmatpush1.bf16.msra.mxu0 %v9202_v20  ;;  %4890 = vmatpush1.bf16.msra.mxu1 %v9494_v46  ;;  %v4306_v20 = vpop.f32.mrb[52].mxu1  ;;  %v10266_v46 = vld [vmem:[#allocation18_spill] sm:$0xff] }
 0x6ba   : > { %4850 = vmatprep.subr.bf16.mxu0 %v9209_v40  ;;  %4891 = vmatprep.subr.bf16.mxu1 %v9501_v47  ;;  %v4270_v40 = vpop.f32.mrb[47].mxu0  ;;  %v10267_v47 = vld [vmem:[#allocation26_spill] sm:$0xff] }
 0x6bd   : > { %4851 = vmatpush1.bf16.msra.mxu0 %v9214_v49  ;;  %4892 = vmatpush1.bf16.msra.mxu1 %v9506_v7  ;;  %v4308_v49 = vpop.f32.mrb[53].mxu1  ;;  %v10268_v7 = vld [vmem:[#allocation32_spill] sm:$0xff] }
 0x6be   : > { %4852 = vmatprep.subr.bf16.mxu0 %v9221_v50  ;;  %4893 = vmatprep.subr.bf16.mxu1 %v9513_v44  ;;  %v4310_v55 = vpop.f32.mrb[54].mxu1  ;;  %v4645_v50 = vpack.c.bf16 %v4609_v19, %v4609_v19  ;;  %v10269_v44 = vld [vmem:[#allocation35_spill] sm:$0xff] }
 0x6bf   : > { %v4311_v33 = vpop.f32.mrb[55].mxu1 }
 0x6c0   : > { %v4004_v33 = vld [vmem:[#allocation3 + $0x30] sm:$0xff] }
 0x6c1   : > { %4853 = vmatpush1.bf16.msra.mxu0 %v9226_v23  ;;  %4894 = vmatpush1.bf16.msra.mxu1 %v9518_v62  ;;  %v10246_v23 = vld [vmem:[#allocation12_spill] sm:$0xff]  ;;  %v10270_v62 = vld [vmem:[#allocation17_spill] sm:$0xff] }
 0x6c2   : > { %5080 = vmatprep.subr.bf16.mxu0 %v9233_v10  ;;  %5121 = vmatprep.subr.bf16.mxu1 %v9525_v6  ;;  %v10247_v10 = vld [vmem:[#allocation31_spill] sm:$0xff]  ;;  %v10271_v6 = vld [vmem:[#allocation36_spill] sm:$0xff] }
 0x6c4   : > { %4871 = vmatmul.mubr.bf16.vlgmr.msra.gmra.mrb[52].mxu0 %v4645_v50  ;;  %4912 = vmatmul.mubr.bf16.vlgmr.msra.gmra.mrb[60].mxu1 %v4645_v50 }
 0x6c5   : > { %5081 = vmatpush1.bf16.msra.mxu0 %v9238_v26  ;;  %5122 = vmatpush1.bf16.msra.mxu1 %v9530_v22  ;;  %v10251_v26 = vld [vmem:[#allocation33_spill] sm:$0xff] }
 0x6c6   : > { %5082 = vmatprep.subr.bf16.mxu0 %v9249_v21  ;;  %5123 = vmatprep.subr.bf16.mxu1 %v9540_v16  ;;  %v10253_v21 = vld [vmem:[#allocation20_spill] sm:$0xff]  ;;  %v4555_v22 = vld [vmem:[%s10066_s4] sm:$0xf]  ;;  %v10272_v16 = vld [vmem:[#allocation10_spill] sm:$0xff] }
 0x6c7   : > { %5112 = vmatprep.mubr.bf16.mxu0 %v10155_v28  ;;  %5153 = vmatprep.mubr.bf16.mxu1 %v10155_v28  ;;  %v10256_v28 = vld [vmem:[#allocation15_spill] sm:$0xff]  ;;  %v4560_v35 = vrot.slane %v4555_v22, %v10272_v16  ;;  %v4564_v38 = vrot.slane %v4555_v22, %v10273_v51  ;;  %v4572_v58 = vrot.slane %v4555_v22, %v8554_v12 }
 0x6c8   : > { %v4568_v57 = vrot.slane %v4555_v22, %v10171_v24  ;;  %v5162_v22 = vld [vmem:[%s10066_s4] sm:$0xf] }
 0x6c9   : > { %5083 = vmatpush1.bf16.msra.mxu0 %v10246_v23  ;;  %5124 = vmatpush1.bf16.msra.mxu1 %v10247_v10 }
 0x6ca   : > { %5084 = vmatprep.subr.bf16.mxu0 %v10248_v39  ;;  %5125 = vmatprep.subr.bf16.mxu1 %v10249_v54 }
 0x6cd   : > { %5085 = vmatpush1.bf16.msra.mxu0 %v10250_v60  ;;  %5126 = vmatpush1.bf16.msra.mxu1 %v10251_v26 }
 0x6ce   : > { %5086 = vmatprep.subr.bf16.mxu0 %v10252_v31  ;;  %5127 = vmatprep.subr.bf16.mxu1 %v10253_v21 }
 0x6d1   : > { %5087 = vmatpush1.bf16.msra.mxu0 %v10254_v34  ;;  %5128 = vmatpush1.bf16.msra.mxu1 %v10255_v5 }
 0x6d2   : > { %5088 = vmatprep.subr.bf16.mxu0 %v10256_v28  ;;  %5129 = vmatprep.subr.bf16.mxu1 %v10257_v63 }
 0x6d5   : > { %5089 = vmatpush1.bf16.msra.mxu0 %v10258_v27  ;;  %5130 = vmatpush1.bf16.msra.mxu1 %v10259_v8 }
 0x6d6   : > { %5090 = vmatprep.subr.bf16.mxu0 %v10260_v37  ;;  %5131 = vmatprep.subr.bf16.mxu1 %v10261_v3 }
 0x6d9   : > { %5091 = vmatpush1.bf16.msra.mxu0 %v10262_v36  ;;  %5132 = vmatpush1.bf16.msra.mxu1 %v10263_v45  ;;  %v7688_v45 = vld [vmem:[%s10067_s5] sm:$0xff]  }
 0x6da   : > { %5092 = vmatprep.subr.bf16.mxu0 %v10264_v0  ;;  %5133 = vmatprep.subr.bf16.mxu1 %v10265_v42  ;;  %v7957_v0 = vmov 0.0   ;;  %v7690_v42 = vld [vmem:[%s10067_s5 + $0x10] sm:$0xff]  }
 0x6dd   : > { %5093 = vmatpush1.bf16.msra.mxu0 %v10266_v46  ;;  %5134 = vmatpush1.bf16.msra.mxu1 %v10267_v47  ;;  %v7691_v46 = vld [vmem:[%s10067_s5 + $0x18] sm:$0xff]   ;;  %v7692_v47 = vld [vmem:[%s10067_s5 + $0x20] sm:$0xff]  }
 0x6de   : > { %5094 = vmatprep.subr.bf16.mxu0 %v10268_v7  ;;  %5135 = vmatprep.subr.bf16.mxu1 %v10269_v44  ;;  %v7693_v7 = vld [vmem:[%s10067_s5 + $0x28] sm:$0xff]   ;;  %v7694_v44 = vld [vmem:[%s10067_s5 + $0x30] sm:$0xff]  }
 0x6e1   : > { %5095 = vmatpush1.bf16.msra.mxu0 %v10270_v62  ;;  %5136 = vmatpush1.bf16.msra.mxu1 %v10271_v6  ;;  %v7695_v62 = vld [vmem:[%s10067_s5 + $0x38] sm:$0xff]   ;;  %v9772_v6 = vld [vmem:[%s10063_s1] sm:$0xf] }
 0x6e2   : > { %7180 = vmatprep.subr.bf16.mxu0 %v7957_v0  ;;  %7200 = vmatprep.subr.bf16.mxu1 %v7957_v0 }
 0x777   : > { %v4507_v41 = vpop.f32.mrb[48].mxu0  ;;  %v4548_v56 = vpop.f32.mrb[56].mxu1 }
 0x778   : > { %v4508_v14 = vadd.f32 %v4507_v41, %v4265_v29  ;;  %v4549_v53 = vadd.f32 %v4548_v56, %v4306_v20  ;;  %v4509_v32 = vpop.f32.mrb[49].mxu0  ;;  %v4550_v25 = vpop.f32.mrb[57].mxu1 }
 0x779   : > { %v4510_v17 = vadd.f32 %v4509_v32, %v4267_v30  ;;  %v4551_v15 = vadd.f32 %v4550_v25, %v4308_v49  ;;  %v4511_v13 = vpop.f32.mrb[50].mxu0  ;;  %v4552_v11 = vpop.f32.mrb[58].mxu1 }
 0x77a   : > { %v4577_v59 = vadd.f32 %v4560_v35, %v4508_v14  ;;  %v4512_v52 = vpop.f32.mrb[51].mxu0  ;;  %v4553_v9 = vpop.f32.mrb[59].mxu1  ;;  %v4579_v29 = vadd.f32 %v4568_v57, %v4549_v53  ;;  %v5167_v35 = vrot.slane %v5162_v22, %v10272_v16  ;;  %v5179_v16 = vrot.slane %v5162_v22, %v8554_v12 }
 0x77b   : > { %v4578_v2 = vadd.f32 %v4564_v38, %v4510_v17  ;;  %v4580_v61 = vadd.f32 %v4572_v58, %v4551_v15  ;;  %v5171_v38 = vrot.slane %v5162_v22, %v10273_v51  ;;  %v5175_v51 = vrot.slane %v5162_v22, %v10171_v24 }
 0x77c   : > { %v7015_v4 = vmul.f32 -1.442695, %v4577_v59 }
 0x77d   : > { %v7016_v48 = vmul.f32 -1.442695, %v4578_v2  ;;  %v7017_v1 = vmul.f32 -1.442695, %v4580_v61 }
 0x77e   : > { %7808 = vpow2.f32 %v7015_v4 }
 0x77f   : > { %7810 = vpow2.f32 %v7016_v48 }
 0x780   : > { %7812 = vpow2.f32 %v7017_v1 }
 0x781   : > { %7814 = vtanh.f32 %v4579_v29 }
 0x788   : > { %v7809_v18 = vpop.eup %7808 }
 0x789   : > { %v7811_v30 = vpop.eup %7810  ;;  %v4584_v20 = vadd.f32 1.0, %v7809_v18 }
 0x78a   : > { %v4590_v40 = vadd.f32 1.0, %v7811_v30  ;;  %v7813_v49 = vpop.eup %7812 }
 0x78b   : > { %7816 = vrcp.f32 %v4584_v20  ;;  %v7815_v55 = vpop.eup %7814  ;;  %v4597_v10 = vadd.f32 1.0, %v7813_v49  ;;  %v4611_v49 = vld [vmem:[#allocation3 + $0x38] sm:$0xff] }
 0x78c   : > { %7818 = vrcp.f32 %v4590_v40 }
 0x78d   : > { %7820 = vrcp.f32 %v4597_v10 }
 0x795   : > { %v7817_v19 = vpop.eup %7816 }
 0x796   : > { %v7819_v50 = vpop.eup %7818  ;;  %v4601_v23 = vmul.f32 %v7817_v19, %v7815_v55 }
 0x797   : > { %v4600_v39 = vmul.f32 %v7819_v50, %v4004_v33  ;;  %v7821_v60 = vpop.eup %7820  ;;  %v4872_v5 = vpop.f32.mrb[52].mxu0 }
 0x798   : > { %v4913_v28 = vpop.f32.mrb[60].mxu1  ;;  %v4874_v63 = vpop.f32.mrb[53].mxu0 }
 0x799   : > { %v4602_v54 = vadd.f32 %v4601_v23, %v4600_v39  ;;  %v4915_v27 = vpop.f32.mrb[61].mxu1  ;;  %v4876_v8 = vpop.f32.mrb[54].mxu0 }
 0x79a   : > { %v4917_v37 = vpop.f32.mrb[62].mxu1  ;;  %v4877_v3 = vpop.f32.mrb[55].mxu0 }
 0x79b   : > { %7822 = vtanh.f32 %v4602_v54  ;;  %4606 = vst [vmem:[#allocation3 + $0x30] sm:$0xff] %v4602_v54  ;;  %v4918_v36 = vpop.f32.mrb[63].mxu1 }
 0x7a5   : > { %v7823_v26 = vpop.eup %7822 }
 0x7a6   : > { %v4604_v31 = vmul.f32 %v7823_v26, %v7821_v60  ;;  %v9789_v26 = vld [vmem:[%s10063_s1 + $0x10] sm:$0xf] }
 0x7a8   : > { %4605 = vst [vmem:[#allocation2 + $0x30] sm:$0xff] %v4604_v31  ;;  %v9727_v21 = vadd.f32 %v4604_v31, %v9649_v43  ;;  %v7689_v43 = vld [vmem:[%s10067_s5 + $0x8] sm:$0xff]   ;;  %v7959_v31 = vmov 1966171168  }
 0x7aa   : > { %v4612_v34 = vpack.c.bf16 %v9727_v21, %v9727_v21 }
 0x7ac   : > { %5113 = vmatmul.mubr.bf16.vlgmr.msra.gmra.mrb[56].mxu0 %v4612_v34  ;;  %5154 = vmatmul.mubr.bf16.vlgmr.msra.gmra.mrb[64].mxu1 %v4612_v34  ;;  %v5331_v34 = vunpack.c.l.s4 %v7959_v31 }
 0x7ad   : > { %7181 = vmatpush3.bf16.msra.mxu0 %v7688_v45  ;;  %7196 = vmatprep.mubr.msk.bf16.mxu0 %vm7958_vm0, %v7957_v0 }
 0x7ae   : > { %7182 = vmatprep.subr.bf16.mxu0 %v7957_v0  ;;  %7202 = vmatprep.mubr.msk.bf16.mxu1 %vm7958_vm0, %v7957_v0 }
 0x7af   : > { %7201 = vmatpush3.bf16.xpose.msra.mxu1 %v9772_v6 }
 0x7b0   : > { %7206 = vmatprep.subr.bf16.mxu1 %v7957_v0 }
 0x7b1   : > { %7183 = vmatpush3.bf16.msra.mxu0 %v7689_v43 }
 0x7b2   : > { %7184 = vmatprep.subr.bf16.mxu0 %v7957_v0 }
 0x7b5   : > { %7185 = vmatpush3.bf16.msra.mxu0 %v7690_v42 }
 0x7b6   : > { %7186 = vmatprep.subr.bf16.mxu0 %v7957_v0 }
 0x7b9   : > { %7187 = vmatpush3.bf16.msra.mxu0 %v7691_v46 }
 0x7ba   : > { %7188 = vmatprep.subr.bf16.mxu0 %v7957_v0 }
 0x7bd   : > { %7189 = vmatpush3.bf16.msra.mxu0 %v7692_v47 }
 0x7be   : > { %7190 = vmatprep.subr.bf16.mxu0 %v7957_v0 }
 0x7c1   : > { %7191 = vmatpush3.bf16.msra.mxu0 %v7693_v7  ;;  %v9802_v7 = vld [vmem:[%s10063_s1 + $0x4] sm:$0xf] }
 0x7c2   : > { %7192 = vmatprep.subr.bf16.mxu0 %v7957_v0 }
 0x7c5   : > { %7193 = vmatpush3.bf16.msra.mxu0 %v7694_v44 }
 0x7c6   : > { %7194 = vmatprep.subr.bf16.mxu0 %v7957_v0 }
 0x7c9   : > { %7195 = vmatpush3.bf16.msra.mxu0 %v7695_v62  ;;  %v9807_v62 = vld [vmem:[%s10063_s1 + $0x18] sm:$0xf] }
 0x7ca   : > { %7224 = vmatprep.subr.bf16.mxu0 %v7957_v0 }
 0x87f   : > { %v5114_v41 = vpop.f32.mrb[56].mxu0  ;;  %v5155_v56 = vpop.f32.mrb[64].mxu1 }
 0x880   : > { %v5115_v14 = vadd.f32 %v5114_v41, %v4872_v5  ;;  %v5156_v53 = vadd.f32 %v5155_v56, %v4913_v28  ;;  %v5116_v32 = vpop.f32.mrb[57].mxu0  ;;  %v5157_v25 = vpop.f32.mrb[65].mxu1  ;;  %v5332_v5 = vunpack.c.0.s8 %v5331_v34  ;;  %v10274_v28 = vld [vmem:[#allocation8_spill] sm:$0xff]  ;;  %v9820_v56 = vld [vmem:[%s10063_s1 + $0x8] sm:$0xf] }
 0x881   : > { %v5117_v17 = vadd.f32 %v5116_v32, %v4874_v63  ;;  %v5158_v15 = vadd.f32 %v5157_v25, %v4915_v27  ;;  %v5118_v13 = vpop.f32.mrb[58].mxu0  ;;  %v5159_v11 = vpop.f32.mrb[66].mxu1  ;;  %v9831_v32 = vld [vmem:[%s10063_s1 + $0xc] sm:$0xf] }
 0x882   : > { %v5184_v59 = vadd.f32 %v5167_v35, %v5115_v14  ;;  %v5119_v52 = vpop.f32.mrb[59].mxu0  ;;  %v5160_v9 = vpop.f32.mrb[67].mxu1  ;;  %v5186_v57 = vadd.f32 %v5175_v51, %v5156_v53  ;;  %v5335_v63 = vsub.s32 %v5332_v5, %v10274_v28  ;;  %v9840_v13 = vld [vmem:[%s10063_s1 + $0x14] sm:$0xf] }
 0x883   : > { %v5185_v2 = vadd.f32 %v5171_v38, %v5117_v17  ;;  %v5187_v58 = vadd.f32 %v5179_v16, %v5158_v15  ;;  %v9849_v52 = vld [vmem:[%s10063_s1 + $0x1c] sm:$0xf] }
 0x884   : > { %v7082_v4 = vmul.f32 -1.442695, %v5184_v59 }
 0x885   : > { %v7083_v48 = vmul.f32 -1.442695, %v5185_v2  ;;  %v7084_v61 = vmul.f32 -1.442695, %v5187_v58 }
 0x886   : > { %7824 = vpow2.f32 %v7082_v4 }
 0x887   : > { %7826 = vpow2.f32 %v7083_v48 }
 0x888   : > { %7828 = vpow2.f32 %v7084_v61 }
 0x889   : > { %7830 = vtanh.f32 %v5186_v57 }
 0x890   : > { %v7825_v1 = vpop.eup %7824 }
 0x891   : > { %v7827_v29 = vpop.eup %7826  ;;  %v5191_v18 = vadd.f32 1.0, %v7825_v1 }
 0x892   : > { %v5197_v30 = vadd.f32 1.0, %v7827_v29  ;;  %v7829_v20 = vpop.eup %7828 }
 0x893   : > { %7832 = vrcp.f32 %v5191_v18  ;;  %v7831_v40 = vpop.eup %7830  ;;  %v5204_v19 = vadd.f32 1.0, %v7829_v20 }
 0x894   : > { %7834 = vrcp.f32 %v5197_v30 }
 0x895   : > { %7836 = vrcp.f32 %v5204_v19 }
 0x89d   : > { %v7833_v55 = vpop.eup %7832 }
 0x89e   : > { %v7835_v12 = vpop.eup %7834  ;;  %v5208_v33 = vmul.f32 %v7833_v55, %v7831_v40 }
 0x89f   : > { %v5207_v50 = vmul.f32 %v7835_v12, %v4611_v49  ;;  %v7837_v24 = vpop.eup %7836 }
 0x8a1   : > { %v5209_v23 = vadd.f32 %v5208_v33, %v5207_v50 }
 0x8a3   : > { %5213 = vst [vmem:[#allocation3 + $0x38] sm:$0xff] %v5209_v23  ;;  %7838 = vtanh.f32 %v5209_v23 }
 0x8ad   : > { %v7839_v10 = vpop.eup %7838 }
 0x8ae   : > { %v5211_v39 = vmul.f32 %v7839_v10, %v7837_v24 }
 0x8b0   : > { %5212 = vst [vmem:[#allocation2 + $0x38] sm:$0xff] %v5211_v39  ;;  %v5214_v54 = vadd.f32 %v5211_v39, %v9727_v21 }
 0x8b2   : > { %v5223_v60 = vpack.c.bf16 %v5214_v54, %v5214_v54 }
 0x8b4   : > { %7197 = vmatmul.mubr.bf16.vlgmr.msra.gmra.mrb[60].mxu0 %v5223_v60 }
 0x8b5   : > { %7226 = vmatprep.mubr.msk.bf16.mxu0 %vm7958_vm0, %v7957_v0  ;;  %7225 = vmatpush3.bf16.xpose.msra.mxu0 %v9789_v26 }
 0x8b6   : > { %7236 = vmatprep.subr.bf16.mxu0 %v7957_v0 }
 0x987   : > { %v9794_v21 = vpop.f32.mrb[60].mxu0 }
 0x988   : > { %v5329_v27 = vcombine.high %v9794_v21, %v9794_v21  ;;  %v5336_v8 = vrot.slane %v9794_v21, %v5335_v63  ;;  %v7198_v37 = vpop.f32.mrb[61].mxu0 }
 0x989   : > { %v5325_v3 = vpop.f32.mrb[62].mxu0 }
 0x98a   : > { %v5343_v36 = vrot.slane %v5329_v27, %v5335_v63  ;;  %v5352_v45 = vrot.slane %v5336_v8, %v5335_v63  ;;  %v7199_v43 = vpop.f32.mrb[63].mxu0  ;;  %v5344_v46 = vcombine.high %v5336_v8, %v5336_v8 }
 0x98c   : > { %v5359_v42 = vrot.slane %v5343_v36, %v5335_v63  ;;  %v5386_v47 = vpack.c.bf16 %v5352_v45, %v5352_v45  ;;  %v5366_v22 = vrot.slane %v5344_v46, %v5335_v63  ;;  %v5374_v14 = vcombine.high %v5352_v45, %v5352_v45 }
 0x98d   : > { %v5345_v17 = vcombine.high %v5343_v36, %v5343_v36 }
 0x98e   : > { %v5390_v44 = vpack.c.bf16 %v5359_v42, %v5359_v42  ;;  %7203 = vmatmul.mubr.bf16.vlgmr.msra.gmra.mrb[68].mxu1 %v5386_v47  ;;  %v5375_v35 = vcombine.high %v5359_v42, %v5359_v42  ;;  %v5387_v41 = vpack.c.bf16 %v5366_v22, %v5366_v22  ;;  %v5388_v53 = vpack.c.bf16 %v5374_v14, %v5374_v14 }
 0x98f   : > { %7207 = vmatpush3.bf16.xpose.msra.mxu1 %v9802_v7  ;;  %7208 = vmatprep.mubr.msk.bf16.mxu1 %vm7958_vm0, %v7957_v0  ;;  %v5376_v25 = vcombine.high %v5366_v22, %v5366_v22  ;;  %v5373_v11 = vrot.slane %v5345_v17, %v5335_v63 }
 0x990   : > { %7227 = vmatmul.mubr.bf16.vlgmr.msra.gmra.mrb[64].mxu0 %v5390_v44  ;;  %7212 = vmatprep.subr.bf16.mxu1 %v7957_v0  ;;  %v5392_v38 = vpack.c.bf16 %v5375_v35, %v5375_v35 }
 0x991   : > { %7237 = vmatpush3.bf16.xpose.msra.mxu0 %v9807_v62  ;;  %7238 = vmatprep.mubr.msk.bf16.mxu0 %vm7958_vm0, %v7957_v0  ;;  %v5389_v15 = vpack.c.bf16 %v5376_v25, %v5376_v25  ;;  %v5391_v59 = vpack.c.bf16 %v5373_v11, %v5373_v11  ;;  %v5377_v9 = vcombine.high %v5373_v11, %v5373_v11 }
 0x992   : > { %7248 = vmatprep.subr.bf16.mxu0 %v7957_v0 }
 0x993   : > { %v5393_v2 = vpack.c.bf16 %v5377_v9, %v5377_v9 }
 0x996   : > { %7209 = vmatmul.mubr.bf16.vlgmr.msra.gmra.mrb[72].mxu1 %v5387_v41 }
 0x997   : > { %7213 = vmatpush3.bf16.xpose.msra.mxu1 %v9820_v56  ;;  %7214 = vmatprep.mubr.msk.bf16.mxu1 %vm7958_vm0, %v7957_v0 }
 0x998   : > { %7239 = vmatmul.mubr.bf16.vlgmr.msra.gmra.mrb[68].mxu0 %v5392_v38  ;;  %7218 = vmatprep.subr.bf16.mxu1 %v7957_v0 }
 0x999   : > { %7250 = vmatprep.mubr.msk.bf16.mxu0 %vm7958_vm0, %v7957_v0 }
 0x99e   : > { %7215 = vmatmul.mubr.bf16.vlgmr.msra.gmra.mrb[76].mxu1 %v5388_v53 }
 0x99f   : > { %7219 = vmatpush3.bf16.xpose.msra.mxu1 %v9831_v32  ;;  %7220 = vmatprep.mubr.msk.bf16.mxu1 %vm7958_vm0, %v7957_v0 }
 0x9a0   : > { %7230 = vmatprep.subr.bf16.mxu1 %v7957_v0 }
 0x9a6   : > { %7221 = vmatmul.mubr.bf16.vlgmr.msra.gmra.mrb[80].mxu1 %v5389_v15 }
 0x9a7   : > { %7231 = vmatpush3.bf16.xpose.msra.mxu1 %v9840_v13  ;;  %7232 = vmatprep.mubr.msk.bf16.mxu1 %vm7958_vm0, %v7957_v0 }
 0x9a8   : > { %7242 = vmatprep.subr.bf16.mxu1 %v7957_v0 }
 0x9ae   : > { %7233 = vmatmul.mubr.bf16.vlgmr.msra.gmra.mrb[84].mxu1 %v5391_v59 }
 0x9af   : > { %7243 = vmatpush3.bf16.xpose.msra.mxu1 %v9849_v52  ;;  %7244 = vmatprep.mubr.msk.bf16.mxu1 %vm7958_vm0, %v7957_v0 }
 0x9b0   : > { %7254 = vmatprep.subr.bf16.mxu1 %v7957_v0 }
 0x9b6   : > { %7245 = vmatmul.mubr.bf16.vlgmr.msra.gmra.mrb[88].mxu1 %v5393_v2 }
 0x9b7   : > { %7256 = vmatprep.mubr.msk.bf16.mxu1 %vm7958_vm0, %v7957_v0 }
 0xa61   : > { %v5428_v4 = vpop.f32.mrb[68].mxu1 }
 0xa62   : > { %v7204_v48 = vpop.f32.mrb[69].mxu1  ;;  %v5715_v16 = vsel %vm5714_vm1, %v5428_v4, -inf }
 0xa63   : > { %v5588_v58 = vpop.f32.mrb[64].mxu0  ;;  %5716 = vmax.xlane.f32.xlu0 %v5715_v16  ;;  %v5431_v51 = vpop.f32.mrb[70].mxu1 }
 0xa64   : > { %v7228_v61 = vpop.f32.mrb[65].mxu0  ;;  %v7205_v57 = vpop.f32.mrb[71].mxu1  ;;  %v5727_v50 = vsel %vm5714_vm1, %v5588_v58, -inf }
 0xa65   : > { %v5591_v1 = vpop.f32.mrb[66].mxu0 }
 0xa66   : > { %v7229_v29 = vpop.f32.mrb[67].mxu0 }
 0xa69   : > { %v5468_v18 = vpop.f32.mrb[72].mxu1 }
 0xa6a   : > { %v7210_v30 = vpop.f32.mrb[73].mxu1  ;;  %v5718_v20 = vsel %vm5714_vm1, %v5468_v18, -inf }
 0xa6b   : > { %v5668_v40 = vpop.f32.mrb[68].mxu0  ;;  %5719 = vmax.xlane.f32.xlu0 %v5718_v20  ;;  %v5471_v49 = vpop.f32.mrb[74].mxu1 }
 0xa6c   : > { %v7240_v55 = vpop.f32.mrb[69].mxu0  ;;  %v7211_v12 = vpop.f32.mrb[75].mxu1  ;;  %v5733_v39 = vsel %vm5714_vm1, %v5668_v40, -inf }
 0xa6d   : > { %v5671_v33 = vpop.f32.mrb[70].mxu0 }
 0xa6e   : > { %v7241_v19 = vpop.f32.mrb[71].mxu0 }
 0xa6f   : > { %5728 = vmax.xlane.f32.xlu0 %v5727_v50 }
 0xa71   : > { %v5508_v23 = vpop.f32.mrb[76].mxu1 }
 0xa72   : > { %v7216_v24 = vpop.f32.mrb[77].mxu1  ;;  %v5721_v10 = vsel %vm5714_vm1, %v5508_v23, -inf }
 0xa73   : > { %5722 = vmax.xlane.f32.xlu1 %v5721_v10  ;;  %v5511_v54 = vpop.f32.mrb[78].mxu1  ;;  %5734 = vmax.xlane.f32.xlu0 %v5733_v39  ;;  %v5817_v39 = vsel %vm5815_vm2, %v9772_v6, 0 }
 0xa74   : > { %v7217_v60 = vpop.f32.mrb[79].mxu1  ;;  %7249 = vmatpush3.bf16.msra.mxu0 %v5817_v39 }
 0xa75   : > { %7260 = vmatprep.subr.bf16.mxu0 %v7957_v0 }
 0xa79   : > { %v5548_v31 = vpop.f32.mrb[80].mxu1 }
 0xa7a   : > { %v7222_v34 = vpop.f32.mrb[81].mxu1  ;;  %v5724_v5 = vsel %vm5714_vm1, %v5548_v31, -inf }
 0xa7b   : > { %5725 = vmax.xlane.f32.xlu1 %v5724_v5  ;;  %v5551_v28 = vpop.f32.mrb[82].mxu1 }
 0xa7c   : > { %v7223_v63 = vpop.f32.mrb[83].mxu1 }
 0xa81   : > { %v5628_v27 = vpop.f32.mrb[84].mxu1 }
 0xa82   : > { %v7234_v8 = vpop.f32.mrb[85].mxu1  ;;  %v5730_v37 = vsel %vm5714_vm1, %v5628_v27, -inf }
 0xa83   : > { %5731 = vmax.xlane.f32.xlu1 %v5730_v37  ;;  %v5631_v3 = vpop.f32.mrb[86].mxu1 }
 0xa84   : > { %v7235_v36 = vpop.f32.mrb[87].mxu1 }
 0xa89   : > { %v5708_v45 = vpop.f32.mrb[88].mxu1 }
 0xa8a   : > { %v7246_v43 = vpop.f32.mrb[89].mxu1  ;;  %v5736_v42 = vsel %vm5714_vm1, %v5708_v45, -inf }
 0xa8b   : > { %5737 = vmax.xlane.f32.xlu1 %v5736_v42  ;;  %v5711_v46 = vpop.f32.mrb[90].mxu1  ;;  %v5955_v42 = vsel %vm5815_vm2, %v9831_v32, 0 }
 0xa8c   : > { %v7247_v47 = vpop.f32.mrb[91].mxu1 }
 0xaf0   : > { %v5717_v44 = vpop.xlane.xlu0 %5716 }
 0xaf1   : > { %v5739_v22 = vsub.f32 %v5428_v4, %v5717_v44 }
 0xaf3   : > { %v5747_v35 = vmul.f32 1.442695, %v5739_v22 }
 0xaf5   : > { %7840 = vpow2.f32 %v5747_v35  ;;  %v6001_v35 = vsel %vm5815_vm2, %v9789_v26, 0  ;;  %v6047_v26 = vsel %vm5815_vm2, %v9840_v13, 0 }
 0xaf8   : > { %v5720_v41 = vpop.xlane.xlu0 %5719 }
 0xaf9   : > { %v5740_v38 = vsub.f32 %v5468_v18, %v5720_v41 }
 0xafb   : > { %v5749_v14 = vmul.f32 1.442695, %v5740_v38 }
 0xafc   : > { %v5729_v53 = vpop.xlane.xlu0 %5728 }
 0xafd   : > { %7842 = vpow2.f32 %v5749_v14  ;;  %v5743_v17 = vsub.f32 %v5588_v58, %v5729_v53 }
 0xaff   : > { %v7841_v25 = vpop.eup %7840  ;;  %v5755_v2 = vmul.f32 1.442695, %v5743_v17 }
 0xb00   : > { %v5723_v15 = vpop.xlane.xlu1 %5722  ;;  %v5735_v11 = vpop.xlane.xlu0 %5734  ;;  %v5763_v59 = vsel %vm5714_vm1, %v7841_v25, 0.0 }
 0xb01   : > { %v5741_v9 = vsub.f32 %v5508_v23, %v5723_v15  ;;  %5764 = vadd.xlane.f32.xlu0 %v5763_v59  ;;  %v5745_v16 = vsub.f32 %v5668_v40, %v5735_v11  ;;  %v6093_v15 = vsel %vm5815_vm2, %v9807_v62, 0 }
 0xb03   : > { %v5751_v48 = vmul.f32 1.442695, %v5741_v9  ;;  %v5759_v51 = vmul.f32 1.442695, %v5745_v16 }
 0xb05   : > { %7844 = vpow2.f32 %v5751_v48 }
 0xb06   : > { %7846 = vpow2.f32 %v5755_v2  ;;  %v7696_v2 = vld [vmem:[%s10069_s7] sm:$0xff]  }
 0xb07   : > { %v7843_v4 = vpop.eup %7842  ;;  %7848 = vpow2.f32 %v5759_v51  ;;  %v7697_v51 = vld [vmem:[%s10069_s7 + $0x8] sm:$0xff]  }
 0xb08   : > { %v5726_v61 = vpop.xlane.xlu1 %5725  ;;  %v5766_v57 = vsel %vm5714_vm1, %v7843_v4, 0.0 }
 0xb09   : > { %v5742_v1 = vsub.f32 %v5548_v31, %v5726_v61  ;;  %5767 = vadd.xlane.f32.xlu1 %v5766_v57  ;;  %v5863_v31 = vsel %vm5815_vm2, %v9802_v7, 0  ;;  %v5909_v7 = vsel %vm5815_vm2, %v9820_v56, 0  ;;  %v7698_v57 = vld [vmem:[%s10069_s7 + $0x10] sm:$0xff]  }
 0xb0a   : > { %7255 = vmatpush3.bf16.msra.mxu1 %v5863_v31 }
 0xb0b   : > { %v5753_v58 = vmul.f32 1.442695, %v5742_v1  ;;  %7266 = vmatprep.subr.bf16.mxu1 %v7957_v0 }
 0xb0d   : > { %7850 = vpow2.f32 %v5753_v58  ;;  %v7699_v58 = vld [vmem:[%s10069_s7 + $0x18] sm:$0xff]  }
 0xb0f   : > { %v7845_v29 = vpop.eup %7844 }
 0xb10   : > { %v5732_v18 = vpop.xlane.xlu1 %5731  ;;  %v5769_v30 = vsel %vm5714_vm1, %v7845_v29, 0.0  ;;  %v9868_v20 = vpop.eup %7846 }
 0xb11   : > { %v5744_v49 = vsub.f32 %v5628_v27, %v5732_v18  ;;  %5770 = vadd.xlane.f32.xlu0 %v5769_v30  ;;  %v5775_v55 = vsel %vm5714_vm1, %v9868_v20, 0.0  ;;  %v9872_v12 = vpop.eup %7848  ;;  %v7701_v18 = vld [vmem:[%s10069_s7 + $0x28] sm:$0xff]   ;;  %v7702_v30 = vld [vmem:[%s10069_s7 + $0x30] sm:$0xff]  }
 0xb12   : > { %v5781_v23 = vsel %vm5714_vm1, %v9872_v12, 0.0 }
 0xb13   : > { %v5757_v40 = vmul.f32 1.442695, %v5744_v49  ;;  %v6205_v49 = vpack.c.bf16 %v9794_v21, %v9794_v21  ;;  %v7706_v21 = vld [vmem:[%s10068_s6 + $0x10] sm:$0xff]  }
 0xb15   : > { %7852 = vpow2.f32 %v5757_v40  ;;  %5776 = vadd.xlane.f32.xlu0 %v5775_v55  ;;  %v7704_v40 = vld [vmem:[%s10068_s6] sm:$0xff]   ;;  %v7705_v55 = vld [vmem:[%s10068_s6 + $0x8] sm:$0xff]  }
 0xb17   : > { %v9874_v33 = vpop.eup %7850 }
 0xb18   : > { %v5738_v19 = vpop.xlane.xlu1 %5737  ;;  %v5772_v50 = vsel %vm5714_vm1, %v9874_v33, 0.0 }
 0xb19   : > { %v5746_v24 = vsub.f32 %v5708_v45, %v5738_v19  ;;  %5773 = vadd.xlane.f32.xlu1 %v5772_v50  ;;  %5782 = vadd.xlane.f32.xlu0 %v5781_v23  ;;  %v7709_v19 = vld [vmem:[%s10068_s6 + $0x28] sm:$0xff]   ;;  %v7710_v50 = vld [vmem:[%s10068_s6 + $0x30] sm:$0xff]   ;;  %v7711_v23 = vld [vmem:[%s10068_s6 + $0x38] sm:$0xff]  }
 0xb1b   : > { %v5761_v10 = vmul.f32 1.442695, %v5746_v24 }
 0xb1d   : > { %7854 = vpow2.f32 %v5761_v10 }
 0xb1f   : > { %v9883_v54 = vpop.eup %7852 }
 0xb20   : > { %v5778_v60 = vsel %vm5714_vm1, %v9883_v54, 0.0 }
 0xb21   : > { %5779 = vadd.xlane.f32.xlu1 %v5778_v60 }
 0xb27   : > { %v9890_v34 = vpop.eup %7854 }
 0xb28   : > { %v5784_v6 = vsel %vm5714_vm1, %v9890_v34, 0.0 }
 0xb29   : > { %5785 = vadd.xlane.f32.xlu1 %v5784_v6 }
 0xb8e   : > { %v5765_v5 = vpop.xlane.xlu0 %5764 }
 0xb8f   : > { %7856 = vrcp.f32 %v5765_v5 }
 0xb96   : > { %v5768_v28 = vpop.xlane.xlu1 %5767 }
 0xb97   : > { %7858 = vrcp.f32 %v5768_v28 }
 0xb99   : > { %v7857_v63 = vpop.eup %7856 }
 0xb9a   : > { %v5788_v27 = vmul.f32 %v7857_v63, %v7841_v25 }
 0xb9c   : > { %v5803_v8 = vpack.c.bf16 %v5788_v27, %v5788_v27 }
 0xb9e   : > { %7251 = vmatmul.mubr.msk.bf16.vlgmr.msra.gmra.mrb[72].mxu0 %vm5811_vm3, %v5803_v8  ;;  %v5771_v37 = vpop.xlane.xlu0 %5770 }
 0xb9f   : > { %7860 = vrcp.f32 %v5771_v37  ;;  %7261 = vmatpush3.bf16.msra.mxu0 %v5909_v7  ;;  %7262 = vmatprep.mubr.msk.bf16.mxu0 %vm7958_vm0, %v7957_v0 }
 0xba0   : > { %7272 = vmatprep.subr.bf16.mxu0 %v7957_v0 }
 0xba1   : > { %v7859_v3 = vpop.eup %7858 }
 0xba2   : > { %v5790_v36 = vmul.f32 %v7859_v3, %v7843_v4  ;;  %v5777_v45 = vpop.xlane.xlu0 %5776  ;;  %v6139_v4 = vsel %vm5815_vm2, %v9849_v52, 0 }
 0xba3   : > { %7862 = vrcp.f32 %v5777_v45 }
 0xba4   : > { %v5804_v43 = vpack.c.bf16 %v5790_v36, %v5790_v36 }
 0xba6   : > { %7257 = vmatmul.mubr.msk.bf16.vlgmr.msra.gmra.mrb[92].mxu1 %vm5811_vm3, %v5804_v43  ;;  %v5774_v56 = vpop.xlane.xlu1 %5773  ;;  %v5783_v46 = vpop.xlane.xlu0 %5782 }
 0xba7   : > { %7864 = vrcp.f32 %v5774_v56  ;;  %7267 = vmatpush3.bf16.msra.mxu1 %v5955_v42  ;;  %7268 = vmatprep.mubr.msk.bf16.mxu1 %vm7958_vm0, %v7957_v0 }
 0xba8   : > { %7278 = vmatprep.subr.bf16.mxu1 %v7957_v0  ;;  %7866 = vrcp.f32 %v5783_v46 }
 0xba9   : > { %v7861_v47 = vpop.eup %7860 }
 0xbaa   : > { %v5792_v44 = vmul.f32 %v7861_v47, %v7845_v29  ;;  %v7700_v29 = vld [vmem:[%s10069_s7 + $0x20] sm:$0xff]  }
 0xbac   : > { %v5805_v22 = vpack.c.bf16 %v5792_v44, %v5792_v44 }
 0xbad   : > { %v7863_v41 = vpop.eup %7862 }
 0xbae   : > { %v5780_v32 = vpop.xlane.xlu1 %5779  ;;  %7263 = vmatmul.mubr.msk.bf16.vlgmr.msra.gmra.mrb[76].mxu0 %vm5811_vm3, %v5805_v22  ;;  %v5796_v38 = vmul.f32 %v7863_v41, %v9868_v20  ;;  %v7703_v20 = vld [vmem:[%s10069_s7 + $0x38] sm:$0xff]  }
 0xbaf   : > { %7868 = vrcp.f32 %v5780_v32  ;;  %7273 = vmatpush3.bf16.msra.mxu0 %v6001_v35  ;;  %7274 = vmatprep.mubr.msk.bf16.mxu0 %vm7958_vm0, %v7957_v0 }
 0xbb0   : > { %7284 = vmatprep.subr.bf16.mxu0 %v7957_v0  ;;  %v5807_v17 = vpack.c.bf16 %v5796_v38, %v5796_v38 }
 0xbb1   : > { %v7865_v14 = vpop.eup %7864 }
 0xbb2   : > { %v5794_v53 = vmul.f32 %v7865_v14, %v9874_v33  ;;  %v7867_v11 = vpop.eup %7866  ;;  %v7708_v33 = vld [vmem:[%s10068_s6 + $0x20] sm:$0xff]  }
 0xbb3   : > { %v5800_v9 = vmul.f32 %v7867_v11, %v9872_v12  ;;  %v7707_v12 = vld [vmem:[%s10068_s6 + $0x18] sm:$0xff]  }
 0xbb4   : > { %v5806_v25 = vpack.c.bf16 %v5794_v53, %v5794_v53 }
 0xbb5   : > { %v5809_v48 = vpack.c.bf16 %v5800_v9, %v5800_v9 }
 0xbb6   : > { %7269 = vmatmul.mubr.msk.bf16.vlgmr.msra.gmra.mrb[96].mxu1 %vm5811_vm3, %v5806_v25  ;;  %v5786_v59 = vpop.xlane.xlu1 %5785  ;;  %7275 = vmatmul.mubr.msk.bf16.vlgmr.msra.gmra.mrb[80].mxu0 %vm5811_vm3, %v5807_v17 }
 0xbb7   : > { %7279 = vmatpush3.bf16.msra.mxu1 %v6047_v26  ;;  %7870 = vrcp.f32 %v5786_v59  ;;  %7285 = vmatpush3.bf16.msra.mxu0 %v6093_v15 }
 0xbb8   : > { %7280 = vmatprep.mubr.msk.bf16.mxu1 %vm7958_vm0, %v7957_v0  ;;  %7286 = vmatprep.mubr.msk.bf16.mxu0 %vm7958_vm0, %v7957_v0 }
 0xbb9   : > { %v7869_v13 = vpop.eup %7868  ;;  %7290 = vmatprep.subr.bf16.mxu1 %v7957_v0  ;;  %7296 = vmatprep.subr.bf16.mxu0 %v7957_v0 }
 0xbba   : > { %v5798_v62 = vmul.f32 %v7869_v13, %v9883_v54 }
 0xbbc   : > { %v5808_v16 = vpack.c.bf16 %v5798_v62, %v5798_v62 }
 0xbbe   : > { %7281 = vmatmul.mubr.msk.bf16.vlgmr.msra.gmra.mrb[100].mxu1 %vm5811_vm3, %v5808_v16  ;;  %7287 = vmatmul.mubr.msk.bf16.vlgmr.msra.gmra.mrb[84].mxu0 %vm5811_vm3, %v5809_v48 }
 0xbbf   : > { %7291 = vmatpush3.bf16.msra.mxu1 %v6139_v4  ;;  %7297 = vmatpush3.bf16.msra.mxu0 %v7696_v2 }
 0xbc0   : > { %7298 = vmatprep.subr.bf16.mxu0 %v7957_v0  ;;  %7292 = vmatprep.mubr.msk.bf16.mxu1 %vm7958_vm0, %v7957_v0 }
 0xbc1   : > { %v7871_v61 = vpop.eup %7870  ;;  %7312 = vmatprep.mubr.msk.bf16.mxu0 %vm7958_vm0, %v7957_v0 }
 0xbc2   : > { %v5802_v52 = vmul.f32 %v7871_v61, %v9890_v34 }
 0xbc3   : > { %7299 = vmatpush3.bf16.msra.mxu0 %v7697_v51 }
 0xbc4   : > { %v5810_v1 = vpack.c.bf16 %v5802_v52, %v5802_v52  ;;  %7300 = vmatprep.subr.bf16.mxu0 %v7957_v0 }
 0xbc6   : > { %7293 = vmatmul.mubr.msk.bf16.vlgmr.msra.gmra.mrb[104].mxu1 %vm5811_vm3, %v5810_v1 }
 0xbc7   : > { %7301 = vmatpush3.bf16.msra.mxu0 %v7698_v57 }
 0xbc8   : > { %7302 = vmatprep.subr.bf16.mxu0 %v7957_v0 }
 0xbcb   : > { %7303 = vmatpush3.bf16.msra.mxu0 %v7699_v58 }
 0xbcc   : > { %7304 = vmatprep.subr.bf16.mxu0 %v7957_v0 }
 0xbcf   : > { %7305 = vmatpush3.bf16.msra.mxu0 %v7700_v29 }
 0xbd0   : > { %7306 = vmatprep.subr.bf16.mxu0 %v7957_v0 }
 0xbd3   : > { %7307 = vmatpush3.bf16.msra.mxu0 %v7701_v18 }
 0xbd4   : > { %7308 = vmatprep.subr.bf16.mxu0 %v7957_v0 }
 0xbd7   : > { %7309 = vmatpush3.bf16.msra.mxu0 %v7702_v30 }
 0xbd8   : > { %7310 = vmatprep.subr.bf16.mxu0 %v7957_v0 }
 0xbdb   : > { %7311 = vmatpush3.bf16.msra.mxu0 %v7703_v20 }
 0xbdc   : > { %7316 = vmatprep.subr.bf16.mxu0 %v7957_v0 }
 0xbde   : > { %7313 = vmatmul.mubr.bf16.vlgmr.msra.gmra.mrb[88].mxu0 %v6205_v49 }
 0xbdf   : > { %7332 = vmatprep.mubr.msk.bf16.mxu0 %vm7958_vm0, %v7957_v0  ;;  %7317 = vmatpush3.bf16.msra.mxu0 %v7704_v40 }
 0xbe0   : > { %7318 = vmatprep.subr.bf16.mxu0 %v7957_v0 }
 0xbe3   : > { %7319 = vmatpush3.bf16.msra.mxu0 %v7705_v55 }
 0xbe4   : > { %7320 = vmatprep.subr.bf16.mxu0 %v7957_v0 }
 0xbe7   : > { %7321 = vmatpush3.bf16.msra.mxu0 %v7706_v21 }
 0xbe8   : > { %7322 = vmatprep.subr.bf16.mxu0 %v7957_v0 }
 0xbeb   : > { %7323 = vmatpush3.bf16.msra.mxu0 %v7707_v12 }
 0xbec   : > { %7324 = vmatprep.subr.bf16.mxu0 %v7957_v0 }
 0xbef   : > { %7325 = vmatpush3.bf16.msra.mxu0 %v7708_v33 }
 0xbf0   : > { %7326 = vmatprep.subr.bf16.mxu0 %v7957_v0 }
 0xbf3   : > { %7327 = vmatpush3.bf16.msra.mxu0 %v7709_v19 }
 0xbf4   : > { %7328 = vmatprep.subr.bf16.mxu0 %v7957_v0 }
 0xbf7   : > { %7329 = vmatpush3.bf16.msra.mxu0 %v7710_v50 }
 0xbf8   : > { %7330 = vmatprep.subr.bf16.mxu0 %v7957_v0 }
 0xbfb   : > { %7331 = vmatpush3.bf16.msra.mxu0 %v7711_v23 }
 0xc71   : > { %v5853_v24 = vpop.f32.mrb[72].mxu0 }
 0xc72   : > { %v7252_v10 = vpop.f32.mrb[73].mxu0  ;;  %v6181_v31 = vpack.c.bf16 %v5853_v24, %v5853_v24 }
 0xc73   : > { %v5856_v39 = vpop.f32.mrb[74].mxu0 }
 0xc74   : > { %v7253_v54 = vpop.f32.mrb[75].mxu0  ;;  %v6318_v27 = vunpack.c.l.b16 %v6181_v31 }
 0xc79   : > { %v5899_v60 = vpop.f32.mrb[92].mxu1 }
 0xc7a   : > { %v6182_v34 = vpack.c.bf16 %v5899_v60, %v5899_v60  ;;  %v7258_v6 = vpop.f32.mrb[93].mxu1 }
 0xc7b   : > { %v5902_v5 = vpop.f32.mrb[94].mxu1 }
 0xc7c   : > { %v6319_v28 = vunpack.c.l.b16 %v6182_v34  ;;  %v7259_v63 = vpop.f32.mrb[95].mxu1 }
 0xc7e   : > { %v6326_v8 = vrot.slane %v6319_v28, 7 }
 0xc80   : > { %v6328_v0 = vsel %vm6327_vm4, %v6326_v8, %v6318_v27 }
 0xc81   : > { %v5945_v7 = vpop.f32.mrb[76].mxu0 }
 0xc82   : > { %v6183_v37 = vpack.c.bf16 %v5945_v7, %v5945_v7  ;;  %v7264_v3 = vpop.f32.mrb[77].mxu0 }
 0xc83   : > { %v5948_v36 = vpop.f32.mrb[78].mxu0 }
 0xc84   : > { %v6320_v45 = vunpack.c.l.b16 %v6183_v37  ;;  %v7265_v43 = vpop.f32.mrb[79].mxu0 }
 0xc86   : > { %v6329_v42 = vrot.slane %v6320_v45, 6 }
 0xc88   : > { %v6331_v56 = vsel %vm6330_vm5, %v6329_v42, %v6328_v0 }
 0xc89   : > { %v5991_v46 = vpop.f32.mrb[96].mxu1  ;;  %v6037_v47 = vpop.f32.mrb[80].mxu0 }
 0xc8a   : > { %v6184_v44 = vpack.c.bf16 %v5991_v46, %v5991_v46  ;;  %v6185_v22 = vpack.c.bf16 %v6037_v47, %v6037_v47  ;;  %v7270_v35 = vpop.f32.mrb[97].mxu1  ;;  %v7276_v41 = vpop.f32.mrb[81].mxu0 }
 0xc8b   : > { %v5994_v32 = vpop.f32.mrb[98].mxu1  ;;  %v6040_v38 = vpop.f32.mrb[82].mxu0 }
 0xc8c   : > { %v6321_v14 = vunpack.c.l.b16 %v6184_v44  ;;  %v6322_v53 = vunpack.c.l.b16 %v6185_v22  ;;  %v7271_v25 = vpop.f32.mrb[99].mxu1  ;;  %v7277_v26 = vpop.f32.mrb[83].mxu0 }
 0xc8e   : > { %v6332_v17 = vrot.slane %v6321_v14, 5  ;;  %v6335_v15 = vrot.slane %v6322_v53, 4 }
 0xc90   : > { %v6334_v11 = vsel %vm6333_vm6, %v6332_v17, %v6331_v56 }
 0xc91   : > { %v6337_v59 = vsel %vm6336_vm7, %v6335_v15, %v6334_v11  ;;  %v6083_v9 = vpop.f32.mrb[100].mxu1  ;;  %v6129_v13 = vpop.f32.mrb[84].mxu0 }
 0xc92   : > { %v6186_v62 = vpack.c.bf16 %v6083_v9, %v6083_v9  ;;  %v6187_v2 = vpack.c.bf16 %v6129_v13, %v6129_v13  ;;  %v7282_v48 = vpop.f32.mrb[101].mxu1  ;;  %v7288_v16 = vpop.f32.mrb[85].mxu0 }
 0xc93   : > { %v6086_v4 = vpop.f32.mrb[102].mxu1  ;;  %v6132_v51 = vpop.f32.mrb[86].mxu0 }
 0xc94   : > { %v6323_v61 = vunpack.c.l.b16 %v6186_v62  ;;  %v6324_v52 = vunpack.c.l.b16 %v6187_v2  ;;  %v7283_v57 = vpop.f32.mrb[103].mxu1  ;;  %v7289_v1 = vpop.f32.mrb[87].mxu0 }
 0xc96   : > { %v6338_v58 = vrot.slane %v6323_v61, 3  ;;  %v6341_v29 = vrot.slane %v6324_v52, 2 }
 0xc98   : > { %v6340_v18 = vsel %vm6339_vm8, %v6338_v58, %v6337_v59 }
 0xc99   : > { %v6343_v30 = vsel %vm6342_vm9, %v6341_v29, %v6340_v18  ;;  %v6175_v20 = vpop.f32.mrb[104].mxu1 }
 0xc9a   : > { %v6188_v49 = vpack.c.bf16 %v6175_v20, %v6175_v20  ;;  %v7294_v40 = vpop.f32.mrb[105].mxu1 }
 0xc9b   : > { %v6178_v55 = vpop.f32.mrb[106].mxu1 }
 0xc9c   : > { %v6325_v21 = vunpack.c.l.b16 %v6188_v49  ;;  %v7295_v12 = vpop.f32.mrb[107].mxu1 }
 0xc9e   : > { %v6344_v33 = vrot.slane %v6325_v21, 1 }
 0xca0   : > { %v6346_v19 = vsel %vm6345_vm10, %v6344_v33, %v6343_v30 }
 0xca1   : > { %v6347_v50 = vpack.c.b16 %v6346_v19, %v6346_v19 }
 0xca3   : > { %7333 = vmatmul.mubr.bf16.vlgmr.msra.gmra.mrb[88].mxu0 %v6347_v50 }
 0xd76   : > { %v6431_v23 = vpop.f32.mrb[88].mxu0 }
 0xd77   : > { %7872 = vtanh.f32 %v6431_v23  ;;  %v7334_v24 = vpop.f32.mrb[89].mxu0 }
 0xd78   : > { %v6434_v10 = vpop.f32.mrb[90].mxu0 }
 0xd79   : > { %v7335_v39 = vpop.f32.mrb[91].mxu0 }
 0xd81   : > { %v7873_v54 = vpop.eup %7872 }
 0xd82   : > { %6438 = vst [vmem:[#allocation4] sm:$0xff] %v7873_v54  ;;  %6439 = vst [vmem:[%s326_s21] sm:$0xff] %v7873_v54 }
 0xd83   : > { %7888 = shalt.err (!%p7885_p5)
}
 0xd84   : > { %s7889_s19 = scalar_lea.hbm %s10011_s26, 128  ;;  %s7893_s22 = scalar_lea.hbm %s10070_s8, 1024 }
 0xd85   : > { %p7890_p6 = scmp.ne.s32.totalorder %s10011_s26, %s7889_s19  ;;  %p7894_p10 = scmp.lt.u32.totalorder %s10011_s26, %s10070_s8 }
 0xd86   : > { %p7895_p11 = scmp.lt.u32.totalorder %s7893_s22, %s7889_s19  ;;  %p7897_p13 = scmp.lt.u32.totalorder %s7889_s19, %s10011_s26 }
 0xd87   : > { %p7891_p7 = pnand %p7890_p6, %p8046_p4 }
 0xd88   : > { %p7896_p12 = por %p7895_p11, %p7894_p10 }
 0xd89   : > { %p7892_p9 = pneg %p7891_p7 }
 0xd8a   : > { %p7898_p0 = por %p7897_p13, %p7896_p12 }
 0xd8c   : > { %p7899_p1 = pnand %p7898_p0, %p7892_p9 }
 0xd8e   : > { %7902 = shalt.err (!%p7899_p1)
}
 0xd8f   : > { %7340 = dma.vmem_to_hbm [thread:$0]  (%p8046_p4), %s10013_s23, 128, %s10011_s26, %s6441_s11  }
 0xd90 PF: > { %p7346_p2 = scmp.ge.s32.totalorder %s7953_s10, 2  ;;  %s6467_s12 = sand.u32 1, %s7933_s27  }
 0xd91   : > { %s6468_s30 = scalar_lea.sflag [#allocation6], %s6467_s12 }
 0xd92   : > { %p7343_p3 = pnand %p7346_p2, %p8053_p8 }
 0xd94   : > { %7928 = dma.done.wait (!%p7343_p3), %s6468_s30, 128  }
 0xd95   : > { %7930 = vsyncadd (!%p7343_p3), %s6468_s30, 4294967168  ;;  %s21_s10 = sadd.s32 1, %s7953_s10   ;;  %s10275_s27 = smov %s7937_s28 }
 0xd96   : > { %p18_p5 = scmp.ge.s32.totalorder %s21_s10, 10   ;;  %s10276_s28 = smov %s7941_s29 }
 0xd97   : > { %s10277_s29 = smov %s8059_s18  ;;  %s10278_s30 = smov %s7949_s9 }
 0xd98   : > { %s10279_s9 = smov %s10281_s13  ;;  %20 = sbr.rel (!%p18_p5) target bundleno = 4 (0x4), region = 108 }
 0xd9f   :  { %6473 = vsyncpa [#allocation6], 1 }
 0xda0   :  { %6475 = vsyncpa [#allocation6 + $0x1], 1 }

</bundles_post_ra>
